<compile_context>
chip_gen: v7x
topology: tpu7x:2x2x1
jax: 0.10.0
libtpu: 0.0.40
codegen_flags: <defaults>
</compile_context>

<pallas_src>
import functools

import numpy as np
import jax
import jax.numpy as jnp
from jax import lax
from jax.experimental import pallas as pl
from jax.experimental.pallas import tpu as pltpu

_HP = lax.Precision.HIGHEST


# ----------------------------------------------------------------------------
# Small helpers
# ----------------------------------------------------------------------------
def _attn_dims(c):
    # C2PSA: PSABlock(c, attn_ratio=0.5, num_heads=c // 64)
    nh = c // 64
    hd = c // nh
    kd = int(hd * 0.5)
    return nh, hd, kd


def _pe_pad(W):
    # sublane padding for the depthwise-3x3 scratch (>= W+1, multiple of 8)
    return ((W + 1 + 7) // 8) * 8


def _fold_bn(w, bn):
    """Fold eval-mode BatchNorm into the (bias-free) conv weight -> (w_eff, b_eff)."""
    g, beta, rm, rv, eps = bn
    s = g * lax.rsqrt(rv + eps)
    w_eff = w * s.reshape((s.shape[0],) + (1,) * (w.ndim - 1))
    b_eff = beta - rm * s
    return w_eff, b_eff


def _make_pe_masks(H, W):
    """(N, 9) f32 validity masks for the 9 taps of a 'same'-padded 3x3 dw conv."""
    N = H * W
    i = np.arange(N) // W
    j = np.arange(N) % W
    m = np.zeros((N, 9), np.float32)
    for t in range(9):
        di, dj = t // 3 - 1, t % 3 - 1
        m[:, t] = ((i + di >= 0) & (i + di < H) & (j + dj >= 0) & (j + dj < W))
    return jnp.asarray(m)


def _replicated_spec(shape):
    nd = len(shape)
    return pl.BlockSpec(shape, lambda b, _nd=nd: (0,) * _nd)


# ----------------------------------------------------------------------------
# In-kernel math helpers
# ----------------------------------------------------------------------------
def _mm(a, b):
    # bf16 x bf16 -> f32 accumulation on the MXU.
    return jnp.dot(a, b, preferred_element_type=jnp.float32)


def _silu(x):
    # sigmoid = exp (EUP) + approx reciprocal (EUP); only the mul hits the VPU.
    return x * pl.reciprocal(1.0 + jnp.exp(-x), approx=True)


def _softmax_rows(x):
    m = jnp.max(x, axis=-1, keepdims=True)
    e = jnp.exp(x - m)
    s = jnp.sum(e, axis=-1, keepdims=True)
    return e * pl.reciprocal(s, approx=True)


# ----------------------------------------------------------------------------
# Fused C2PSA Pallas kernel (one batch element per grid step)
# ----------------------------------------------------------------------------
def _c2psa_kernel(x_ref, w1_ref, wqkv_ref, mw_ref, wp_ref, wf1_ref, wf2_ref,
                  w2_ref, bias_ref, o_ref, vp_ref, *, c, nh, kd, hd, H, W):
    N = H * W
    pad = _pe_pad(W)
    nkd = nh * kd
    h = c + 2 * nkd
    c1 = w2_ref.shape[1]
    bf16 = jnp.bfloat16

    # Packed f32 bias table -> individual (1, width) rows.
    bias = bias_ref[...]                                      # (8, BW)
    b_cv1 = bias[0:1, :2 * c]
    b_qkv = bias[1:2, :h]
    b_ffn1 = bias[2:3, :2 * c]
    b_cv2 = bias[3:4, :c1]
    b_pe = bias[4:5, :c]
    b_proj = bias[5:6, :c]
    b_ffn2 = bias[6:7, :c]

    # ---- NCHW tile -> (pixels, channels); transpose rides the XLU ----------
    x_nc = jnp.transpose(x_ref[0], (1, 0)).astype(bf16)       # (N, C1) bf16

    # ---- cv1: fused 1x1 conv (+BN +SiLU), one full 2c-lane output ----------
    ab = _silu(_mm(x_nc, w1_ref[...]) + b_cv1)                # (N, 2c) f32
    a = ab[:, :c]                                             # (N, c) f32
    bcur = ab[:, c:]                                          # (N, c) f32

    # ---- PSABlock.attn: fused qkv (columns = [q|k|v], scale folded in q) ---
    qkv = _mm(bcur.astype(bf16), wqkv_ref[...]) + b_qkv       # (N, h) f32
    q_all = qkv[:, :nkd].astype(bf16)
    k_all = qkv[:, nkd:2 * nkd].astype(bf16)
    v_f32 = qkv[:, 2 * nkd:]                                  # (N, c) f32
    v_bf = v_f32.astype(bf16)

    # Attention per head, processed in 128-query-row chunks so the (N, N)
    # score temporaries stay small and exp/p@v can overlap.
    qc = 128 if (N > 128 and N % 128 == 0) else N
    heads = []
    for hh in range(nh):                                      # static, nh = c//64
        q = q_all[:, hh * kd:(hh + 1) * kd]                   # (N, kd) bf16
        k = k_all[:, hh * kd:(hh + 1) * kd]                   # (N, kd) bf16
        v = v_bf[:, hh * hd:(hh + 1) * hd]                    # (N, hd) bf16
        parts = []
        for r0 in range(0, N, qc):                            # static chunk loop
            s = lax.dot_general(q[r0:r0 + qc], k, (((1,), (1,)), ((), ())),
                                preferred_element_type=jnp.float32)
            p = _softmax_rows(s).astype(bf16)                 # (qc, N)
            parts.append(_mm(p, v))                           # (qc, hd) f32
        heads.append(parts[0] if len(parts) == 1
                     else jnp.concatenate(parts, axis=0))
    out_v = heads[0] if nh == 1 else jnp.concatenate(heads, axis=1)

    # pe: depthwise 3x3 conv (+ folded BN) realized as 9 statically shifted
    # reads of a zero-padded VMEM scratch; border masks are pre-multiplied
    # into the per-tap weights (mw), so each tap is a single mul-add.
    zpad = jnp.zeros((pad, c), jnp.float32)
    vp_ref[pl.ds(0, pad), :] = zpad                  # only the pads are zeroed
    vp_ref[pl.ds(pad + N, pad), :] = zpad
    vp_ref[pl.ds(pad, N), :] = v_f32
    pe = jnp.zeros((N, c), jnp.float32)
    for t in range(9):                                        # static tap loop
        di, dj = t // 3 - 1, t % 3 - 1
        tap = vp_ref[pl.ds(pad + di * W + dj, N), :]          # (N, c)
        pe = pe + tap * mw_ref[t]
    x_att = (out_v + pe + b_pe).astype(bf16)

    # proj (1x1 conv + BN) and the attention shortcut.
    bcur = bcur + _mm(x_att, wp_ref[...]) + b_proj            # (N, c) f32

    # ---- PSABlock.ffn (+ shortcut) ------------------------------------------
    f = _silu(_mm(bcur.astype(bf16), wf1_ref[...]) + b_ffn1)  # (N, 2c)
    bcur = bcur + _mm(f.astype(bf16), wf2_ref[...]) + b_ffn2  # (N, c)

    # ---- cv2 over cat(a, b): single 2c-deep-K, 128-lane-output dot ----------
    ab2 = jnp.concatenate([a, bcur], axis=1).astype(bf16)     # (N, 2c)
    out = _silu(_mm(ab2, w2_ref[...]) + b_cv2)                # (N, C1) f32

    # ---- (pixels, channels) -> NCHW tile for a lane-dense store -------------
    o_ref[0] = jnp.transpose(out, (1, 0)).astype(o_ref.dtype)


def c2psa_forward_pallas(p, x):
    B, C1, H, W = x.shape
    N = H * W
    c = p["proj_w"].shape[0]
    nh, hd, kd = _attn_dims(c)
    phd = 2 * kd + hd
    nkd = nh * kd
    h = c + 2 * nkd
    scale = float(kd) ** -0.5
    pad = _pe_pad(W)
    bf16 = jnp.bfloat16

    # ---- host-side BN folding + channels-last bf16 weights ------------------
    w_cv1, b_cv1 = _fold_bn(p["cv1_w"], p["cv1_bn"])          # (2c, C1)
    w1 = w_cv1.T.astype(bf16)                                 # (C1, 2c) fused a|b
    w_cv2, b_cv2 = _fold_bn(p["cv2_w"], p["cv2_bn"])          # (C1, 2c)
    w2 = w_cv2.T.astype(bf16)                                 # (2c, C1) fused cat(a,b)

    # qkv: reorder output channels to [q heads | k heads | v heads] and fold
    # the attention scale into the q columns (kills the N*N VPU multiply).
    w_qkv, b_qkv = _fold_bn(p["qkv_w"], p["qkv_bn"])          # (h, c)
    q_idx = np.concatenate([np.arange(g * phd, g * phd + kd) for g in range(nh)])
    k_idx = q_idx + kd
    v_idx = np.concatenate([np.arange(g * phd + 2 * kd, (g + 1) * phd)
                            for g in range(nh)])
    perm = np.concatenate([q_idx, k_idx, v_idx])
    colscale = np.ones((h,), np.float32)
    colscale[:nkd] = scale
    colscale = jnp.asarray(colscale)
    w_qkv_p = w_qkv[perm] * colscale[:, None]
    b_qkv_p = b_qkv[perm] * colscale
    wqkv = w_qkv_p.T.astype(bf16)                             # (c, h)

    # pe: fold BN, pre-multiply the 9 tap-validity masks into the tap weights.
    w_pe, b_pe = _fold_bn(p["pe_w"], p["pe_bn"])              # (c, 3, 3)
    pew = w_pe.reshape(c, 9).T                                # (9, c)
    masks = _make_pe_masks(H, W)                              # (N, 9)
    mw = masks.T[:, :, None] * pew[:, None, :]                # (9, N, c) f32

    w_proj, b_proj = _fold_bn(p["proj_w"], p["proj_bn"])
    wp = w_proj.T.astype(bf16)
    w_f1, b_f1 = _fold_bn(p["ffn1_w"], p["ffn1_bn"])
    wf1 = w_f1.T.astype(bf16)
    w_f2, b_f2 = _fold_bn(p["ffn2_w"], p["ffn2_bn"])
    wf2 = w_f2.T.astype(bf16)

    # Pack every small bias row into one f32 table (fewer tiny replicated DMAs).
    BW = ((max(C1, 2 * c, h) + 127) // 128) * 128
    def _row(v):
        return jnp.zeros((BW,), jnp.float32).at[:v.shape[0]].set(v)
    bias_tab = jnp.stack([_row(b_cv1), _row(b_qkv_p), _row(b_f1), _row(b_cv2),
                          _row(b_pe), _row(b_proj), _row(b_f2),
                          jnp.zeros((BW,), jnp.float32)])      # (8, BW)

    # Only a free reshape on the host — the NCHW<->(N,C) transpose is in-kernel.
    xr = x.reshape(B, C1, N)

    args = (xr, w1, wqkv, mw, wp, wf1, wf2, w2, bias_tab)
    in_specs = [pl.BlockSpec((1, C1, N), lambda b: (b, 0, 0))]
    in_specs += [_replicated_spec(a.shape) for a in args[1:]]

    kern = functools.partial(_c2psa_kernel, c=c, nh=nh, kd=kd, hd=hd, H=H, W=W)

    out = pl.pallas_call(
        kern,
        out_shape=jax.ShapeDtypeStruct((B, C1, N), jnp.float32),
        grid=(B,),
        in_specs=in_specs,
        out_specs=pl.BlockSpec((1, C1, N), lambda b: (b, 0, 0)),
        scratch_shapes=[pltpu.VMEM((N + 2 * pad, c), jnp.float32)],
        compiler_params=pltpu.CompilerParams(
            dimension_semantics=("parallel",),
            vmem_limit_bytes=32 * 1024 * 1024),
    )(*args)

    return out.reshape(B, C1, H, W)


# ----------------------------------------------------------------------------
# Pure-JAX reference (mirrors the PyTorch module structure, eval-mode BN)
# ----------------------------------------------------------------------------
def _silu_ref(x):
    return x * jax.nn.sigmoid(x)


def _bn_apply(y, bn):
    g, beta, rm, rv, eps = bn
    s = g * lax.rsqrt(rv + eps)
    return y * s[None, :, None, None] + (beta - rm * s)[None, :, None, None]


def _conv1x1_bn(x, w, bn, act):
    y = jnp.einsum("oc,bchw->bohw", w, x, precision=_HP)
    y = _bn_apply(y, bn)
    return _silu_ref(y) if act else y


def _dwconv3x3_bn(x, w, bn):
    C = x.shape[1]
    y = lax.conv_general_dilated(
        x, w[:, None], (1, 1), "SAME",
        dimension_numbers=("NCHW", "OIHW", "NCHW"),
        feature_group_count=C, precision=_HP)
    return _bn_apply(y, bn)


def _attention_ref(p, x, nh, kd, hd):
    B, C, H, W = x.shape
    N = H * W
    scale = float(kd) ** -0.5
    qkv = _conv1x1_bn(x, p["qkv_w"], p["qkv_bn"], act=False)
    qkv = qkv.reshape(B, nh, 2 * kd + hd, N)
    q, k, v = qkv[:, :, :kd], qkv[:, :, kd:2 * kd], qkv[:, :, 2 * kd:]
    attn = jnp.einsum("bhdm,bhdn->bhmn", q, k, precision=_HP) * scale
    attn = jax.nn.softmax(attn, axis=-1)
    xo = jnp.einsum("bhdn,bhmn->bhdm", v, attn, precision=_HP).reshape(B, C, H, W)
    xo = xo + _dwconv3x3_bn(v.reshape(B, C, H, W), p["pe_w"], p["pe_bn"])
    return _conv1x1_bn(xo, p["proj_w"], p["proj_bn"], act=False)


def _psablock_ref(p, x, nh, kd, hd):
    x = x + _attention_ref(p, x, nh, kd, hd)
    f = _conv1x1_bn(x, p["ffn1_w"], p["ffn1_bn"], act=True)
    f = _conv1x1_bn(f, p["ffn2_w"], p["ffn2_bn"], act=False)
    return x + f


def c2psa_forward_ref(p, x):
    c = p["proj_w"].shape[0]
    nh, hd, kd = _attn_dims(c)
    y = _conv1x1_bn(x, p["cv1_w"], p["cv1_bn"], act=True)
    a, b = y[:, :c], y[:, c:]
    b = _psablock_ref(p, b, nh, kd, hd)
    return _conv1x1_bn(jnp.concatenate([a, b], axis=1),
                       p["cv2_w"], p["cv2_bn"], act=True)


# ----------------------------------------------------------------------------
# Deterministic parameter init (shapes follow C2PSA(c1, c2, n=1, e=0.5))
# ----------------------------------------------------------------------------
def init_params(key, c1, e=0.5):
    c = int(c1 * e)
    nh, hd, kd = _attn_dims(c)
    h = c + 2 * nh * kd
    ks = jax.random.split(key, 16)

    def w(k, co, ci):
        return jax.random.normal(k, (co, ci), jnp.float32) * (ci ** -0.5)

    def bn(k, n):
        k1, k2, k3, k4 = jax.random.split(k, 4)
        g = 1.0 + 0.2 * jax.random.normal(k1, (n,), jnp.float32)
        beta = 0.1 * jax.random.normal(k2, (n,), jnp.float32)
        rm = 0.1 * jax.random.normal(k3, (n,), jnp.float32)
        rv = jax.random.uniform(k4, (n,), jnp.float32, 0.5, 1.5)
        return (g, beta, rm, rv, 1e-5)

    return dict(
        cv1_w=w(ks[0], 2 * c, c1), cv1_bn=bn(ks[1], 2 * c),
        qkv_w=w(ks[2], h, c), qkv_bn=bn(ks[3], h),
        pe_w=jax.random.normal(ks[4], (c, 3, 3), jnp.float32) / 3.0,
        pe_bn=bn(ks[5], c),
        proj_w=w(ks[6], c, c), proj_bn=bn(ks[7], c),
        ffn1_w=w(ks[8], 2 * c, c), ffn1_bn=bn(ks[9], 2 * c),
        ffn2_w=w(ks[10], c, 2 * c), ffn2_bn=bn(ks[11], c),
        cv2_w=w(ks[12], c1, 2 * c), cv2_bn=bn(ks[13], c1),
    )


# ----------------------------------------------------------------------------
if __name__ == "__main__":
    C1, E = 128, 0.5          # c = 64 -> num_heads = 1, head_dim = 64, key_dim = 32
    B, H, W = 2, 16, 16       # N = H*W = 256

    key = jax.random.PRNGKey(0)
    kx, kp = jax.random.split(key)
    x = jax.random.normal(kx, (B, C1, H, W), jnp.float32)
    params = init_params(kp, C1, E)

    out = c2psa_forward_pallas(params, x)
    out = jax.block_until_ready(out)

    ref = c2psa_forward_ref(params, x)
    ref = jax.block_until_ready(ref)

    assert out.shape == (B, C1, H, W), out.shape
    np.testing.assert_allclose(np.asarray(out), np.asarray(ref),
                               rtol=5e-2, atol=5e-2)
    print("KERNEL_OK")
</pallas_src>

<mosaic_0001>
module attributes {stable_mosaic.version = 11 : i64} {
  func.func @_c2psa_kernel(%arg0: i32, %arg1: memref<1x128x256xf32, #tpu.memory_space<vmem>>, %arg2: memref<128x128xbf16, #tpu.memory_space<vmem>>, %arg3: memref<64x128xbf16, #tpu.memory_space<vmem>>, %arg4: memref<9x256x64xf32, #tpu.memory_space<vmem>>, %arg5: memref<64x64xbf16, #tpu.memory_space<vmem>>, %arg6: memref<64x128xbf16, #tpu.memory_space<vmem>>, %arg7: memref<128x64xbf16, #tpu.memory_space<vmem>>, %arg8: memref<128x128xbf16, #tpu.memory_space<vmem>>, %arg9: memref<8x128xf32, #tpu.memory_space<vmem>>, %arg10: memref<1x128x256xf32, #tpu.memory_space<vmem>>, %arg11: memref<304x64xf32, #tpu.memory_space<vmem>>) attributes {dimension_semantics = [#tpu.dimension_semantics<parallel>], iteration_bounds = array<i64: 2>, scalar_prefetch = 0 : i64, scratch_operands = 1 : i64, tpu.core_type = #tpu.core_type<tc>, window_params = [{transform_indices = @transform_0, window_bounds = array<i64: 1, 128, 256>}, {pipeline_mode = #tpu.pipeline_mode<synchronous>, transform_indices = @transform_1, window_bounds = array<i64: 128, 128>}, {pipeline_mode = #tpu.pipeline_mode<synchronous>, transform_indices = @transform_2, window_bounds = array<i64: 64, 128>}, {pipeline_mode = #tpu.pipeline_mode<synchronous>, transform_indices = @transform_3, window_bounds = array<i64: 9, 256, 64>}, {pipeline_mode = #tpu.pipeline_mode<synchronous>, transform_indices = @transform_4, window_bounds = array<i64: 64, 64>}, {pipeline_mode = #tpu.pipeline_mode<synchronous>, transform_indices = @transform_5, window_bounds = array<i64: 64, 128>}, {pipeline_mode = #tpu.pipeline_mode<synchronous>, transform_indices = @transform_6, window_bounds = array<i64: 128, 64>}, {pipeline_mode = #tpu.pipeline_mode<synchronous>, transform_indices = @transform_7, window_bounds = array<i64: 128, 128>}, {pipeline_mode = #tpu.pipeline_mode<synchronous>, transform_indices = @transform_8, window_bounds = array<i64: 8, 128>}, {transform_indices = @transform_9, window_bounds = array<i64: 1, 128, 256>}]} {
    %c0 = arith.constant 0 : index
    %c0_0 = arith.constant 0 : index
    %0 = vector.load %arg9[%c0, %c0_0] : memref<8x128xf32, #tpu.memory_space<vmem>>, vector<8x128xf32>
    %1 = vector.extract_strided_slice %0 {offsets = [0, 0], sizes = [1, 128], strides = [1, 1]} : vector<8x128xf32> to vector<1x128xf32>
    %2 = vector.extract_strided_slice %0 {offsets = [1, 0], sizes = [1, 128], strides = [1, 1]} : vector<8x128xf32> to vector<1x128xf32>
    %3 = vector.extract_strided_slice %0 {offsets = [2, 0], sizes = [1, 128], strides = [1, 1]} : vector<8x128xf32> to vector<1x128xf32>
    %4 = vector.extract_strided_slice %0 {offsets = [3, 0], sizes = [1, 128], strides = [1, 1]} : vector<8x128xf32> to vector<1x128xf32>
    %5 = vector.extract_strided_slice %0 {offsets = [4, 0], sizes = [1, 64], strides = [1, 1]} : vector<8x128xf32> to vector<1x64xf32>
    %6 = vector.extract_strided_slice %0 {offsets = [5, 0], sizes = [1, 64], strides = [1, 1]} : vector<8x128xf32> to vector<1x64xf32>
    %7 = vector.extract_strided_slice %0 {offsets = [6, 0], sizes = [1, 64], strides = [1, 1]} : vector<8x128xf32> to vector<1x64xf32>
    %c0_1 = arith.constant 0 : index
    %c0_2 = arith.constant 0 : index
    %c0_3 = arith.constant 0 : index
    %8 = vector.load %arg1[%c0_1, %c0_2, %c0_3] : memref<1x128x256xf32, #tpu.memory_space<vmem>>, vector<1x128x256xf32>
    %9 = vector.shape_cast %8 : vector<1x128x256xf32> to vector<128x256xf32>
    %10 = tpu.transpose %9, [1, 0] : vector<128x256xf32> -> vector<256x128xf32>
    %11 = arith.truncf %10 : vector<256x128xf32> to vector<256x128xbf16>
    %c0_4 = arith.constant 0 : index
    %c0_5 = arith.constant 0 : index
    %12 = vector.load %arg2[%c0_4, %c0_5] : memref<128x128xbf16, #tpu.memory_space<vmem>>, vector<128x128xbf16>
    %cst = arith.constant dense<0.000000e+00> : vector<256x128xf32>
    %13 = tpu.matmul %11, %12, %cst {dimension_numbers = #tpu.dot_dimension_numbers<[1], [0], [0], [1], [0, 0, 1, 1], [], []>} : vector<256x128xbf16>, vector<128x128xbf16>, vector<256x128xf32> -> vector<256x128xf32>
    %14 = vector.broadcast %1 : vector<1x128xf32> to vector<256x128xf32>
    %15 = arith.addf %13, %14 : vector<256x128xf32>
    %cst_6 = arith.constant 0.000000e+00 : f32
    %16 = vector.broadcast %cst_6 : f32 to vector<256x128xf32>
    %17 = arith.subf %16, %15 : vector<256x128xf32>
    %18 = math.exp %17 : vector<256x128xf32>
    %cst_7 = arith.constant 1.000000e+00 : f32
    %19 = vector.broadcast %cst_7 : f32 to vector<256x128xf32>
    %20 = arith.addf %19, %18 : vector<256x128xf32>
    %21 = tpu.reciprocal %20 {approx = true} : vector<256x128xf32> -> vector<256x128xf32>
    %22 = arith.mulf %15, %21 : vector<256x128xf32>
    %23 = vector.extract_strided_slice %22 {offsets = [0, 0], sizes = [256, 64], strides = [1, 1]} : vector<256x128xf32> to vector<256x64xf32>
    %24 = vector.extract_strided_slice %22 {offsets = [0, 64], sizes = [256, 64], strides = [1, 1]} : vector<256x128xf32> to vector<256x64xf32>
    %25 = arith.truncf %24 : vector<256x64xf32> to vector<256x64xbf16>
    %c0_8 = arith.constant 0 : index
    %c0_9 = arith.constant 0 : index
    %26 = vector.load %arg3[%c0_8, %c0_9] : memref<64x128xbf16, #tpu.memory_space<vmem>>, vector<64x128xbf16>
    %cst_10 = arith.constant dense<0.000000e+00> : vector<256x128xf32>
    %27 = tpu.matmul %25, %26, %cst_10 {dimension_numbers = #tpu.dot_dimension_numbers<[1], [0], [0], [1], [0, 0, 1, 1], [], []>} : vector<256x64xbf16>, vector<64x128xbf16>, vector<256x128xf32> -> vector<256x128xf32>
    %28 = vector.broadcast %2 : vector<1x128xf32> to vector<256x128xf32>
    %29 = arith.addf %27, %28 : vector<256x128xf32>
    %30 = vector.extract_strided_slice %29 {offsets = [0, 0], sizes = [256, 32], strides = [1, 1]} : vector<256x128xf32> to vector<256x32xf32>
    %31 = arith.truncf %30 : vector<256x32xf32> to vector<256x32xbf16>
    %32 = vector.extract_strided_slice %29 {offsets = [0, 32], sizes = [256, 32], strides = [1, 1]} : vector<256x128xf32> to vector<256x32xf32>
    %33 = arith.truncf %32 : vector<256x32xf32> to vector<256x32xbf16>
    %34 = vector.extract_strided_slice %29 {offsets = [0, 64], sizes = [256, 64], strides = [1, 1]} : vector<256x128xf32> to vector<256x64xf32>
    %35 = arith.truncf %34 : vector<256x64xf32> to vector<256x64xbf16>
    %36 = vector.extract_strided_slice %31 {offsets = [0, 0], sizes = [128, 32], strides = [1, 1]} : vector<256x32xbf16> to vector<128x32xbf16>
    %cst_11 = arith.constant dense<0.000000e+00> : vector<128x256xf32>
    %37 = tpu.matmul %36, %33, %cst_11 {dimension_numbers = #tpu.dot_dimension_numbers<[1], [1], [0], [0], [0, 0, 1, 0], [], []>} : vector<128x32xbf16>, vector<256x32xbf16>, vector<128x256xf32> -> vector<128x256xf32>
    %cst_12 = arith.constant dense<0xFF800000> : vector<128xf32>
    %38 = vector.multi_reduction <maximumf>, %37, %cst_12 [1] : vector<128x256xf32> to vector<128xf32>
    %39 = vector.shape_cast %38 : vector<128xf32> to vector<128x1xf32>
    %40 = vector.broadcast %39 : vector<128x1xf32> to vector<128x256xf32>
    %41 = arith.subf %37, %40 : vector<128x256xf32>
    %42 = math.exp %41 : vector<128x256xf32>
    %cst_13 = arith.constant dense<0.000000e+00> : vector<128xf32>
    %43 = vector.multi_reduction <add>, %42, %cst_13 [1] : vector<128x256xf32> to vector<128xf32>
    %44 = vector.shape_cast %43 : vector<128xf32> to vector<128x1xf32>
    %45 = tpu.reciprocal %44 {approx = true} : vector<128x1xf32> -> vector<128x1xf32>
    %46 = vector.broadcast %45 : vector<128x1xf32> to vector<128x256xf32>
    %47 = arith.mulf %42, %46 : vector<128x256xf32>
    %48 = arith.truncf %47 : vector<128x256xf32> to vector<128x256xbf16>
    %cst_14 = arith.constant dense<0.000000e+00> : vector<128x64xf32>
    %49 = tpu.matmul %48, %35, %cst_14 {dimension_numbers = #tpu.dot_dimension_numbers<[1], [0], [0], [1], [0, 0, 1, 1], [], []>} : vector<128x256xbf16>, vector<256x64xbf16>, vector<128x64xf32> -> vector<128x64xf32>
    %50 = vector.extract_strided_slice %31 {offsets = [128, 0], sizes = [128, 32], strides = [1, 1]} : vector<256x32xbf16> to vector<128x32xbf16>
    %cst_15 = arith.constant dense<0.000000e+00> : vector<128x256xf32>
    %51 = tpu.matmul %50, %33, %cst_15 {dimension_numbers = #tpu.dot_dimension_numbers<[1], [1], [0], [0], [0, 0, 1, 0], [], []>} : vector<128x32xbf16>, vector<256x32xbf16>, vector<128x256xf32> -> vector<128x256xf32>
    %cst_16 = arith.constant dense<0xFF800000> : vector<128xf32>
    %52 = vector.multi_reduction <maximumf>, %51, %cst_16 [1] : vector<128x256xf32> to vector<128xf32>
    %53 = vector.shape_cast %52 : vector<128xf32> to vector<128x1xf32>
    %54 = vector.broadcast %53 : vector<128x1xf32> to vector<128x256xf32>
    %55 = arith.subf %51, %54 : vector<128x256xf32>
    %56 = math.exp %55 : vector<128x256xf32>
    %cst_17 = arith.constant dense<0.000000e+00> : vector<128xf32>
    %57 = vector.multi_reduction <add>, %56, %cst_17 [1] : vector<128x256xf32> to vector<128xf32>
    %58 = vector.shape_cast %57 : vector<128xf32> to vector<128x1xf32>
    %59 = tpu.reciprocal %58 {approx = true} : vector<128x1xf32> -> vector<128x1xf32>
    %60 = vector.broadcast %59 : vector<128x1xf32> to vector<128x256xf32>
    %61 = arith.mulf %56, %60 : vector<128x256xf32>
    %62 = arith.truncf %61 : vector<128x256xf32> to vector<128x256xbf16>
    %cst_18 = arith.constant dense<0.000000e+00> : vector<128x64xf32>
    %63 = tpu.matmul %62, %35, %cst_18 {dimension_numbers = #tpu.dot_dimension_numbers<[1], [0], [0], [1], [0, 0, 1, 1], [], []>} : vector<128x256xbf16>, vector<256x64xbf16>, vector<128x64xf32> -> vector<128x64xf32>
    %64 = tpu.concatenate %49, %63 in 0 : vector<128x64xf32>, vector<128x64xf32> -> vector<256x64xf32>
    %cst_19 = arith.constant 0.000000e+00 : f32
    %65 = vector.broadcast %cst_19 : f32 to vector<24x64xf32>
    %c0_20 = arith.constant 0 : index
    %c0_21 = arith.constant 0 : index
    %66 = vector.load %arg11[%c0_20, %c0_21] : memref<304x64xf32, #tpu.memory_space<vmem>>, vector<24x64xf32>
    tpu.vector_store %arg11[%c0_20, %c0_21], %65 {strides = array<i32>} : memref<304x64xf32, #tpu.memory_space<vmem>>, vector<24x64xf32>,
    %c280 = arith.constant 280 : index
    %c0_22 = arith.constant 0 : index
    %67 = vector.load %arg11[%c280, %c0_22] : memref<304x64xf32, #tpu.memory_space<vmem>>, vector<24x64xf32>
    tpu.vector_store %arg11[%c280, %c0_22], %65 {strides = array<i32>} : memref<304x64xf32, #tpu.memory_space<vmem>>, vector<24x64xf32>,
    %c24 = arith.constant 24 : index
    %c0_23 = arith.constant 0 : index
    %68 = vector.load %arg11[%c24, %c0_23] : memref<304x64xf32, #tpu.memory_space<vmem>>, vector<256x64xf32>
    tpu.vector_store %arg11[%c24, %c0_23], %34 {strides = array<i32>} : memref<304x64xf32, #tpu.memory_space<vmem>>, vector<256x64xf32>,
    %cst_24 = arith.constant 0.000000e+00 : f32
    %69 = vector.broadcast %cst_24 : f32 to vector<256x64xf32>
    %c7 = arith.constant 7 : index
    %c0_25 = arith.constant 0 : index
    %70 = vector.load %arg11[%c7, %c0_25] : memref<304x64xf32, #tpu.memory_space<vmem>>, vector<256x64xf32>
    %c0_26 = arith.constant 0 : index
    %c0_27 = arith.constant 0 : index
    %c0_28 = arith.constant 0 : index
    %71 = vector.load %arg4[%c0_26, %c0_27, %c0_28] : memref<9x256x64xf32, #tpu.memory_space<vmem>>, vector<1x256x64xf32>
    %72 = vector.shape_cast %71 : vector<1x256x64xf32> to vector<256x64xf32>
    %73 = arith.mulf %70, %72 : vector<256x64xf32>
    %74 = arith.addf %69, %73 : vector<256x64xf32>
    %c8 = arith.constant 8 : index
    %c0_29 = arith.constant 0 : index
    %75 = vector.load %arg11[%c8, %c0_29] : memref<304x64xf32, #tpu.memory_space<vmem>>, vector<256x64xf32>
    %c1 = arith.constant 1 : index
    %c0_30 = arith.constant 0 : index
    %c0_31 = arith.constant 0 : index
    %76 = vector.load %arg4[%c1, %c0_30, %c0_31] : memref<9x256x64xf32, #tpu.memory_space<vmem>>, vector<1x256x64xf32>
    %77 = vector.shape_cast %76 : vector<1x256x64xf32> to vector<256x64xf32>
    %78 = arith.mulf %75, %77 : vector<256x64xf32>
    %79 = arith.addf %74, %78 : vector<256x64xf32>
    %c9 = arith.constant 9 : index
    %c0_32 = arith.constant 0 : index
    %80 = vector.load %arg11[%c9, %c0_32] : memref<304x64xf32, #tpu.memory_space<vmem>>, vector<256x64xf32>
    %c2 = arith.constant 2 : index
    %c0_33 = arith.constant 0 : index
    %c0_34 = arith.constant 0 : index
    %81 = vector.load %arg4[%c2, %c0_33, %c0_34] : memref<9x256x64xf32, #tpu.memory_space<vmem>>, vector<1x256x64xf32>
    %82 = vector.shape_cast %81 : vector<1x256x64xf32> to vector<256x64xf32>
    %83 = arith.mulf %80, %82 : vector<256x64xf32>
    %84 = arith.addf %79, %83 : vector<256x64xf32>
    %c23 = arith.constant 23 : index
    %c0_35 = arith.constant 0 : index
    %85 = vector.load %arg11[%c23, %c0_35] : memref<304x64xf32, #tpu.memory_space<vmem>>, vector<256x64xf32>
    %c3 = arith.constant 3 : index
    %c0_36 = arith.constant 0 : index
    %c0_37 = arith.constant 0 : index
    %86 = vector.load %arg4[%c3, %c0_36, %c0_37] : memref<9x256x64xf32, #tpu.memory_space<vmem>>, vector<1x256x64xf32>
    %87 = vector.shape_cast %86 : vector<1x256x64xf32> to vector<256x64xf32>
    %88 = arith.mulf %85, %87 : vector<256x64xf32>
    %89 = arith.addf %84, %88 : vector<256x64xf32>
    %c24_38 = arith.constant 24 : index
    %c0_39 = arith.constant 0 : index
    %90 = vector.load %arg11[%c24_38, %c0_39] : memref<304x64xf32, #tpu.memory_space<vmem>>, vector<256x64xf32>
    %c4 = arith.constant 4 : index
    %c0_40 = arith.constant 0 : index
    %c0_41 = arith.constant 0 : index
    %91 = vector.load %arg4[%c4, %c0_40, %c0_41] : memref<9x256x64xf32, #tpu.memory_space<vmem>>, vector<1x256x64xf32>
    %92 = vector.shape_cast %91 : vector<1x256x64xf32> to vector<256x64xf32>
    %93 = arith.mulf %90, %92 : vector<256x64xf32>
    %94 = arith.addf %89, %93 : vector<256x64xf32>
    %c25 = arith.constant 25 : index
    %c0_42 = arith.constant 0 : index
    %95 = vector.load %arg11[%c25, %c0_42] : memref<304x64xf32, #tpu.memory_space<vmem>>, vector<256x64xf32>
    %c5 = arith.constant 5 : index
    %c0_43 = arith.constant 0 : index
    %c0_44 = arith.constant 0 : index
    %96 = vector.load %arg4[%c5, %c0_43, %c0_44] : memref<9x256x64xf32, #tpu.memory_space<vmem>>, vector<1x256x64xf32>
    %97 = vector.shape_cast %96 : vector<1x256x64xf32> to vector<256x64xf32>
    %98 = arith.mulf %95, %97 : vector<256x64xf32>
    %99 = arith.addf %94, %98 : vector<256x64xf32>
    %c39 = arith.constant 39 : index
    %c0_45 = arith.constant 0 : index
    %100 = vector.load %arg11[%c39, %c0_45] : memref<304x64xf32, #tpu.memory_space<vmem>>, vector<256x64xf32>
    %c6 = arith.constant 6 : index
    %c0_46 = arith.constant 0 : index
    %c0_47 = arith.constant 0 : index
    %101 = vector.load %arg4[%c6, %c0_46, %c0_47] : memref<9x256x64xf32, #tpu.memory_space<vmem>>, vector<1x256x64xf32>
    %102 = vector.shape_cast %101 : vector<1x256x64xf32> to vector<256x64xf32>
    %103 = arith.mulf %100, %102 : vector<256x64xf32>
    %104 = arith.addf %99, %103 : vector<256x64xf32>
    %c40 = arith.constant 40 : index
    %c0_48 = arith.constant 0 : index
    %105 = vector.load %arg11[%c40, %c0_48] : memref<304x64xf32, #tpu.memory_space<vmem>>, vector<256x64xf32>
    %c7_49 = arith.constant 7 : index
    %c0_50 = arith.constant 0 : index
    %c0_51 = arith.constant 0 : index
    %106 = vector.load %arg4[%c7_49, %c0_50, %c0_51] : memref<9x256x64xf32, #tpu.memory_space<vmem>>, vector<1x256x64xf32>
    %107 = vector.shape_cast %106 : vector<1x256x64xf32> to vector<256x64xf32>
    %108 = arith.mulf %105, %107 : vector<256x64xf32>
    %109 = arith.addf %104, %108 : vector<256x64xf32>
    %c41 = arith.constant 41 : index
    %c0_52 = arith.constant 0 : index
    %110 = vector.load %arg11[%c41, %c0_52] : memref<304x64xf32, #tpu.memory_space<vmem>>, vector<256x64xf32>
    %c8_53 = arith.constant 8 : index
    %c0_54 = arith.constant 0 : index
    %c0_55 = arith.constant 0 : index
    %111 = vector.load %arg4[%c8_53, %c0_54, %c0_55] : memref<9x256x64xf32, #tpu.memory_space<vmem>>, vector<1x256x64xf32>
    %112 = vector.shape_cast %111 : vector<1x256x64xf32> to vector<256x64xf32>
    %113 = arith.mulf %110, %112 : vector<256x64xf32>
    %114 = arith.addf %109, %113 : vector<256x64xf32>
    %115 = arith.addf %64, %114 : vector<256x64xf32>
    %116 = vector.broadcast %5 : vector<1x64xf32> to vector<256x64xf32>
    %117 = arith.addf %115, %116 : vector<256x64xf32>
    %118 = arith.truncf %117 : vector<256x64xf32> to vector<256x64xbf16>
    %c0_56 = arith.constant 0 : index
    %c0_57 = arith.constant 0 : index
    %119 = vector.load %arg5[%c0_56, %c0_57] : memref<64x64xbf16, #tpu.memory_space<vmem>>, vector<64x64xbf16>
    %cst_58 = arith.constant dense<0.000000e+00> : vector<256x64xf32>
    %120 = tpu.matmul %118, %119, %cst_58 {dimension_numbers = #tpu.dot_dimension_numbers<[1], [0], [0], [1], [0, 0, 1, 1], [], []>} : vector<256x64xbf16>, vector<64x64xbf16>, vector<256x64xf32> -> vector<256x64xf32>
    %121 = arith.addf %24, %120 : vector<256x64xf32>
    %122 = vector.broadcast %6 : vector<1x64xf32> to vector<256x64xf32>
    %123 = arith.addf %121, %122 : vector<256x64xf32>
    %124 = arith.truncf %123 : vector<256x64xf32> to vector<256x64xbf16>
    %c0_59 = arith.constant 0 : index
    %c0_60 = arith.constant 0 : index
    %125 = vector.load %arg6[%c0_59, %c0_60] : memref<64x128xbf16, #tpu.memory_space<vmem>>, vector<64x128xbf16>
    %cst_61 = arith.constant dense<0.000000e+00> : vector<256x128xf32>
    %126 = tpu.matmul %124, %125, %cst_61 {dimension_numbers = #tpu.dot_dimension_numbers<[1], [0], [0], [1], [0, 0, 1, 1], [], []>} : vector<256x64xbf16>, vector<64x128xbf16>, vector<256x128xf32> -> vector<256x128xf32>
    %127 = vector.broadcast %3 : vector<1x128xf32> to vector<256x128xf32>
    %128 = arith.addf %126, %127 : vector<256x128xf32>
    %cst_62 = arith.constant 0.000000e+00 : f32
    %129 = vector.broadcast %cst_62 : f32 to vector<256x128xf32>
    %130 = arith.subf %129, %128 : vector<256x128xf32>
    %131 = math.exp %130 : vector<256x128xf32>
    %cst_63 = arith.constant 1.000000e+00 : f32
    %132 = vector.broadcast %cst_63 : f32 to vector<256x128xf32>
    %133 = arith.addf %132, %131 : vector<256x128xf32>
    %134 = tpu.reciprocal %133 {approx = true} : vector<256x128xf32> -> vector<256x128xf32>
    %135 = arith.mulf %128, %134 : vector<256x128xf32>
    %136 = arith.truncf %135 : vector<256x128xf32> to vector<256x128xbf16>
    %c0_64 = arith.constant 0 : index
    %c0_65 = arith.constant 0 : index
    %137 = vector.load %arg7[%c0_64, %c0_65] : memref<128x64xbf16, #tpu.memory_space<vmem>>, vector<128x64xbf16>
    %cst_66 = arith.constant dense<0.000000e+00> : vector<256x64xf32>
    %138 = tpu.matmul %136, %137, %cst_66 {dimension_numbers = #tpu.dot_dimension_numbers<[1], [0], [0], [1], [0, 0, 1, 1], [], []>} : vector<256x128xbf16>, vector<128x64xbf16>, vector<256x64xf32> -> vector<256x64xf32>
    %139 = arith.addf %123, %138 : vector<256x64xf32>
    %140 = vector.broadcast %7 : vector<1x64xf32> to vector<256x64xf32>
    %141 = arith.addf %139, %140 : vector<256x64xf32>
    %142 = tpu.concatenate %23, %141 in 1 : vector<256x64xf32>, vector<256x64xf32> -> vector<256x128xf32>
    %143 = arith.truncf %142 : vector<256x128xf32> to vector<256x128xbf16>
    %c0_67 = arith.constant 0 : index
    %c0_68 = arith.constant 0 : index
    %144 = vector.load %arg8[%c0_67, %c0_68] : memref<128x128xbf16, #tpu.memory_space<vmem>>, vector<128x128xbf16>
    %cst_69 = arith.constant dense<0.000000e+00> : vector<256x128xf32>
    %145 = tpu.matmul %143, %144, %cst_69 {dimension_numbers = #tpu.dot_dimension_numbers<[1], [0], [0], [1], [0, 0, 1, 1], [], []>} : vector<256x128xbf16>, vector<128x128xbf16>, vector<256x128xf32> -> vector<256x128xf32>
    %146 = vector.broadcast %4 : vector<1x128xf32> to vector<256x128xf32>
    %147 = arith.addf %145, %146 : vector<256x128xf32>
    %cst_70 = arith.constant 0.000000e+00 : f32
    %148 = vector.broadcast %cst_70 : f32 to vector<256x128xf32>
    %149 = arith.subf %148, %147 : vector<256x128xf32>
    %150 = math.exp %149 : vector<256x128xf32>
    %cst_71 = arith.constant 1.000000e+00 : f32
    %151 = vector.broadcast %cst_71 : f32 to vector<256x128xf32>
    %152 = arith.addf %151, %150 : vector<256x128xf32>
    %153 = tpu.reciprocal %152 {approx = true} : vector<256x128xf32> -> vector<256x128xf32>
    %154 = arith.mulf %147, %153 : vector<256x128xf32>
    %155 = tpu.transpose %154, [1, 0] : vector<256x128xf32> -> vector<128x256xf32>
    %c0_72 = arith.constant 0 : index
    %c0_73 = arith.constant 0 : index
    %c0_74 = arith.constant 0 : index
    %156 = vector.load %arg10[%c0_72, %c0_73, %c0_74] : memref<1x128x256xf32, #tpu.memory_space<vmem>>, vector<1x128x256xf32>
    %157 = vector.shape_cast %156 : vector<1x128x256xf32> to vector<128x256xf32>
    %158 = vector.shape_cast %155 : vector<128x256xf32> to vector<1x128x256xf32>
    tpu.vector_store %arg10[%c0_72, %c0_73, %c0_74], %158 {strides = array<i32>} : memref<1x128x256xf32, #tpu.memory_space<vmem>>, vector<1x128x256xf32>,
    return
  }
  func.func @transform_0(%arg0: i32) -> (i32, i32, i32) {
    %c0_i32 = arith.constant 0 : i32
    %c0_i32_0 = arith.constant 0 : i32
    %c0_i32_1 = arith.constant 0 : i32
    return %arg0, %c0_i32, %c0_i32_0 : i32, i32, i32
  }
  func.func @transform_1(%arg0: i32) -> (i32, i32) {
    %c0_i32 = arith.constant 0 : i32
    %c0_i32_0 = arith.constant 0 : i32
    %c0_i32_1 = arith.constant 0 : i32
    return %c0_i32, %c0_i32_0 : i32, i32
  }
  func.func @transform_2(%arg0: i32) -> (i32, i32) {
    %c0_i32 = arith.constant 0 : i32
    %c0_i32_0 = arith.constant 0 : i32
    %c0_i32_1 = arith.constant 0 : i32
    return %c0_i32, %c0_i32_0 : i32, i32
  }
  func.func @transform_3(%arg0: i32) -> (i32, i32, i32) {
    %c0_i32 = arith.constant 0 : i32
    %c0_i32_0 = arith.constant 0 : i32
    %c0_i32_1 = arith.constant 0 : i32
    %c0_i32_2 = arith.constant 0 : i32
    return %c0_i32, %c0_i32_0, %c0_i32_1 : i32, i32, i32
  }
  func.func @transform_4(%arg0: i32) -> (i32, i32) {
    %c0_i32 = arith.constant 0 : i32
    %c0_i32_0 = arith.constant 0 : i32
    %c0_i32_1 = arith.constant 0 : i32
    return %c0_i32, %c0_i32_0 : i32, i32
  }
  func.func @transform_5(%arg0: i32) -> (i32, i32) {
    %c0_i32 = arith.constant 0 : i32
    %c0_i32_0 = arith.constant 0 : i32
    %c0_i32_1 = arith.constant 0 : i32
    return %c0_i32, %c0_i32_0 : i32, i32
  }
  func.func @transform_6(%arg0: i32) -> (i32, i32) {
    %c0_i32 = arith.constant 0 : i32
    %c0_i32_0 = arith.constant 0 : i32
    %c0_i32_1 = arith.constant 0 : i32
    return %c0_i32, %c0_i32_0 : i32, i32
  }
  func.func @transform_7(%arg0: i32) -> (i32, i32) {
    %c0_i32 = arith.constant 0 : i32
    %c0_i32_0 = arith.constant 0 : i32
    %c0_i32_1 = arith.constant 0 : i32
    return %c0_i32, %c0_i32_0 : i32, i32
  }
  func.func @transform_8(%arg0: i32) -> (i32, i32) {
    %c0_i32 = arith.constant 0 : i32
    %c0_i32_0 = arith.constant 0 : i32
    %c0_i32_1 = arith.constant 0 : i32
    return %c0_i32, %c0_i32_0 : i32, i32
  }
  func.func @transform_9(%arg0: i32) -> (i32, i32, i32) {
    %c0_i32 = arith.constant 0 : i32
    %c0_i32_0 = arith.constant 0 : i32
    %c0_i32_1 = arith.constant 0 : i32
    return %arg0, %c0_i32, %c0_i32_0 : i32, i32, i32
  }
}

</mosaic_0001>

<bundles_post_ra>
// kernel: tpu_custom_call.1
= control target key start
LH: loop header
LB: loop body
LE: loop exit
PB: predicated region body
PF: predicated region fallthrough
CT: control target
= control target key end

     0   :  { %14 = vsyncpa [#allocation4], 0  ;;  %s10894_s0 = inlined_call_operand.vmem [shape: f32[2,128,256], index: 0, kind: input, shape index: {}]   ;;  %s10895_s1 = inlined_call_operand.vmem [shape: bf16[128,128], index: 1, kind: input, shape index: {}]   ;;  %s10896_s2 = inlined_call_operand.vmem [shape: bf16[64,128], index: 2, kind: input, shape index: {}]   ;;  %s10897_s3 = inlined_call_operand.vmem [shape: f32[9,256,64], index: 3, kind: input, shape index: {}]   ;;  %s10898_s4 = inlined_call_operand.vmem [shape: bf16[64,64], index: 4, kind: input, shape index: {}]   ;;  %s10899_s5 = inlined_call_operand.vmem [shape: bf16[64,128], index: 5, kind: input, shape index: {}]   ;;  %s10900_s6 = inlined_call_operand.vmem [shape: bf16[128,64], index: 6, kind: input, shape index: {}]   ;;  %s10901_s7 = inlined_call_operand.vmem [shape: bf16[128,128], index: 7, kind: input, shape index: {}]   ;;  %s10902_s8 = inlined_call_operand.vmem [shape: f32[8,128], index: 8, kind: input, shape index: {}]   ;;  %s10903_s9 = inlined_call_operand.hbm [shape: f32[2,128,256], index: 9, kind: output, shape index: {}]  }
   0x1   :  { %16 = vsyncpa [#allocation4 + $0x1], 0  ;;  %s7340_s30 = smov 0   ;;  %s7342_s10 = smov 0  }
   0x2   :  { %s7344_s11 = smov 0   ;;  %s7346_s12 = smov 0  }
   0x3 LB: > { %s7361_s13 = sadd.s32 4294967295, %s7282_s12   ;;  %s5571_s14 = sadd.s32 4294967294, %s7282_s12   ;;  %s7282_s12 = sphi %s7346_s12, %s11347_s12   ;;  %s7278_s11 = sphi %s7344_s11, %s11346_s11   ;;  %s7274_s10 = sphi %s7342_s10, %s11345_s10   ;;  %s7270_s30 = sphi %s7340_s30, %s11344_s30  }
   0x4   : > { %s7365_s15 = sadd.s32 1, %s7282_s12   ;;  %s223_s16 = sadd.s32 1, %s7278_s11 }
   0x5   : > { %s220_s17 = ssub.s32 %s7282_s12, %s7365_s15  ;;  %p233_p0 = scmp.ne.s32.totalorder %s7278_s11, %s7274_s10 }
   0x6   : > { %p221_p1 = scmp.eq.s32.totalorder %s220_s17, 0  ;;  %p234_p2 = scmp.eq.s32.totalorder %s7361_s13, 1 }
   0x7   : > { %p239_p3 = scmp.ne.s32.totalorder %s7274_s10, %s7270_s30  ;;  %p240_p4 = scmp.eq.s32.totalorder %s5571_s14, 1 }
   0x8   : > { %s7376_s18 = scalar_select %p221_p1, %s7278_s11, %s223_s16  }
   0x9   : > { %p7378_p5 = por %p234_p2, %p233_p0  ;;  %p7382_p6 = por %p240_p4, %p239_p3 }
   0xa   : > { %p5574_p7 = scmp.ge.s32.totalorder %s7282_s12, 1  ;;  %p290_p8 = scmp.lt.s32.totalorder %s7282_s12, 3 }
   0xc   : > { %p291_p9 = pnand %p5574_p7, %p290_p8 }
   0xe   : > { %294 = sbr.rel (%p291_p9) target bundleno = 3432 (0xd68), region = 56 }
  0x15   : > { %p326_p10 = scmp.lt.s32.totalorder %s7361_s13, 1  ;;  %v6605_v0 = vld [vmem:[%s10895_s1] sm:$0xff]   ;;  %v6606_v1 = vld [vmem:[%s10895_s1 + $0x8] sm:$0xff]   ;;  %v6607_v2 = vld [vmem:[%s10895_s1 + $0x10] sm:$0xff]   ;;  %s7284_s28 = smov 64   ;;  %vm966_vm0 = vcmask 523264  }
  0x16   : > { %6265 = vmatprep.subr.bf16.mxu0 %v6605_v0  ;;  %v6608_v6 = vld [vmem:[%s10895_s1 + $0x18] sm:$0xff]   ;;  %v6609_v9 = vld [vmem:[%s10895_s1 + $0x20] sm:$0xff]   ;;  %v6610_v12 = vld [vmem:[%s10895_s1 + $0x28] sm:$0xff]   ;;  %vm1240_vm1 = vcmask 261120   ;;  %s7285_s29 = smov 96   ;;  %s5940_s23 = sshll.u32 %s7361_s13, 12 }
  0x17   : > { %s327_s25 = scalar_select %p326_p10, %s7361_s13, 1  ;;  %6266 = vmatpush3.bf16.msra.mxu0 %v6605_v0  ;;  %v6611_v15 = vld [vmem:[%s10895_s1 + $0x30] sm:$0xff]   ;;  %v6612_v18 = vld [vmem:[%s10895_s1 + $0x38] sm:$0xff]  }
  0x18   : > { %6267 = vmatprep.subr.bf16.mxu0 %v6606_v1  ;;  %s10846_s27 = scalar_lea.hbm %s10903_s9, %s5940_s23  ;;  %s7287_s13 = smov [#allocation3]  }
  0x19   : > { %s5939_s26 = sshll.u32 %s327_s25, 8 }
  0x1a   : > { %s7402_s16 = scalar_lea.vmem %s10894_s0, %s5939_s26 }
  0x1b   : > { %v333_v3 = vld [vmem:[%s7402_s16] sm:$0xff]  ;;  %6268 = vmatpush3.bf16.msra.mxu0 %v6606_v1  ;;  %v335_v4 = vld [vmem:[%s7402_s16 + $0x10] sm:$0xff]  ;;  %v334_v5 = vld [vmem:[%s7402_s16 + $0x8] sm:$0xff] }
  0x1c   : > { %365 = vxpose.xlu0.b32.start [1/16] %v333_v3, 128  ;;  %6269 = vmatprep.subr.bf16.mxu0 %v6607_v2  ;;  %v336_v7 = vld [vmem:[%s7402_s16 + $0x18] sm:$0xff]  ;;  %v337_v8 = vld [vmem:[%s7402_s16 + $0x20] sm:$0xff]  ;;  %v338_v10 = vld [vmem:[%s7402_s16 + $0x28] sm:$0xff] }
  0x1d   : > { %397 = vxpose.xlu1.b32.start [1/16] %v334_v5, 128  ;;  %v339_v11 = vld [vmem:[%s7402_s16 + $0x30] sm:$0xff]  ;;  %v340_v13 = vld [vmem:[%s7402_s16 + $0x38] sm:$0xff]  ;;  %v341_v14 = vld [vmem:[%s7402_s16 + $0x40] sm:$0xff] }
  0x1e   : > { %v342_v16 = vld [vmem:[%s7402_s16 + $0x48] sm:$0xff]  ;;  %v343_v17 = vld [vmem:[%s7402_s16 + $0x50] sm:$0xff]  ;;  %v344_v19 = vld [vmem:[%s7402_s16 + $0x58] sm:$0xff] }
  0x1f   : > { %6270 = vmatpush3.bf16.msra.mxu0 %v6607_v2  ;;  %v345_v20 = vld [vmem:[%s7402_s16 + $0x60] sm:$0xff]  ;;  %v346_v21 = vld [vmem:[%s7402_s16 + $0x68] sm:$0xff]  ;;  %v347_v22 = vld [vmem:[%s7402_s16 + $0x70] sm:$0xff] }
  0x20   : > { %366 = vxpose.xlu0.b32.cont [2/16] %v335_v4, 128  ;;  %6271 = vmatprep.subr.bf16.mxu0 %v6608_v6  ;;  %v348_v23 = vld [vmem:[%s7402_s16 + $0x78] sm:$0xff]  ;;  %v349_v24 = vld [vmem:[%s7402_s16 + $0x80] sm:$0xff]  ;;  %v350_v25 = vld [vmem:[%s7402_s16 + $0x88] sm:$0xff] }
  0x21   : > { %398 = vxpose.xlu1.b32.cont [2/16] %v336_v7, 128  ;;  %v351_v26 = vld [vmem:[%s7402_s16 + $0x90] sm:$0xff]  ;;  %v352_v27 = vld [vmem:[%s7402_s16 + $0x98] sm:$0xff]  ;;  %v353_v28 = vld [vmem:[%s7402_s16 + $0xa0] sm:$0xff] }
  0x22   : > { %v354_v29 = vld [vmem:[%s7402_s16 + $0xa8] sm:$0xff]  ;;  %v355_v30 = vld [vmem:[%s7402_s16 + $0xb0] sm:$0xff]  ;;  %v356_v31 = vld [vmem:[%s7402_s16 + $0xb8] sm:$0xff] }
  0x23   : > { %6272 = vmatpush3.bf16.msra.mxu0 %v6608_v6  ;;  %v357_v32 = vld [vmem:[%s7402_s16 + $0xc0] sm:$0xff]  ;;  %v358_v33 = vld [vmem:[%s7402_s16 + $0xc8] sm:$0xff]  ;;  %v359_v34 = vld [vmem:[%s7402_s16 + $0xd0] sm:$0xff] }
  0x24   : > { %367 = vxpose.xlu0.b32.cont [3/16] %v337_v8, 128  ;;  %6273 = vmatprep.subr.bf16.mxu0 %v6609_v9  ;;  %v360_v35 = vld [vmem:[%s7402_s16 + $0xd8] sm:$0xff]  ;;  %v361_v36 = vld [vmem:[%s7402_s16 + $0xe0] sm:$0xff]  ;;  %v362_v37 = vld [vmem:[%s7402_s16 + $0xe8] sm:$0xff] }
  0x25   : > { %399 = vxpose.xlu1.b32.cont [3/16] %v338_v10, 128  ;;  %v363_v38 = vld [vmem:[%s7402_s16 + $0xf0] sm:$0xff]  ;;  %v364_v39 = vld [vmem:[%s7402_s16 + $0xf8] sm:$0xff]  ;;  %s7224_s16 = sshll.u32 %s7287_s13, 4  ;;  %s7225_s16 = int_to_ptr.vmem [resolvable:$false] %s7224_s16 }
  0x26   : > { %s7226_s17 = scalar_lea.vmem %s7225_s16, 8192 }
  0x27   : > { %6274 = vmatpush3.bf16.msra.mxu0 %v6609_v9 }
  0x28   : > { %368 = vxpose.xlu0.b32.cont [4/16] %v339_v11, 128  ;;  %6275 = vmatprep.subr.bf16.mxu0 %v6610_v12 }
  0x29   : > { %400 = vxpose.xlu1.b32.cont [4/16] %v340_v13, 128 }
  0x2b   : > { %6276 = vmatpush3.bf16.msra.mxu0 %v6610_v12 }
  0x2c   : > { %369 = vxpose.xlu0.b32.cont [5/16] %v341_v14, 128  ;;  %6277 = vmatprep.subr.bf16.mxu0 %v6611_v15 }
  0x2d   : > { %401 = vxpose.xlu1.b32.cont [5/16] %v342_v16, 128 }
  0x2f   : > { %6278 = vmatpush3.bf16.msra.mxu0 %v6611_v15 }
  0x30   : > { %370 = vxpose.xlu0.b32.cont [6/16] %v343_v17, 128  ;;  %6279 = vmatprep.subr.bf16.mxu0 %v6612_v18 }
  0x31   : > { %402 = vxpose.xlu1.b32.cont [6/16] %v344_v19, 128 }
  0x33   : > { %6280 = vmatpush3.bf16.msra.mxu0 %v6612_v18 }
  0x34   : > { %371 = vxpose.xlu0.b32.cont [7/16] %v345_v20, 128 }
  0x35   : > { %403 = vxpose.xlu1.b32.cont [7/16] %v346_v21, 128 }
  0x38   : > { %372 = vxpose.xlu0.b32.cont [8/16] %v347_v22, 128 }
  0x39   : > { %404 = vxpose.xlu1.b32.cont [8/16] %v348_v23, 128 }
  0x3c   : > { %373 = vxpose.xlu0.b32.cont [9/16] %v349_v24, 128  ;;  %v461_v24 = vlaneseq }
  0x3d   : > { %405 = vxpose.xlu1.b32.cont [9/16] %v350_v25, 128 }
  0x3e   : > { %v7451_v25 = vshrl.u32 %v461_v24, 7 }
  0x40   : > { %374 = vxpose.xlu0.b32.cont [10/16] %v351_v26, 128  ;;  %11066 = vst [vmem:[#allocation6_spill] sm:$0xff] %v7451_v25  ;;  %v6613_v26 = vld [vmem:[%s10896_s2] sm:$0xff]  }
  0x41   : > { %406 = vxpose.xlu1.b32.cont [10/16] %v352_v27, 128  ;;  %v6614_v27 = vld [vmem:[%s10896_s2 + $0x8] sm:$0xff]   ;;  %6313 = vmatprep.subr.bf16.mxu1 %v6613_v26 }
  0x42   : > { %6314 = vmatpush3.bf16.msra.mxu1 %v6613_v26 }
  0x43   : > { %6315 = vmatprep.subr.bf16.mxu1 %v6614_v27 }
  0x44   : > { %375 = vxpose.xlu0.b32.cont [11/16] %v353_v28, 128  ;;  %v463_v28 = vsub.s32 0, %v7451_v25 }
  0x45   : > { %407 = vxpose.xlu1.b32.cont [11/16] %v354_v29, 128  ;;  %v7463_v29 = vld [vmem:[%s10902_s8] sm:$0xff] }
  0x46   : > { %6316 = vmatpush3.bf16.msra.mxu1 %v6614_v27 }
  0x48   : > { %376 = vxpose.xlu0.b32.cont [12/16] %v355_v30, 128  ;;  %v6615_v30 = vld [vmem:[%s10896_s2 + $0x10] sm:$0xff]  }
  0x49   : > { %408 = vxpose.xlu1.b32.cont [12/16] %v356_v31, 128  ;;  %v7469_v31 = vrot.slane %v7463_v29, %v463_v28  ;;  %6317 = vmatprep.subr.bf16.mxu1 %v6615_v30 }
  0x4a   : > { %6318 = vmatpush3.bf16.msra.mxu1 %v6615_v30 }
  0x4c   : > { %377 = vxpose.xlu0.b32.cont [13/16] %v357_v32, 128  ;;  %v6616_v32 = vld [vmem:[%s10896_s2 + $0x18] sm:$0xff]  }
  0x4d   : > { %409 = vxpose.xlu1.b32.cont [13/16] %v358_v33, 128  ;;  %6319 = vmatprep.subr.bf16.mxu1 %v6616_v32 }
  0x4e   : > { %6320 = vmatpush3.bf16.msra.mxu1 %v6616_v32 }
  0x50   : > { %378 = vxpose.xlu0.b32.cont [14/16] %v359_v34, 128 }
  0x51   : > { %410 = vxpose.xlu1.b32.cont [14/16] %v360_v35, 128 }
  0x54   : > { %379 = vxpose.xlu0.b32.cont [15/16] %v361_v36, 128 }
  0x55   : > { %411 = vxpose.xlu1.b32.cont [15/16] %v362_v37, 128 }
  0x58   : > { %380 = vxpose.xlu0.b32.end [16/16] %v363_v38, 128 }
  0x59   : > { %412 = vxpose.xlu1.b32.end [16/16] %v364_v39, 128 }
  0x9c   : > { %v381_v40 = vpop.trf.xlu0 }
  0x9d   : > { %v413_v41 = vpop.trf.xlu1 }
  0xa0   : > { %v382_v42 = vpop.trf.xlu0 }
  0xa1   : > { %v429_v43 = vpack.c.bf16 %v382_v42, %v381_v40  ;;  %v414_v44 = vpop.trf.xlu1 }
  0xa2   : > { %v437_v11 = vpack.c.bf16 %v414_v44, %v413_v41 }
  0xa3   : > { %6281 = vmatprep.mubr.bf16.mxu0 %v429_v43 }
  0xa4   : > { %v383_v45 = vpop.trf.xlu0 }
  0xa5   : > { %v415_v46 = vpop.trf.xlu1 }
  0xa8   : > { %v384_v47 = vpop.trf.xlu0 }
  0xa9   : > { %v430_v48 = vpack.c.bf16 %v384_v47, %v383_v45  ;;  %v416_v50 = vpop.trf.xlu1 }
  0xaa   : > { %v438_v14 = vpack.c.bf16 %v416_v50, %v415_v46 }
  0xab   : > { %6282 = vmatmul.mubr.bf16.vlgmr.msra.gmra.mrb[0].mxu0 %v430_v48 }
  0xac   : > { %v385_v49 = vpop.trf.xlu0 }
  0xad   : > { %v417_v53 = vpop.trf.xlu1 }
  0xb0   : > { %v386_v51 = vpop.trf.xlu0 }
  0xb1   : > { %v431_v52 = vpack.c.bf16 %v386_v51, %v385_v49  ;;  %v418_v56 = vpop.trf.xlu1 }
  0xb2   : > { %v439_v13 = vpack.c.bf16 %v418_v56, %v417_v53 }
  0xb3   : > { %6285 = vmatprep.mubr.bf16.mxu0 %v431_v52 }
  0xb4   : > { %v387_v54 = vpop.trf.xlu0 }
  0xb5   : > { %v419_v59 = vpop.trf.xlu1 }
  0xb8   : > { %v388_v55 = vpop.trf.xlu0 }
  0xb9   : > { %v432_v57 = vpack.c.bf16 %v388_v55, %v387_v54  ;;  %v420_v63 = vpop.trf.xlu1 }
  0xba   : > { %v440_v16 = vpack.c.bf16 %v420_v63, %v419_v59 }
  0xbb   : > { %6286 = vmatmul.mubr.bf16.gmra.mrb[4].mxu0 %v432_v57 }
  0xbc   : > { %v389_v58 = vpop.trf.xlu0 }
  0xbd   : > { %v421_v2 = vpop.trf.xlu1 }
  0xc0   : > { %v390_v60 = vpop.trf.xlu0 }
  0xc1   : > { %v433_v61 = vpack.c.bf16 %v390_v60, %v389_v58  ;;  %v422_v5 = vpop.trf.xlu1 }
  0xc2   : > { %v441_v17 = vpack.c.bf16 %v422_v5, %v421_v2 }
  0xc3   : > { %6289 = vmatprep.mubr.bf16.mxu0 %v433_v61 }
  0xc4   : > { %v391_v62 = vpop.trf.xlu0 }
  0xc5   : > { %v423_v8 = vpop.trf.xlu1 }
  0xc8   : > { %v392_v0 = vpop.trf.xlu0 }
  0xc9   : > { %v434_v1 = vpack.c.bf16 %v392_v0, %v391_v62  ;;  %v424_v12 = vpop.trf.xlu1 }
  0xca   : > { %v442_v20 = vpack.c.bf16 %v424_v12, %v423_v8 }
  0xcb   : > { %6290 = vmatmul.mubr.bf16.gmra.mrb[8].mxu0 %v434_v1 }
  0xcc   : > { %v393_v3 = vpop.trf.xlu0 }
  0xcd   : > { %v425_v15 = vpop.trf.xlu1 }
  0xd0   : > { %v394_v4 = vpop.trf.xlu0 }
  0xd1   : > { %v435_v6 = vpack.c.bf16 %v394_v4, %v393_v3  ;;  %v426_v18 = vpop.trf.xlu1 }
  0xd2   : > { %v443_v21 = vpack.c.bf16 %v426_v18, %v425_v15 }
  0xd3   : > { %6293 = vmatprep.mubr.bf16.mxu0 %v435_v6 }
  0xd4   : > { %v395_v7 = vpop.trf.xlu0 }
  0xd5   : > { %v427_v19 = vpop.trf.xlu1 }
  0xd8   : > { %v396_v9 = vpop.trf.xlu0 }
  0xd9   : > { %v436_v10 = vpack.c.bf16 %v396_v9, %v395_v7  ;;  %v428_v22 = vpop.trf.xlu1 }
  0xda   : > { %v444_v23 = vpack.c.bf16 %v428_v22, %v427_v19 }
  0xdb   : > { %6294 = vmatmul.mubr.bf16.gmra.mrb[12].mxu0 %v436_v10 }
  0xdc   : > { %6297 = vmatprep.mubr.bf16.mxu0 %v437_v11 }
  0xe3   : > { %6298 = vmatmul.mubr.bf16.gmra.mrb[16].mxu0 %v438_v14 }
  0xe4   : > { %6301 = vmatprep.mubr.bf16.mxu0 %v439_v13 }
  0xeb   : > { %6302 = vmatmul.mubr.bf16.gmra.mrb[20].mxu0 %v440_v16 }
  0xec   : > { %6305 = vmatprep.mubr.bf16.mxu0 %v441_v17 }
  0xf3   : > { %6306 = vmatmul.mubr.bf16.gmra.mrb[24].mxu0 %v442_v20 }
  0xf4   : > { %6309 = vmatprep.mubr.bf16.mxu0 %v443_v21 }
  0xfb   : > { %6310 = vmatmul.mubr.bf16.gmra.mrb[28].mxu0 %v444_v23 }
 0x17e   : > { %v6283_v33 = vpop.f32.mrb[0].mxu0 }
 0x17f   : > { %v556_v34 = vadd.f32 %v6283_v33, %v7469_v31  ;;  %v547_v35 = vpop.f32.mrb[1].mxu0 }
 0x180   : > { %v548_v36 = vadd.f32 %v547_v35, %v7469_v31  ;;  %v6284_v37 = vpop.f32.mrb[2].mxu0 }
 0x181   : > { %v676_v38 = vsub.f32 0.0, %v556_v34  ;;  %v559_v39 = vadd.f32 %v6284_v37, %v7469_v31  ;;  %v550_v40 = vpop.f32.mrb[3].mxu0 }
 0x182   : > { %v674_v41 = vsub.f32 0.0, %v548_v36  ;;  %v551_v42 = vadd.f32 %v550_v40, %v7469_v31 }
 0x183   : > { %v710_v43 = vmul.f32 1.442695, %v676_v38  ;;  %v677_v44 = vsub.f32 0.0, %v559_v39 }
 0x184   : > { %v706_v45 = vmul.f32 1.442695, %v674_v41  ;;  %v675_v46 = vsub.f32 0.0, %v551_v42 }
 0x185   : > { %6641 = vpow2.f32 %v710_v43  ;;  %v712_v47 = vmul.f32 1.442695, %v677_v44 }
 0x186   : > { %6643 = vpow2.f32 %v706_v45  ;;  %v708_v48 = vmul.f32 1.442695, %v675_v46 }
 0x187   : > { %6645 = vpow2.f32 %v712_v47 }
 0x188   : > { %6647 = vpow2.f32 %v708_v48 }
 0x18e   : > { %v6287_v49 = vpop.f32.mrb[4].mxu0 }
 0x18f   : > { %v6642_v50 = vpop.eup %6641  ;;  %v7479_v51 = vadd.f32 %v6287_v49, %v7469_v31  ;;  %v563_v52 = vpop.f32.mrb[5].mxu0 }
 0x190   : > { %v6644_v53 = vpop.eup %6643  ;;  %v772_v54 = vadd.f32 1.0, %v6642_v50  ;;  %v7482_v55 = vadd.f32 %v563_v52, %v7469_v31  ;;  %v6288_v56 = vpop.f32.mrb[6].mxu0 }
 0x191   : > { %v6646_v57 = vpop.eup %6645  ;;  %v770_v58 = vadd.f32 1.0, %v6644_v53  ;;  %v680_v59 = vsub.f32 0.0, %v7479_v51  ;;  %v7486_v60 = vadd.f32 %v6288_v56, %v7469_v31  ;;  %v566_v61 = vpop.f32.mrb[7].mxu0 }
 0x192   : > { %v6648_v62 = vpop.eup %6647  ;;  %6649 = vrcp.f32 %v772_v54  ;;  %v773_v63 = vadd.f32 1.0, %v6646_v57  ;;  %v678_v0 = vsub.f32 0.0, %v7482_v55  ;;  %v7490_v1 = vadd.f32 %v566_v61, %v7469_v31 }
 0x193   : > { %6651 = vrcp.f32 %v770_v58  ;;  %v771_v2 = vadd.f32 1.0, %v6648_v62  ;;  %v718_v3 = vmul.f32 1.442695, %v680_v59  ;;  %v681_v4 = vsub.f32 0.0, %v7486_v60 }
 0x194   : > { %6653 = vrcp.f32 %v773_v63  ;;  %v714_v5 = vmul.f32 1.442695, %v678_v0  ;;  %v679_v6 = vsub.f32 0.0, %v7490_v1 }
 0x195   : > { %6655 = vrcp.f32 %v771_v2  ;;  %v720_v7 = vmul.f32 1.442695, %v681_v4 }
 0x196   : > { %6657 = vpow2.f32 %v718_v3  ;;  %v716_v8 = vmul.f32 1.442695, %v679_v6 }
 0x197   : > { %6659 = vpow2.f32 %v714_v5 }
 0x198   : > { %6661 = vpow2.f32 %v720_v7 }
 0x199   : > { %6663 = vpow2.f32 %v716_v8 }
 0x19c   : > { %v6650_v9 = vpop.eup %6649 }
 0x19d   : > { %v6652_v10 = vpop.eup %6651  ;;  %v7494_v14 = vmul.f32 %v6650_v9, %v556_v34 }
 0x19e   : > { %v6654_v11 = vpop.eup %6653  ;;  %v6291_v12 = vpop.f32.mrb[8].mxu0  ;;  %v7501_v19 = vmul.f32 %v6652_v10, %v548_v36 }
 0x19f   : > { %v6656_v13 = vpop.eup %6655  ;;  %11067 = vst [vmem:[#allocation7_spill] sm:$0xff] %v7494_v14  ;;  %v7496_v15 = vmul.f32 %v6654_v11, %v559_v39  ;;  %v7499_v16 = vadd.f32 %v6291_v12, %v7469_v31  ;;  %v579_v17 = vpop.f32.mrb[9].mxu0 }
 0x1a0   : > { %v6658_v18 = vpop.eup %6657  ;;  %11069 = vst [vmem:[#allocation9_spill] sm:$0xff] %v7501_v19  ;;  %v7503_v20 = vmul.f32 %v6656_v13, %v551_v42  ;;  %v7506_v21 = vadd.f32 %v579_v17, %v7469_v31  ;;  %v6292_v22 = vpop.f32.mrb[10].mxu0 }
 0x1a1   : > { %11068 = vst [vmem:[#allocation8_spill] sm:$0xff] %v7496_v15  ;;  %v6660_v23 = vpop.eup %6659  ;;  %v776_v24 = vadd.f32 1.0, %v6658_v18  ;;  %v684_v26 = vsub.f32 0.0, %v7499_v16  ;;  %v7510_v27 = vadd.f32 %v6292_v22, %v7469_v31  ;;  %v582_v28 = vpop.f32.mrb[11].mxu0  ;;  %v867_v30 = vpack.c.bf16 %v7496_v15, %v7494_v14 }
 0x1a2   : > { %11070 = vst [vmem:[#allocation10_spill] sm:$0xff] %v7503_v20  ;;  %v6662_v32 = vpop.eup %6661  ;;  %v774_v33 = vadd.f32 1.0, %v6660_v23  ;;  %v682_v34 = vsub.f32 0.0, %v7506_v21  ;;  %v7516_v35 = vadd.f32 %v582_v28, %v7469_v31  ;;  %v866_v36 = vpack.c.bf16 %v7503_v20, %v7501_v19 }
 0x1a3   : > { %v6664_v37 = vpop.eup %6663  ;;  %6665 = vrcp.f32 %v776_v24  ;;  %v777_v38 = vadd.f32 1.0, %v6662_v32  ;;  %v726_v39 = vmul.f32 1.442695, %v684_v26  ;;  %v685_v40 = vsub.f32 0.0, %v7510_v27  ;;  %912 = vrot.lane.b32.xlu1 %v867_v30, %s7284_s28 }
 0x1a4   : > { %6667 = vrcp.f32 %v774_v33  ;;  %v775_v41 = vadd.f32 1.0, %v6664_v37  ;;  %v722_v42 = vmul.f32 1.442695, %v682_v34  ;;  %v683_v43 = vsub.f32 0.0, %v7516_v35  ;;  %910 = vrot.lane.b32.xlu0 %v866_v36, %s7284_s28 }
 0x1a5   : > { %6669 = vrcp.f32 %v777_v38  ;;  %v728_v44 = vmul.f32 1.442695, %v685_v40 }
 0x1a6   : > { %6671 = vrcp.f32 %v775_v41  ;;  %v724_v45 = vmul.f32 1.442695, %v683_v43 }
 0x1a7   : > { %6673 = vpow2.f32 %v726_v39 }
 0x1a8   : > { %6675 = vpow2.f32 %v722_v42 }
 0x1a9   : > { %6677 = vpow2.f32 %v728_v44 }
 0x1aa   : > { %6679 = vpow2.f32 %v724_v45 }
 0x1ad   : > { %v6666_v46 = vpop.eup %6665 }
 0x1ae   : > { %v6668_v47 = vpop.eup %6667  ;;  %v6295_v48 = vpop.f32.mrb[12].mxu0  ;;  %v7552_v12 = vmul.f32 %v6666_v46, %v7479_v51 }
 0x1af   : > { %v6670_v49 = vpop.eup %6669  ;;  %v7525_v50 = vadd.f32 %v6295_v48, %v7469_v31  ;;  %v595_v52 = vpop.f32.mrb[13].mxu0  ;;  %v7531_v58 = vmul.f32 %v6668_v47, %v7482_v55 }
 0x1b0   : > { %v6672_v53 = vpop.eup %6671  ;;  %v7528_v54 = vadd.f32 %v595_v52, %v7469_v31  ;;  %v6296_v56 = vpop.f32.mrb[14].mxu0  ;;  %v7545_v55 = vmul.f32 %v6670_v49, %v7486_v60  ;;  %11074 = vst [vmem:[#allocation14_spill] sm:$0xff] %v7552_v12 }
 0x1b1   : > { %v6674_v57 = vpop.eup %6673  ;;  %11071 = vst [vmem:[#allocation11_spill] sm:$0xff] %v7531_v58  ;;  %v7534_v59 = vmul.f32 %v6672_v53, %v7490_v1  ;;  %v688_v61 = vsub.f32 0.0, %v7525_v50  ;;  %v7538_v62 = vadd.f32 %v6296_v56, %v7469_v31  ;;  %v598_v63 = vpop.f32.mrb[15].mxu0 }
 0x1b2   : > { %v6676_v0 = vpop.eup %6675  ;;  %v780_v2 = vadd.f32 1.0, %v6674_v57  ;;  %v686_v3 = vsub.f32 0.0, %v7528_v54  ;;  %v7542_v4 = vadd.f32 %v598_v63, %v7469_v31  ;;  %11073 = vst [vmem:[#allocation13_spill] sm:$0xff] %v7545_v55  ;;  %v869_v26 = vpack.c.bf16 %v7545_v55, %v7552_v12 }
 0x1b3   : > { %11072 = vst [vmem:[#allocation12_spill] sm:$0xff] %v7534_v59  ;;  %v6678_v5 = vpop.eup %6677  ;;  %v778_v6 = vadd.f32 1.0, %v6676_v0  ;;  %v689_v1 = vsub.f32 0.0, %v7538_v62  ;;  %v868_v7 = vpack.c.bf16 %v7534_v59, %v7531_v58  ;;  %v734_v10 = vmul.f32 1.442695, %v688_v61 }
 0x1b4   : > { %v6680_v8 = vpop.eup %6679  ;;  %6681 = vrcp.f32 %v780_v2  ;;  %v781_v9 = vadd.f32 1.0, %v6678_v5  ;;  %v687_v11 = vsub.f32 0.0, %v7542_v4  ;;  %v730_v17 = vmul.f32 1.442695, %v686_v3 }
 0x1b5   : > { %6683 = vrcp.f32 %v778_v6  ;;  %v779_v13 = vadd.f32 1.0, %v6680_v8  ;;  %914 = vrot.lane.b32.xlu1 %v868_v7, %s7284_s28  ;;  %v736_v60 = vmul.f32 1.442695, %v689_v1 }
 0x1b6   : > { %6685 = vrcp.f32 %v781_v9  ;;  %v6299_v18 = vpop.f32.mrb[16].mxu0  ;;  %v732_v22 = vmul.f32 1.442695, %v687_v11 }
 0x1b7   : > { %6687 = vrcp.f32 %v779_v13  ;;  %v7556_v23 = vadd.f32 %v6299_v18, %v7469_v31  ;;  %v611_v24 = vpop.f32.mrb[17].mxu0 }
 0x1b8   : > { %6689 = vpow2.f32 %v734_v10  ;;  %v7561_v51 = vadd.f32 %v611_v24, %v7469_v31  ;;  %v6300_v28 = vpop.f32.mrb[18].mxu0 }
 0x1b9   : > { %6691 = vpow2.f32 %v730_v17  ;;  %v692_v30 = vsub.f32 0.0, %v7556_v23  ;;  %916 = vrot.lane.b32.xlu1 %v869_v26, %s7284_s28  ;;  %v7566_v32 = vadd.f32 %v6300_v28, %v7469_v31  ;;  %v614_v33 = vpop.f32.mrb[19].mxu0 }
 0x1ba   : > { %6693 = vpow2.f32 %v736_v60  ;;  %v690_v34 = vsub.f32 0.0, %v7561_v51  ;;  %v7570_v36 = vadd.f32 %v614_v33, %v7469_v31 }
 0x1bb   : > { %6695 = vpow2.f32 %v732_v22  ;;  %v742_v37 = vmul.f32 1.442695, %v692_v30  ;;  %v693_v38 = vsub.f32 0.0, %v7566_v32 }
 0x1bc   : > { %v738_v39 = vmul.f32 1.442695, %v690_v34  ;;  %v691_v40 = vsub.f32 0.0, %v7570_v36 }
 0x1bd   : > { %6697 = vpow2.f32 %v742_v37  ;;  %v744_v41 = vmul.f32 1.442695, %v693_v38 }
 0x1be   : > { %v6682_v42 = vpop.eup %6681  ;;  %6699 = vpow2.f32 %v738_v39  ;;  %v740_v43 = vmul.f32 1.442695, %v691_v40  ;;  %v6303_v44 = vpop.f32.mrb[20].mxu0 }
 0x1bf   : > { %v6684_v45 = vpop.eup %6683  ;;  %6701 = vpow2.f32 %v744_v41  ;;  %v7575_v46 = vadd.f32 %v6303_v44, %v7469_v31  ;;  %v627_v47 = vpop.f32.mrb[21].mxu0  ;;  %v7581_v56 = vmul.f32 %v6682_v42, %v7499_v16 }
 0x1c0   : > { %v6686_v48 = vpop.eup %6685  ;;  %6703 = vpow2.f32 %v740_v43  ;;  %v7578_v49 = vadd.f32 %v627_v47, %v7469_v31  ;;  %v6304_v52 = vpop.f32.mrb[22].mxu0  ;;  %v7588_v2 = vmul.f32 %v6684_v45, %v7506_v21 }
 0x1c1   : > { %v6688_v53 = vpop.eup %6687  ;;  %11075 = vst [vmem:[#allocation15_spill] sm:$0xff] %v7581_v56  ;;  %v7584_v57 = vmul.f32 %v6686_v48, %v7510_v27  ;;  %v696_v61 = vsub.f32 0.0, %v7575_v46  ;;  %v630_v63 = vpop.f32.mrb[23].mxu0  ;;  %v7595_v16 = vadd.f32 %v6304_v52, %v7469_v31 }
 0x1c2   : > { %v6690_v0 = vpop.eup %6689  ;;  %11077 = vst [vmem:[#allocation17_spill] sm:$0xff] %v7588_v2  ;;  %v7591_v3 = vmul.f32 %v6688_v53, %v7516_v35  ;;  %v694_v1 = vsub.f32 0.0, %v7578_v49  ;;  %v7600_v9 = vadd.f32 %v630_v63, %v7469_v31 }
 0x1c3   : > { %11076 = vst [vmem:[#allocation16_spill] sm:$0xff] %v7584_v57  ;;  %v6692_v5 = vpop.eup %6691  ;;  %v784_v6 = vadd.f32 1.0, %v6690_v0  ;;  %v871_v27 = vpack.c.bf16 %v7584_v57, %v7581_v56  ;;  %v750_v11 = vmul.f32 1.442695, %v696_v61  ;;  %v697_v22 = vsub.f32 0.0, %v7595_v16 }
 0x1c4   : > { %11078 = vst [vmem:[#allocation18_spill] sm:$0xff] %v7591_v3  ;;  %v6694_v7 = vpop.eup %6693  ;;  %v782_v8 = vadd.f32 1.0, %v6692_v5  ;;  %v870_v21 = vpack.c.bf16 %v7591_v3, %v7588_v2  ;;  %v746_v18 = vmul.f32 1.442695, %v694_v1  ;;  %v695_v33 = vsub.f32 0.0, %v7600_v9 }
 0x1c5   : > { %v6696_v35 = vpop.eup %6695  ;;  %6705 = vrcp.f32 %v784_v6  ;;  %v785_v10 = vadd.f32 1.0, %v6694_v7  ;;  %920 = vrot.lane.b32.xlu0 %v871_v27, %s7284_s28  ;;  %v752_v52 = vmul.f32 1.442695, %v697_v22 }
 0x1c6   : > { %6707 = vrcp.f32 %v782_v8  ;;  %v783_v13 = vadd.f32 1.0, %v6696_v35  ;;  %918 = vrot.lane.b32.xlu1 %v870_v21, %s7284_s28  ;;  %v6307_v17 = vpop.f32.mrb[24].mxu0  ;;  %v748_v61 = vmul.f32 1.442695, %v695_v33 }
 0x1c7   : > { %v6698_v60 = vpop.eup %6697  ;;  %6709 = vrcp.f32 %v785_v10  ;;  %v7608_v24 = vadd.f32 %v6307_v17, %v7469_v31  ;;  %v643_v26 = vpop.f32.mrb[25].mxu0 }
 0x1c8   : > { %v6700_v28 = vpop.eup %6699  ;;  %6711 = vrcp.f32 %v783_v13  ;;  %v788_v30 = vadd.f32 1.0, %v6698_v60  ;;  %v7612_v34 = vadd.f32 %v643_v26, %v7469_v31  ;;  %v6308_v37 = vpop.f32.mrb[26].mxu0 }
 0x1c9   : > { %v6702_v38 = vpop.eup %6701  ;;  %v786_v39 = vadd.f32 1.0, %v6700_v28  ;;  %6713 = vpow2.f32 %v750_v11  ;;  %v700_v40 = vsub.f32 0.0, %v7608_v24  ;;  %v7616_v41 = vadd.f32 %v6308_v37, %v7469_v31  ;;  %v646_v42 = vpop.f32.mrb[27].mxu0 }
 0x1ca   : > { %v6704_v43 = vpop.eup %6703  ;;  %6715 = vrcp.f32 %v788_v30  ;;  %v789_v44 = vadd.f32 1.0, %v6702_v38  ;;  %v698_v45 = vsub.f32 0.0, %v7612_v34  ;;  %v7620_v47 = vadd.f32 %v646_v42, %v7469_v31 }
 0x1cb   : > { %6717 = vrcp.f32 %v786_v39  ;;  %v787_v48 = vadd.f32 1.0, %v6704_v43  ;;  %v701_v53 = vsub.f32 0.0, %v7616_v41  ;;  %v758_v0 = vmul.f32 1.442695, %v700_v40 }
 0x1cc   : > { %6719 = vrcp.f32 %v789_v44  ;;  %v699_v63 = vsub.f32 0.0, %v7620_v47  ;;  %v754_v5 = vmul.f32 1.442695, %v698_v45 }
 0x1cd   : > { %6721 = vrcp.f32 %v787_v48  ;;  %v760_v27 = vmul.f32 1.442695, %v701_v53 }
 0x1ce   : > { %6723 = vpow2.f32 %v746_v18  ;;  %v6311_v6 = vpop.f32.mrb[28].mxu0  ;;  %v756_v35 = vmul.f32 1.442695, %v699_v63 }
 0x1cf   : > { %v6706_v1 = vpop.eup %6705  ;;  %6725 = vpow2.f32 %v752_v52  ;;  %v7625_v7 = vadd.f32 %v6311_v6, %v7469_v31  ;;  %v659_v8 = vpop.f32.mrb[29].mxu0 }
 0x1d0   : > { %v6708_v21 = vpop.eup %6707  ;;  %6727 = vpow2.f32 %v748_v61  ;;  %v7628_v10 = vadd.f32 %v659_v8, %v7469_v31  ;;  %v6312_v11 = vpop.f32.mrb[30].mxu0  ;;  %v7631_v17 = vmul.f32 %v6706_v1, %v7525_v50 }
 0x1d1   : > { %v6710_v13 = vpop.eup %6709  ;;  %6729 = vpow2.f32 %v758_v0  ;;  %v704_v60 = vsub.f32 0.0, %v7625_v7  ;;  %v7635_v18 = vadd.f32 %v6312_v11, %v7469_v31  ;;  %v662_v22 = vpop.f32.mrb[31].mxu0  ;;  %v7649_v42 = vmul.f32 %v6708_v21, %v7528_v54 }
 0x1d2   : > { %11079 = vst [vmem:[#allocation19_spill] sm:$0xff] %v7631_v17  ;;  %v6712_v26 = vpop.eup %6711  ;;  %v7638_v28 = vmul.f32 %v6710_v13, %v7538_v62  ;;  %6731 = vpow2.f32 %v754_v5  ;;  %v702_v30 = vsub.f32 0.0, %v7628_v10  ;;  %v7642_v33 = vadd.f32 %v662_v22, %v7469_v31 }
 0x1d3   : > { %v6714_v37 = vpop.eup %6713  ;;  %v7645_v50 = vmul.f32 %v6712_v26, %v7542_v4  ;;  %6733 = vpow2.f32 %v760_v27  ;;  %v766_v38 = vmul.f32 1.442695, %v704_v60  ;;  %v705_v39 = vsub.f32 0.0, %v7635_v18  ;;  %11082 = vst [vmem:[#allocation22_spill] sm:$0xff] %v7649_v42 }
 0x1d4   : > { %11080 = vst [vmem:[#allocation20_spill] sm:$0xff] %v7638_v28  ;;  %v6716_v40 = vpop.eup %6715  ;;  %6735 = vpow2.f32 %v756_v35  ;;  %v762_v62 = vmul.f32 1.442695, %v702_v30  ;;  %v703_v43 = vsub.f32 0.0, %v7642_v33  ;;  %v873_v45 = vpack.c.bf16 %v7638_v28, %v7631_v17 }
 0x1d5   : > { %11081 = vst [vmem:[#allocation21_spill] sm:$0xff] %v7645_v50  ;;  %v6718_v44 = vpop.eup %6717  ;;  %6737 = vpow2.f32 %v766_v38  ;;  %v768_v31 = vmul.f32 1.442695, %v705_v39  ;;  %v792_v48 = vadd.f32 1.0, %v6714_v37  ;;  %v872_v53 = vpack.c.bf16 %v7645_v50, %v7649_v42 }
 0x1d6   : > { %v6720_v4 = vpop.eup %6719  ;;  %v764_v52 = vmul.f32 1.442695, %v703_v43  ;;  %v7657_v54 = vmul.f32 %v6716_v40, %v7556_v23  ;;  %6739 = vpow2.f32 %v762_v62  ;;  %924 = vrot.lane.b32.xlu0 %v873_v45, %s7284_s28  ;;  %v7664_v5 = vmul.f32 %v6718_v44, %v7561_v51 }
 0x1d7   : > { %v6722_v61 = vpop.eup %6721  ;;  %v7660_v63 = vmul.f32 %v6720_v4, %v7566_v32  ;;  %6741 = vpow2.f32 %v768_v31  ;;  %922 = vrot.lane.b32.xlu1 %v872_v53, %s7284_s28 }
 0x1d8   : > { %11083 = vst [vmem:[#allocation23_spill] sm:$0xff] %v7657_v54  ;;  %v6724_v0 = vpop.eup %6723  ;;  %11085 = vst [vmem:[#allocation25_spill] sm:$0xff] %v7664_v5  ;;  %v7667_v6 = vmul.f32 %v6722_v61, %v7570_v36  ;;  %6743 = vpow2.f32 %v764_v52 }
 0x1d9   : > { %11084 = vst [vmem:[#allocation24_spill] sm:$0xff] %v7660_v63  ;;  %v6726_v1 = vpop.eup %6725  ;;  %v790_v27 = vadd.f32 1.0, %v6724_v0  ;;  %v875_v23 = vpack.c.bf16 %v7660_v63, %v7657_v54  ;;  %6745 = vrcp.f32 %v792_v48 }
 0x1da   : > { %11086 = vst [vmem:[#allocation26_spill] sm:$0xff] %v7667_v6  ;;  %v6728_v32 = vpop.eup %6727  ;;  %v793_v8 = vadd.f32 1.0, %v6726_v1  ;;  %v874_v21 = vpack.c.bf16 %v7667_v6, %v7664_v5 }
 0x1db   : > { %v6730_v51 = vpop.eup %6729  ;;  %6747 = vrcp.f32 %v790_v27  ;;  %v791_v35 = vadd.f32 1.0, %v6728_v32  ;;  %928 = vrot.lane.b32.xlu0 %v875_v23, %s7284_s28 }
 0x1dc   : > { %v6732_v36 = vpop.eup %6731  ;;  %6749 = vrcp.f32 %v793_v8  ;;  %v796_v11 = vadd.f32 1.0, %v6730_v51  ;;  %926 = vrot.lane.b32.xlu1 %v874_v21, %s7284_s28 }
 0x1dd   : > { %v6734_v13 = vpop.eup %6733  ;;  %6751 = vrcp.f32 %v791_v35  ;;  %v794_v60 = vadd.f32 1.0, %v6732_v36 }
 0x1de   : > { %v6736_v22 = vpop.eup %6735  ;;  %6753 = vrcp.f32 %v796_v11  ;;  %v797_v26 = vadd.f32 1.0, %v6734_v13 }
 0x1df   : > { %v6738_v30 = vpop.eup %6737  ;;  %6755 = vrcp.f32 %v794_v60  ;;  %v795_v37 = vadd.f32 1.0, %v6736_v22 }
 0x1e0   : > { %6757 = vrcp.f32 %v797_v26  ;;  %v800_v38 = vadd.f32 1.0, %v6738_v30  ;;  %v6740_v39 = vpop.eup %6739 }
 0x1e1   : > { %6759 = vrcp.f32 %v795_v37  ;;  %v6742_v40 = vpop.eup %6741  ;;  %v798_v62 = vadd.f32 1.0, %v6740_v39 }
 0x1e2   : > { %v6744_v43 = vpop.eup %6743  ;;  %6761 = vrcp.f32 %v800_v38  ;;  %v801_v44 = vadd.f32 1.0, %v6742_v40 }
 0x1e3   : > { %v6746_v31 = vpop.eup %6745  ;;  %6763 = vrcp.f32 %v798_v62  ;;  %v799_v45 = vadd.f32 1.0, %v6744_v43 }
 0x1e4   : > { %6765 = vrcp.f32 %v801_v44  ;;  %v7677_v53 = vmul.f32 %v6746_v31, %v7575_v46 }
 0x1e5   : > { %v6748_v4 = vpop.eup %6747  ;;  %6767 = vrcp.f32 %v799_v45 }
 0x1e6   : > { %v6750_v48 = vpop.eup %6749  ;;  %11087 = vst [vmem:[#allocation27_spill] sm:$0xff] %v7677_v53  ;;  %v7683_v1 = vmul.f32 %v6748_v4, %v7578_v49 }
 0x1e7   : > { %v6752_v52 = vpop.eup %6751  ;;  %v7680_v61 = vmul.f32 %v6750_v48, %v7595_v16 }
 0x1e8   : > { %v6754_v0 = vpop.eup %6753  ;;  %11089 = vst [vmem:[#allocation29_spill] sm:$0xff] %v7683_v1  ;;  %v7686_v27 = vmul.f32 %v6752_v52, %v7600_v9 }
 0x1e9   : > { %11088 = vst [vmem:[#allocation28_spill] sm:$0xff] %v7680_v61  ;;  %v6756_v23 = vpop.eup %6755  ;;  %v877_v32 = vpack.c.bf16 %v7680_v61, %v7677_v53  ;;  %v7693_v51 = vmul.f32 %v6754_v0, %v7608_v24  ;;  %v892_v0 = vsub.s32 1, %v7451_v25 }
 0x1ea   : > { %11090 = vst [vmem:[#allocation30_spill] sm:$0xff] %v7686_v27  ;;  %v6758_v8 = vpop.eup %6757  ;;  %v876_v21 = vpack.c.bf16 %v7686_v27, %v7683_v1  ;;  %v7700_v49 = vmul.f32 %v6756_v23, %v7612_v34 }
 0x1eb   : > { %v6760_v46 = vpop.eup %6759  ;;  %11091 = vst [vmem:[#allocation31_spill] sm:$0xff] %v7693_v51  ;;  %v7696_v16 = vmul.f32 %v6758_v8, %v7616_v41  ;;  %932 = vrot.lane.b32.xlu0 %v877_v32, %s7284_s28  ;;  %v7748_v23 = vrot.slane %v7463_v29, %v892_v0 }
 0x1ec   : > { %11093 = vst [vmem:[#allocation33_spill] sm:$0xff] %v7700_v49  ;;  %v7703_v9 = vmul.f32 %v6760_v46, %v7620_v47  ;;  %930 = vrot.lane.b32.xlu1 %v876_v21, %s7284_s28  ;;  %v6762_v35 = vpop.eup %6761 }
 0x1ed   : > { %11092 = vst [vmem:[#allocation32_spill] sm:$0xff] %v7696_v16  ;;  %v879_v36 = vpack.c.bf16 %v7696_v16, %v7693_v51  ;;  %v6764_v11 = vpop.eup %6763  ;;  %v7712_v34 = vmul.f32 %v6762_v35, %v7625_v7 }
 0x1ee   : > { %11094 = vst [vmem:[#allocation34_spill] sm:$0xff] %v7703_v9  ;;  %v878_v24 = vpack.c.bf16 %v7703_v9, %v7700_v49  ;;  %v6766_v41 = vpop.eup %6765  ;;  %v7719_v60 = vmul.f32 %v6764_v11, %v7628_v10 }
 0x1ef   : > { %936 = vrot.lane.b32.xlu0 %v879_v36, %s7284_s28  ;;  %v6768_v13 = vpop.eup %6767  ;;  %11095 = vst [vmem:[#allocation35_spill] sm:$0xff] %v7712_v34  ;;  %v7715_v47 = vmul.f32 %v6766_v41, %v7635_v18 }
 0x1f0   : > { %934 = vrot.lane.b32.xlu1 %v878_v24, %s7284_s28  ;;  %11097 = vst [vmem:[#allocation37_spill] sm:$0xff] %v7719_v60  ;;  %v7722_v22 = vmul.f32 %v6768_v13, %v7642_v33 }
 0x1f1   : > { %11096 = vst [vmem:[#allocation36_spill] sm:$0xff] %v7715_v47  ;;  %v881_v26 = vpack.c.bf16 %v7715_v47, %v7712_v34 }
 0x1f2   : > { %11098 = vst [vmem:[#allocation38_spill] sm:$0xff] %v7722_v22  ;;  %v880_v30 = vpack.c.bf16 %v7722_v22, %v7719_v60 }
 0x1f3   : > { %940 = vrot.lane.b32.xlu0 %v881_v26, %s7284_s28 }
 0x1f4   : > { %938 = vrot.lane.b32.xlu1 %v880_v30, %s7284_s28 }
 0x215   : > { %v913_v18 = vpop.permute.xlu1 %912 }
 0x216   : > { %v911_v7 = vpop.permute.xlu0 %910 }
 0x217   : > { %6321 = vmatprep.mubr.msk.bf16.mxu1 %vm966_vm0, %v911_v7 }
 0x218   : > { %6322 = vmatmul.mubr.msk.bf16.vlgmr.msra.gmra.mrb[0].mxu1 %vm966_vm0, %v913_v18 }
 0x227   : > { %v915_v10 = vpop.permute.xlu1 %914 }
 0x228   : > { %6325 = vmatprep.mubr.msk.bf16.mxu1 %vm966_vm0, %v915_v10 }
 0x22b   : > { %v917_v33 = vpop.permute.xlu1 %916 }
 0x22c   : > { %6326 = vmatmul.mubr.msk.bf16.gmra.mrb[4].mxu1 %vm966_vm0, %v917_v33 }
 0x237   : > { %v921_v38 = vpop.permute.xlu0 %920 }
 0x238   : > { %v919_v37 = vpop.permute.xlu1 %918 }
 0x239   : > { %6329 = vmatprep.mubr.msk.bf16.mxu1 %vm966_vm0, %v919_v37 }
 0x23a   : > { %6330 = vmatmul.mubr.msk.bf16.gmra.mrb[8].mxu1 %vm966_vm0, %v921_v38 }
 0x248   : > { %v925_v40 = vpop.permute.xlu0 %924 }
 0x249   : > { %v923_v39 = vpop.permute.xlu1 %922 }
 0x24a   : > { %6333 = vmatprep.mubr.msk.bf16.mxu1 %vm966_vm0, %v923_v39 }
 0x24b   : > { %6334 = vmatmul.mubr.msk.bf16.gmra.mrb[12].mxu1 %vm966_vm0, %v925_v40 }
 0x24d   : > { %v929_v43 = vpop.permute.xlu0 %928 }
 0x24e   : > { %v927_v62 = vpop.permute.xlu1 %926 }
 0x24f   : > { %6337 = vmatprep.mubr.msk.bf16.mxu1 %vm966_vm0, %v927_v62 }
 0x253   : > { %6338 = vmatmul.mubr.msk.bf16.gmra.mrb[16].mxu1 %vm966_vm0, %v929_v43 }
 0x25d   : > { %v933_v31 = vpop.permute.xlu0 %932 }
 0x25e   : > { %v931_v44 = vpop.permute.xlu1 %930 }
 0x25f   : > { %6341 = vmatprep.mubr.msk.bf16.mxu1 %vm966_vm0, %v931_v44 }
 0x260   : > { %6342 = vmatmul.mubr.msk.bf16.gmra.mrb[20].mxu1 %vm966_vm0, %v933_v31 }
 0x261   : > { %v937_v4 = vpop.permute.xlu0 %936 }
 0x262   : > { %v935_v45 = vpop.permute.xlu1 %934 }
 0x263   : > { %6345 = vmatprep.mubr.msk.bf16.mxu1 %vm966_vm0, %v935_v45 }
 0x265   : > { %v941_v52 = vpop.permute.xlu0 %940 }
 0x266   : > { %v939_v48 = vpop.permute.xlu1 %938 }
 0x268   : > { %6346 = vmatmul.mubr.msk.bf16.gmra.mrb[24].mxu1 %vm966_vm0, %v937_v4 }
 0x269   : > { %6349 = vmatprep.mubr.msk.bf16.mxu1 %vm966_vm0, %v939_v48 }
 0x270   : > { %6350 = vmatmul.mubr.msk.bf16.gmra.mrb[28].mxu1 %vm966_vm0, %v941_v52 }
 0x2eb   : > { %v6323_v32 = vpop.f32.mrb[0].mxu1 }
 0x2ec   : > { %v1049_v8 = vpop.f32.mrb[1].mxu1  ;;  %v7764_v29 = vadd.f32 %v6323_v32, %v7748_v23 }
 0x2ed   : > { %v6324_v21 = vpop.f32.mrb[2].mxu1  ;;  %v7751_v35 = vadd.f32 %v1049_v8, %v7748_v23 }
 0x2ee   : > { %v1052_v46 = vpop.f32.mrb[3].mxu1  ;;  %v7757_v11 = vadd.f32 %v6324_v21, %v7748_v23  ;;  %11102 = vst [vmem:[#allocation42_spill] sm:$0xff] %v7764_v29 }
 0x2ef   : > { %11099 = vst [vmem:[#allocation39_spill] sm:$0xff] %v7751_v35  ;;  %v7754_v36 = vadd.f32 %v1052_v46, %v7748_v23 }
 0x2f0   : > { %11101 = vst [vmem:[#allocation41_spill] sm:$0xff] %v7757_v11  ;;  %v7772_v41 = vpack.c.bf16 %v7757_v11, %v7764_v29 }
 0x2f1   : > { %11100 = vst [vmem:[#allocation40_spill] sm:$0xff] %v7754_v36  ;;  %v7761_v24 = vpack.c.bf16 %v7754_v36, %v7751_v35 }
 0x2f3   : > { %1208 = vrot.lane.b32.xlu1 %v7761_v24, %s7285_s29  ;;  %6001 = vmatprep.mubr.msk.bf16.mxu1 %vm1240_vm1, %v7761_v24 }
 0x2f7   : > { %1210 = vrot.lane.b32.xlu1 %v7772_v41, %s7285_s29 }
 0x2ff   : > { %v6327_v13 = vpop.f32.mrb[4].mxu1 }
 0x300   : > { %v1065_v26 = vpop.f32.mrb[5].mxu1  ;;  %v7790_v38 = vadd.f32 %v6327_v13, %v7748_v23 }
 0x301   : > { %v6328_v30 = vpop.f32.mrb[6].mxu1  ;;  %v7777_v18 = vadd.f32 %v1065_v26, %v7748_v23 }
 0x302   : > { %v1068_v7 = vpop.f32.mrb[7].mxu1  ;;  %v7783_v33 = vadd.f32 %v6328_v30, %v7748_v23  ;;  %11106 = vst [vmem:[#allocation46_spill] sm:$0xff] %v7790_v38 }
 0x303   : > { %11103 = vst [vmem:[#allocation43_spill] sm:$0xff] %v7777_v18  ;;  %v7780_v10 = vadd.f32 %v1068_v7, %v7748_v23 }
 0x304   : > { %11105 = vst [vmem:[#allocation45_spill] sm:$0xff] %v7783_v33  ;;  %v7796_v39 = vpack.c.bf16 %v7783_v33, %v7790_v38 }
 0x305   : > { %11104 = vst [vmem:[#allocation44_spill] sm:$0xff] %v7780_v10  ;;  %v7787_v37 = vpack.c.bf16 %v7780_v10, %v7777_v18 }
 0x307   : > { %1212 = vrot.lane.b32.xlu1 %v7787_v37, %s7285_s29 }
 0x30b   : > { %1214 = vrot.lane.b32.xlu1 %v7796_v39, %s7285_s29 }
 0x30d   : > { %v6331_v40 = vpop.f32.mrb[8].mxu1 }
 0x30e   : > { %v1081_v62 = vpop.f32.mrb[9].mxu1  ;;  %v7814_v52 = vadd.f32 %v6331_v40, %v7748_v23 }
 0x30f   : > { %v6332_v43 = vpop.f32.mrb[10].mxu1  ;;  %v7801_v31 = vadd.f32 %v1081_v62, %v7748_v23 }
 0x310   : > { %v1084_v44 = vpop.f32.mrb[11].mxu1  ;;  %v7807_v4 = vadd.f32 %v6332_v43, %v7748_v23  ;;  %11110 = vst [vmem:[#allocation50_spill] sm:$0xff] %v7814_v52 }
 0x311   : > { %11107 = vst [vmem:[#allocation47_spill] sm:$0xff] %v7801_v31  ;;  %v7804_v45 = vadd.f32 %v1084_v44, %v7748_v23 }
 0x312   : > { %11109 = vst [vmem:[#allocation49_spill] sm:$0xff] %v7807_v4  ;;  %v7820_v0 = vpack.c.bf16 %v7807_v4, %v7814_v52 }
 0x313   : > { %11108 = vst [vmem:[#allocation48_spill] sm:$0xff] %v7804_v45  ;;  %v7811_v48 = vpack.c.bf16 %v7804_v45, %v7801_v31 }
 0x315   : > { %1216 = vrot.lane.b32.xlu1 %v7811_v48, %s7285_s29 }
 0x319   : > { %1218 = vrot.lane.b32.xlu1 %v7820_v0, %s7285_s29 }
 0x31e   : > { %v6335_v32 = vpop.f32.mrb[12].mxu1 }
 0x31f   : > { %v1097_v8 = vpop.f32.mrb[13].mxu1  ;;  %v7838_v40 = vadd.f32 %v6335_v32, %v7748_v23 }
 0x320   : > { %v6336_v21 = vpop.f32.mrb[14].mxu1  ;;  %v7825_v13 = vadd.f32 %v1097_v8, %v7748_v23 }
 0x321   : > { %v1100_v46 = vpop.f32.mrb[15].mxu1  ;;  %v7831_v30 = vadd.f32 %v6336_v21, %v7748_v23  ;;  %11114 = vst [vmem:[#allocation54_spill] sm:$0xff] %v7838_v40 }
 0x322   : > { %11111 = vst [vmem:[#allocation51_spill] sm:$0xff] %v7825_v13  ;;  %v7828_v26 = vadd.f32 %v1100_v46, %v7748_v23 }
 0x323   : > { %11113 = vst [vmem:[#allocation53_spill] sm:$0xff] %v7831_v30  ;;  %v7844_v44 = vpack.c.bf16 %v7831_v30, %v7838_v40 }
 0x324   : > { %11112 = vst [vmem:[#allocation52_spill] sm:$0xff] %v7828_v26  ;;  %v7835_v7 = vpack.c.bf16 %v7828_v26, %v7825_v13 }
 0x326   : > { %1220 = vrot.lane.b32.xlu1 %v7835_v7, %s7285_s29  ;;  %v6339_v62 = vpop.f32.mrb[16].mxu1 }
 0x327   : > { %v1113_v43 = vpop.f32.mrb[17].mxu1  ;;  %v7862_v22 = vadd.f32 %v6339_v62, %v7748_v23 }
 0x328   : > { %v6340_v8 = vpop.f32.mrb[18].mxu1  ;;  %v7847_v21 = vadd.f32 %v1113_v43, %v7748_v23 }
 0x329   : > { %v1116_v46 = vpop.f32.mrb[19].mxu1  ;;  %v7855_v32 = vadd.f32 %v6340_v8, %v7748_v23  ;;  %11118 = vst [vmem:[#allocation58_spill] sm:$0xff] %v7862_v22 }
 0x32a   : > { %11115 = vst [vmem:[#allocation55_spill] sm:$0xff] %v7847_v21  ;;  %v7850_v47 = vadd.f32 %v1116_v46, %v7748_v23  ;;  %1222 = vrot.lane.b32.xlu1 %v7844_v44, %s7285_s29 }
 0x32b   : > { %11117 = vst [vmem:[#allocation57_spill] sm:$0xff] %v7855_v32  ;;  %v7870_v43 = vpack.c.bf16 %v7855_v32, %v7862_v22 }
 0x32c   : > { %11116 = vst [vmem:[#allocation56_spill] sm:$0xff] %v7850_v47  ;;  %v7859_v34 = vpack.c.bf16 %v7850_v47, %v7847_v21 }
 0x32e   : > { %1682 = vrot.lane.b32.xlu1 %v7761_v24, %s7284_s28  ;;  %1224 = vrot.lane.b32.xlu0 %v7859_v34, %s7285_s29 }
 0x332   : > { %1684 = vrot.lane.b32.xlu1 %v7772_v41, %s7284_s28  ;;  %1226 = vrot.lane.b32.xlu0 %v7870_v43, %s7285_s29 }
 0x333   : > { %v6343_v46 = vpop.f32.mrb[20].mxu1 }
 0x334   : > { %v1129_v8 = vpop.f32.mrb[21].mxu1  ;;  %v7890_v61 = vadd.f32 %v6343_v46, %v7748_v23 }
 0x335   : > { %v6344_v62 = vpop.f32.mrb[22].mxu1  ;;  %v7877_v16 = vadd.f32 %v1129_v8, %v7748_v23 }
 0x336   : > { %v1132_v60 = vpop.f32.mrb[23].mxu1  ;;  %v7883_v9 = vadd.f32 %v6344_v62, %v7748_v23  ;;  %11122 = vst [vmem:[#allocation62_spill] sm:$0xff] %v7890_v61 }
 0x337   : > { %11119 = vst [vmem:[#allocation59_spill] sm:$0xff] %v7877_v16  ;;  %v7880_v51 = vadd.f32 %v1132_v60, %v7748_v23 }
 0x338   : > { %11121 = vst [vmem:[#allocation61_spill] sm:$0xff] %v7883_v9  ;;  %v7898_v60 = vpack.c.bf16 %v7883_v9, %v7890_v61 }
 0x339   : > { %11120 = vst [vmem:[#allocation60_spill] sm:$0xff] %v7880_v51  ;;  %v7887_v49 = vpack.c.bf16 %v7880_v51, %v7877_v16 }
 0x33b   : > { %1702 = vrot.lane.b32.xlu1 %v7887_v49, %s7284_s28  ;;  %1228 = vrot.lane.b32.xlu0 %v7887_v49, %s7285_s29  ;;  %v6347_v8 = vpop.f32.mrb[24].mxu1 }
 0x33c   : > { %v1145_v53 = vpop.f32.mrb[25].mxu1  ;;  %v7918_v5 = vadd.f32 %v6347_v8, %v7748_v23 }
 0x33d   : > { %v6348_v62 = vpop.f32.mrb[26].mxu1  ;;  %v7901_v1 = vadd.f32 %v1145_v53, %v7748_v23 }
 0x33e   : > { %v1148_v27 = vpop.f32.mrb[27].mxu1  ;;  %v7911_v54 = vadd.f32 %v6348_v62, %v7748_v23  ;;  %11126 = vst [vmem:[#allocation66_spill] sm:$0xff] %v7918_v5 }
 0x33f   : > { %11123 = vst [vmem:[#allocation63_spill] sm:$0xff] %v7901_v1  ;;  %v7904_v46 = vadd.f32 %v1148_v27, %v7748_v23  ;;  %1688 = vrot.lane.b32.xlu1 %v7796_v39, %s7284_s28  ;;  %1230 = vrot.lane.b32.xlu0 %v7898_v60, %s7285_s29 }
 0x340   : > { %11125 = vst [vmem:[#allocation65_spill] sm:$0xff] %v7911_v54  ;;  %v7926_v6 = vpack.c.bf16 %v7911_v54, %v7918_v5 }
 0x341   : > { %11124 = vst [vmem:[#allocation64_spill] sm:$0xff] %v7904_v46  ;;  %v7915_v63 = vpack.c.bf16 %v7904_v46, %v7901_v1 }
 0x343   : > { %1706 = vrot.lane.b32.xlu1 %v7915_v63, %s7284_s28  ;;  %1232 = vrot.lane.b32.xlu0 %v7915_v63, %s7285_s29  ;;  %v6351_v53 = vpop.f32.mrb[28].mxu1 }
 0x344   : > { %v1161_v27 = vpop.f32.mrb[29].mxu1  ;;  %v7946_v56 = vadd.f32 %v6351_v53, %v7748_v23 }
 0x345   : > { %v6352_v62 = vpop.f32.mrb[30].mxu1  ;;  %v7929_v28 = vadd.f32 %v1161_v27, %v7748_v23 }
 0x346   : > { %v1164_v17 = vpop.f32.mrb[31].mxu1  ;;  %v7939_v42 = vadd.f32 %v6352_v62, %v7748_v23  ;;  %11130 = vst [vmem:[#allocation70_spill] sm:$0xff] %v7946_v56 }
 0x347   : > { %11127 = vst [vmem:[#allocation67_spill] sm:$0xff] %v7929_v28  ;;  %v7932_v8 = vadd.f32 %v1164_v17, %v7748_v23  ;;  %1692 = vrot.lane.b32.xlu1 %v7820_v0, %s7284_s28  ;;  %1234 = vrot.lane.b32.xlu0 %v7926_v6, %s7285_s29 }
 0x348   : > { %11129 = vst [vmem:[#allocation69_spill] sm:$0xff] %v7939_v42  ;;  %v7954_v17 = vpack.c.bf16 %v7939_v42, %v7946_v56 }
 0x349   : > { %11128 = vst [vmem:[#allocation68_spill] sm:$0xff] %v7932_v8  ;;  %v7943_v50 = vpack.c.bf16 %v7932_v8, %v7929_v28 }
 0x34b   : > { %1710 = vrot.lane.b32.xlu1 %v7943_v50, %s7284_s28  ;;  %1236 = vrot.lane.b32.xlu0 %v7943_v50, %s7285_s29 }
 0x34f   : > { %1238 = vrot.lane.b32.xlu0 %v7954_v17, %s7285_s29 }
 0x353   : > { %1698 = vrot.lane.b32.xlu0 %v7859_v34, %s7284_s28 }
 0x357   : > { %1700 = vrot.lane.b32.xlu0 %v7870_v43, %s7284_s28 }
 0x35b   : > { %1686 = vrot.lane.b32.xlu0 %v7787_v37, %s7284_s28 }
 0x35f   : > { %1704 = vrot.lane.b32.xlu0 %v7898_v60, %s7284_s28 }
 0x363   : > { %1690 = vrot.lane.b32.xlu0 %v7811_v48, %s7284_s28 }
 0x365   : > { %v1209_v23 = vpop.permute.xlu1 %1208 }
 0x366   : > { %v7973_v3 = vsel %vm1240_vm1, %v1209_v23, 0 }
 0x367   : > { %1708 = vrot.lane.b32.xlu0 %v7926_v6, %s7284_s28 }
 0x369   : > { %v1211_v53 = vpop.permute.xlu1 %1210 }
 0x36a   : > { %v7982_v58 = vsel %vm1240_vm1, %v1211_v53, 0 }
 0x36b   : > { %1694 = vrot.lane.b32.xlu0 %v7835_v7, %s7284_s28 }
 0x379   : > { %v1213_v27 = vpop.permute.xlu1 %1212 }
 0x37a   : > { %v1272_v19 = vsel %vm1240_vm1, %v1213_v27, 0 }
 0x37d   : > { %v1215_v62 = vpop.permute.xlu1 %1214 }
 0x37e   : > { %v1275_v53 = vsel %vm1240_vm1, %v1215_v62, 0 }
 0x387   : > { %v1217_v2 = vpop.permute.xlu1 %1216 }
 0x388   : > { %v1278_v27 = vsel %vm1240_vm1, %v1217_v2, 0 }
 0x38b   : > { %v1219_v55 = vpop.permute.xlu1 %1218 }
 0x38c   : > { %v1281_v9 = vsel %vm1240_vm1, %v1219_v55, 0 }
 0x398   : > { %v1221_v59 = vpop.permute.xlu1 %1220 }
 0x399   : > { %v1284_v55 = vsel %vm1240_vm1, %v1221_v59, 0 }
 0x39c   : > { %v1223_v23 = vpop.permute.xlu1 %1222 }
 0x39d   : > { %v1287_v59 = vsel %vm1240_vm1, %v1223_v23, 0 }
 0x3a0   : > { %v1225_v57 = vpop.permute.xlu0 %1224  ;;  %v7988_v25 = vpop.permute.xlu1 %1682 }
 0x3a1   : > { %6545 = vmatprep.subr.msk.bf16.mxu1 %vm1240_vm1, %v1225_v57  ;;  %11131 = vst [vmem:[#allocation71_spill] sm:$0xff] %v7988_v25 }
 0x3a2   : > { %5986 = vmatpush3.bf16.xpose.msra.mxu1 %v7973_v3 }
 0x3a4   : > { %v7977_v12 = vpop.permute.xlu0 %1226  ;;  %v7994_v8 = vpop.permute.xlu1 %1684 }
 0x3a5   : > { %6546 = vmatprep.subr.msk.bf16.mxu1 %vm1240_vm1, %v7977_v12  ;;  %11132 = vst [vmem:[#allocation72_spill] sm:$0xff] %v7994_v8 }
 0x3aa   : > { %5988 = vmatpush3.bf16.xpose.msra.mxu1 %v7982_v58 }
 0x3ad   : > { %v1229_v14 = vpop.permute.xlu0 %1228  ;;  %v8001_v28 = vpop.permute.xlu1 %1702 }
 0x3ae   : > { %6547 = vmatprep.subr.msk.bf16.mxu1 %vm1240_vm1, %v1229_v14  ;;  %11133 = vst [vmem:[#allocation73_spill] sm:$0xff] %v8001_v28 }
 0x3b1   : > { %v1231_v15 = vpop.permute.xlu0 %1230  ;;  %v8009_v62 = vpop.permute.xlu1 %1688 }
 0x3b2   : > { %5990 = vmatpush3.bf16.xpose.msra.mxu1 %v1272_v19  ;;  %11135 = vst [vmem:[#allocation75_spill] sm:$0xff] %v8009_v62 }
 0x3b3   : > { %6548 = vmatprep.subr.msk.bf16.mxu1 %vm1240_vm1, %v1231_v15 }
 0x3b5   : > { %v1233_v20 = vpop.permute.xlu0 %1232  ;;  %v8021_v1 = vpop.permute.xlu1 %1706 }
 0x3b6   : > { %11138 = vst [vmem:[#allocation78_spill] sm:$0xff] %v8021_v1 }
 0x3b9   : > { %v7990_v42 = vpop.permute.xlu0 %1234  ;;  %v8032_v61 = vpop.permute.xlu1 %1692 }
 0x3ba   : > { %5992 = vmatpush3.bf16.xpose.msra.mxu1 %v1275_v53  ;;  %11140 = vst [vmem:[#allocation80_spill] sm:$0xff] %v8032_v61 }
 0x3bb   : > { %6549 = vmatprep.subr.msk.bf16.mxu1 %vm1240_vm1, %v1233_v20 }
 0x3bd   : > { %v7996_v56 = vpop.permute.xlu0 %1236  ;;  %v8041_v47 = vpop.permute.xlu1 %1710 }
 0x3be   : > { %11143 = vst [vmem:[#allocation83_spill] sm:$0xff] %v8041_v47 }
 0x3c1   : > { %v7998_v54 = vpop.permute.xlu0 %1238 }
 0x3c2   : > { %5994 = vmatpush3.bf16.xpose.msra.mxu1 %v1278_v27 }
 0x3c3   : > { %6550 = vmatprep.subr.msk.bf16.mxu1 %vm1240_vm1, %v7990_v42 }
 0x3c5   : > { %v8005_v46 = vpop.permute.xlu0 %1698 }
 0x3c6   : > { %11134 = vst [vmem:[#allocation74_spill] sm:$0xff] %v8005_v46  ;;  %6017 = vmatprep.subr.bf16.mxu0 %v8005_v46 }
 0x3c7   : > { %6018 = vmatpush3.bf16.msra.mxu0 %v7988_v25 }
 0x3c9   : > { %v8011_v5 = vpop.permute.xlu0 %1700 }
 0x3ca   : > { %11136 = vst [vmem:[#allocation76_spill] sm:$0xff] %v8011_v5  ;;  %6019 = vmatprep.subr.bf16.mxu0 %v8011_v5  ;;  %5996 = vmatpush3.bf16.xpose.msra.mxu1 %v1281_v9 }
 0x3cb   : > { %6020 = vmatpush3.bf16.msra.mxu0 %v7994_v8  ;;  %6551 = vmatprep.subr.msk.bf16.mxu1 %vm1240_vm1, %v7996_v56 }
 0x3cc   : > { %6021 = vmatprep.subr.bf16.mxu0 %v8001_v28 }
 0x3cd   : > { %v8019_v2 = vpop.permute.xlu0 %1686 }
 0x3ce   : > { %11137 = vst [vmem:[#allocation77_spill] sm:$0xff] %v8019_v2 }
 0x3cf   : > { %6022 = vmatpush3.bf16.msra.mxu0 %v8019_v2 }
 0x3d1   : > { %v8024_v51 = vpop.permute.xlu0 %1704 }
 0x3d2   : > { %11139 = vst [vmem:[#allocation79_spill] sm:$0xff] %v8024_v51  ;;  %6023 = vmatprep.subr.bf16.mxu0 %v8024_v51  ;;  %5998 = vmatpush3.bf16.xpose.msra.mxu1 %v1284_v55 }
 0x3d3   : > { %6024 = vmatpush3.bf16.msra.mxu0 %v8009_v62  ;;  %6552 = vmatprep.subr.msk.bf16.mxu1 %vm1240_vm1, %v7998_v54 }
 0x3d4   : > { %6025 = vmatprep.subr.bf16.mxu0 %v8021_v1 }
 0x3d5   : > { %v8034_v32 = vpop.permute.xlu0 %1690 }
 0x3d6   : > { %11141 = vst [vmem:[#allocation81_spill] sm:$0xff] %v8034_v32 }
 0x3d7   : > { %6026 = vmatpush3.bf16.msra.mxu0 %v8034_v32 }
 0x3d9   : > { %v8037_v16 = vpop.permute.xlu0 %1708 }
 0x3da   : > { %11142 = vst [vmem:[#allocation82_spill] sm:$0xff] %v8037_v16  ;;  %6027 = vmatprep.subr.bf16.mxu0 %v8037_v16  ;;  %6000 = vmatpush3.bf16.xpose.msra.mxu1 %v1287_v59 }
 0x3db   : > { %6028 = vmatpush3.bf16.msra.mxu0 %v8032_v61  ;;  %6553 = vmatprep.subr.msk.bf16.mxu1 %vm1240_vm1, %v1225_v57 }
 0x3dc   : > { %6029 = vmatprep.subr.bf16.mxu0 %v8041_v47 }
 0x3dd   : > { %v8046_v22 = vpop.permute.xlu0 %1694 }
 0x3de   : > { %11144 = vst [vmem:[#allocation84_spill] sm:$0xff] %v8046_v22 }
 0x3df   : > { %6030 = vmatpush3.bf16.msra.mxu0 %v8046_v22 }
 0x3e1   : > { %6002 = vmatmul.mubr.msk.bf16.vlgmr.msra.gmra.mrb[32].mxu1 %vm1240_vm1, %v7761_v24 }
 0x3e2   : > { %6003 = vmatprep.mubr.msk.bf16.mxu1 %vm1240_vm1, %v7772_v41  ;;  %6082 = vmatpush3.bf16.xpose.msra.mxu1 %v7973_v3 }
 0x3e3   : > { %6554 = vmatprep.subr.msk.bf16.mxu1 %vm1240_vm1, %v7977_v12 }
 0x3e9   : > { %6004 = vmatmul.mubr.msk.bf16.gmra.mrb[36].mxu1 %vm1240_vm1, %v7772_v41 }
 0x3ea   : > { %6005 = vmatprep.mubr.msk.bf16.mxu1 %vm1240_vm1, %v7787_v37  ;;  %6084 = vmatpush3.bf16.xpose.msra.mxu1 %v7982_v58 }
 0x3eb   : > { %6555 = vmatprep.subr.msk.bf16.mxu1 %vm1240_vm1, %v1229_v14 }
 0x3f1   : > { %6006 = vmatmul.mubr.msk.bf16.gmra.mrb[40].mxu1 %vm1240_vm1, %v7787_v37 }
 0x3f2   : > { %6007 = vmatprep.mubr.msk.bf16.mxu1 %vm1240_vm1, %v7796_v39  ;;  %6086 = vmatpush3.bf16.xpose.msra.mxu1 %v1272_v19 }
 0x3f3   : > { %6556 = vmatprep.subr.msk.bf16.mxu1 %vm1240_vm1, %v1231_v15 }
 0x3f9   : > { %6008 = vmatmul.mubr.msk.bf16.gmra.mrb[44].mxu1 %vm1240_vm1, %v7796_v39 }
 0x3fa   : > { %6009 = vmatprep.mubr.msk.bf16.mxu1 %vm1240_vm1, %v7811_v48  ;;  %6088 = vmatpush3.bf16.xpose.msra.mxu1 %v1275_v53 }
 0x3fb   : > { %6557 = vmatprep.subr.msk.bf16.mxu1 %vm1240_vm1, %v1233_v20 }
 0x401   : > { %6010 = vmatmul.mubr.msk.bf16.gmra.mrb[48].mxu1 %vm1240_vm1, %v7811_v48 }
 0x402   : > { %6011 = vmatprep.mubr.msk.bf16.mxu1 %vm1240_vm1, %v7820_v0  ;;  %6090 = vmatpush3.bf16.xpose.msra.mxu1 %v1278_v27 }
 0x403   : > { %6558 = vmatprep.subr.msk.bf16.mxu1 %vm1240_vm1, %v7990_v42 }
 0x409   : > { %6012 = vmatmul.mubr.msk.bf16.gmra.mrb[52].mxu1 %vm1240_vm1, %v7820_v0 }
 0x40a   : > { %6013 = vmatprep.mubr.msk.bf16.mxu1 %vm1240_vm1, %v7835_v7  ;;  %6092 = vmatpush3.bf16.xpose.msra.mxu1 %v1281_v9 }
 0x40b   : > { %6559 = vmatprep.subr.msk.bf16.mxu1 %vm1240_vm1, %v7996_v56 }
 0x411   : > { %6014 = vmatmul.mubr.msk.bf16.gmra.mrb[56].mxu1 %vm1240_vm1, %v7835_v7 }
 0x412   : > { %6015 = vmatprep.mubr.msk.bf16.mxu1 %vm1240_vm1, %v7844_v44  ;;  %6094 = vmatpush3.bf16.xpose.msra.mxu1 %v1284_v55 }
 0x413   : > { %6560 = vmatprep.subr.msk.bf16.mxu1 %vm1240_vm1, %v7998_v54 }
 0x419   : > { %6016 = vmatmul.mubr.msk.bf16.gmra.mrb[60].mxu1 %vm1240_vm1, %v7844_v44 }
 0x41a   : > { %6096 = vmatpush3.bf16.xpose.msra.mxu1 %v1287_v59  ;;  %6097 = vmatprep.mubr.msk.bf16.mxu1 %vm1240_vm1, %v7859_v34 }
 0x421   : > { %6098 = vmatmul.mubr.msk.bf16.vlgmr.msra.gmra.mrb[64].mxu1 %vm1240_vm1, %v7859_v34 }
 0x422   : > { %6099 = vmatprep.mubr.msk.bf16.mxu1 %vm1240_vm1, %v7870_v43 }
 0x429   : > { %6100 = vmatmul.mubr.msk.bf16.gmra.mrb[68].mxu1 %vm1240_vm1, %v7870_v43 }
 0x42a   : > { %6101 = vmatprep.mubr.msk.bf16.mxu1 %vm1240_vm1, %v7887_v49 }
 0x431   : > { %6102 = vmatmul.mubr.msk.bf16.gmra.mrb[72].mxu1 %vm1240_vm1, %v7887_v49 }
 0x432   : > { %6103 = vmatprep.mubr.msk.bf16.mxu1 %vm1240_vm1, %v7898_v60 }
 0x439   : > { %6104 = vmatmul.mubr.msk.bf16.gmra.mrb[76].mxu1 %vm1240_vm1, %v7898_v60 }
 0x43a   : > { %6105 = vmatprep.mubr.msk.bf16.mxu1 %vm1240_vm1, %v7915_v63 }
 0x441   : > { %6106 = vmatmul.mubr.msk.bf16.gmra.mrb[80].mxu1 %vm1240_vm1, %v7915_v63 }
 0x442   : > { %6107 = vmatprep.mubr.msk.bf16.mxu1 %vm1240_vm1, %v7926_v6 }
 0x449   : > { %6108 = vmatmul.mubr.msk.bf16.gmra.mrb[84].mxu1 %vm1240_vm1, %v7926_v6 }
 0x44a   : > { %6109 = vmatprep.mubr.msk.bf16.mxu1 %vm1240_vm1, %v7943_v50 }
 0x451   : > { %6110 = vmatmul.mubr.msk.bf16.gmra.mrb[88].mxu1 %vm1240_vm1, %v7943_v50 }
 0x452   : > { %6111 = vmatprep.mubr.msk.bf16.mxu1 %vm1240_vm1, %v7954_v17 }
 0x459   : > { %6112 = vmatmul.mubr.msk.bf16.gmra.mrb[92].mxu1 %vm1240_vm1, %v7954_v17 }
 0x4b4   : > { %v8124_v14 = vpop.f32.mrb[32].mxu1 }
 0x4b5   : > { %v8126_v15 = vpop.f32.mrb[33].mxu1 }
 0x4b6   : > { %v8128_v19 = vpop.f32.mrb[34].mxu1  ;;  %v1426_v20 = vmax.f32 %v8124_v14, %v8126_v15 }
 0x4b7   : > { %v8132_v58 = vpop.f32.mrb[35].mxu1 }
 0x4b8   : > { %1427 = vmax.xlane.f32.xlu1 %v1426_v20  ;;  %v1429_v12 = vmax.f32 %v8128_v19, %v8132_v58 }
 0x4ba   : > { %1430 = vmax.xlane.f32.xlu0 %v1429_v12 }
 0x4bc   : > { %v8136_v56 = vpop.f32.mrb[36].mxu1 }
 0x4bd   : > { %v8138_v57 = vpop.f32.mrb[37].mxu1 }
 0x4be   : > { %v8140_v3 = vpop.f32.mrb[38].mxu1  ;;  %v1432_v50 = vmax.f32 %v8136_v56, %v8138_v57 }
 0x4bf   : > { %v8144_v42 = vpop.f32.mrb[39].mxu1 }
 0x4c0   : > { %1433 = vmax.xlane.f32.xlu0 %v1432_v50  ;;  %v1435_v54 = vmax.f32 %v8140_v3, %v8144_v42 }
 0x4c2   : > { %1436 = vmax.xlane.f32.xlu1 %v1435_v54 }
 0x4c4   : > { %v8148_v63 = vpop.f32.mrb[40].mxu1 }
 0x4c5   : > { %v8150_v6 = vpop.f32.mrb[41].mxu1 }
 0x4c6   : > { %v8152_v49 = vpop.f32.mrb[42].mxu1  ;;  %v1438_v9 = vmax.f32 %v8148_v63, %v8150_v6 }
 0x4c7   : > { %v8156_v34 = vpop.f32.mrb[43].mxu1 }
 0x4c8   : > { %1439 = vmax.xlane.f32.xlu0 %v1438_v9  ;;  %v1441_v24 = vmax.f32 %v8152_v49, %v8156_v34 }
 0x4ca   : > { %1442 = vmax.xlane.f32.xlu1 %v1441_v24 }
 0x4cc   : > { %v8160_v41 = vpop.f32.mrb[44].mxu1 }
 0x4cd   : > { %v8162_v37 = vpop.f32.mrb[45].mxu1 }
 0x4ce   : > { %v8164_v39 = vpop.f32.mrb[46].mxu1  ;;  %v1444_v48 = vmax.f32 %v8160_v41, %v8162_v37 }
 0x4cf   : > { %v8168_v0 = vpop.f32.mrb[47].mxu1 }
 0x4d0   : > { %1445 = vmax.xlane.f32.xlu0 %v1444_v48  ;;  %v1447_v7 = vmax.f32 %v8164_v39, %v8168_v0 }
 0x4d2   : > { %1448 = vmax.xlane.f32.xlu1 %v1447_v7 }
 0x4d4   : > { %v8172_v43 = vpop.f32.mrb[48].mxu1 }
 0x4d5   : > { %v8174_v60 = vpop.f32.mrb[49].mxu1 }
 0x4d6   : > { %v8176_v23 = vpop.f32.mrb[50].mxu1  ;;  %v1450_v53 = vmax.f32 %v8172_v43, %v8174_v60 }
 0x4d7   : > { %v8180_v27 = vpop.f32.mrb[51].mxu1 }
 0x4d8   : > { %1451 = vmax.xlane.f32.xlu0 %v1450_v53  ;;  %v1453_v55 = vmax.f32 %v8176_v23, %v8180_v27 }
 0x4da   : > { %1454 = vmax.xlane.f32.xlu1 %v1453_v55 }
 0x4dc   : > { %v8184_v59 = vpop.f32.mrb[52].mxu1 }
 0x4dd   : > { %v8186_v20 = vpop.f32.mrb[53].mxu1 }
 0x4de   : > { %v8188_v12 = vpop.f32.mrb[54].mxu1  ;;  %v1456_v50 = vmax.f32 %v8184_v59, %v8186_v20 }
 0x4df   : > { %v8192_v54 = vpop.f32.mrb[55].mxu1 }
 0x4e0   : > { %1457 = vmax.xlane.f32.xlu0 %v1456_v50  ;;  %v1459_v9 = vmax.f32 %v8188_v12, %v8192_v54 }
 0x4e2   : > { %1460 = vmax.xlane.f32.xlu1 %v1459_v9 }
 0x4e4   : > { %v8196_v24 = vpop.f32.mrb[56].mxu1 }
 0x4e5   : > { %v8198_v48 = vpop.f32.mrb[57].mxu1 }
 0x4e6   : > { %v8200_v7 = vpop.f32.mrb[58].mxu1  ;;  %v1462_v53 = vmax.f32 %v8196_v24, %v8198_v48 }
 0x4e7   : > { %v8204_v55 = vpop.f32.mrb[59].mxu1 }
 0x4e8   : > { %1463 = vmax.xlane.f32.xlu0 %v1462_v53  ;;  %v1465_v30 = vmax.f32 %v8200_v7, %v8204_v55 }
 0x4ea   : > { %1466 = vmax.xlane.f32.xlu1 %v1465_v30 }
 0x4ec   : > { %v8208_v50 = vpop.f32.mrb[60].mxu1 }
 0x4ed   : > { %v8210_v21 = vpop.f32.mrb[61].mxu1 }
 0x4ee   : > { %v8212_v9 = vpop.f32.mrb[62].mxu1  ;;  %v1468_v26 = vmax.f32 %v8208_v50, %v8210_v21 }
 0x4ef   : > { %v8216_v40 = vpop.f32.mrb[63].mxu1 }
 0x4f0   : > { %1469 = vmax.xlane.f32.xlu0 %v1468_v26  ;;  %v1471_v4 = vmax.f32 %v8212_v9, %v8216_v40 }
 0x4f2   : > { %1472 = vmax.xlane.f32.xlu1 %v1471_v4 }
 0x4f4   : > { %v8220_v53 = vpop.f32.mrb[64].mxu1 }
 0x4f5   : > { %v8222_v13 = vpop.f32.mrb[65].mxu1 }
 0x4f6   : > { %v8224_v30 = vpop.f32.mrb[66].mxu1  ;;  %v1964_v45 = vmax.f32 %v8220_v53, %v8222_v13 }
 0x4f7   : > { %v8228_v52 = vpop.f32.mrb[67].mxu1 }
 0x4f8   : > { %1965 = vmax.xlane.f32.xlu0 %v1964_v45  ;;  %v1967_v33 = vmax.f32 %v8224_v30, %v8228_v52 }
 0x4fa   : > { %1968 = vmax.xlane.f32.xlu1 %v1967_v33 }
 0x4fc   : > { %v8232_v26 = vpop.f32.mrb[68].mxu1 }
 0x4fd   : > { %v8234_v31 = vpop.f32.mrb[69].mxu1 }
 0x4fe   : > { %v8236_v4 = vpop.f32.mrb[70].mxu1  ;;  %v1970_v10 = vmax.f32 %v8232_v26, %v8234_v31 }
 0x4ff   : > { %v8240_v38 = vpop.f32.mrb[71].mxu1 }
 0x500   : > { %v1973_v11 = vmax.f32 %v8236_v4, %v8240_v38  ;;  %1971 = vmax.xlane.f32.xlu0 %v1970_v10 }
 0x502   : > { %1974 = vmax.xlane.f32.xlu1 %v1973_v11 }
 0x504   : > { %v8244_v45 = vpop.f32.mrb[72].mxu1 }
 0x505   : > { %v8246_v18 = vpop.f32.mrb[73].mxu1 }
 0x506   : > { %v8248_v33 = vpop.f32.mrb[74].mxu1  ;;  %v1976_v35 = vmax.f32 %v8244_v45, %v8246_v18 }
 0x507   : > { %v8252_v29 = vpop.f32.mrb[75].mxu1 }
 0x508   : > { %v1979_v36 = vmax.f32 %v8248_v33, %v8252_v29  ;;  %1977 = vmax.xlane.f32.xlu0 %v1976_v35 }
 0x50a   : > { %1980 = vmax.xlane.f32.xlu1 %v1979_v36 }
 0x50c   : > { %v8256_v22 = vpop.f32.mrb[76].mxu1 }
 0x50d   : > { %v8258_v10 = vpop.f32.mrb[77].mxu1 }
 0x50e   : > { %11145 = vst [vmem:[#allocation85_spill] sm:$0xff] %v8258_v10  ;;  %v1982_v11 = vmax.f32 %v8256_v22, %v8258_v10  ;;  %v8262_v47 = vpop.f32.mrb[78].mxu1 }
 0x50f   : > { %11146 = vst [vmem:[#allocation86_spill] sm:$0xff] %v8262_v47  ;;  %v8264_v61 = vpop.f32.mrb[79].mxu1 }
 0x510   : > { %11147 = vst [vmem:[#allocation87_spill] sm:$0xff] %v8264_v61  ;;  %v1985_v16 = vmax.f32 %v8262_v47, %v8264_v61  ;;  %1983 = vmax.xlane.f32.xlu1 %v1982_v11 }
 0x512   : > { %1986 = vmax.xlane.f32.xlu0 %v1985_v16 }
 0x514   : > { %v8268_v32 = vpop.f32.mrb[80].mxu1 }
 0x515   : > { %11148 = vst [vmem:[#allocation88_spill] sm:$0xff] %v8268_v32  ;;  %v8270_v35 = vpop.f32.mrb[81].mxu1 }
 0x516   : > { %11149 = vst [vmem:[#allocation89_spill] sm:$0xff] %v8270_v35  ;;  %v1988_v36 = vmax.f32 %v8268_v32, %v8270_v35  ;;  %v8274_v1 = vpop.f32.mrb[82].mxu1 }
 0x517   : > { %11150 = vst [vmem:[#allocation90_spill] sm:$0xff] %v8274_v1  ;;  %v8276_v62 = vpop.f32.mrb[83].mxu1 }
 0x518   : > { %11151 = vst [vmem:[#allocation91_spill] sm:$0xff] %v8276_v62  ;;  %v1991_v51 = vmax.f32 %v8274_v1, %v8276_v62  ;;  %1989 = vmax.xlane.f32.xlu1 %v1988_v36 }
 0x51a   : > { %1992 = vmax.xlane.f32.xlu0 %v1991_v51 }
 0x51c   : > { %v8280_v2 = vpop.f32.mrb[84].mxu1 }
 0x51d   : > { %11152 = vst [vmem:[#allocation92_spill] sm:$0xff] %v8280_v2  ;;  %v8282_v11 = vpop.f32.mrb[85].mxu1 }
 0x51e   : > { %11153 = vst [vmem:[#allocation93_spill] sm:$0xff] %v8282_v11  ;;  %v1994_v16 = vmax.f32 %v8280_v2, %v8282_v11  ;;  %v8286_v28 = vpop.f32.mrb[86].mxu1 }
 0x51f   : > { %11154 = vst [vmem:[#allocation94_spill] sm:$0xff] %v8286_v28  ;;  %v8288_v8 = vpop.f32.mrb[87].mxu1 }
 0x520   : > { %11155 = vst [vmem:[#allocation95_spill] sm:$0xff] %v8288_v8  ;;  %v1997_v5 = vmax.f32 %v8286_v28, %v8288_v8  ;;  %1995 = vmax.xlane.f32.xlu1 %v1994_v16 }
 0x522   : > { %1998 = vmax.xlane.f32.xlu0 %v1997_v5 }
 0x524   : > { %v8292_v25 = vpop.f32.mrb[88].mxu1 }
 0x525   : > { %11156 = vst [vmem:[#allocation96_spill] sm:$0xff] %v8292_v25  ;;  %v8294_v36 = vpop.f32.mrb[89].mxu1 }
 0x526   : > { %11157 = vst [vmem:[#allocation97_spill] sm:$0xff] %v8294_v36  ;;  %v2000_v51 = vmax.f32 %v8292_v25, %v8294_v36  ;;  %v8298_v46 = vpop.f32.mrb[90].mxu1 }
 0x527   : > { %11158 = vst [vmem:[#allocation98_spill] sm:$0xff] %v8298_v46  ;;  %v8300_v62 = vpop.f32.mrb[91].mxu1 }
 0x528   : > { %11159 = vst [vmem:[#allocation99_spill] sm:$0xff] %v8300_v62  ;;  %v2003_v11 = vmax.f32 %v8298_v46, %v8300_v62  ;;  %2001 = vmax.xlane.f32.xlu1 %v2000_v51 }
 0x52a   : > { %2004 = vmax.xlane.f32.xlu0 %v2003_v11 }
 0x52c   : > { %v8304_v2 = vpop.f32.mrb[92].mxu1 }
 0x52d   : > { %v8306_v16 = vpop.f32.mrb[93].mxu1 }
 0x52e   : > { %v8310_v8 = vpop.f32.mrb[94].mxu1 }
 0x52f   : > { %v8312_v28 = vpop.f32.mrb[95].mxu1 }
 0x545   : > { %v1428_v25 = vpop.xlane.xlu1 %1427 }
 0x546   : > { %v1474_v1 = vsub.f32 %v8124_v14, %v1428_v25  ;;  %v1475_v51 = vsub.f32 %v8126_v15, %v1428_v25 }
 0x547   : > { %v1431_v11 = vpop.xlane.xlu0 %1430 }
 0x548   : > { %v1506_v62 = vmul.f32 1.442695, %v1474_v1  ;;  %v1508_v46 = vmul.f32 1.442695, %v1475_v51  ;;  %v1476_v35 = vsub.f32 %v8128_v19, %v1431_v11  ;;  %v1477_v32 = vsub.f32 %v8132_v58, %v1431_v11 }
 0x54a   : > { %6769 = vpow2.f32 %v1506_v62  ;;  %v1510_v5 = vmul.f32 1.442695, %v1476_v35  ;;  %v1512_v61 = vmul.f32 1.442695, %v1477_v32 }
 0x54b   : > { %6771 = vpow2.f32 %v1508_v46 }
 0x54c   : > { %6773 = vpow2.f32 %v1510_v5 }
 0x54d   : > { %6775 = vpow2.f32 %v1512_v61  ;;  %v1434_v47 = vpop.xlane.xlu0 %1433 }
 0x54e   : > { %v1478_v36 = vsub.f32 %v8136_v56, %v1434_v47  ;;  %v1479_v14 = vsub.f32 %v8138_v57, %v1434_v47 }
 0x54f   : > { %v1437_v10 = vpop.xlane.xlu1 %1436 }
 0x550   : > { %v1514_v25 = vmul.f32 1.442695, %v1478_v36  ;;  %v1516_v15 = vmul.f32 1.442695, %v1479_v14  ;;  %v1480_v1 = vsub.f32 %v8140_v3, %v1437_v10  ;;  %v1481_v19 = vsub.f32 %v8144_v42, %v1437_v10 }
 0x552   : > { %6777 = vpow2.f32 %v1514_v25  ;;  %v1518_v58 = vmul.f32 1.442695, %v1480_v1  ;;  %v1520_v62 = vmul.f32 1.442695, %v1481_v19 }
 0x553   : > { %6779 = vpow2.f32 %v1516_v15 }
 0x554   : > { %v8324_v32 = vpop.eup %6769  ;;  %6781 = vpow2.f32 %v1518_v58 }
 0x555   : > { %v8326_v61 = vpop.eup %6771  ;;  %6783 = vpow2.f32 %v1520_v62  ;;  %v1440_v46 = vpop.xlane.xlu0 %1439 }
 0x556   : > { %v8328_v56 = vpop.eup %6773  ;;  %v1482_v47 = vsub.f32 %v8148_v63, %v1440_v46  ;;  %v1483_v57 = vsub.f32 %v8150_v6, %v1440_v46  ;;  %v1570_v3 = vadd.f32 %v8326_v61, %v8324_v32 }
 0x557   : > { %v8334_v42 = vpop.eup %6775  ;;  %v1443_v10 = vpop.xlane.xlu1 %1442 }
 0x558   : > { %v1522_v35 = vmul.f32 1.442695, %v1482_v47  ;;  %v1524_v36 = vmul.f32 1.442695, %v1483_v57  ;;  %v1484_v5 = vsub.f32 %v8152_v49, %v1443_v10  ;;  %v1485_v51 = vsub.f32 %v8156_v34, %v1443_v10  ;;  %1571 = vadd.xlane.f32.xlu0 %v1570_v3 }
 0x559   : > { %v1573_v11 = vadd.f32 %v8334_v42, %v8328_v56 }
 0x55a   : > { %6785 = vpow2.f32 %v1522_v35  ;;  %v1526_v63 = vmul.f32 1.442695, %v1484_v5  ;;  %v1528_v14 = vmul.f32 1.442695, %v1485_v51 }
 0x55b   : > { %6787 = vpow2.f32 %v1524_v36  ;;  %1574 = vadd.xlane.f32.xlu1 %v1573_v11 }
 0x55c   : > { %v8340_v6 = vpop.eup %6777  ;;  %6789 = vpow2.f32 %v1526_v63 }
 0x55d   : > { %v8342_v25 = vpop.eup %6779  ;;  %6791 = vpow2.f32 %v1528_v14  ;;  %v1446_v3 = vpop.xlane.xlu0 %1445 }
 0x55e   : > { %v8344_v15 = vpop.eup %6781  ;;  %v1576_v49 = vadd.f32 %v8342_v25, %v8340_v6  ;;  %v1486_v10 = vsub.f32 %v8160_v41, %v1446_v3  ;;  %v1487_v36 = vsub.f32 %v8162_v37, %v1446_v3 }
 0x55f   : > { %v8348_v34 = vpop.eup %6783  ;;  %v1449_v35 = vpop.xlane.xlu1 %1448 }
 0x560   : > { %1577 = vadd.xlane.f32.xlu0 %v1576_v49  ;;  %v1579_v1 = vadd.f32 %v8348_v34, %v8344_v15  ;;  %v1488_v5 = vsub.f32 %v8164_v39, %v1449_v35  ;;  %v1530_v51 = vmul.f32 1.442695, %v1486_v10  ;;  %v1489_v11 = vsub.f32 %v8168_v0, %v1449_v35 }
 0x561   : > { %v1532_v63 = vmul.f32 1.442695, %v1487_v36 }
 0x562   : > { %1580 = vadd.xlane.f32.xlu1 %v1579_v1  ;;  %v1534_v1 = vmul.f32 1.442695, %v1488_v5  ;;  %6793 = vpow2.f32 %v1530_v51 }
 0x563   : > { %6795 = vpow2.f32 %v1532_v63 }
 0x564   : > { %v8352_v19 = vpop.eup %6785  ;;  %6797 = vpow2.f32 %v1534_v1 }
 0x565   : > { %v8354_v58 = vpop.eup %6787  ;;  %v1452_v14 = vpop.xlane.xlu0 %1451 }
 0x566   : > { %v8356_v62 = vpop.eup %6789  ;;  %v1582_v46 = vadd.f32 %v8354_v58, %v8352_v19 }
 0x567   : > { %v8360_v47 = vpop.eup %6791  ;;  %v1455_v49 = vpop.xlane.xlu1 %1454 }
 0x568   : > { %1583 = vadd.xlane.f32.xlu0 %v1582_v46  ;;  %v1585_v57 = vadd.f32 %v8360_v47, %v8356_v62  ;;  %v1490_v46 = vsub.f32 %v8172_v43, %v1452_v14  ;;  %v1492_v37 = vsub.f32 %v8176_v23, %v1455_v49  ;;  %v1493_v39 = vsub.f32 %v8180_v27, %v1455_v49 }
 0x56a   : > { %1586 = vadd.xlane.f32.xlu1 %v1585_v57  ;;  %v1538_v0 = vmul.f32 1.442695, %v1490_v46  ;;  %v1542_v43 = vmul.f32 1.442695, %v1492_v37 }
 0x56c   : > { %v8382_v1 = vpop.eup %6793 }
 0x56d   : > { %v1458_v41 = vpop.xlane.xlu0 %1457 }
 0x56e   : > { %v1494_v3 = vsub.f32 %v8184_v59, %v1458_v41  ;;  %v1495_v35 = vsub.f32 %v8186_v20, %v1458_v41 }
 0x56f   : > { %v1461_v57 = vpop.xlane.xlu1 %1460 }
 0x570   : > { %v1496_v51 = vsub.f32 %v8188_v12, %v1461_v57  ;;  %v1546_v23 = vmul.f32 1.442695, %v1494_v3  ;;  %v1548_v27 = vmul.f32 1.442695, %v1495_v35  ;;  %v8385_v12 = vpop.eup %6795 }
 0x571   : > { %v8389_v41 = vpop.eup %6797 }
 0x572   : > { %v1550_v20 = vmul.f32 1.442695, %v1496_v51 }
 0x575   : > { %v1464_v36 = vpop.xlane.xlu0 %1463 }
 0x576   : > { %v1498_v63 = vsub.f32 %v8196_v24, %v1464_v36 }
 0x577   : > { %v1467_v5 = vpop.xlane.xlu1 %1466 }
 0x578   : > { %v1501_v46 = vsub.f32 %v8204_v55, %v1467_v5  ;;  %v1554_v24 = vmul.f32 1.442695, %v1498_v63  ;;  %v1588_v55 = vadd.f32 %v8385_v12, %v8382_v1 }
 0x57b   : > { %1696 = vrot.lane.b32.xlu1 %v7844_v44, %s7284_s28  ;;  %v1536_v44 = vmul.f32 1.442695, %v1489_v11  ;;  %v1497_v11 = vsub.f32 %v8192_v54, %v1461_v57 }
 0x57d   : > { %6799 = vpow2.f32 %v1536_v44  ;;  %v1470_v59 = vpop.xlane.xlu0 %1469  ;;  %v1500_v44 = vsub.f32 %v8200_v7, %v1467_v5  ;;  %v1552_v54 = vmul.f32 1.442695, %v1497_v11 }
 0x57e   : > { %1712 = vrot.lane.b32.xlu0 %v7954_v17, %s7284_s28  ;;  %v1491_v17 = vsub.f32 %v8174_v60, %v1452_v14  ;;  %v1544_v60 = vmul.f32 1.442695, %v1493_v39  ;;  %6801 = vpow2.f32 %v1538_v0  ;;  %v1499_v14 = vsub.f32 %v8198_v48, %v1464_v36 }
 0x57f   : > { %v1473_v49 = vpop.xlane.xlu1 %1472  ;;  %v1503_v57 = vsub.f32 %v8210_v21, %v1470_v59  ;;  %v1558_v7 = vmul.f32 1.442695, %v1500_v44 }
 0x580   : > { %v1540_v10 = vmul.f32 1.442695, %v1491_v17  ;;  %v1502_v17 = vsub.f32 %v8208_v50, %v1470_v59  ;;  %v1556_v48 = vmul.f32 1.442695, %v1499_v14  ;;  %v1504_v3 = vsub.f32 %v8212_v9, %v1473_v49 }
 0x581   : > { %v1505_v50 = vsub.f32 %v8216_v40, %v1473_v49  ;;  %v1564_v21 = vmul.f32 1.442695, %v1503_v57  ;;  %v11160_v59 = vmax.f32 %v8310_v8, %v8312_v28 }
 0x582   : > { %6803 = vpow2.f32 %v1540_v10  ;;  %v1560_v10 = vmul.f32 1.442695, %v1501_v46  ;;  %v1562_v35 = vmul.f32 1.442695, %v1502_v17  ;;  %v1566_v11 = vmul.f32 1.442695, %v1504_v3 }
 0x583   : > { %6805 = vpow2.f32 %v1542_v43 }
 0x584   : > { %6807 = vpow2.f32 %v1544_v60 }
 0x585   : > { %6809 = vpow2.f32 %v1546_v23  ;;  %v1966_v37 = vpop.xlane.xlu0 %1965 }
 0x586   : > { %6811 = vpow2.f32 %v1548_v27  ;;  %v2012_v36 = vsub.f32 %v8220_v53, %v1966_v37  ;;  %v2013_v5 = vsub.f32 %v8222_v13, %v1966_v37  ;;  %v1568_v53 = vmul.f32 1.442695, %v1505_v50 }
 0x587   : > { %v1969_v39 = vpop.xlane.xlu1 %1968  ;;  %v8392_v0 = vpop.eup %6799  ;;  %6813 = vpow2.f32 %v1550_v20 }
 0x588   : > { %6815 = vpow2.f32 %v1552_v54  ;;  %v1591_v9 = vadd.f32 %v8392_v0, %v8389_v41  ;;  %v8402_v60 = vpop.eup %6801  ;;  %v2014_v40 = vsub.f32 %v8224_v30, %v1969_v39  ;;  %v2015_v63 = vsub.f32 %v8228_v52, %v1969_v39 }
 0x589   : > { %6817 = vpow2.f32 %v1554_v24  ;;  %v2044_v13 = vmul.f32 1.442695, %v2012_v36  ;;  %v2046_v30 = vmul.f32 1.442695, %v2013_v5 }
 0x58a   : > { %6819 = vpow2.f32 %v1556_v48  ;;  %v2048_v46 = vmul.f32 1.442695, %v2014_v40  ;;  %v2050_v48 = vmul.f32 1.442695, %v2015_v63 }
 0x58b   : > { %6821 = vpow2.f32 %v1558_v7 }
 0x58c   : > { %v8405_v23 = vpop.eup %6803  ;;  %6823 = vpow2.f32 %v1560_v10 }
 0x58d   : > { %v1972_v43 = vpop.xlane.xlu0 %1971  ;;  %v8408_v27 = vpop.eup %6805  ;;  %6825 = vpow2.f32 %v1562_v35 }
 0x58e   : > { %v2016_v14 = vsub.f32 %v8232_v26, %v1972_v43  ;;  %v8414_v49 = vpop.eup %6807  ;;  %6827 = vpow2.f32 %v1564_v21  ;;  %v2017_v20 = vsub.f32 %v8234_v31, %v1972_v43  ;;  %v1594_v26 = vadd.f32 %v8405_v23, %v8402_v60 }
 0x58f   : > { %v1975_v51 = vpop.xlane.xlu1 %1974  ;;  %v8417_v52 = vpop.eup %6809  ;;  %6829 = vpow2.f32 %v1566_v11  ;;  %v11161_v31 = vmax.f32 %v8304_v2, %v8306_v16 }
 0x590   : > { %v2018_v24 = vsub.f32 %v8236_v4, %v1975_v51  ;;  %v8422_v17 = vpop.eup %6811  ;;  %6831 = vpow2.f32 %v1568_v53  ;;  %v2019_v57 = vsub.f32 %v8240_v38, %v1975_v51  ;;  %v2052_v39 = vmul.f32 1.442695, %v2016_v14  ;;  %v11162_v53 = vld [vmem:[#allocation85_spill] sm:$0xff] }
 0x591   : > { %v8428_v37 = vpop.eup %6813  ;;  %6833 = vpow2.f32 %v2044_v13  ;;  %v2054_v3 = vmul.f32 1.442695, %v2017_v20  ;;  %v1597_v38 = vadd.f32 %v8414_v49, %v8408_v27 }
 0x592   : > { %v8431_v4 = vpop.eup %6815  ;;  %6835 = vpow2.f32 %v2046_v30  ;;  %v2056_v35 = vmul.f32 1.442695, %v2018_v24  ;;  %v2058_v5 = vmul.f32 1.442695, %v2019_v57  ;;  %v11163_v30 = vld [vmem:[#allocation86_spill] sm:$0xff] }
 0x593   : > { %v8436_v50 = vpop.eup %6817  ;;  %6837 = vpow2.f32 %v2048_v46  ;;  %v1603_v14 = vadd.f32 %v8431_v4, %v8428_v37  ;;  %v11164_v46 = vld [vmem:[#allocation87_spill] sm:$0xff] }
 0x594   : > { %v8441_v21 = vpop.eup %6819  ;;  %6839 = vpow2.f32 %v2050_v48 }
 0x595   : > { %v1978_v44 = vpop.xlane.xlu0 %1977  ;;  %v8444_v51 = vpop.eup %6821  ;;  %6841 = vpow2.f32 %v2052_v39 }
 0x596   : > { %v2020_v7 = vsub.f32 %v8244_v45, %v1978_v44  ;;  %v1600_v45 = vadd.f32 %v8422_v17, %v8417_v52  ;;  %v8447_v40 = vpop.eup %6823  ;;  %6843 = vpow2.f32 %v2054_v3 }
 0x597   : > { %v1981_v54 = vpop.xlane.xlu1 %1980  ;;  %6845 = vpow2.f32 %v2056_v35  ;;  %v1609_v35 = vadd.f32 %v8447_v40, %v8444_v51 }
 0x598   : > { %v2022_v36 = vsub.f32 %v8248_v33, %v1981_v54  ;;  %v2023_v43 = vsub.f32 %v8252_v29, %v1981_v54  ;;  %v8452_v29 = vpop.eup %6825  ;;  %6847 = vpow2.f32 %v2058_v5  ;;  %v11168_v5 = vld [vmem:[#allocation90_spill] sm:$0xff] }
 0x59a   : > { %v2066_v54 = vmul.f32 1.442695, %v2023_v43 }
 0x59d   : > { %1589 = vadd.xlane.f32.xlu0 %v1588_v55  ;;  %v2021_v55 = vsub.f32 %v8246_v18, %v1978_v44  ;;  %v1984_v10 = vpop.xlane.xlu1 %1983  ;;  %v8457_v44 = vpop.eup %6827 }
 0x59e   : > { %v2024_v11 = vsub.f32 %v8256_v22, %v1984_v10  ;;  %v2025_v63 = vsub.f32 %v11162_v53, %v1984_v10  ;;  %v1606_v22 = vadd.f32 %v8441_v21, %v8436_v50  ;;  %v8460_v48 = vpop.eup %6829 }
 0x59f   : > { %1592 = vadd.xlane.f32.xlu1 %v1591_v9  ;;  %v1987_v18 = vpop.xlane.xlu0 %1986  ;;  %v2060_v9 = vmul.f32 1.442695, %v2020_v7  ;;  %v2062_v33 = vmul.f32 1.442695, %v2021_v55  ;;  %v8463_v7 = vpop.eup %6831  ;;  %v11166_v55 = vld [vmem:[#allocation89_spill] sm:$0xff] }
 0x5a0   : > { %v2026_v20 = vsub.f32 %v11163_v30, %v1987_v18  ;;  %v2027_v24 = vsub.f32 %v11164_v46, %v1987_v18  ;;  %v2068_v57 = vmul.f32 1.442695, %v2024_v11  ;;  %v2070_v3 = vmul.f32 1.442695, %v2025_v63  ;;  %v11170_v30 = vld [vmem:[#allocation92_spill] sm:$0xff]  ;;  %v11171_v46 = vld [vmem:[#allocation93_spill] sm:$0xff] }
 0x5a1   : > { %2010 = vmax.xlane.f32.xlu0 %v11160_v59  ;;  %v2064_v59 = vmul.f32 1.442695, %v2022_v36  ;;  %6849 = vpow2.f32 %v2060_v9  ;;  %v8468_v36 = vpop.eup %6833  ;;  %v1612_v18 = vadd.f32 %v8457_v44, %v8452_v29 }
 0x5a2   : > { %6851 = vpow2.f32 %v2062_v33  ;;  %11167 = vst [vmem:[#allocation85_spill] sm:$0xff] %v8468_v36  ;;  %v8473_v9 = vpop.eup %6835  ;;  %v2074_v11 = vmul.f32 1.442695, %v2027_v24  ;;  %v11169_v33 = vld [vmem:[#allocation91_spill] sm:$0xff] }
 0x5a3   : > { %2007 = vmax.xlane.f32.xlu1 %v11161_v31  ;;  %v11165_v31 = vld [vmem:[#allocation88_spill] sm:$0xff]  ;;  %6853 = vpow2.f32 %v2064_v59 }
 0x5a4   : > { %6855 = vpow2.f32 %v2066_v54  ;;  %v1615_v54 = vadd.f32 %v8463_v7, %v8460_v48 }
 0x5a5   : > { %1595 = vadd.xlane.f32.xlu0 %v1594_v26  ;;  %v1990_v13 = vpop.xlane.xlu1 %1989  ;;  %6857 = vpow2.f32 %v2068_v57  ;;  %v2108_v57 = vadd.f32 %v8473_v9, %v8468_v36 }
 0x5a6   : > { %v2028_v39 = vsub.f32 %v11165_v31, %v1990_v13  ;;  %v2029_v10 = vsub.f32 %v11166_v55, %v1990_v13  ;;  %v8476_v13 = vpop.eup %6837  ;;  %6859 = vpow2.f32 %v2070_v3  ;;  %v11173_v55 = vld [vmem:[#allocation94_spill] sm:$0xff]  ;;  %v11175_v3 = vld [vmem:[#allocation95_spill] sm:$0xff] }
 0x5a7   : > { %1598 = vadd.xlane.f32.xlu1 %v1597_v38  ;;  %v1993_v26 = vpop.xlane.xlu0 %1992 }
 0x5a8   : > { %v2030_v43 = vsub.f32 %v11168_v5, %v1993_v26  ;;  %v2031_v53 = vsub.f32 %v11169_v33, %v1993_v26 }
 0x5a9   : > { %1601 = vadd.xlane.f32.xlu0 %v1600_v45  ;;  %v2072_v45 = vmul.f32 1.442695, %v2026_v20  ;;  %v8479_v20 = vpop.eup %6839 }
 0x5aa   : > { %v8484_v24 = vpop.eup %6841  ;;  %v2080_v26 = vmul.f32 1.442695, %v2030_v43  ;;  %v2082_v5 = vmul.f32 1.442695, %v2031_v53 }
 0x5ab   : > { %1604 = vadd.xlane.f32.xlu1 %v1603_v14  ;;  %v2076_v14 = vmul.f32 1.442695, %v2028_v39  ;;  %11172 = vst [vmem:[#allocation86_spill] sm:$0xff] %v8484_v24  ;;  %6861 = vpow2.f32 %v2072_v45  ;;  %v8489_v39 = vpop.eup %6843  ;;  %v2111_v45 = vadd.f32 %v8479_v20, %v8476_v13 }
 0x5ac   : > { %11174 = vst [vmem:[#allocation87_spill] sm:$0xff] %v8489_v39  ;;  %6863 = vpow2.f32 %v2074_v11  ;;  %v11177_v11 = vld [vmem:[#allocation97_spill] sm:$0xff] }
 0x5ad   : > { %1607 = vadd.xlane.f32.xlu0 %v1606_v22  ;;  %v1996_v38 = vpop.xlane.xlu1 %1995  ;;  %v2078_v22 = vmul.f32 1.442695, %v2029_v10  ;;  %6865 = vpow2.f32 %v2076_v14  ;;  %v2114_v14 = vadd.f32 %v8489_v39, %v8484_v24 }
 0x5ae   : > { %v2032_v59 = vsub.f32 %v11170_v30, %v1996_v38  ;;  %v2033_v31 = vsub.f32 %v11171_v46, %v1996_v38  ;;  %v8492_v38 = vpop.eup %6845  ;;  %v11176_v46 = vld [vmem:[#allocation96_spill] sm:$0xff] }
 0x5af   : > { %1610 = vadd.xlane.f32.xlu1 %v1609_v35  ;;  %v1999_v63 = vpop.xlane.xlu0 %1998  ;;  %v8496_v43 = vpop.eup %6847  ;;  %6867 = vpow2.f32 %v2078_v22 }
 0x5b0   : > { %v2034_v35 = vsub.f32 %v11173_v55, %v1999_v63  ;;  %v2035_v10 = vsub.f32 %v11175_v3, %v1999_v63  ;;  %v2086_v30 = vmul.f32 1.442695, %v2033_v31  ;;  %v8500_v36 = vpop.eup %6849  ;;  %6869 = vpow2.f32 %v2080_v26  ;;  %v11178_v3 = vld [vmem:[#allocation98_spill] sm:$0xff] }
 0x5b1   : > { %1613 = vadd.xlane.f32.xlu0 %v1612_v18  ;;  %v2084_v18 = vmul.f32 1.442695, %v2032_v59  ;;  %v8504_v59 = vpop.eup %6851  ;;  %6871 = vpow2.f32 %v2082_v5  ;;  %v2117_v24 = vadd.f32 %v8496_v43, %v8492_v38 }
 0x5b2   : > { %v2088_v63 = vmul.f32 1.442695, %v2034_v35  ;;  %v8507_v31 = vpop.eup %6853  ;;  %v2120_v5 = vadd.f32 %v8504_v59, %v8500_v36 }
 0x5b3   : > { %1616 = vadd.xlane.f32.xlu1 %v1615_v54  ;;  %6873 = vpow2.f32 %v2084_v18  ;;  %v8510_v26 = vpop.eup %6855 }
 0x5b4   : > { %6875 = vpow2.f32 %v2086_v30  ;;  %v8514_v39 = vpop.eup %6857 }
 0x5b5   : > { %2109 = vadd.xlane.f32.xlu0 %v2108_v57  ;;  %v2002_v33 = vpop.xlane.xlu1 %2001  ;;  %v2090_v57 = vmul.f32 1.442695, %v2035_v10  ;;  %6877 = vpow2.f32 %v2088_v63  ;;  %v8518_v10 = vpop.eup %6859 }
 0x5b6   : > { %v2036_v55 = vsub.f32 %v11176_v46, %v2002_v33  ;;  %v2037_v53 = vsub.f32 %v11177_v11, %v2002_v33  ;;  %v11179_v33 = vld [vmem:[#allocation99_spill] sm:$0xff] }
 0x5b7   : > { %v2005_v54 = vpop.xlane.xlu0 %2004  ;;  %2112 = vadd.xlane.f32.xlu1 %v2111_v45  ;;  %6879 = vpow2.f32 %v2090_v57  ;;  %v8520_v45 = vpop.eup %6861 }
 0x5b8   : > { %v2038_v22 = vsub.f32 %v11178_v3, %v2005_v54  ;;  %v2092_v46 = vmul.f32 1.442695, %v2036_v55  ;;  %v2039_v11 = vsub.f32 %v11179_v33, %v2005_v54  ;;  %v2094_v35 = vmul.f32 1.442695, %v2037_v53  ;;  %v8522_v30 = vpop.eup %6863 }
 0x5b9   : > { %2115 = vadd.xlane.f32.xlu0 %v2114_v14  ;;  %v2123_v53 = vadd.f32 %v8510_v26, %v8507_v31  ;;  %v8526_v63 = vpop.eup %6865  ;;  %v2126_v54 = vadd.f32 %v8518_v10, %v8514_v39  ;;  %v2129_v3 = vadd.f32 %v8522_v30, %v8520_v45 }
 0x5ba   : > { %v2096_v18 = vmul.f32 1.442695, %v2038_v22  ;;  %6881 = vpow2.f32 %v2092_v46  ;;  %v2098_v55 = vmul.f32 1.442695, %v2039_v11  ;;  %11180 = vst [vmem:[#allocation88_spill] sm:$0xff] %v8526_v63  ;;  %v8530_v14 = vpop.eup %6867 }
 0x5bb   : > { %2118 = vadd.xlane.f32.xlu1 %v2117_v24  ;;  %6883 = vpow2.f32 %v2094_v35  ;;  %11181 = vst [vmem:[#allocation89_spill] sm:$0xff] %v8530_v14  ;;  %v8532_v24 = vpop.eup %6869  ;;  %v2132_v46 = vadd.f32 %v8530_v14, %v8526_v63 }
 0x5bc   : > { %6885 = vpow2.f32 %v2096_v18  ;;  %11182 = vst [vmem:[#allocation90_spill] sm:$0xff] %v8532_v24  ;;  %v8534_v57 = vpop.eup %6871 }
 0x5bd   : > { %2121 = vadd.xlane.f32.xlu0 %v2120_v5  ;;  %6887 = vpow2.f32 %v2098_v55  ;;  %v8538_v22 = vpop.eup %6873  ;;  %v2135_v5 = vadd.f32 %v8534_v57, %v8532_v24 }
 0x5be   : > { %11183 = vst [vmem:[#allocation91_spill] sm:$0xff] %v8538_v22  ;;  %v8542_v33 = vpop.eup %6875 }
 0x5bf   : > { %2124 = vadd.xlane.f32.xlu1 %v2123_v53  ;;  %11184 = vst [vmem:[#allocation92_spill] sm:$0xff] %v8542_v33  ;;  %v8544_v11 = vpop.eup %6877  ;;  %v2138_v55 = vadd.f32 %v8542_v33, %v8538_v22 }
 0x5c0   : > { %11185 = vst [vmem:[#allocation93_spill] sm:$0xff] %v8544_v11 }
 0x5c1   : > { %2127 = vadd.xlane.f32.xlu0 %v2126_v54  ;;  %v8546_v35 = vpop.eup %6879 }
 0x5c2   : > { %11186 = vst [vmem:[#allocation94_spill] sm:$0xff] %v8546_v35 }
 0x5c3   : > { %2130 = vadd.xlane.f32.xlu1 %v2129_v3  ;;  %v2141_v3 = vadd.f32 %v8546_v35, %v8544_v11 }
 0x5c4   : > { %v8550_v18 = vpop.eup %6881 }
 0x5c5   : > { %2133 = vadd.xlane.f32.xlu0 %v2132_v46  ;;  %11187 = vst [vmem:[#allocation95_spill] sm:$0xff] %v8550_v18  ;;  %v8554_v53 = vpop.eup %6883 }
 0x5c6   : > { %11188 = vst [vmem:[#allocation96_spill] sm:$0xff] %v8554_v53  ;;  %v8556_v54 = vpop.eup %6885  ;;  %v2144_v63 = vadd.f32 %v8554_v53, %v8550_v18 }
 0x5c7   : > { %2136 = vadd.xlane.f32.xlu1 %v2135_v5  ;;  %11189 = vst [vmem:[#allocation97_spill] sm:$0xff] %v8556_v54  ;;  %v8560_v46 = vpop.eup %6887 }
 0x5c8   : > { %11190 = vst [vmem:[#allocation98_spill] sm:$0xff] %v8560_v46  ;;  %v2147_v24 = vadd.f32 %v8560_v46, %v8556_v54 }
 0x5c9   : > { %2139 = vadd.xlane.f32.xlu0 %v2138_v55 }
 0x5cb   : > { %2142 = vadd.xlane.f32.xlu1 %v2141_v3 }
 0x5cd   : > { %2145 = vadd.xlane.f32.xlu0 %v2144_v63 }
 0x5cf   : > { %2148 = vadd.xlane.f32.xlu1 %v2147_v24 }
 0x5e5   : > { %v1572_v22 = vpop.xlane.xlu0 %1571 }
 0x5e6   : > { %6889 = vrcp.f32 %v1572_v22 }
 0x5e8   : > { %v1575_v5 = vpop.xlane.xlu1 %1574 }
 0x5e9   : > { %6891 = vrcp.f32 %v1575_v5 }
 0x5ed   : > { %v1578_v55 = vpop.xlane.xlu0 %1577 }
 0x5ee   : > { %6893 = vrcp.f32 %v1578_v55 }
 0x5ef   : > { %v1581_v33 = vpop.xlane.xlu1 %1580 }
 0x5f0   : > { %v6890_v14 = vpop.eup %6889  ;;  %6895 = vrcp.f32 %v1581_v33 }
 0x5f1   : > { %v1635_v35 = vmul.f32 %v6890_v14, %v8326_v61  ;;  %v1634_v54 = vmul.f32 %v6890_v14, %v8324_v32 }
 0x5f3   : > { %v6892_v11 = vpop.eup %6891 }
 0x5f4   : > { %v1637_v18 = vmul.f32 %v6892_v11, %v8334_v42  ;;  %v1636_v5 = vmul.f32 %v6892_v11, %v8328_v56  ;;  %v11191_v42 = vld [vmem:[#allocation74_spill] sm:$0xff]  ;;  %v11193_v56 = vld [vmem:[#allocation76_spill] sm:$0xff] }
 0x5f5   : > { %v1584_v3 = vpop.xlane.xlu0 %1583 }
 0x5f6   : > { %v1667_v63 = vpack.c.bf16 %v1637_v18, %v1635_v35  ;;  %6897 = vrcp.f32 %v1584_v3  ;;  %v1666_v35 = vpack.c.bf16 %v1636_v5, %v1634_v54  ;;  %v11195_v54 = vld [vmem:[#allocation73_spill] sm:$0xff] }
 0x5f7   : > { %v1587_v53 = vpop.xlane.xlu1 %1586 }
 0x5f8   : > { %1762 = vmatprep.mubr.bf16.mxu0 %v1667_v63  ;;  %v6894_v24 = vpop.eup %6893  ;;  %6899 = vrcp.f32 %v1587_v53  ;;  %v11192_v53 = vld [vmem:[#allocation71_spill] sm:$0xff]  ;;  %v11194_v63 = vld [vmem:[#allocation72_spill] sm:$0xff] }
 0x5f9   : > { %v1713_v22 = vpop.permute.xlu0 %1712  ;;  %v1639_v46 = vmul.f32 %v6894_v24, %v8342_v25  ;;  %v1638_v14 = vmul.f32 %v6894_v24, %v8340_v6  ;;  %v11198_v24 = vld [vmem:[#allocation75_spill] sm:$0xff] }
 0x5fa   : > { %6031 = vmatprep.subr.bf16.mxu0 %v1713_v22  ;;  %v6896_v55 = vpop.eup %6895 }
 0x5fb   : > { %v1697_v33 = vpop.permute.xlu1 %1696  ;;  %v1641_v61 = vmul.f32 %v6896_v55, %v8348_v34  ;;  %v1640_v11 = vmul.f32 %v6896_v55, %v8344_v15  ;;  %v11200_v55 = vld [vmem:[#allocation81_spill] sm:$0xff] }
 0x5fc   : > { %6032 = vmatpush3.bf16.msra.mxu0 %v1697_v33 }
 0x5fd   : > { %6113 = vmatprep.subr.bf16.mxu0 %v11191_v42  ;;  %v1669_v18 = vpack.c.bf16 %v1641_v61, %v1639_v46  ;;  %v1668_v46 = vpack.c.bf16 %v1640_v11, %v1638_v14  ;;  %v11196_v61 = vld [vmem:[#allocation77_spill] sm:$0xff]  ;;  %v11197_v42 = vld [vmem:[#allocation79_spill] sm:$0xff] }
 0x5ff   : > { %1763 = vmatmul.mubr.bf16.vlgmr.msra.gmra.mrb[32].mxu0 %v1666_v35  ;;  %v11201_v35 = vld [vmem:[#allocation82_spill] sm:$0xff] }
 0x600   : > { %v6898_v3 = vpop.eup %6897  ;;  %1770 = vmatprep.mubr.bf16.mxu0 %v1669_v18  ;;  %6114 = vmatpush3.bf16.msra.mxu0 %v11192_v53  ;;  %v11202_v18 = vld [vmem:[#allocation80_spill] sm:$0xff]  ;;  %v11203_v53 = vld [vmem:[#allocation83_spill] sm:$0xff] }
 0x601   : > { %6115 = vmatprep.subr.bf16.mxu0 %v11193_v56  ;;  %v1643_v25 = vmul.f32 %v6898_v3, %v8354_v58  ;;  %v1642_v6 = vmul.f32 %v6898_v3, %v8352_v19  ;;  %v11199_v58 = vld [vmem:[#allocation78_spill] sm:$0xff]  ;;  %v11204_v56 = vld [vmem:[#allocation84_spill] sm:$0xff] }
 0x602   : > { %v6900_v32 = vpop.eup %6899 }
 0x603   : > { %v1645_v34 = vmul.f32 %v6900_v32, %v8360_v47  ;;  %v1644_v15 = vmul.f32 %v6900_v32, %v8356_v62 }
 0x604   : > { %6116 = vmatpush3.bf16.msra.mxu0 %v11194_v63 }
 0x605   : > { %6117 = vmatprep.subr.bf16.mxu0 %v11195_v54  ;;  %v1671_v5 = vpack.c.bf16 %v1645_v34, %v1643_v25  ;;  %v1670_v47 = vpack.c.bf16 %v1644_v15, %v1642_v6 }
 0x607   : > { %1771 = vmatmul.mubr.bf16.gmra.mrb[36].mxu0 %v1668_v46 }
 0x608   : > { %1778 = vmatprep.mubr.bf16.mxu0 %v1671_v5  ;;  %6118 = vmatpush3.bf16.msra.mxu0 %v11196_v61 }
 0x609   : > { %6119 = vmatprep.subr.bf16.mxu0 %v11197_v42 }
 0x60c   : > { %6120 = vmatpush3.bf16.msra.mxu0 %v11198_v24 }
 0x60d   : > { %6121 = vmatprep.subr.bf16.mxu0 %v11199_v58 }
 0x60f   : > { %1779 = vmatmul.mubr.bf16.gmra.mrb[40].mxu0 %v1670_v47 }
 0x610   : > { %6122 = vmatpush3.bf16.msra.mxu0 %v11200_v55 }
 0x611   : > { %6123 = vmatprep.subr.bf16.mxu0 %v11201_v35 }
 0x614   : > { %6124 = vmatpush3.bf16.msra.mxu0 %v11202_v18 }
 0x615   : > { %6125 = vmatprep.subr.bf16.mxu0 %v11203_v53 }
 0x618   : > { %6126 = vmatpush3.bf16.msra.mxu0 %v11204_v56 }
 0x619   : > { %6127 = vmatprep.subr.bf16.mxu0 %v1713_v22 }
 0x61c   : > { %6128 = vmatpush3.bf16.msra.mxu0 %v1697_v33 }
 0x62a   : > { %v1590_v62 = vpop.xlane.xlu0 %1589 }
 0x62b   : > { %6901 = vrcp.f32 %v1590_v62 }
 0x62c   : > { %v1593_v19 = vpop.xlane.xlu1 %1592 }
 0x62d   : > { %6903 = vrcp.f32 %v1593_v19 }
 0x62e   : > { %v2011_v3 = vpop.xlane.xlu0 %2010 }
 0x62f   : > { %v2042_v11 = vsub.f32 %v8310_v8, %v2011_v3  ;;  %v2043_v32 = vsub.f32 %v8312_v28, %v2011_v3 }
 0x630   : > { %v2008_v34 = vpop.xlane.xlu1 %2007 }
 0x631   : > { %v2104_v14 = vmul.f32 1.442695, %v2042_v11  ;;  %v2106_v25 = vmul.f32 1.442695, %v2043_v32  ;;  %v2040_v63 = vsub.f32 %v8304_v2, %v2008_v34  ;;  %v2041_v54 = vsub.f32 %v8306_v16, %v2008_v34 }
 0x632   : > { %v1596_v46 = vpop.xlane.xlu0 %1595 }
 0x633   : > { %6905 = vpow2.f32 %v2104_v14  ;;  %v2100_v22 = vmul.f32 1.442695, %v2040_v63  ;;  %v2102_v33 = vmul.f32 1.442695, %v2041_v54 }
 0x634   : > { %6907 = vpow2.f32 %v2106_v25  ;;  %v1599_v61 = vpop.xlane.xlu1 %1598 }
 0x635   : > { %v6902_v5 = vpop.eup %6901  ;;  %6909 = vrcp.f32 %v1596_v46 }
 0x636   : > { %6911 = vpow2.f32 %v2100_v22  ;;  %v1602_v42 = vpop.xlane.xlu0 %1601  ;;  %v1647_v28 = vmul.f32 %v6902_v5, %v8385_v12  ;;  %v1646_v16 = vmul.f32 %v6902_v5, %v8382_v1 }
 0x637   : > { %6913 = vpow2.f32 %v2102_v33  ;;  %v6904_v8 = vpop.eup %6903 }
 0x638   : > { %6915 = vrcp.f32 %v1599_v61  ;;  %v1605_v15 = vpop.xlane.xlu1 %1604  ;;  %v1649_v2 = vmul.f32 %v6904_v8, %v8392_v0  ;;  %v1648_v6 = vmul.f32 %v6904_v8, %v8389_v41 }
 0x639   : > { %6917 = vrcp.f32 %v1602_v42 }
 0x63a   : > { %6919 = vrcp.f32 %v1605_v15  ;;  %v1673_v24 = vpack.c.bf16 %v1649_v2, %v1647_v28  ;;  %v1672_v58 = vpack.c.bf16 %v1648_v6, %v1646_v16  ;;  %v1608_v55 = vpop.xlane.xlu0 %1607  ;;  %v11205_v2 = vld [vmem:[#allocation40_spill] sm:$0xff] }
 0x63c   : > { %v1611_v35 = vpop.xlane.xlu1 %1610  ;;  %1786 = vmatprep.mubr.bf16.mxu0 %v1673_v24 }
 0x63d   : > { %v8600_v47 = vpop.eup %6905  ;;  %6921 = vrcp.f32 %v1611_v35  ;;  %1787 = vmatmul.mubr.bf16.gmra.mrb[44].mxu0 %v1672_v58 }
 0x63e   : > { %v8602_v18 = vpop.eup %6907  ;;  %6923 = vrcp.f32 %v1608_v55  ;;  %v1614_v34 = vpop.xlane.xlu0 %1613 }
 0x63f   : > { %v6910_v12 = vpop.eup %6909  ;;  %v2153_v0 = vadd.f32 %v8602_v18, %v8600_v47 }
 0x640   : > { %v8606_v53 = vpop.eup %6911  ;;  %v1617_v19 = vpop.xlane.xlu1 %1616  ;;  %v1651_v3 = vmul.f32 %v6910_v12, %v8405_v23  ;;  %v1650_v32 = vmul.f32 %v6910_v12, %v8402_v60  ;;  %v11207_v12 = vld [vmem:[#allocation39_spill] sm:$0xff] }
 0x641   : > { %v8608_v1 = vpop.eup %6913  ;;  %2154 = vadd.xlane.f32.xlu1 %v2153_v0  ;;  %6925 = vrcp.f32 %v1617_v19  ;;  %v11208_v0 = vld [vmem:[#allocation43_spill] sm:$0xff] }
 0x642   : > { %v6916_v41 = vpop.eup %6915  ;;  %v2150_v56 = vadd.f32 %v8608_v1, %v8606_v53  ;;  %6927 = vrcp.f32 %v1614_v34  ;;  %v2110_v42 = vpop.xlane.xlu0 %2109 }
 0x643   : > { %v6918_v62 = vpop.eup %6917  ;;  %v1653_v11 = vmul.f32 %v6916_v41, %v8414_v49  ;;  %v1652_v14 = vmul.f32 %v6916_v41, %v8408_v27 }
 0x644   : > { %v6920_v25 = vpop.eup %6919  ;;  %2151 = vadd.xlane.f32.xlu0 %v2150_v56  ;;  %v1655_v46 = vmul.f32 %v6918_v62, %v8422_v17  ;;  %v2113_v27 = vpop.xlane.xlu1 %2112  ;;  %v1654_v61 = vmul.f32 %v6918_v62, %v8417_v52  ;;  %v7286_v52 = vmov 0.0  }
 0x645   : > { %v1675_v63 = vpack.c.bf16 %v1653_v11, %v1651_v3  ;;  %v1674_v54 = vpack.c.bf16 %v1652_v14, %v1650_v32  ;;  %v1657_v22 = vmul.f32 %v6920_v25, %v8431_v4  ;;  %v1656_v60 = vmul.f32 %v6920_v25, %v8428_v37  ;;  %2319 = vst.msk [vmem:[#allocation2 + $0x10] sm:$0xff] %vm966_vm0, %v7286_v52  ;;  %v11209_v3 = vld [vmem:[#allocation41_spill] sm:$0xff]  ;;  %v11210_v11 = vld [vmem:[#allocation46_spill] sm:$0xff] }
 0x646   : > { %6929 = vrcp.f32 %v2113_v27  ;;  %2317 = vst.msk [vmem:[#allocation2] sm:$0xff] %vm966_vm0, %v7286_v52  ;;  %2318 = vst.msk [vmem:[#allocation2 + $0x8] sm:$0xff] %vm966_vm0, %v7286_v52  ;;  %v2116_v6 = vpop.xlane.xlu0 %2115 }
 0x647   : > { %1794 = vmatprep.mubr.bf16.mxu0 %v1675_v63  ;;  %v1677_v33 = vpack.c.bf16 %v1657_v22, %v1655_v46  ;;  %v6922_v5 = vpop.eup %6921  ;;  %v1676_v4 = vpack.c.bf16 %v1656_v60, %v1654_v61  ;;  %6931 = vrcp.f32 %v2110_v42  ;;  %2320 = vst.msk [vmem:[#allocation2 + $0x118] sm:$0xff] %vm966_vm0, %v7286_v52  ;;  %2321 = vst.msk [vmem:[#allocation2 + $0x120] sm:$0xff] %vm966_vm0, %v7286_v52  ;;  %v11217_v42 = vld [vmem:[#allocation48_spill] sm:$0xff] }
 0x648   : > { %1795 = vmatmul.mubr.bf16.gmra.mrb[48].mxu0 %v1674_v54  ;;  %v6924_v23 = vpop.eup %6923  ;;  %v1661_v49 = vmul.f32 %v6922_v5, %v8447_v40  ;;  %v1660_v37 = vmul.f32 %v6922_v5, %v8444_v51  ;;  %v2119_v16 = vpop.xlane.xlu1 %2118  ;;  %2322 = vst.msk [vmem:[#allocation2 + $0x128] sm:$0xff] %vm966_vm0, %v7286_v52  ;;  %v11213_v54 = vld [vmem:[#allocation85_spill] sm:$0xff]  ;;  %v11221_v52 = vld [vmem:[#allocation54_spill] sm:$0xff] }
 0x649   : > { %1802 = vmatprep.mubr.bf16.mxu0 %v1677_v33  ;;  %v1659_v17 = vmul.f32 %v6924_v23, %v8441_v21  ;;  %v1658_v21 = vmul.f32 %v6924_v23, %v8436_v50  ;;  %6933 = vrcp.f32 %v2119_v16  ;;  %v11214_v33 = vld [vmem:[#allocation87_spill] sm:$0xff]  ;;  %v11215_v23 = vld [vmem:[#allocation45_spill] sm:$0xff] }
 0x64a   : > { %6935 = vrcp.f32 %v2116_v6  ;;  %v2122_v62 = vpop.xlane.xlu0 %2121 }
 0x64b   : > { %v1679_v8 = vpack.c.bf16 %v1661_v49, %v1659_v17  ;;  %v6926_v28 = vpop.eup %6925  ;;  %v1678_v24 = vpack.c.bf16 %v1660_v37, %v1658_v21  ;;  %v11218_v17 = vld [vmem:[#allocation51_spill] sm:$0xff] }
 0x64c   : > { %v6928_v15 = vpop.eup %6927  ;;  %v1665_v40 = vmul.f32 %v6926_v28, %v8463_v7  ;;  %v11206_v7 = vld [vmem:[#allocation42_spill] sm:$0xff]  ;;  %v1664_v50 = vmul.f32 %v6926_v28, %v8460_v48 }
 0x64d   : > { %v1663_v51 = vmul.f32 %v6928_v15, %v8457_v44  ;;  %v2125_v44 = vpop.xlane.xlu1 %2124  ;;  %v1662_v56 = vmul.f32 %v6928_v15, %v8452_v29  ;;  %v11211_v29 = vld [vmem:[#allocation44_spill] sm:$0xff]  ;;  %v11219_v15 = vld [vmem:[#allocation86_spill] sm:$0xff] }
 0x64e   : > { %6937 = vrcp.f32 %v2125_v44  ;;  %v2128_v22 = vpop.xlane.xlu0 %2127  ;;  %v11225_v44 = vld [vmem:[#allocation58_spill] sm:$0xff] }
 0x64f   : > { %v1681_v58 = vpack.c.bf16 %v1665_v40, %v1663_v51  ;;  %v1680_v32 = vpack.c.bf16 %v1664_v50, %v1662_v56  ;;  %6939 = vrcp.f32 %v2122_v62  ;;  %v11220_v40 = vld [vmem:[#allocation49_spill] sm:$0xff]  ;;  %v11222_v51 = vld [vmem:[#allocation52_spill] sm:$0xff]  ;;  %v11227_v62 = vld [vmem:[#allocation59_spill] sm:$0xff] }
 0x650   : > { %1803 = vmatmul.mubr.bf16.gmra.mrb[52].mxu0 %v1676_v4  ;;  %v6930_v55 = vpop.eup %6929  ;;  %v11224_v50 = vld [vmem:[#allocation53_spill] sm:$0xff]  ;;  %v11226_v56 = vld [vmem:[#allocation56_spill] sm:$0xff] }
 0x651   : > { %1810 = vmatprep.mubr.bf16.mxu0 %v1679_v8  ;;  %v6932_v35 = vpop.eup %6931  ;;  %v2175_v41 = vmul.f32 %v6930_v55, %v8479_v20  ;;  %v2174_v20 = vmul.f32 %v6930_v55, %v8476_v13  ;;  %v2131_v34 = vpop.xlane.xlu1 %2130  ;;  %v11216_v13 = vld [vmem:[#allocation50_spill] sm:$0xff] }
 0x652   : > { %2357 = vrot.lane.b32.xlu1 %v11205_v2, %s7284_s28  ;;  %v2173_v19 = vmul.f32 %v6932_v35, %v8473_v9  ;;  %v11212_v9 = vld [vmem:[#allocation47_spill] sm:$0xff]  ;;  %v2172_v46 = vmul.f32 %v6932_v35, %v11213_v54  ;;  %6941 = vrcp.f32 %v2131_v34  ;;  %v2134_v37 = vpop.xlane.xlu0 %2133 }
 0x653   : > { %v6934_v25 = vpop.eup %6933  ;;  %6943 = vrcp.f32 %v2128_v22  ;;  %v11232_v54 = vld [vmem:[#allocation63_spill] sm:$0xff] }
 0x654   : > { %v2205_v14 = vpack.c.bf16 %v2175_v41, %v2173_v19  ;;  %v6936_v48 = vpop.eup %6935  ;;  %v2179_v63 = vmul.f32 %v6934_v25, %v8496_v43  ;;  %v2204_v60 = vpack.c.bf16 %v2174_v20, %v2172_v46  ;;  %v6617_v43 = vld [vmem:[%s10898_s4] sm:$0xff]   ;;  %v2178_v4 = vmul.f32 %v6934_v25, %v8492_v38  ;;  %v11228_v25 = vld [vmem:[#allocation89_spill] sm:$0xff]  ;;  %v6620_v20 = vld [vmem:[%s10898_s4 + $0x18] sm:$0xff]  }
 0x655   : > { %v2177_v5 = vmul.f32 %v6936_v48, %v11214_v33  ;;  %v2137_v8 = vpop.xlane.xlu1 %2136  ;;  %6353 = vmatprep.subr.bf16.mxu1 %v6617_v43  ;;  %v2176_v2 = vmul.f32 %v6936_v48, %v11219_v15  ;;  %v11233_v46 = vld [vmem:[#allocation90_spill] sm:$0xff]  ;;  %v11241_v15 = vld [vmem:[#allocation93_spill] sm:$0xff] }
 0x656   : > { %2359 = vrot.lane.b32.xlu1 %v11206_v7, %s7284_s28  ;;  %6354 = vmatpush3.bf16.msra.mxu1 %v6617_v43  ;;  %6945 = vrcp.f32 %v2137_v8  ;;  %v11223_v7 = vld [vmem:[#allocation55_spill] sm:$0xff]  ;;  %v2140_v35 = vpop.xlane.xlu0 %2139  ;;  %v11234_v33 = vld [vmem:[#allocation94_spill] sm:$0xff]  ;;  %v11239_v8 = vld [vmem:[#allocation64_spill] sm:$0xff] }
 0x657   : > { %v2207_v27 = vpack.c.bf16 %v2179_v63, %v2177_v5  ;;  %v2206_v21 = vpack.c.bf16 %v2178_v4, %v2176_v2  ;;  %6947 = vrcp.f32 %v2134_v37  ;;  %v11231_v63 = vld [vmem:[#allocation60_spill] sm:$0xff]  ;;  %v11238_v43 = vld [vmem:[#allocation66_spill] sm:$0xff] }
 0x658   : > { %1811 = vmatmul.mubr.bf16.gmra.mrb[56].mxu0 %v1678_v24  ;;  %v6938_v49 = vpop.eup %6937  ;;  %v11242_v37 = vld [vmem:[#allocation98_spill] sm:$0xff] }
 0x659   : > { %1818 = vmatprep.mubr.bf16.mxu0 %v1681_v58  ;;  %v6940_v61 = vpop.eup %6939  ;;  %v2183_v28 = vmul.f32 %v6938_v49, %v8510_v26  ;;  %v2143_v24 = vpop.xlane.xlu1 %2142 }
 0x65a   : > { %2355 = vrot.lane.b32.xlu0 %v11207_v12, %s7284_s28  ;;  %2363 = vrot.lane.b32.xlu1 %v11208_v0, %s7284_s28  ;;  %v2181_v16 = vmul.f32 %v6940_v61, %v8504_v59  ;;  %v2182_v59 = vmul.f32 %v6938_v49, %v8507_v31  ;;  %v2180_v55 = vmul.f32 %v6940_v61, %v8500_v36  ;;  %v6618_v0 = vld [vmem:[%s10898_s4 + $0x8] sm:$0xff]   ;;  %6949 = vrcp.f32 %v2143_v24  ;;  %v6619_v36 = vld [vmem:[%s10898_s4 + $0x10] sm:$0xff]  }
 0x65b   : > { %6355 = vmatprep.subr.bf16.mxu1 %v6618_v0  ;;  %6951 = vrcp.f32 %v2140_v35  ;;  %v11237_v49 = vld [vmem:[#allocation61_spill] sm:$0xff] }
 0x65c   : > { %v2209_v6 = vpack.c.bf16 %v2183_v28, %v2181_v16  ;;  %v6942_v38 = vpop.eup %6941  ;;  %v2208_v31 = vpack.c.bf16 %v2182_v59, %v2180_v55  ;;  %6356 = vmatpush3.bf16.msra.mxu1 %v6618_v0  ;;  %v11240_v28 = vld [vmem:[#allocation67_spill] sm:$0xff]  ;;  %v11247_v59 = vld [vmem:[#allocation68_spill] sm:$0xff]  ;;  %v11248_v24 = vld [vmem:[#allocation97_spill] sm:$0xff] }
 0x65d   : > { %v6944_v26 = vpop.eup %6943  ;;  %v2187_v58 = vmul.f32 %v6942_v38, %v8522_v30  ;;  %v2186_v19 = vmul.f32 %v6942_v38, %v8520_v45  ;;  %6357 = vmatprep.subr.bf16.mxu1 %v6619_v36  ;;  %v11230_v45 = vld [vmem:[#allocation62_spill] sm:$0xff]  ;;  %v11245_v38 = vld [vmem:[#allocation65_spill] sm:$0xff]  ;;  %v11249_v55 = vld [vmem:[#allocation95_spill] sm:$0xff] }
 0x65e   : > { %2361 = vrot.lane.b32.xlu0 %v11209_v3, %s7284_s28  ;;  %2367 = vrot.lane.b32.xlu1 %v11210_v11, %s7284_s28  ;;  %v2185_v12 = vmul.f32 %v6944_v26, %v8518_v10  ;;  %v2149_v3 = vpop.xlane.xlu1 %2148 }
 0x65f   : > { %6953 = vrcp.f32 %v2149_v3 }
 0x660   : > { %1819 = vmatmul.mubr.bf16.gmra.mrb[60].mxu0 %v1680_v32  ;;  %v2211_v41 = vpack.c.bf16 %v2187_v58, %v2185_v12  ;;  %v6946_v30 = vpop.eup %6945  ;;  %v2184_v32 = vmul.f32 %v6944_v26, %v8514_v39  ;;  %6358 = vmatpush3.bf16.msra.mxu1 %v6619_v36  ;;  %v11246_v26 = vld [vmem:[#allocation70_spill] sm:$0xff]  ;;  %v11250_v12 = vld [vmem:[#allocation69_spill] sm:$0xff] }
 0x661   : > { %2252 = vmatprep.mubr.bf16.mxu0 %v2205_v14  ;;  %v6948_v10 = vpop.eup %6947  ;;  %v2191_v11 = vmul.f32 %v6946_v30, %v8534_v57  ;;  %v2146_v14 = vpop.xlane.xlu0 %2145  ;;  %6359 = vmatprep.subr.bf16.mxu1 %v6620_v20  ;;  %v2190_v22 = vmul.f32 %v6946_v30, %v11233_v46 }
 0x662   : > { %2365 = vrot.lane.b32.xlu0 %v11211_v29, %s7284_s28  ;;  %2371 = vrot.lane.b32.xlu1 %v11212_v9, %s7284_s28  ;;  %v2189_v48 = vmul.f32 %v6948_v10, %v11228_v25  ;;  %v11229_v29 = vld [vmem:[#allocation57_spill] sm:$0xff]  ;;  %v2210_v9 = vpack.c.bf16 %v2186_v19, %v2184_v32  ;;  %6955 = vrcp.f32 %v2146_v14  ;;  %v2515_v25 = vld [vmem:[%s10897_s3] sm:$0xff] }
 0x664   : > { %v2213_v57 = vpack.c.bf16 %v2191_v11, %v2189_v48  ;;  %v6950_v34 = vpop.eup %6949  ;;  %6360 = vmatpush3.bf16.msra.mxu1 %v6620_v20  ;;  %v2483_v11 = vld [vmem:[#allocation2 + $0x7] sm:$0xff] }
 0x665   : > { %v6952_v39 = vpop.eup %6951  ;;  %v2195_v5 = vmul.f32 %v6950_v34, %v11234_v33  ;;  %v2194_v2 = vmul.f32 %v6950_v34, %v11241_v15  ;;  %v2611_v48 = vld [vmem:[#allocation2 + $0x8] sm:$0xff]  ;;  %v5622_v20 = vld [vmem:[%s10897_s3 + $0x100] sm:$0xff] }
 0x666   : > { %2369 = vrot.lane.b32.xlu0 %v11215_v23, %s7284_s28  ;;  %2375 = vrot.lane.b32.xlu1 %v11216_v13, %s7284_s28  ;;  %v11235_v23 = vld [vmem:[#allocation88_spill] sm:$0xff]  ;;  %v2484_v33 = vld [vmem:[#allocation2 + $0xf] sm:$0xff] }
 0x667   : > { %v2188_v13 = vmul.f32 %v6948_v10, %v11235_v23  ;;  %v2519_v34 = vld [vmem:[%s10897_s3 + $0x20] sm:$0xff]  ;;  %v2547_v23 = vmul.f32 %v2515_v25, %v2483_v11 }
 0x668   : > { %2253 = vmatmul.mubr.bf16.vlgmr.msra.gmra.mrb[64].mxu0 %v2204_v60  ;;  %v11236_v60 = vld [vmem:[#allocation92_spill] sm:$0xff] }
 0x669   : > { %2260 = vmatprep.mubr.bf16.mxu0 %v2207_v27  ;;  %v2193_v27 = vmul.f32 %v6952_v39, %v11236_v60  ;;  %v2212_v61 = vpack.c.bf16 %v2190_v22, %v2188_v13  ;;  %v2612_v13 = vld [vmem:[#allocation2 + $0x10] sm:$0xff]  ;;  %v5623_v60 = vld [vmem:[%s10897_s3 + $0x108] sm:$0xff] }
 0x66a   : > { %2373 = vrot.lane.b32.xlu0 %v11217_v42, %s7284_s28  ;;  %2379 = vrot.lane.b32.xlu1 %v11218_v17, %s7284_s28  ;;  %v6954_v17 = vpop.eup %6953 }
 0x66b   : > { %v2215_v42 = vpack.c.bf16 %v2195_v5, %v2193_v27  ;;  %v2199_v16 = vmul.f32 %v6954_v17, %v11242_v37  ;;  %v2198_v58 = vmul.f32 %v6954_v17, %v11248_v24  ;;  %v2516_v5 = vld [vmem:[%s10897_s3 + $0x8] sm:$0xff]  ;;  %v2676_v27 = vmul.f32 %v5622_v20, %v2611_v48 }
 0x66c   : > { %v6956_v4 = vpop.eup %6955 }
 0x66d   : > { %v2196_v35 = vmul.f32 %v6956_v4, %v11249_v55  ;;  %v5690_v55 = vld [vmem:[%s10897_s3 + $0x320] sm:$0xff] }
 0x66e   : > { %2377 = vrot.lane.b32.xlu0 %v11220_v40, %s7284_s28  ;;  %2383 = vrot.lane.b32.xlu1 %v11221_v52, %s7284_s28  ;;  %v11243_v40 = vld [vmem:[#allocation91_spill] sm:$0xff] }
 0x66f   : > { %v2192_v52 = vmul.f32 %v6952_v39, %v11243_v40  ;;  %v2216_v0 = vpack.c.bf16 %v2198_v58, %v2196_v35  ;;  %v5626_v39 = vld [vmem:[%s10897_s3 + $0x120] sm:$0xff]  ;;  %v11251_v35 = vld [vmem:[#allocation6_spill] sm:$0xff] }
 0x670   : > { %2261 = vmatmul.mubr.bf16.gmra.mrb[68].mxu0 %v2206_v21  ;;  %v11244_v21 = vld [vmem:[#allocation96_spill] sm:$0xff] }
 0x671   : > { %2268 = vmatprep.mubr.bf16.mxu0 %v2209_v6  ;;  %v2197_v6 = vmul.f32 %v6956_v4, %v11244_v21 }
 0x672   : > { %2381 = vrot.lane.b32.xlu0 %v11222_v51, %s7284_s28  ;;  %2387 = vrot.lane.b32.xlu1 %v11223_v7, %s7284_s28  ;;  %v2214_v51 = vpack.c.bf16 %v2194_v2, %v2192_v52 }
 0x673   : > { %v2217_v7 = vpack.c.bf16 %v2199_v16, %v2197_v6 }
 0x676   : > { %2385 = vrot.lane.b32.xlu0 %v11224_v50, %s7284_s28  ;;  %2391 = vrot.lane.b32.xlu1 %v11225_v44, %s7284_s28 }
 0x678   : > { %2269 = vmatmul.mubr.bf16.gmra.mrb[72].mxu0 %v2208_v31 }
 0x679   : > { %2276 = vmatprep.mubr.bf16.mxu0 %v2211_v41 }
 0x67a   : > { %2389 = vrot.lane.b32.xlu0 %v11226_v56, %s7284_s28  ;;  %2395 = vrot.lane.b32.xlu1 %v11227_v62, %s7284_s28 }
 0x67e   : > { %2393 = vrot.lane.b32.xlu0 %v11229_v29, %s7284_s28  ;;  %2399 = vrot.lane.b32.xlu1 %v11230_v45, %s7284_s28  ;;  %v2517_v45 = vld [vmem:[%s10897_s3 + $0x10] sm:$0xff] }
 0x680   : > { %2277 = vmatmul.mubr.bf16.gmra.mrb[76].mxu0 %v2210_v9  ;;  %v5624_v9 = vld [vmem:[%s10897_s3 + $0x110] sm:$0xff] }
 0x681   : > { %2284 = vmatprep.mubr.bf16.mxu0 %v2213_v57 }
 0x682   : > { %2397 = vrot.lane.b32.xlu0 %v11231_v63, %s7284_s28  ;;  %2403 = vrot.lane.b32.xlu1 %v11232_v54, %s7284_s28  ;;  %v5656_v63 = vld [vmem:[%s10897_s3 + $0x210] sm:$0xff] }
 0x686   : > { %2401 = vrot.lane.b32.xlu0 %v11237_v49, %s7284_s28  ;;  %2407 = vrot.lane.b32.xlu1 %v11238_v43, %s7284_s28 }
 0x688   : > { %2285 = vmatmul.mubr.bf16.gmra.mrb[80].mxu0 %v2212_v61 }
 0x689   : > { %2292 = vmatprep.mubr.bf16.mxu0 %v2215_v42 }
 0x68a   : > { %2405 = vrot.lane.b32.xlu0 %v11239_v8, %s7284_s28  ;;  %2411 = vrot.lane.b32.xlu1 %v11240_v28, %s7284_s28  ;;  %v2740_v28 = vld [vmem:[#allocation2 + $0x9] sm:$0xff] }
 0x68e   : > { %2409 = vrot.lane.b32.xlu0 %v11245_v38, %s7284_s28  ;;  %2415 = vrot.lane.b32.xlu1 %v11246_v26, %s7284_s28  ;;  %v5658_v26 = vld [vmem:[%s10897_s3 + $0x220] sm:$0xff] }
 0x690   : > { %2293 = vmatmul.mubr.bf16.gmra.mrb[84].mxu0 %v2214_v51  ;;  %v5688_v51 = vld [vmem:[%s10897_s3 + $0x310] sm:$0xff] }
 0x691   : > { %2300 = vmatprep.mubr.bf16.mxu0 %v2217_v7 }
 0x692   : > { %2413 = vrot.lane.b32.xlu0 %v11247_v59, %s7284_s28 }
 0x696   : > { %2417 = vrot.lane.b32.xlu0 %v11250_v12, %s7284_s28  ;;  %v3497_v12 = vsub.s32 4, %v11251_v35 }
 0x698   : > { %2301 = vmatmul.mubr.bf16.gmra.mrb[88].mxu0 %v2216_v0  ;;  %v2518_v0 = vld [vmem:[%s10897_s3 + $0x18] sm:$0xff] }
 0x6ce   : > { %v2155_v50 = vpop.xlane.xlu1 %2154 }
 0x6cf   : > { %6957 = vrcp.f32 %v2155_v50  ;;  %v5625_v50 = vld [vmem:[%s10897_s3 + $0x118] sm:$0xff] }
 0x6d1   : > { %v2152_v44 = vpop.xlane.xlu0 %2151 }
 0x6d2   : > { %6959 = vrcp.f32 %v2152_v44  ;;  %v2358_v31 = vpop.permute.xlu1 %2357  ;;  %v6033_v41 = vpop.f32.mrb[32].mxu0 }
 0x6d3   : > { %2452 = vst.msk [vmem:[#allocation2 + $0x20] sm:$0xff] %vm966_vm0, %v2358_v31  ;;  %v6034_v30 = vpop.f32.mrb[33].mxu0 }
 0x6d4   : > { %v8739_v36 = vadd.f32 %v6034_v30, %v6033_v41  ;;  %v6036_v56 = vpop.f32.mrb[34].mxu0  ;;  %v5720_v41 = vld [vmem:[%s10897_s3 + $0x410] sm:$0xff] }
 0x6d5   : > { %v2356_v10 = vpop.permute.xlu0 %2355  ;;  %v6037_v62 = vpop.f32.mrb[35].mxu0  ;;  %v5752_v30 = vld [vmem:[%s10897_s3 + $0x510] sm:$0xff] }
 0x6d6   : > { %2451 = vst.msk [vmem:[#allocation2 + $0x18] sm:$0xff] %vm966_vm0, %v2356_v10  ;;  %v2360_v19 = vpop.permute.xlu1 %2359  ;;  %v8742_v3 = vadd.f32 %v6037_v62, %v6036_v56  ;;  %v2548_v10 = vmul.f32 %v2516_v5, %v2484_v33  ;;  %v2677_v56 = vmul.f32 %v5623_v60, %v2612_v13  ;;  %v2708_v62 = vadd.f32 %v2676_v27, %v2547_v23  ;;  %v5657_v33 = vld [vmem:[%s10897_s3 + $0x218] sm:$0xff] }
 0x6d7   : > { %2453 = vst.msk [vmem:[#allocation2 + $0x28] sm:$0xff] %vm966_vm0, %v2360_v19 }
 0x6d9   : > { %v6958_v32 = vpop.eup %6957  ;;  %v2362_v14 = vpop.permute.xlu0 %2361 }
 0x6da   : > { %2454 = vst.msk [vmem:[#allocation2 + $0x30] sm:$0xff] %vm966_vm0, %v2362_v14  ;;  %v2364_v29 = vpop.permute.xlu1 %2363  ;;  %v6039_v57 = vpop.f32.mrb[36].mxu0  ;;  %v2203_v22 = vmul.f32 %v6958_v32, %v8602_v18  ;;  %v2202_v8 = vmul.f32 %v6958_v32, %v8600_v47  ;;  %v8828_v11 = vld [vmem:[#allocation2 + $0x20] sm:$0xff] }
 0x6db   : > { %2455 = vst.msk [vmem:[#allocation2 + $0x38] sm:$0xff] %vm966_vm0, %v2364_v29  ;;  %v6040_v46 = vpop.f32.mrb[37].mxu0 }
 0x6dc   : > { %v6960_v54 = vpop.eup %6959  ;;  %v8779_v61 = vadd.f32 %v6040_v46, %v6039_v57  ;;  %v6042_v18 = vpop.f32.mrb[38].mxu0  ;;  %v5627_v57 = vld [vmem:[%s10897_s3 + $0x128] sm:$0xff]  ;;  %v5784_v46 = vld [vmem:[%s10897_s3 + $0x610] sm:$0xff] }
 0x6dd   : > { %v8775_v49 = vld [vmem:[#allocation2 + $0x17] sm:$0xff]  ;;  %v2366_v42 = vpop.permute.xlu0 %2365  ;;  %v2201_v17 = vmul.f32 %v6960_v54, %v8608_v1  ;;  %v2200_v4 = vmul.f32 %v6960_v54, %v8606_v53  ;;  %v6043_v2 = vpop.f32.mrb[39].mxu0  ;;  %v5654_v1 = vld [vmem:[%s10897_s3 + $0x200] sm:$0xff] }
 0x6de   : > { %v8777_v43 = vld [vmem:[#allocation2 + $0x18] sm:$0xff]  ;;  %2456 = vst.msk [vmem:[#allocation2 + $0x40] sm:$0xff] %vm966_vm0, %v2366_v42  ;;  %v2368_v37 = vpop.permute.xlu1 %2367  ;;  %v8787_v16 = vld [vmem:[#allocation2 + $0x27] sm:$0xff]  ;;  %v2549_v40 = vmul.f32 %v2517_v45, %v8775_v49  ;;  %v8794_v53 = vadd.f32 %v6043_v2, %v6042_v18  ;;  %v2805_v19 = vmul.f32 %v5654_v1, %v2740_v28 }
 0x6df   : > { %v8784_v15 = vld [vmem:[#allocation2 + $0x19] sm:$0xff]  ;;  %v2678_v52 = vmul.f32 %v5624_v9, %v8777_v43  ;;  %2457 = vst.msk [vmem:[#allocation2 + $0x48] sm:$0xff] %vm966_vm0, %v2368_v37  ;;  %v2219_v47 = vpack.c.bf16 %v2203_v22, %v2201_v17  ;;  %v2218_v21 = vpack.c.bf16 %v2202_v8, %v2200_v4  ;;  %v2551_v6 = vmul.f32 %v2519_v34, %v8787_v16  ;;  %v8798_v38 = vld [vmem:[#allocation2 + $0x28] sm:$0xff] }
 0x6e0   : > { %v8806_v7 = vld [vmem:[#allocation2 + $0x1f] sm:$0xff]  ;;  %v2680_v59 = vmul.f32 %v5626_v39, %v8798_v38  ;;  %v2807_v58 = vmul.f32 %v5656_v63, %v8784_v15  ;;  %v2906_v29 = vmul.f32 %v5688_v51, %v8787_v16  ;;  %v2520_v9 = vld [vmem:[%s10897_s3 + $0x28] sm:$0xff]  ;;  %v3005_v27 = vmul.f32 %v5720_v41, %v8798_v38  ;;  %v5628_v41 = vld [vmem:[%s10897_s3 + $0x130] sm:$0xff] }
 0x6e1   : > { %v2710_v24 = vadd.f32 %v2678_v52, %v2549_v40  ;;  %2308 = vmatprep.mubr.bf16.mxu0 %v2219_v47  ;;  %v2370_v44 = vpop.permute.xlu0 %2369  ;;  %v8820_v31 = vld [vmem:[#allocation2 + $0x29] sm:$0xff]  ;;  %v5722_v45 = vld [vmem:[%s10897_s3 + $0x420] sm:$0xff]  ;;  %v2550_v22 = vmul.f32 %v2518_v0, %v8806_v7  ;;  %v2679_v52 = vmul.f32 %v5625_v50, %v8828_v11  ;;  %v8881_v47 = vadd.f32 %v2677_v56, %v2548_v10 }
 0x6e2   : > { %2458 = vst.msk [vmem:[#allocation2 + $0x50] sm:$0xff] %vm966_vm0, %v2370_v44  ;;  %2309 = vmatmul.mubr.bf16.gmra.mrb[92].mxu0 %v2218_v21  ;;  %v2372_v32 = vpop.permute.xlu1 %2371  ;;  %v8831_v14 = vld [vmem:[#allocation2 + $0x37] sm:$0xff]  ;;  %v2712_v25 = vadd.f32 %v2680_v59, %v2551_v6  ;;  %v2809_v48 = vmul.f32 %v5658_v26, %v8820_v31  ;;  %v6045_v34 = vpop.f32.mrb[40].mxu0  ;;  %v5754_v54 = vld [vmem:[%s10897_s3 + $0x520] sm:$0xff]  ;;  %v8866_v17 = vld [vmem:[#allocation2 + $0x2f] sm:$0xff]  ;;  %v8883_v21 = vadd.f32 %v2805_v19, %v2708_v62 }
 0x6e3   : > { %v2839_v20 = vadd.f32 %v2807_v58, %v2710_v24  ;;  %2459 = vst.msk [vmem:[#allocation2 + $0x58] sm:$0xff] %vm966_vm0, %v2372_v32  ;;  %v8845_v39 = vld [vmem:[#allocation2 + $0x38] sm:$0xff]  ;;  %v2908_v63 = vmul.f32 %v5690_v55, %v8831_v14  ;;  %v8858_v5 = vld [vmem:[#allocation2 + $0x21] sm:$0xff]  ;;  %v6046_v23 = vpop.f32.mrb[41].mxu0  ;;  %v8868_v4 = vld [vmem:[#allocation2 + $0x30] sm:$0xff]  ;;  %v3104_v24 = vmul.f32 %v5752_v30, %v8820_v31  ;;  %v2552_v10 = vmul.f32 %v2520_v9, %v8866_v17 }
 0x6e4   : > { %v2841_v13 = vadd.f32 %v2809_v48, %v2712_v25  ;;  %v7217_v42 = vld [vmem:[%s10902_s8] sm:$0xff]  ;;  %v8870_v8 = vadd.f32 %v6046_v23, %v6045_v34  ;;  %v6048_v40 = vpop.f32.mrb[42].mxu0  ;;  %v5659_v1 = vld [vmem:[%s10897_s3 + $0x228] sm:$0xff]  ;;  %v3007_v51 = vmul.f32 %v5722_v45, %v8845_v39  ;;  %v8891_v55 = vld [vmem:[#allocation2 + $0x31] sm:$0xff]  ;;  %v2681_v56 = vmul.f32 %v5627_v57, %v8868_v4 }
 0x6e5   : > { %v2938_v60 = vadd.f32 %v2906_v29, %v2839_v20  ;;  %v8864_v18 = vrot.slane %v7217_v42, %v3497_v12  ;;  %v8872_v28 = vld [vmem:[#allocation2 + $0x39] sm:$0xff]  ;;  %v2374_v37 = vpop.permute.xlu0 %2373  ;;  %v6049_v58 = vpop.f32.mrb[43].mxu0  ;;  %v5719_v50 = vld [vmem:[%s10897_s3 + $0x408] sm:$0xff]  ;;  %v5660_v30 = vld [vmem:[%s10897_s3 + $0x230] sm:$0xff]  ;;  %v2711_v62 = vadd.f32 %v2679_v52, %v2550_v22  ;;  %v2808_v19 = vmul.f32 %v5657_v33, %v8858_v5 }
 0x6e6   : > { %v5786_v2 = vld [vmem:[%s10897_s3 + $0x620] sm:$0xff]  ;;  %v2940_v26 = vadd.f32 %v2908_v63, %v2841_v13  ;;  %2460 = vst.msk [vmem:[#allocation2 + $0x60] sm:$0xff] %vm966_vm0, %v2374_v37  ;;  %v2376_v12 = vpop.permute.xlu1 %2375  ;;  %v2741_v32 = vld [vmem:[#allocation2 + $0x11] sm:$0xff]  ;;  %v5655_v25 = vld [vmem:[%s10897_s3 + $0x208] sm:$0xff]  ;;  %v3106_v45 = vmul.f32 %v5754_v54, %v8872_v28  ;;  %v3203_v57 = vmul.f32 %v5784_v46, %v8831_v14  ;;  %v8928_v33 = vadd.f32 %v6049_v58, %v6048_v40 }
 0x6e7   : > { %v2523_v6 = vld [vmem:[%s10897_s3 + $0x40] sm:$0xff]  ;;  %v3037_v59 = vadd.f32 %v3005_v27, %v2938_v60  ;;  %2461 = vst.msk [vmem:[#allocation2 + $0x68] sm:$0xff] %vm966_vm0, %v2376_v12  ;;  %v8912_v48 = vld [vmem:[#allocation2 + $0x48] sm:$0xff]  ;;  %v5816_v34 = vld [vmem:[%s10897_s3 + $0x710] sm:$0xff]  ;;  %v2810_v46 = vmul.f32 %v5659_v1, %v8891_v55  ;;  %v8938_v60 = vmul.f32 %v5719_v50, %v8828_v11  ;;  %v8950_v11 = vmul.f32 %v5655_v25, %v2741_v32 }
 0x6e8   : > { %v5686_v0 = vld [vmem:[%s10897_s3 + $0x300] sm:$0xff]  ;;  %v3039_v29 = vadd.f32 %v3007_v51, %v2940_v26  ;;  %v5692_v63 = vld [vmem:[%s10897_s3 + $0x330] sm:$0xff]  ;;  %v2524_v54 = vld [vmem:[%s10897_s3 + $0x48] sm:$0xff]  ;;  %v2713_v58 = vadd.f32 %v2681_v56, %v2552_v10  ;;  %v2840_v12 = vadd.f32 %v2808_v19, %v2711_v62  ;;  %v8964_v50 = vmul.f32 %v5660_v30, %v8872_v28 }
 0x6e9   : > { %v2491_v44 = vld [vmem:[#allocation2 + $0x47] sm:$0xff]  ;;  %v3136_v9 = vadd.f32 %v3104_v24, %v3037_v59  ;;  %v2378_v23 = vpop.permute.xlu0 %2377  ;;  %v8935_v13 = vmul.f32 %v5686_v0, %v8775_v49  ;;  %v5689_v52 = vld [vmem:[%s10897_s3 + $0x318] sm:$0xff]  ;;  %v8955_v59 = vld [vmem:[#allocation2 + $0x4f] sm:$0xff]  ;;  %v8961_v0 = vmul.f32 %v5628_v41, %v8845_v39 }
 0x6ea   : > { %v5630_v20 = vld [vmem:[%s10897_s3 + $0x140] sm:$0xff]  ;;  %v3138_v27 = vadd.f32 %v3106_v45, %v3039_v29  ;;  %v3205_v42 = vmul.f32 %v5786_v2, %v2491_v44  ;;  %v5631_v40 = vld [vmem:[%s10897_s3 + $0x148] sm:$0xff]  ;;  %2462 = vst.msk [vmem:[#allocation2 + $0x70] sm:$0xff] %vm966_vm0, %v2378_v23  ;;  %v2380_v49 = vpop.permute.xlu1 %2379  ;;  %v2555_v26 = vmul.f32 %v2523_v6, %v2491_v44  ;;  %v8957_v24 = vld [vmem:[#allocation2 + $0x50] sm:$0xff]  ;;  %v3302_v6 = vmul.f32 %v5816_v34, %v8845_v39 }
 0x6eb   : > { %v5818_v22 = vld [vmem:[%s10897_s3 + $0x720] sm:$0xff]  ;;  %v3235_v37 = vadd.f32 %v3203_v57, %v3136_v9  ;;  %v5691_v1 = vld [vmem:[%s10897_s3 + $0x328] sm:$0xff]  ;;  %v2684_v2 = vmul.f32 %v5630_v20, %v8912_v48  ;;  %2463 = vst.msk [vmem:[#allocation2 + $0x78] sm:$0xff] %vm966_vm0, %v2380_v49  ;;  %v5848_v25 = vld [vmem:[%s10897_s3 + $0x810] sm:$0xff]  ;;  %v8979_v30 = vmul.f32 %v5692_v63, %v2491_v44  ;;  %v2842_v19 = vadd.f32 %v2810_v46, %v2713_v58 }
 0x6ec   : > { %v8953_v51 = vld [vmem:[#allocation2 + $0x3f] sm:$0xff]  ;;  %v3237_v32 = vadd.f32 %v3205_v42, %v3138_v27  ;;  %v3304_v39 = vmul.f32 %v5818_v22, %v8912_v48  ;;  %v2907_v20 = vmul.f32 %v5689_v52, %v8866_v17  ;;  %v5723_v29 = vld [vmem:[%s10897_s3 + $0x428] sm:$0xff]  ;;  %v2556_v44 = vmul.f32 %v2524_v54, %v8955_v59  ;;  %v9010_v58 = vld [vmem:[#allocation2 + $0x51] sm:$0xff] }
 0x6ed   : > { %v5629_v10 = vld [vmem:[%s10897_s3 + $0x138] sm:$0xff]  ;;  %v5662_v41 = vld [vmem:[%s10897_s3 + $0x240] sm:$0xff]  ;;  %v2382_v45 = vpop.permute.xlu0 %2381  ;;  %v8986_v9 = vld [vmem:[#allocation2 + $0x49] sm:$0xff]  ;;  %v3334_v57 = vadd.f32 %v3302_v6, %v3235_v37  ;;  %v2685_v63 = vmul.f32 %v5631_v40, %v8957_v24  ;;  %v2909_v22 = vmul.f32 %v5691_v1, %v8953_v51  ;;  %v8998_v27 = vadd.f32 %v2684_v2, %v2555_v26 }
 0x6ee   : > { %v5721_v56 = vld [vmem:[%s10897_s3 + $0x418] sm:$0xff]  ;;  %v2618_v62 = vld [vmem:[#allocation2 + $0x40] sm:$0xff]  ;;  %2464 = vst.msk [vmem:[#allocation2 + $0x80] sm:$0xff] %vm966_vm0, %v2382_v45  ;;  %v2384_v23 = vpop.permute.xlu1 %2383  ;;  %v3336_v42 = vadd.f32 %v3304_v39, %v3237_v32  ;;  %v2939_v52 = vadd.f32 %v2907_v20, %v2840_v12  ;;  %v5755_v54 = vld [vmem:[%s10897_s3 + $0x528] sm:$0xff]  ;;  %v3401_v40 = vmul.f32 %v5848_v25, %v8872_v28  ;;  %v9019_v6 = vmul.f32 %v5662_v41, %v8986_v9 }
 0x6ef   : > { %v5850_v34 = vld [vmem:[%s10897_s3 + $0x820] sm:$0xff]  ;;  %v5753_v46 = vld [vmem:[%s10897_s3 + $0x518] sm:$0xff]  ;;  %v3006_v49 = vmul.f32 %v5721_v56, %v8868_v4  ;;  %2465 = vst.msk [vmem:[#allocation2 + $0x88] sm:$0xff] %vm966_vm0, %v2384_v23  ;;  %v9008_v1 = vmul.f32 %v5629_v10, %v2618_v62  ;;  %v5663_v26 = vld [vmem:[%s10897_s3 + $0x248] sm:$0xff]  ;;  %v2941_v2 = vadd.f32 %v2909_v22, %v2842_v19  ;;  %v3008_v12 = vmul.f32 %v5723_v29, %v2618_v62 }
 0x6f0   : > { %v9000_v37 = vld [vmem:[#allocation2 + $0x41] sm:$0xff]  ;;  %v5785_v32 = vld [vmem:[%s10897_s3 + $0x618] sm:$0xff]  ;;  %v3403_v56 = vmul.f32 %v5850_v34, %v8986_v9  ;;  %v3105_v25 = vmul.f32 %v5753_v46, %v8891_v55  ;;  %v3433_v20 = vadd.f32 %v3401_v40, %v3334_v57  ;;  %v9029_v29 = vadd.f32 %v2685_v63, %v2556_v44 }
 0x6f1   : > { %v3038_v28 = vadd.f32 %v3006_v49, %v2939_v52  ;;  %v5787_v10 = vld [vmem:[%s10897_s3 + $0x628] sm:$0xff]  ;;  %v5817_v39 = vld [vmem:[%s10897_s3 + $0x718] sm:$0xff]  ;;  %v2386_v19 = vpop.permute.xlu0 %2385  ;;  %v3040_v45 = vadd.f32 %v3008_v12, %v2941_v2  ;;  %v3107_v41 = vmul.f32 %v5755_v54, %v9000_v37  ;;  %v5718_v46 = vld [vmem:[%s10897_s3 + $0x400] sm:$0xff]  ;;  %v9040_v52 = vmul.f32 %v5663_v26, %v9010_v58 }
 0x6f2   : > { %2466 = vst.msk [vmem:[#allocation2 + $0x90] sm:$0xff] %vm966_vm0, %v2386_v19  ;;  %v2388_v34 = vpop.permute.xlu1 %2387  ;;  %v5687_v22 = vld [vmem:[%s10897_s3 + $0x308] sm:$0xff]  ;;  %v3435_v23 = vadd.f32 %v3403_v56, %v3336_v42  ;;  %v3204_v44 = vmul.f32 %v5785_v32, %v8953_v51  ;;  %v5849_v49 = vld [vmem:[%s10897_s3 + $0x818] sm:$0xff]  ;;  %v3206_v40 = vmul.f32 %v5787_v10, %v8955_v59  ;;  %v3303_v42 = vmul.f32 %v5817_v39, %v2618_v62  ;;  %v5750_v2 = vld [vmem:[%s10897_s3 + $0x500] sm:$0xff] }
 0x6f3   : > { %v3137_v57 = vadd.f32 %v3105_v25, %v3038_v28  ;;  %v5819_v63 = vld [vmem:[%s10897_s3 + $0x728] sm:$0xff]  ;;  %2467 = vst.msk [vmem:[#allocation2 + $0x98] sm:$0xff] %vm966_vm0, %v2388_v34  ;;  %v3139_v54 = vadd.f32 %v3107_v41, %v3040_v45  ;;  %v2838_v26 = vadd.f32 %v8950_v11, %v8881_v47  ;;  %v2905_v56 = vmul.f32 %v5687_v22, %v8806_v7  ;;  %v5782_v7 = vld [vmem:[%s10897_s3 + $0x600] sm:$0xff]  ;;  %v2521_v34 = vld [vmem:[%s10897_s3 + $0x30] sm:$0xff] }
 0x6f4   : > { %v5851_v32 = vld [vmem:[%s10897_s3 + $0x828] sm:$0xff]  ;;  %v2936_v28 = vadd.f32 %v8935_v13, %v8883_v21  ;;  %v3003_v25 = vmul.f32 %v5718_v46, %v8777_v43  ;;  %v3465_v62 = vadd.f32 %v8779_v61, %v3433_v20  ;;  %v3305_v39 = vmul.f32 %v5819_v63, %v8957_v24  ;;  %v5814_v20 = vld [vmem:[%s10897_s3 + $0x700] sm:$0xff] }
 0x6f5   : > { %v3236_v12 = vadd.f32 %v3204_v44, %v3137_v57  ;;  %v5751_v47 = vld [vmem:[%s10897_s3 + $0x508] sm:$0xff]  ;;  %v2390_v11 = vpop.permute.xlu0 %2389  ;;  %v3238_v10 = vadd.f32 %v3206_v40, %v3139_v54  ;;  %v3402_v19 = vmul.f32 %v5849_v49, %v9000_v37  ;;  %v2937_v13 = vadd.f32 %v2905_v56, %v2838_v26 }
 0x6f6   : > { %2468 = vst.msk [vmem:[#allocation2 + $0xa0] sm:$0xff] %vm966_vm0, %v2390_v11  ;;  %v2392_v21 = vpop.permute.xlu1 %2391  ;;  %v3035_v45 = vadd.f32 %v3003_v25, %v2936_v28  ;;  %v3102_v41 = vmul.f32 %v5750_v2, %v8784_v15  ;;  %v5783_v61 = vld [vmem:[%s10897_s3 + $0x608] sm:$0xff]  ;;  %v3467_v22 = vadd.f32 %v8870_v8, %v3435_v23  ;;  %v3404_v57 = vmul.f32 %v5851_v32, %v9010_v58  ;;  %v2525_v28 = vld [vmem:[%s10897_s3 + $0x50] sm:$0xff] }
 0x6f7   : > { %v3335_v43 = vadd.f32 %v3303_v42, %v3236_v12  ;;  %2469 = vst.msk [vmem:[#allocation2 + $0xa8] sm:$0xff] %vm966_vm0, %v2392_v21  ;;  %v3337_v46 = vadd.f32 %v3305_v39, %v3238_v10  ;;  %v3103_v15 = vmul.f32 %v5751_v47, %v8858_v5  ;;  %v3036_v63 = vadd.f32 %v8938_v60, %v2937_v13  ;;  %v5815_v40 = vld [vmem:[%s10897_s3 + $0x708] sm:$0xff]  ;;  %v5846_v5 = vld [vmem:[%s10897_s3 + $0x800] sm:$0xff]  ;;  %v9117_v47 = vld [vmem:[#allocation2 + $0x58] sm:$0xff] }
 0x6f8   : > { %v3134_v49 = vadd.f32 %v3102_v41, %v3035_v45  ;;  %v3201_v54 = vmul.f32 %v5782_v7, %v8787_v16  ;;  %v3202_v2 = vmul.f32 %v5783_v61, %v8866_v17  ;;  %v3300_v8 = vmul.f32 %v5814_v20, %v8798_v38  ;;  %v5847_v56 = vld [vmem:[%s10897_s3 + $0x808] sm:$0xff]  ;;  %v9107_v38 = vld [vmem:[#allocation2 + $0x57] sm:$0xff] }
 0x6f9   : > { %v3434_v44 = vadd.f32 %v3402_v19, %v3335_v43  ;;  %v2394_v42 = vpop.permute.xlu0 %2393  ;;  %v3436_v26 = vadd.f32 %v3404_v57, %v3337_v46  ;;  %v2553_v23 = vmul.f32 %v2521_v34, %v8831_v14  ;;  %v3135_v12 = vadd.f32 %v3103_v15, %v3036_v63  ;;  %v5632_v11 = vld [vmem:[%s10897_s3 + $0x150] sm:$0xff]  ;;  %v2522_v61 = vld [vmem:[%s10897_s3 + $0x38] sm:$0xff] }
 0x6fa   : > { %2470 = vst.msk [vmem:[#allocation2 + $0xb0] sm:$0xff] %vm966_vm0, %v2394_v42  ;;  %v2396_v60 = vpop.permute.xlu1 %2395  ;;  %v3233_v32 = vadd.f32 %v3201_v54, %v3134_v49  ;;  %v9104_v17 = vadd.f32 %v8864_v18, %v3465_v62  ;;  %v9113_v14 = vadd.f32 %v8864_v18, %v3467_v22  ;;  %v3301_v25 = vmul.f32 %v5815_v40, %v8868_v4  ;;  %v5724_v10 = vld [vmem:[%s10897_s3 + $0x430] sm:$0xff]  ;;  %v5693_v20 = vld [vmem:[%s10897_s3 + $0x338] sm:$0xff] }
 0x6fb   : > { %v3466_v16 = vadd.f32 %v8794_v53, %v3434_v44  ;;  %2471 = vst.msk [vmem:[#allocation2 + $0xb8] sm:$0xff] %vm966_vm0, %v2396_v60  ;;  %v3468_v53 = vadd.f32 %v8928_v33, %v3436_v26  ;;  %v2714_v62 = vadd.f32 %v8961_v0, %v2553_v23  ;;  %v5756_v39 = vld [vmem:[%s10897_s3 + $0x530] sm:$0xff]  ;;  %v3234_v19 = vadd.f32 %v3202_v2, %v3135_v12  ;;  %v5661_v0 = vld [vmem:[%s10897_s3 + $0x238] sm:$0xff]  ;;  %v5694_v2 = vld [vmem:[%s10897_s3 + $0x340] sm:$0xff] }
 0x6fc   : > { %v3332_v33 = vadd.f32 %v3300_v8, %v3233_v32  ;;  %v3399_v4 = vmul.f32 %v5846_v5, %v8820_v31  ;;  %v3400_v13 = vmul.f32 %v5847_v56, %v8891_v55  ;;  %v2557_v41 = vmul.f32 %v2525_v28, %v9107_v38  ;;  %v5725_v15 = vld [vmem:[%s10897_s3 + $0x438] sm:$0xff]  ;;  %v5664_v49 = vld [vmem:[%s10897_s3 + $0x250] sm:$0xff]  ;;  %v5726_v8 = vld [vmem:[%s10897_s3 + $0x440] sm:$0xff] }
 0x6fd   : > { %v9131_v7 = vadd.f32 %v8864_v18, %v3466_v16  ;;  %v2398_v21 = vpop.permute.xlu0 %2397  ;;  %v9137_v43 = vadd.f32 %v8864_v18, %v3468_v53  ;;  %v2843_v31 = vadd.f32 %v8964_v50, %v2714_v62  ;;  %v3333_v34 = vadd.f32 %v3301_v25, %v3234_v19  ;;  %v2750_v63 = vld [vmem:[#allocation2 + $0x59] sm:$0xff]  ;;  %v5852_v62 = vld [vmem:[%s10897_s3 + $0x830] sm:$0xff] }
 0x6fe   : > { %2472 = vst.msk [vmem:[#allocation2 + $0xc0] sm:$0xff] %vm966_vm0, %v2398_v21  ;;  %v2400_v45 = vpop.permute.xlu1 %2399  ;;  %v3431_v22 = vadd.f32 %v3399_v4, %v3332_v33  ;;  %v2686_v46 = vmul.f32 %v5632_v11, %v9117_v47  ;;  %v3009_v57 = vmul.f32 %v5724_v10, %v8912_v48  ;;  %v3108_v50 = vmul.f32 %v5756_v39, %v8986_v9  ;;  %v5757_v48 = vld [vmem:[%s10897_s3 + $0x538] sm:$0xff]  ;;  %v5758_v16 = vld [vmem:[%s10897_s3 + $0x540] sm:$0xff]  ;;  %v5820_v11 = vld [vmem:[%s10897_s3 + $0x730] sm:$0xff] }
 0x6ff   : > { %v3532_v55 = vpack.c.bf16 %v9131_v7, %v9104_v17  ;;  %2473 = vst.msk [vmem:[#allocation2 + $0xc8] sm:$0xff] %vm966_vm0, %v2400_v45  ;;  %v3533_v44 = vpack.c.bf16 %v9137_v43, %v9113_v14  ;;  %v2942_v54 = vadd.f32 %v8979_v30, %v2843_v31  ;;  %v2812_v40 = vmul.f32 %v5661_v0, %v9000_v37  ;;  %v9197_v12 = vld [vmem:[#allocation2 + $0x60] sm:$0xff]  ;;  %v5633_v32 = vld [vmem:[%s10897_s3 + $0x158] sm:$0xff]  ;;  %v5695_v10 = vld [vmem:[%s10897_s3 + $0x348] sm:$0xff] }
 0x700   : > { %v3432_v9 = vadd.f32 %v3400_v13, %v3333_v34  ;;  %v3463_v42 = vadd.f32 %v8739_v36, %v3431_v22  ;;  %v2554_v30 = vmul.f32 %v2522_v61, %v8953_v51  ;;  %v2845_v37 = vadd.f32 %v9019_v6, %v8998_v27  ;;  %v5788_v51 = vld [vmem:[%s10897_s3 + $0x630] sm:$0xff]  ;;  %v2526_v27 = vld [vmem:[%s10897_s3 + $0x58] sm:$0xff]  ;;  %v2527_v4 = vld [vmem:[%s10897_s3 + $0x60] sm:$0xff] }
 0x701   : > { %v2402_v26 = vpop.permute.xlu0 %2401  ;;  %v9180_v5 = vadd.f32 %v9040_v52, %v9029_v29  ;;  %v2911_v36 = vmul.f32 %v5693_v20, %v8955_v59  ;;  %v3041_v23 = vadd.f32 %v3009_v57, %v2942_v54  ;;  %v2718_v59 = vadd.f32 %v2686_v46, %v2557_v41  ;;  %v9195_v52 = vld [vmem:[#allocation2 + $0x5f] sm:$0xff]  ;;  %v2495_v61 = vld [vmem:[#allocation2 + $0x67] sm:$0xff]  ;;  %v5728_v14 = vld [vmem:[%s10897_s3 + $0x450] sm:$0xff] }
 0x702   : > { %2474 = vst.msk [vmem:[#allocation2 + $0xd0] sm:$0xff] %vm966_vm0, %v2402_v26  ;;  %v2404_v60 = vpop.permute.xlu1 %2403  ;;  %v3464_v6 = vadd.f32 %v8742_v3, %v3432_v9  ;;  %v2815_v29 = vmul.f32 %v5664_v49, %v2750_v63  ;;  %v2715_v56 = vadd.f32 %v9008_v1, %v2554_v30  ;;  %v3010_v28 = vmul.f32 %v5725_v15, %v8957_v24  ;;  %v5665_v19 = vld [vmem:[%s10897_s3 + $0x258] sm:$0xff]  ;;  %v5634_v21 = vld [vmem:[%s10897_s3 + $0x160] sm:$0xff]  ;;  %v9231_v20 = vld [vmem:[#allocation2 + $0x68] sm:$0xff] }
 0x703   : > { %2475 = vst.msk [vmem:[#allocation2 + $0xd8] sm:$0xff] %vm966_vm0, %v2404_v60  ;;  %v3109_v53 = vmul.f32 %v5757_v48, %v9010_v58  ;;  %v2912_v3 = vmul.f32 %v5694_v2, %v9107_v38  ;;  %v3140_v25 = vadd.f32 %v3108_v50, %v3041_v23  ;;  %v3499_v1 = vadd.f32 %v8864_v18, %v3463_v42  ;;  %v2751_v31 = vld [vmem:[#allocation2 + $0x61] sm:$0xff]  ;;  %v5789_v48 = vld [vmem:[%s10897_s3 + $0x638] sm:$0xff]  ;;  %v9257_v60 = vld [vmem:[#allocation2 + $0x70] sm:$0xff] }
 0x704   : > { %v3500_v24 = vadd.f32 %v8864_v18, %v3464_v6  ;;  %v3207_v39 = vmul.f32 %v5788_v51, %v9107_v38  ;;  %v2844_v33 = vadd.f32 %v2812_v40, %v2715_v56  ;;  %v3011_v13 = vmul.f32 %v5726_v8, %v9117_v47  ;;  %v5727_v50 = vld [vmem:[%s10897_s3 + $0x448] sm:$0xff]  ;;  %v5821_v9 = vld [vmem:[%s10897_s3 + $0x738] sm:$0xff]  ;;  %v5760_v43 = vld [vmem:[%s10897_s3 + $0x550] sm:$0xff] }
 0x705   : > { %v2406_v58 = vpop.permute.xlu0 %2405  ;;  %v3110_v45 = vmul.f32 %v5758_v16, %v2750_v63  ;;  %v2558_v38 = vmul.f32 %v2526_v27, %v9195_v52  ;;  %v2687_v41 = vmul.f32 %v5633_v32, %v9197_v12  ;;  %v9234_v22 = vadd.f32 %v2815_v29, %v2718_v59  ;;  %v5759_v15 = vld [vmem:[%s10897_s3 + $0x548] sm:$0xff]  ;;  %v5666_v59 = vld [vmem:[%s10897_s3 + $0x260] sm:$0xff]  ;;  %v5696_v29 = vld [vmem:[%s10897_s3 + $0x350] sm:$0xff] }
 0x706   : > { %2476 = vst.msk [vmem:[#allocation2 + $0xe0] sm:$0xff] %vm966_vm0, %v2406_v58  ;;  %v2408_v0 = vpop.permute.xlu1 %2407  ;;  %v3531_v34 = vpack.c.bf16 %v3500_v24, %v3499_v1  ;;  %v3239_v46 = vadd.f32 %v3207_v39, %v3140_v25  ;;  %v2943_v57 = vadd.f32 %v2911_v36, %v2844_v33  ;;  %v3306_v49 = vmul.f32 %v5820_v11, %v9117_v47  ;;  %v2528_v26 = vld [vmem:[%s10897_s3 + $0x68] sm:$0xff]  ;;  %v9299_v58 = vld [vmem:[#allocation2 + $0x71] sm:$0xff] }
 0x707   : > { %2477 = vst.msk [vmem:[#allocation2 + $0xe8] sm:$0xff] %vm966_vm0, %v2408_v0  ;;  %v3405_v54 = vmul.f32 %v5852_v62, %v2750_v63  ;;  %v2913_v40 = vmul.f32 %v5695_v10, %v9195_v52  ;;  %v2944_v42 = vadd.f32 %v2912_v3, %v2845_v37  ;;  %v2816_v47 = vmul.f32 %v5665_v19, %v2751_v31  ;;  %v9255_v36 = vld [vmem:[#allocation2 + $0x6f] sm:$0xff]  ;;  %v5790_v3 = vld [vmem:[%s10897_s3 + $0x640] sm:$0xff]  ;;  %v5697_v0 = vld [vmem:[%s10897_s3 + $0x358] sm:$0xff] }
 0x708   : > { %6361 = vmatprep.mubr.msk.bf16.mxu1 %vm966_vm0, %v3531_v34  ;;  %v3042_v63 = vadd.f32 %v3010_v28, %v2943_v57  ;;  %v2559_v8 = vmul.f32 %v2527_v4, %v2495_v61  ;;  %v2688_v30 = vmul.f32 %v5634_v21, %v9231_v20  ;;  %v5635_v37 = vld [vmem:[%s10897_s3 + $0x168] sm:$0xff]  ;;  %v2719_v16 = vadd.f32 %v2687_v41, %v2558_v38  ;;  %v5853_v28 = vld [vmem:[%s10897_s3 + $0x838] sm:$0xff]  ;;  %v2529_v57 = vld [vmem:[%s10897_s3 + $0x70] sm:$0xff] }
 0x709   : > { %v2410_v2 = vpop.permute.xlu0 %2409  ;;  %6362 = vmatmul.mubr.msk.bf16.vlgmr.msra.gmra.mrb[96].mxu1 %vm966_vm0, %v3532_v55  ;;  %v3012_v51 = vmul.f32 %v5727_v50, %v9197_v12  ;;  %v3111_v27 = vmul.f32 %v5759_v15, %v2751_v31  ;;  %v2752_v6 = vld [vmem:[#allocation2 + $0x69] sm:$0xff]  ;;  %v3043_v32 = vadd.f32 %v3011_v13, %v2944_v42  ;;  %v3338_v17 = vadd.f32 %v3306_v49, %v3239_v46  ;;  %v5729_v13 = vld [vmem:[%s10897_s3 + $0x458] sm:$0xff] }
 0x70a   : > { %2478 = vst.msk [vmem:[#allocation2 + $0xf0] sm:$0xff] %vm966_vm0, %v2410_v2  ;;  %v2412_v23 = vpop.permute.xlu1 %2411  ;;  %6365 = vmatprep.mubr.msk.bf16.mxu1 %vm966_vm0, %v3533_v44  ;;  %v3141_v7 = vadd.f32 %v3109_v53, %v3042_v63  ;;  %v3208_v55 = vmul.f32 %v5789_v48, %v9195_v52  ;;  %v3307_v56 = vmul.f32 %v5821_v9, %v9197_v12  ;;  %v5822_v52 = vld [vmem:[%s10897_s3 + $0x740] sm:$0xff]  ;;  %v5667_v39 = vld [vmem:[%s10897_s3 + $0x268] sm:$0xff]  ;;  %v5761_v34 = vld [vmem:[%s10897_s3 + $0x558] sm:$0xff] }
 0x70b   : > { %2479 = vst.msk [vmem:[#allocation2 + $0xf8] sm:$0xff] %vm966_vm0, %v2412_v23  ;;  %v3142_v44 = vadd.f32 %v3110_v45, %v3043_v32  ;;  %v2560_v12 = vmul.f32 %v2528_v26, %v9255_v36  ;;  %v2689_v53 = vmul.f32 %v5635_v37, %v9257_v60  ;;  %v2945_v25 = vadd.f32 %v2913_v40, %v9180_v5  ;;  %v5854_v5 = vld [vmem:[%s10897_s3 + $0x840] sm:$0xff]  ;;  %v5791_v46 = vld [vmem:[%s10897_s3 + $0x648] sm:$0xff]  ;;  %v2497_v40 = vld [vmem:[#allocation2 + $0x77] sm:$0xff] }
 0x70c   : > { %v3240_v62 = vadd.f32 %v3208_v55, %v3141_v7  ;;  %v2720_v10 = vadd.f32 %v2688_v30, %v2559_v8  ;;  %v2817_v1 = vmul.f32 %v5666_v59, %v2752_v6  ;;  %v2914_v24 = vmul.f32 %v5696_v29, %v2495_v61  ;;  %v9329_v48 = vld [vmem:[#allocation2 + $0x78] sm:$0xff]  ;;  %v5823_v63 = vld [vmem:[%s10897_s3 + $0x748] sm:$0xff]  ;;  %v9356_v55 = vld [vmem:[#allocation2 + $0x80] sm:$0xff] }
 0x70d   : > { %v2414_v11 = vpop.permute.xlu0 %2413  ;;  %v9305_v33 = vadd.f32 %v2816_v47, %v2719_v16  ;;  %v3406_v4 = vmul.f32 %v5853_v28, %v2751_v31  ;;  %v3209_v21 = vmul.f32 %v5790_v3, %v2495_v61  ;;  %v3044_v45 = vadd.f32 %v3012_v51, %v2945_v25  ;;  %v9354_v7 = vld [vmem:[#allocation2 + $0x7f] sm:$0xff] }
 0x70e   : > { %2480 = vst.msk [vmem:[#allocation2 + $0x100] sm:$0xff] %vm966_vm0, %v2414_v11  ;;  %v2416_v19 = vpop.permute.xlu1 %2415  ;;  %v3437_v38 = vadd.f32 %v3405_v54, %v3338_v17  ;;  %v3013_v41 = vmul.f32 %v5728_v14, %v9231_v20  ;;  %v3112_v31 = vmul.f32 %v5760_v43, %v2752_v6  ;;  %v3308_v61 = vmul.f32 %v5822_v52, %v9231_v20  ;;  %v5636_v20 = vld [vmem:[%s10897_s3 + $0x170] sm:$0xff] }
 0x70f   : > { %2481 = vst.msk [vmem:[#allocation2 + $0x108] sm:$0xff] %vm966_vm0, %v2416_v19  ;;  %v3241_v50 = vadd.f32 %v3209_v21, %v3142_v44  ;;  %v2721_v15 = vadd.f32 %v2689_v53, %v2560_v12  ;;  %v2818_v49 = vmul.f32 %v5667_v39, %v9299_v58  ;;  %v3143_v54 = vadd.f32 %v3111_v27, %v3044_v45  ;;  %v5855_v27 = vld [vmem:[%s10897_s3 + $0x848] sm:$0xff]  ;;  %v2754_v44 = vld [vmem:[#allocation2 + $0x79] sm:$0xff]  ;;  %v5668_v52 = vld [vmem:[%s10897_s3 + $0x270] sm:$0xff] }
 0x710   : > { %v6051_v42 = vpop.f32.mrb[44].mxu0  ;;  %v3339_v26 = vadd.f32 %v3307_v56, %v3240_v62  ;;  %v9334_v2 = vadd.f32 %v2817_v1, %v2720_v10  ;;  %v3407_v47 = vmul.f32 %v5854_v5, %v2752_v6  ;;  %v2946_v8 = vadd.f32 %v2914_v24, %v9234_v22  ;;  %v2530_v22 = vld [vmem:[%s10897_s3 + $0x78] sm:$0xff]  ;;  %v5792_v12 = vld [vmem:[%s10897_s3 + $0x650] sm:$0xff]  ;;  %v5698_v62 = vld [vmem:[%s10897_s3 + $0x360] sm:$0xff] }
 0x711   : > { %v2418_v9 = vpop.permute.xlu0 %2417  ;;  %v6052_v30 = vpop.f32.mrb[45].mxu0  ;;  %v2915_v37 = vmul.f32 %v5697_v0, %v9255_v36  ;;  %v3014_v23 = vmul.f32 %v5729_v13, %v9257_v60  ;;  %v9344_v16 = vmul.f32 %v5761_v34, %v9299_v58  ;;  %v3210_v51 = vmul.f32 %v5791_v46, %v9255_v36  ;;  %v5637_v36 = vld [vmem:[%s10897_s3 + $0x178] sm:$0xff]  ;;  %v5824_v24 = vld [vmem:[%s10897_s3 + $0x750] sm:$0xff]  ;;  %v5762_v13 = vld [vmem:[%s10897_s3 + $0x560] sm:$0xff] }
 0x712   : > { %2482 = vst.msk [vmem:[#allocation2 + $0x110] sm:$0xff] %vm966_vm0, %v2418_v9  ;;  %v6053_v6 = vadd.f32 %v6052_v30, %v6051_v42  ;;  %v6054_v59 = vpop.f32.mrb[46].mxu0  ;;  %v2561_v29 = vmul.f32 %v2529_v57, %v2497_v40  ;;  %v2690_v32 = vmul.f32 %v5636_v20, %v9329_v48  ;;  %v3045_v17 = vadd.f32 %v3013_v41, %v2946_v8  ;;  %v2531_v46 = vld [vmem:[%s10897_s3 + $0x80] sm:$0xff]  ;;  %v9398_v20 = vld [vmem:[#allocation2 + $0x88] sm:$0xff] }
 0x713   : > { %v6055_v56 = vpop.f32.mrb[47].mxu0  ;;  %v3340_v28 = vadd.f32 %v3308_v61, %v3241_v50  ;;  %v9361_v3 = vadd.f32 %v2818_v49, %v2721_v15  ;;  %v3242_v14 = vadd.f32 %v3210_v51, %v3143_v54  ;;  %v3309_v43 = vmul.f32 %v5823_v63, %v9257_v60  ;;  %v5730_v60 = vld [vmem:[%s10897_s3 + $0x460] sm:$0xff]  ;;  %v5699_v8 = vld [vmem:[%s10897_s3 + $0x368] sm:$0xff] }
 0x714   : > { %v3469_v53 = vadd.f32 %v6053_v6, %v3437_v38  ;;  %v6056_v25 = vadd.f32 %v6055_v56, %v6054_v59  ;;  %v3438_v11 = vadd.f32 %v3406_v4, %v3339_v26  ;;  %v3144_v10 = vadd.f32 %v3112_v31, %v3045_v17  ;;  %v2755_v38 = vld [vmem:[#allocation2 + $0x81] sm:$0xff] }
 0x715   : > { %v3408_v1 = vmul.f32 %v5855_v27, %v9299_v58  ;;  %v2562_v39 = vmul.f32 %v2530_v22, %v9354_v7  ;;  %v2691_v19 = vmul.f32 %v5637_v36, %v9356_v55  ;;  %v2947_v4 = vadd.f32 %v2915_v37, %v9305_v33  ;;  %v5669_v58 = vld [vmem:[%s10897_s3 + $0x278] sm:$0xff]  ;;  %v5856_v33 = vld [vmem:[%s10897_s3 + $0x850] sm:$0xff]  ;;  %v2499_v54 = vld [vmem:[#allocation2 + $0x87] sm:$0xff] }
 0x716   : > { %v3470_v21 = vadd.f32 %v6056_v25, %v3438_v11  ;;  %v2722_v5 = vadd.f32 %v2690_v32, %v2561_v29  ;;  %v2819_v0 = vmul.f32 %v5668_v52, %v2754_v44  ;;  %v3211_v45 = vmul.f32 %v5792_v12, %v2497_v40  ;;  %v5731_v27 = vld [vmem:[%s10897_s3 + $0x468] sm:$0xff]  ;;  %v5825_v29 = vld [vmem:[%s10897_s3 + $0x758] sm:$0xff]  ;;  %v5670_v12 = vld [vmem:[%s10897_s3 + $0x280] sm:$0xff] }
 0x717   : > { %v3341_v41 = vadd.f32 %v3309_v43, %v3242_v14  ;;  %v2916_v31 = vmul.f32 %v5698_v62, %v2497_v40  ;;  %v3015_v61 = vmul.f32 %v5730_v60, %v9329_v48  ;;  %v3046_v34 = vadd.f32 %v3014_v23, %v2947_v4  ;;  %v5638_v40 = vld [vmem:[%s10897_s3 + $0x180] sm:$0xff]  ;;  %v5857_v32 = vld [vmem:[%s10897_s3 + $0x858] sm:$0xff]  ;;  %v2756_v52 = vld [vmem:[#allocation2 + $0x89] sm:$0xff] }
 0x718   : > { %v3505_v57 = vadd.f32 %v8864_v18, %v3469_v53  ;;  %v3506_v50 = vadd.f32 %v8864_v18, %v3470_v21  ;;  %v3439_v15 = vadd.f32 %v3407_v47, %v3340_v28  ;;  %v3243_v49 = vadd.f32 %v3211_v45, %v3144_v10  ;;  %v5793_v47 = vld [vmem:[%s10897_s3 + $0x658] sm:$0xff]  ;;  %v5700_v53 = vld [vmem:[%s10897_s3 + $0x370] sm:$0xff]  ;;  %v5794_v10 = vld [vmem:[%s10897_s3 + $0x660] sm:$0xff] }
 0x719   : > { %v3114_v9 = vmul.f32 %v5762_v13, %v2754_v44  ;;  %v3310_v42 = vmul.f32 %v5824_v24, %v9329_v48  ;;  %v2723_v26 = vadd.f32 %v2691_v19, %v2562_v39  ;;  %v2820_v63 = vmul.f32 %v5669_v58, %v2755_v38  ;;  %v5763_v48 = vld [vmem:[%s10897_s3 + $0x568] sm:$0xff]  ;;  %v5732_v60 = vld [vmem:[%s10897_s3 + $0x470] sm:$0xff] }
 0x71a   : > { %v3534_v30 = vpack.c.bf16 %v3506_v50, %v3505_v57  ;;  %v9410_v23 = vadd.f32 %v2819_v0, %v2722_v5  ;;  %v3409_v51 = vmul.f32 %v5856_v33, %v2754_v44  ;;  %v3145_v22 = vadd.f32 %v9344_v16, %v3046_v34  ;;  %v2500_v21 = vld [vmem:[#allocation2 + $0x8f] sm:$0xff] }
 0x71b   : > { %v6057_v37 = vpop.f32.mrb[48].mxu0  ;;  %v3440_v59 = vadd.f32 %v3408_v1, %v3341_v41  ;;  %v2563_v17 = vmul.f32 %v2531_v46, %v2499_v54  ;;  %v2692_v36 = vmul.f32 %v5638_v40, %v9398_v20  ;;  %v2948_v56 = vadd.f32 %v2916_v31, %v9334_v2  ;;  %v2532_v1 = vld [vmem:[%s10897_s3 + $0x88] sm:$0xff]  ;;  %v2628_v5 = vld [vmem:[#allocation2 + $0x90] sm:$0xff] }
 0x71c   : > { %v6058_v6 = vpop.f32.mrb[49].mxu0  ;;  %6366 = vmatmul.mubr.msk.bf16.gmra.mrb[100].mxu1 %vm966_vm0, %v3534_v30  ;;  %v3342_v16 = vadd.f32 %v3310_v42, %v3243_v49  ;;  %v2917_v43 = vmul.f32 %v5699_v8, %v9354_v7  ;;  %v3212_v44 = vmul.f32 %v5793_v47, %v9354_v7  ;;  %v9436_v2 = vadd.f32 %v2820_v63, %v2723_v26  ;;  %v5639_v0 = vld [vmem:[%s10897_s3 + $0x188] sm:$0xff]  ;;  %v5764_v34 = vld [vmem:[%s10897_s3 + $0x570] sm:$0xff]  ;;  %v5858_v63 = vld [vmem:[%s10897_s3 + $0x860] sm:$0xff] }
 0x71d   : > { %v6059_v28 = vadd.f32 %v6058_v6, %v6057_v37  ;;  %v6060_v14 = vpop.f32.mrb[50].mxu0  ;;  %v3016_v11 = vmul.f32 %v5731_v27, %v9356_v55  ;;  %v3115_v62 = vmul.f32 %v5763_v48, %v2755_v38  ;;  %v3047_v7 = vadd.f32 %v3015_v61, %v2948_v56  ;;  %v5795_v49 = vld [vmem:[%s10897_s3 + $0x668] sm:$0xff]  ;;  %v5701_v48 = vld [vmem:[%s10897_s3 + $0x378] sm:$0xff] }
 0x71e   : > { %v6061_v25 = vpop.f32.mrb[51].mxu0  ;;  %v3244_v19 = vadd.f32 %v3212_v44, %v3145_v22  ;;  %v3311_v4 = vmul.f32 %v5825_v29, %v9356_v55  ;;  %v3410_v13 = vmul.f32 %v5857_v32, %v2755_v38  ;;  %v2724_v45 = vadd.f32 %v2692_v36, %v2563_v17  ;;  %v5826_v55 = vld [vmem:[%s10897_s3 + $0x760] sm:$0xff]  ;;  %v5733_v29 = vld [vmem:[%s10897_s3 + $0x478] sm:$0xff]  ;;  %v5827_v36 = vld [vmem:[%s10897_s3 + $0x768] sm:$0xff] }
 0x71f   : > { %v3471_v24 = vadd.f32 %v6059_v28, %v3439_v15  ;;  %v6062_v39 = vadd.f32 %v6061_v25, %v6060_v14  ;;  %v2821_v58 = vmul.f32 %v5670_v12, %v2756_v52  ;;  %v3146_v41 = vadd.f32 %v3114_v9, %v3047_v7  ;;  %v2629_v44 = vld [vmem:[#allocation2 + $0x98] sm:$0xff]  ;;  %v5640_v12 = vld [vmem:[%s10897_s3 + $0x190] sm:$0xff] }
 0x720   : > { %v3441_v61 = vadd.f32 %v3409_v51, %v3342_v16  ;;  %v2918_v33 = vmul.f32 %v5700_v53, %v2499_v54  ;;  %v2949_v46 = vadd.f32 %v2917_v43, %v9361_v3  ;;  %v3017_v57 = vmul.f32 %v5732_v60, %v9398_v20  ;;  %v2757_v3 = vld [vmem:[#allocation2 + $0x91] sm:$0xff] }
 0x721   : > { %v3472_v31 = vadd.f32 %v6062_v39, %v3440_v59  ;;  %v3213_v50 = vmul.f32 %v5794_v10, %v2499_v54  ;;  %v2564_v38 = vmul.f32 %v2532_v1, %v2500_v21  ;;  %v2693_v15 = vmul.f32 %v5639_v0, %v2628_v5  ;;  %v5671_v54 = vld [vmem:[%s10897_s3 + $0x288] sm:$0xff]  ;;  %v2501_v43 = vld [vmem:[#allocation2 + $0x97] sm:$0xff] }
 0x722   : > { %v3507_v40 = vadd.f32 %v8864_v18, %v3471_v24  ;;  %v3343_v26 = vadd.f32 %v3311_v4, %v3244_v19  ;;  %v3048_v8 = vadd.f32 %v3016_v11, %v2949_v46  ;;  %v9471_v30 = vadd.f32 %v2821_v58, %v2724_v45  ;;  %v5765_v60 = vld [vmem:[%s10897_s3 + $0x578] sm:$0xff]  ;;  %v5796_v7 = vld [vmem:[%s10897_s3 + $0x670] sm:$0xff] }
 0x723   : > { %v3508_v9 = vadd.f32 %v8864_v18, %v3472_v31  ;;  %v6063_v42 = vpop.f32.mrb[52].mxu0  ;;  %v3116_v37 = vmul.f32 %v5764_v34, %v2756_v52  ;;  %v3245_v51 = vadd.f32 %v3213_v50, %v3146_v41  ;;  %v3312_v27 = vmul.f32 %v5826_v55, %v9398_v20  ;;  %v2533_v20 = vld [vmem:[%s10897_s3 + $0x90] sm:$0xff]  ;;  %v2758_v45 = vld [vmem:[#allocation2 + $0x99] sm:$0xff] }
 0x724   : > { %v6064_v47 = vpop.f32.mrb[53].mxu0  ;;  %v3147_v32 = vadd.f32 %v3115_v62, %v3048_v8  ;;  %v3214_v17 = vmul.f32 %v5795_v49, %v2500_v21  ;;  %v3411_v28 = vmul.f32 %v5858_v63, %v2756_v52  ;;  %v2725_v14 = vadd.f32 %v2693_v15, %v2564_v38  ;;  %v5672_v58 = vld [vmem:[%s10897_s3 + $0x290] sm:$0xff]  ;;  %v2534_v34 = vld [vmem:[%s10897_s3 + $0x98] sm:$0xff]  ;;  %v9516_v49 = vld [vmem:[#allocation2 + $0xa0] sm:$0xff] }
 0x725   : > { %v3535_v22 = vpack.c.bf16 %v3508_v9, %v3507_v40  ;;  %v6065_v6 = vadd.f32 %v6064_v47, %v6063_v42  ;;  %v6066_v59 = vpop.f32.mrb[54].mxu0  ;;  %v2822_v16 = vmul.f32 %v5671_v54, %v2757_v3  ;;  %v2950_v53 = vadd.f32 %v2918_v33, %v9410_v23  ;;  %v5859_v23 = vld [vmem:[%s10897_s3 + $0x868] sm:$0xff]  ;;  %v2502_v15 = vld [vmem:[#allocation2 + $0x9f] sm:$0xff] }
 0x726   : > { %v6067_v56 = vpop.f32.mrb[55].mxu0  ;;  %v3442_v62 = vadd.f32 %v3410_v13, %v3343_v26  ;;  %v3246_v52 = vadd.f32 %v3214_v17, %v3147_v32  ;;  %v3344_v10 = vadd.f32 %v3312_v27, %v3245_v51  ;;  %v2919_v1 = vmul.f32 %v5701_v48, %v2500_v21  ;;  %v5702_v21 = vld [vmem:[%s10897_s3 + $0x380] sm:$0xff]  ;;  %v5641_v40 = vld [vmem:[%s10897_s3 + $0x198] sm:$0xff] }
 0x727   : > { %v3473_v25 = vadd.f32 %v6065_v6, %v3441_v61  ;;  %v6068_v11 = vadd.f32 %v6067_v56, %v6066_v59  ;;  %6369 = vmatprep.mubr.msk.bf16.mxu1 %vm966_vm0, %v3535_v22  ;;  %v3018_v24 = vmul.f32 %v5733_v29, %v2628_v5  ;;  %v3049_v39 = vadd.f32 %v3017_v57, %v2950_v53  ;;  %v5734_v63 = vld [vmem:[%s10897_s3 + $0x480] sm:$0xff]  ;;  %v5797_v22 = vld [vmem:[%s10897_s3 + $0x678] sm:$0xff]  ;;  %v5860_v29 = vld [vmem:[%s10897_s3 + $0x870] sm:$0xff] }
 0x728   : > { %v3313_v4 = vmul.f32 %v5827_v36, %v2628_v5  ;;  %v2565_v0 = vmul.f32 %v2533_v20, %v2501_v43  ;;  %v2694_v13 = vmul.f32 %v5640_v12, %v2629_v44  ;;  %v9503_v41 = vadd.f32 %v2822_v16, %v2725_v14  ;;  %v5828_v5 = vld [vmem:[%s10897_s3 + $0x770] sm:$0xff]  ;;  %v5766_v48 = vld [vmem:[%s10897_s3 + $0x580] sm:$0xff]  ;;  %v5673_v36 = vld [vmem:[%s10897_s3 + $0x298] sm:$0xff] }
 0x729   : > { %v3474_v19 = vadd.f32 %v6068_v11, %v3442_v62  ;;  %v3117_v31 = vmul.f32 %v5765_v60, %v2757_v3  ;;  %v3148_v61 = vadd.f32 %v3116_v37, %v3049_v39  ;;  %v3215_v33 = vmul.f32 %v5796_v7, %v2501_v43  ;;  %v2759_v17 = vld [vmem:[#allocation2 + $0xa1] sm:$0xff]  ;;  %v5829_v12 = vld [vmem:[%s10897_s3 + $0x778] sm:$0xff] }
 0x72a   : > { %v3509_v55 = vadd.f32 %v8864_v18, %v3473_v25  ;;  %v3345_v50 = vadd.f32 %v3313_v4, %v3246_v52  ;;  %v3412_v38 = vmul.f32 %v5859_v23, %v2757_v3  ;;  %v3443_v42 = vadd.f32 %v3411_v28, %v3344_v10  ;;  %v5861_v60 = vld [vmem:[%s10897_s3 + $0x878] sm:$0xff]  ;;  %v5642_v23 = vld [vmem:[%s10897_s3 + $0x1a0] sm:$0xff] }
 0x72b   : > { %v3510_v46 = vadd.f32 %v8864_v18, %v3474_v19  ;;  %v6069_v57 = vpop.f32.mrb[56].mxu0  ;;  %v9521_v26 = vmul.f32 %v5672_v58, %v2758_v45  ;;  %v3247_v54 = vadd.f32 %v3215_v33, %v3148_v61  ;;  %v2951_v8 = vadd.f32 %v2919_v1, %v9436_v2  ;;  %v2503_v1 = vld [vmem:[#allocation2 + $0xa7] sm:$0xff] }
 0x72c   : > { %v6070_v9 = vpop.f32.mrb[57].mxu0  ;;  %v2726_v51 = vadd.f32 %v2694_v13, %v2565_v0  ;;  %v2920_v27 = vmul.f32 %v5702_v21, %v2501_v43  ;;  %v3314_v59 = vmul.f32 %v5828_v5, %v2629_v44  ;;  %v2566_v2 = vmul.f32 %v2534_v34, %v2502_v15  ;;  %v5703_v43 = vld [vmem:[%s10897_s3 + $0x388] sm:$0xff]  ;;  %v5798_v58 = vld [vmem:[%s10897_s3 + $0x680] sm:$0xff] }
 0x72d   : > { %v3536_v47 = vpack.c.bf16 %v3510_v46, %v3509_v55  ;;  %v6071_v3 = vadd.f32 %v6070_v9, %v6069_v57  ;;  %v6072_v37 = vpop.f32.mrb[58].mxu0  ;;  %v2695_v32 = vmul.f32 %v5641_v40, %v9516_v49  ;;  %v3050_v20 = vadd.f32 %v3018_v24, %v2951_v8  ;;  %v2631_v24 = vld [vmem:[#allocation2 + $0xa8] sm:$0xff]  ;;  %v5704_v9 = vld [vmem:[%s10897_s3 + $0x390] sm:$0xff] }
 0x72e   : > { %v6073_v6 = vpop.f32.mrb[59].mxu0  ;;  %v3444_v14 = vadd.f32 %v3412_v38, %v3345_v50  ;;  %v3019_v16 = vmul.f32 %v5734_v63, %v2629_v44  ;;  %v3118_v53 = vmul.f32 %v5766_v48, %v2758_v45  ;;  %v3346_v25 = vadd.f32 %v3314_v59, %v3247_v54  ;;  %v2535_v44 = vld [vmem:[%s10897_s3 + $0xa0] sm:$0xff]  ;;  %v5735_v61 = vld [vmem:[%s10897_s3 + $0x488] sm:$0xff] }
 0x72f   : > { %v3475_v56 = vadd.f32 %v6071_v3, %v3443_v42  ;;  %v6074_v28 = vadd.f32 %v6073_v6, %v6072_v37  ;;  %6370 = vmatmul.mubr.msk.bf16.gmra.mrb[104].mxu1 %vm966_vm0, %v3536_v47  ;;  %v3149_v11 = vadd.f32 %v3117_v31, %v3050_v20  ;;  %v3216_v62 = vmul.f32 %v5797_v22, %v2502_v15  ;;  %v5767_v40 = vld [vmem:[%s10897_s3 + $0x588] sm:$0xff]  ;;  %v5830_v54 = vld [vmem:[%s10897_s3 + $0x780] sm:$0xff] }
 0x730   : > { %v3413_v7 = vmul.f32 %v5860_v29, %v2758_v45  ;;  %v2824_v10 = vmul.f32 %v5673_v36, %v2759_v17  ;;  %v2952_v39 = vadd.f32 %v2920_v27, %v9471_v30  ;;  %v2727_v19 = vadd.f32 %v2695_v32, %v2566_v2  ;;  %v2760_v37 = vld [vmem:[#allocation2 + $0xa9] sm:$0xff]  ;;  %v5674_v27 = vld [vmem:[%s10897_s3 + $0x2a0] sm:$0xff] }
 0x731   : > { %v3476_v52 = vadd.f32 %v6074_v28, %v3444_v14  ;;  %v2921_v4 = vmul.f32 %v5703_v43, %v2502_v15  ;;  %v3248_v0 = vadd.f32 %v3216_v62, %v3149_v11  ;;  %v3315_v13 = vmul.f32 %v5829_v12, %v9516_v49  ;;  %v5736_v29 = vld [vmem:[%s10897_s3 + $0x490] sm:$0xff]  ;;  %v5862_v20 = vld [vmem:[%s10897_s3 + $0x880] sm:$0xff]  ;;  %v2536_v12 = vld [vmem:[%s10897_s3 + $0xa8] sm:$0xff] }
 0x732   : > { %v3511_v45 = vadd.f32 %v8864_v18, %v3475_v56  ;;  %v3414_v33 = vmul.f32 %v5861_v60, %v2759_v17  ;;  %v3051_v30 = vadd.f32 %v3019_v16, %v2952_v39  ;;  %v3445_v34 = vadd.f32 %v3413_v7, %v3346_v25  ;;  %v5643_v62 = vld [vmem:[%s10897_s3 + $0x1a8] sm:$0xff]  ;;  %v5705_v60 = vld [vmem:[%s10897_s3 + $0x398] sm:$0xff] }
 0x733   : > { %v3512_v31 = vadd.f32 %v8864_v18, %v3476_v52  ;;  %v6075_v21 = vpop.f32.mrb[60].mxu0  ;;  %v3347_v55 = vadd.f32 %v3315_v13, %v3248_v0  ;;  %v2567_v46 = vmul.f32 %v2535_v44, %v2503_v1  ;;  %v2696_v57 = vmul.f32 %v5642_v23, %v2631_v24  ;;  %v5675_v13 = vld [vmem:[%s10897_s3 + $0x2a8] sm:$0xff] }
 0x734   : > { %v6076_v5 = vpop.f32.mrb[61].mxu0  ;;  %v3150_v42 = vadd.f32 %v3118_v53, %v3051_v30  ;;  %v3217_v63 = vmul.f32 %v5798_v58, %v2503_v1  ;;  %v2855_v8 = vadd.f32 %v9521_v26, %v2726_v51  ;;  %v3020_v3 = vmul.f32 %v5735_v61, %v9516_v49  ;;  %v2504_v51 = vld [vmem:[#allocation2 + $0xaf] sm:$0xff] }
 0x735   : > { %v3537_v50 = vpack.c.bf16 %v3512_v31, %v3511_v45  ;;  %v6077_v38 = vadd.f32 %v6076_v5, %v6075_v21  ;;  %v6078_v15 = vpop.f32.mrb[62].mxu0  ;;  %v2953_v48 = vadd.f32 %v2921_v4, %v9503_v41  ;;  %v3446_v59 = vadd.f32 %v3414_v33, %v3347_v55  ;;  %v5799_v49 = vld [vmem:[%s10897_s3 + $0x688] sm:$0xff]  ;;  %v5768_v41 = vld [vmem:[%s10897_s3 + $0x590] sm:$0xff] }
 0x736   : > { %v6079_v47 = vpop.f32.mrb[63].mxu0  ;;  %v3249_v26 = vadd.f32 %v3217_v63, %v3150_v42  ;;  %v3119_v2 = vmul.f32 %v5767_v40, %v2759_v17  ;;  %v2922_v32 = vmul.f32 %v5704_v9, %v2503_v1  ;;  %v3316_v36 = vmul.f32 %v5830_v54, %v2631_v24  ;;  %v2632_v17 = vld [vmem:[#allocation2 + $0xb0] sm:$0xff]  ;;  %v5831_v53 = vld [vmem:[%s10897_s3 + $0x788] sm:$0xff]  ;;  %v2633_v9 = vld [vmem:[#allocation2 + $0xb8] sm:$0xff] }
 0x737   : > { %v3477_v22 = vadd.f32 %v6077_v38, %v3445_v34  ;;  %v6080_v6 = vadd.f32 %v6079_v47, %v6078_v15  ;;  %6373 = vmatprep.mubr.msk.bf16.mxu1 %vm966_vm0, %v3537_v50  ;;  %v3052_v56 = vadd.f32 %v3020_v3, %v2953_v48  ;;  %v2856_v28 = vadd.f32 %v2824_v10, %v2727_v19  ;;  %v2761_v19 = vld [vmem:[#allocation2 + $0xb1] sm:$0xff] }
 0x738   : > { %v2728_v16 = vadd.f32 %v2696_v57, %v2567_v46  ;;  %v2825_v43 = vmul.f32 %v5674_v27, %v2760_v37  ;;  %v3021_v25 = vmul.f32 %v5736_v29, %v2631_v24  ;;  %v3348_v11 = vadd.f32 %v3316_v36, %v3249_v26  ;;  %v5863_v24 = vld [vmem:[%s10897_s3 + $0x888] sm:$0xff]  ;;  %v5737_v34 = vld [vmem:[%s10897_s3 + $0x498] sm:$0xff]  ;;  %v5800_v46 = vld [vmem:[%s10897_s3 + $0x690] sm:$0xff] }
 0x739   : > { %v3478_v14 = vadd.f32 %v6080_v6, %v3446_v59  ;;  %v3151_v44 = vadd.f32 %v3119_v2, %v3052_v56  ;;  %v3218_v52 = vmul.f32 %v5799_v49, %v2504_v51  ;;  %v3513_v7 = vadd.f32 %v8864_v18, %v3477_v22  ;;  %v2505_v55 = vld [vmem:[#allocation2 + $0xb7] sm:$0xff]  ;;  %v5706_v59 = vld [vmem:[%s10897_s3 + $0x3a0] sm:$0xff] }
 0x73a   : > { %v3120_v23 = vmul.f32 %v5768_v41, %v2760_v37  ;;  %v3415_v39 = vmul.f32 %v5862_v20, %v2760_v37  ;;  %v2568_v0 = vmul.f32 %v2536_v12, %v2504_v51  ;;  %v3317_v45 = vmul.f32 %v5831_v53, %v2632_v17  ;;  %v2537_v40 = vld [vmem:[%s10897_s3 + $0xb0] sm:$0xff]  ;;  %v5769_v3 = vld [vmem:[%s10897_s3 + $0x598] sm:$0xff] }
 0x73b   : > { %v3514_v10 = vadd.f32 %v8864_v18, %v3478_v14  ;;  %v6129_v1 = vpop.f32.mrb[64].mxu0  ;;  %v3250_v58 = vadd.f32 %v3218_v52, %v3151_v44  ;;  %v2954_v31 = vadd.f32 %v2922_v32, %v2855_v8  ;;  %v2697_v30 = vmul.f32 %v5643_v62, %v2632_v17  ;;  %v5644_v42 = vld [vmem:[%s10897_s3 + $0x1b0] sm:$0xff]  ;;  %v2762_v22 = vld [vmem:[#allocation2 + $0xb9] sm:$0xff] }
 0x73c   : > { %v6130_v4 = vpop.f32.mrb[65].mxu0  ;;  %v2923_v5 = vmul.f32 %v5705_v60, %v2504_v51  ;;  %v3447_v57 = vadd.f32 %v3415_v39, %v3348_v11  ;;  %v3416_v15 = vmul.f32 %v5863_v24, %v2761_v19  ;;  %v2857_v54 = vadd.f32 %v2825_v43, %v2728_v16  ;;  %v5832_v37 = vld [vmem:[%s10897_s3 + $0x790] sm:$0xff]  ;;  %v5738_v32 = vld [vmem:[%s10897_s3 + $0x4a0] sm:$0xff]  ;;  %v5801_v12 = vld [vmem:[%s10897_s3 + $0x698] sm:$0xff] }
 0x73d   : > { %v3538_v21 = vpack.c.bf16 %v3514_v10, %v3513_v7  ;;  %v6131_v61 = vadd.f32 %v6130_v4, %v6129_v1  ;;  %v6132_v33 = vpop.f32.mrb[66].mxu0  ;;  %v3349_v38 = vadd.f32 %v3317_v45, %v3250_v58  ;;  %v3053_v63 = vadd.f32 %v3021_v25, %v2954_v31  ;;  %v5676_v6 = vld [vmem:[%s10897_s3 + $0x2b0] sm:$0xff]  ;;  %v2506_v43 = vld [vmem:[#allocation2 + $0xbf] sm:$0xff]  ;;  %v5707_v58 = vld [vmem:[%s10897_s3 + $0x3a8] sm:$0xff] }
 0x73e   : > { %v6133_v50 = vpop.f32.mrb[67].mxu0  ;;  %v2826_v47 = vmul.f32 %v5675_v13, %v2761_v19  ;;  %v3219_v26 = vmul.f32 %v5800_v46, %v2505_v55  ;;  %v3022_v51 = vmul.f32 %v5737_v34, %v2632_v17  ;;  %v2569_v49 = vmul.f32 %v2537_v40, %v2505_v55  ;;  %v5864_v16 = vld [vmem:[%s10897_s3 + $0x890] sm:$0xff]  ;;  %v2634_v62 = vld [vmem:[#allocation2 + $0xc0] sm:$0xff]  ;;  %v5645_v60 = vld [vmem:[%s10897_s3 + $0x1b8] sm:$0xff] }
 0x73f   : > { %v6134_v8 = vadd.f32 %v6133_v50, %v6132_v33  ;;  %6374 = vmatmul.mubr.msk.bf16.gmra.mrb[108].mxu1 %vm966_vm0, %v3538_v21  ;;  %v3479_v27 = vadd.f32 %v6131_v61, %v3447_v57  ;;  %v3448_v48 = vadd.f32 %v3416_v15, %v3349_v38  ;;  %v3152_v29 = vadd.f32 %v3120_v23, %v3053_v63  ;;  %v5833_v39 = vld [vmem:[%s10897_s3 + $0x798] sm:$0xff]  ;;  %v5770_v4 = vld [vmem:[%s10897_s3 + $0x5a0] sm:$0xff]  ;;  %v9674_v40 = vld [vmem:[#allocation2 + $0xc8] sm:$0xff] }
 0x740   : > { %v2698_v2 = vmul.f32 %v5644_v42, %v2633_v9  ;;  %v2955_v41 = vadd.f32 %v2923_v5, %v2856_v28  ;;  %v2729_v36 = vadd.f32 %v2697_v30, %v2568_v0  ;;  %v3318_v14 = vmul.f32 %v5832_v37, %v2633_v9  ;;  %v2538_v28 = vld [vmem:[%s10897_s3 + $0xb8] sm:$0xff]  ;;  %v2763_v34 = vld [vmem:[#allocation2 + $0xc1] sm:$0xff] }
 0x741   : > { %v3480_v20 = vadd.f32 %v6134_v8, %v3448_v48  ;;  %v3251_v56 = vadd.f32 %v3219_v26, %v3152_v29  ;;  %v3121_v17 = vmul.f32 %v5769_v3, %v2761_v19  ;;  %v2827_v25 = vmul.f32 %v5676_v6, %v2762_v22  ;;  %v5677_v13 = vld [vmem:[%s10897_s3 + $0x2b8] sm:$0xff]  ;;  %v2539_v46 = vld [vmem:[%s10897_s3 + $0xc0] sm:$0xff] }
 0x742   : > { %v2924_v11 = vmul.f32 %v5706_v59, %v2505_v55  ;;  %v3054_v44 = vadd.f32 %v3022_v51, %v2955_v41  ;;  %v3515_v52 = vadd.f32 %v8864_v18, %v3479_v27  ;;  %v3023_v1 = vmul.f32 %v5738_v32, %v2633_v9  ;;  %v5865_v55 = vld [vmem:[%s10897_s3 + $0x898] sm:$0xff]  ;;  %v2507_v15 = vld [vmem:[#allocation2 + $0xc7] sm:$0xff]  ;;  %v5708_v41 = vld [vmem:[%s10897_s3 + $0x3b0] sm:$0xff] }
 0x743   : > { %v6135_v53 = vpop.f32.mrb[68].mxu0  ;;  %v3516_v7 = vadd.f32 %v8864_v18, %v3480_v20  ;;  %v3350_v23 = vadd.f32 %v3318_v14, %v3251_v56  ;;  %v2730_v24 = vadd.f32 %v2698_v2, %v2569_v49  ;;  %v3220_v31 = vmul.f32 %v5801_v12, %v2506_v43  ;;  %v5646_v9 = vld [vmem:[%s10897_s3 + $0x1c0] sm:$0xff]  ;;  %v5739_v27 = vld [vmem:[%s10897_s3 + $0x4a8] sm:$0xff] }
 0x744   : > { %v6136_v10 = vpop.f32.mrb[69].mxu0  ;;  %v3153_v45 = vadd.f32 %v3121_v17, %v3054_v44  ;;  %v3417_v61 = vmul.f32 %v5864_v16, %v2762_v22  ;;  %v2570_v30 = vmul.f32 %v2538_v28, %v2506_v43  ;;  %v2699_v5 = vmul.f32 %v5645_v60, %v2634_v62  ;;  %v5802_v48 = vld [vmem:[%s10897_s3 + $0x6a0] sm:$0xff]  ;;  %v5771_v59 = vld [vmem:[%s10897_s3 + $0x5a8] sm:$0xff]  ;;  %v2636_v60 = vld [vmem:[#allocation2 + $0xd0] sm:$0xff] }
 0x745   : > { %v6137_v19 = vadd.f32 %v6136_v10, %v6135_v53  ;;  %v6138_v0 = vpop.f32.mrb[70].mxu0  ;;  %v3539_v21 = vpack.c.bf16 %v3516_v7, %v3515_v52  ;;  %v3319_v38 = vmul.f32 %v5833_v39, %v2634_v62  ;;  %v2956_v42 = vadd.f32 %v2924_v11, %v2857_v54  ;;  %v5678_v29 = vld [vmem:[%s10897_s3 + $0x2c0] sm:$0xff]  ;;  %v2540_v12 = vld [vmem:[%s10897_s3 + $0xc8] sm:$0xff] }
 0x746   : > { %v6139_v33 = vpop.f32.mrb[71].mxu0  ;;  %v3252_v50 = vadd.f32 %v3220_v31, %v3153_v45  ;;  %v2858_v63 = vadd.f32 %v2826_v47, %v2729_v36  ;;  %v3122_v8 = vmul.f32 %v5770_v4, %v2762_v22  ;;  %v3449_v3 = vadd.f32 %v3417_v61, %v3350_v23  ;;  %v2764_v22 = vld [vmem:[#allocation2 + $0xc9] sm:$0xff] }
 0x747   : > { %v6140_v57 = vadd.f32 %v6139_v33, %v6138_v0  ;;  %v2925_v37 = vmul.f32 %v5707_v58, %v2506_v43  ;;  %6377 = vmatprep.mubr.msk.bf16.mxu1 %vm966_vm0, %v3539_v21  ;;  %v2859_v6 = vadd.f32 %v2827_v25, %v2730_v24  ;;  %v3418_v47 = vmul.f32 %v5865_v55, %v2763_v34  ;;  %v5834_v43 = vld [vmem:[%s10897_s3 + $0x7a0] sm:$0xff]  ;;  %v2508_v28 = vld [vmem:[#allocation2 + $0xcf] sm:$0xff] }
 0x748   : > { %v3351_v54 = vadd.f32 %v3319_v38, %v3252_v50  ;;  %v3055_v26 = vadd.f32 %v3023_v1, %v2956_v42  ;;  %v3481_v51 = vadd.f32 %v6137_v19, %v3449_v3  ;;  %v2828_v49 = vmul.f32 %v5677_v13, %v2763_v34  ;;  %v5647_v44 = vld [vmem:[%s10897_s3 + $0x1c8] sm:$0xff]  ;;  %v5740_v4 = vld [vmem:[%s10897_s3 + $0x4b0] sm:$0xff]  ;;  %v5866_v21 = vld [vmem:[%s10897_s3 + $0x8a0] sm:$0xff] }
 0x749   : > { %v2571_v2 = vmul.f32 %v2539_v46, %v2507_v15  ;;  %v2700_v32 = vmul.f32 %v5646_v9, %v9674_v40  ;;  %v2731_v36 = vadd.f32 %v2699_v5, %v2570_v30  ;;  %v3221_v16 = vmul.f32 %v5802_v48, %v2507_v15  ;;  %v5803_v19 = vld [vmem:[%s10897_s3 + $0x6a8] sm:$0xff]  ;;  %v5772_v0 = vld [vmem:[%s10897_s3 + $0x5b0] sm:$0xff]  ;;  %v5709_v5 = vld [vmem:[%s10897_s3 + $0x3b8] sm:$0xff] }
 0x74a   : > { %v3450_v20 = vadd.f32 %v3418_v47, %v3351_v54  ;;  %v3154_v14 = vadd.f32 %v3122_v8, %v3055_v26  ;;  %v3024_v17 = vmul.f32 %v5739_v27, %v2634_v62  ;;  %v3123_v53 = vmul.f32 %v5771_v59, %v2763_v34  ;;  %v5835_v34 = vld [vmem:[%s10897_s3 + $0x7a8] sm:$0xff]  ;;  %v5741_v8 = vld [vmem:[%s10897_s3 + $0x4b8] sm:$0xff] }
 0x74b   : > { %v6141_v56 = vpop.f32.mrb[72].mxu0  ;;  %v2829_v11 = vmul.f32 %v5678_v29, %v2764_v22  ;;  %v2957_v52 = vadd.f32 %v2925_v37, %v2858_v63  ;;  %v2926_v1 = vmul.f32 %v5708_v41, %v2507_v15  ;;  %v3517_v62 = vadd.f32 %v8864_v18, %v3481_v51  ;;  %v5679_v50 = vld [vmem:[%s10897_s3 + $0x2c8] sm:$0xff]  ;;  %v2509_v47 = vld [vmem:[#allocation2 + $0xd7] sm:$0xff] }
 0x74c   : > { %v6142_v25 = vpop.f32.mrb[73].mxu0  ;;  %v3482_v7 = vadd.f32 %v6140_v57, %v3450_v20  ;;  %v3253_v23 = vadd.f32 %v3221_v16, %v3154_v14  ;;  %v2732_v24 = vadd.f32 %v2700_v32, %v2571_v2  ;;  %v3320_v13 = vmul.f32 %v5834_v43, %v9674_v40  ;;  %v2765_v57 = vld [vmem:[#allocation2 + $0xd1] sm:$0xff]  ;;  %v5867_v3 = vld [vmem:[%s10897_s3 + $0x8a8] sm:$0xff]  ;;  %v5710_v43 = vld [vmem:[%s10897_s3 + $0x3c0] sm:$0xff] }
 0x74d   : > { %v6143_v10 = vadd.f32 %v6142_v25, %v6141_v56  ;;  %v6144_v39 = vpop.f32.mrb[74].mxu0  ;;  %v3056_v45 = vadd.f32 %v3024_v17, %v2957_v52  ;;  %v2572_v33 = vmul.f32 %v2540_v12, %v2508_v28  ;;  %v2701_v30 = vmul.f32 %v5647_v44, %v2636_v60  ;;  %v2541_v29 = vld [vmem:[%s10897_s3 + $0xd0] sm:$0xff]  ;;  %v5773_v20 = vld [vmem:[%s10897_s3 + $0x5b8] sm:$0xff] }
 0x74e   : > { %v6145_v58 = vpop.f32.mrb[75].mxu0  ;;  %v3518_v31 = vadd.f32 %v8864_v18, %v3482_v7  ;;  %v2860_v55 = vadd.f32 %v2828_v49, %v2731_v36  ;;  %v3352_v46 = vadd.f32 %v3320_v13, %v3253_v23  ;;  %v3222_v15 = vmul.f32 %v5803_v19, %v2508_v28  ;;  %v5836_v12 = vld [vmem:[%s10897_s3 + $0x7b0] sm:$0xff]  ;;  %v2542_v44 = vld [vmem:[%s10897_s3 + $0xd8] sm:$0xff] }
 0x74f   : > { %v9720_v61 = vadd.f32 %v6145_v58, %v6144_v39  ;;  %v3155_v38 = vadd.f32 %v3123_v53, %v3056_v45  ;;  %v3025_v42 = vmul.f32 %v5740_v4, %v9674_v40  ;;  %v3124_v63 = vmul.f32 %v5772_v0, %v2764_v22  ;;  %v5804_v40 = vld [vmem:[%s10897_s3 + $0x6b0] sm:$0xff]  ;;  %v5649_v52 = vld [vmem:[%s10897_s3 + $0x1d8] sm:$0xff] }
 0x750   : > { %v3540_v9 = vpack.c.bf16 %v3518_v31, %v3517_v62  ;;  %v2958_v37 = vadd.f32 %v2926_v1, %v2859_v6  ;;  %v3419_v27 = vmul.f32 %v5866_v21, %v2764_v22  ;;  %v2927_v48 = vmul.f32 %v5709_v5, %v2508_v28  ;;  %v2637_v6 = vld [vmem:[#allocation2 + $0xd8] sm:$0xff]  ;;  %v5648_v22 = vld [vmem:[%s10897_s3 + $0x1d0] sm:$0xff] }
 0x751   : > { %v3254_v59 = vadd.f32 %v3222_v15, %v3155_v38  ;;  %v3321_v54 = vmul.f32 %v5835_v34, %v2636_v60  ;;  %v2861_v26 = vadd.f32 %v2829_v11, %v2732_v24  ;;  %v2733_v51 = vadd.f32 %v2701_v30, %v2572_v33  ;;  %v5680_v25 = vld [vmem:[%s10897_s3 + $0x2d0] sm:$0xff]  ;;  %v2766_v39 = vld [vmem:[#allocation2 + $0xd9] sm:$0xff] }
 0x752   : > { %v2830_v49 = vmul.f32 %v5679_v50, %v2765_v57  ;;  %6378 = vmatmul.mubr.msk.bf16.gmra.mrb[112].mxu1 %vm966_vm0, %v3540_v9  ;;  %v3057_v32 = vadd.f32 %v3025_v42, %v2958_v37  ;;  %v3451_v41 = vadd.f32 %v3419_v27, %v3352_v46  ;;  %v3026_v36 = vmul.f32 %v5741_v8, %v2636_v60  ;;  %v2510_v62 = vld [vmem:[#allocation2 + $0xdf] sm:$0xff]  ;;  %v5868_v5 = vld [vmem:[%s10897_s3 + $0x8b0] sm:$0xff]  ;;  %v5711_v42 = vld [vmem:[%s10897_s3 + $0x3c8] sm:$0xff] }
 0x753   : > { %v6147_v2 = vpop.f32.mrb[76].mxu0  ;;  %v3353_v56 = vadd.f32 %v3321_v54, %v3254_v59  ;;  %v3420_v14 = vmul.f32 %v5867_v3, %v2765_v57  ;;  %v2573_v53 = vmul.f32 %v2541_v29, %v2509_v47  ;;  %v3223_v28 = vmul.f32 %v5804_v40, %v2509_v47  ;;  %v2638_v24 = vld [vmem:[#allocation2 + $0xe0] sm:$0xff]  ;;  %v5805_v31 = vld [vmem:[%s10897_s3 + $0x6b8] sm:$0xff] }
 0x754   : > { %v6148_v16 = vpop.f32.mrb[77].mxu0  ;;  %v3156_v11 = vadd.f32 %v3124_v63, %v3057_v32  ;;  %v3483_v7 = vadd.f32 %v6143_v10, %v3451_v41  ;;  %v2702_v23 = vmul.f32 %v5648_v22, %v2637_v6  ;;  %v2959_v4 = vadd.f32 %v2927_v48, %v2860_v55  ;;  %v5742_v30 = vld [vmem:[%s10897_s3 + $0x4c0] sm:$0xff]  ;;  %v5681_v59 = vld [vmem:[%s10897_s3 + $0x2d8] sm:$0xff] }
 0x755   : > { %v9757_v17 = vadd.f32 %v6148_v16, %v6147_v2  ;;  %v6150_v60 = vpop.f32.mrb[78].mxu0  ;;  %v3452_v1 = vadd.f32 %v3420_v14, %v3353_v56  ;;  %v2928_v0 = vmul.f32 %v5710_v43, %v2509_v47  ;;  %v3322_v58 = vmul.f32 %v5836_v12, %v2637_v6  ;;  %v5774_v46 = vld [vmem:[%s10897_s3 + $0x5c0] sm:$0xff]  ;;  %v5869_v54 = vld [vmem:[%s10897_s3 + $0x8b8] sm:$0xff] }
 0x756   : > { %v6151_v19 = vpop.f32.mrb[79].mxu0  ;;  %v3255_v13 = vadd.f32 %v3223_v28, %v3156_v11  ;;  %v9773_v21 = vadd.f32 %v2830_v49, %v2733_v51  ;;  %v3125_v33 = vmul.f32 %v5773_v20, %v2765_v57  ;;  %v3058_v34 = vadd.f32 %v3026_v36, %v2959_v4  ;;  %v2767_v48 = vld [vmem:[#allocation2 + $0xe1] sm:$0xff] }
 0x757   : > { %v9768_v45 = vadd.f32 %v6151_v19, %v6150_v60  ;;  %v3484_v10 = vadd.f32 %v9720_v61, %v3452_v1  ;;  %v2831_v55 = vmul.f32 %v5680_v25, %v2766_v39  ;;  %v2574_v38 = vmul.f32 %v2542_v44, %v2510_v62  ;;  %v5837_v61 = vld [vmem:[%s10897_s3 + $0x7b8] sm:$0xff]  ;;  %v2511_v32 = vld [vmem:[#allocation2 + $0xe7] sm:$0xff] }
 0x758   : > { %v3354_v50 = vadd.f32 %v3322_v58, %v3255_v13  ;;  %v2703_v15 = vmul.f32 %v5649_v52, %v2638_v24  ;;  %v3519_v57 = vadd.f32 %v8864_v18, %v3483_v7  ;;  %v3157_v63 = vadd.f32 %v3125_v33, %v3058_v34  ;;  %v5743_v20 = vld [vmem:[%s10897_s3 + $0x4c8] sm:$0xff]  ;;  %v2543_v25 = vld [vmem:[%s10897_s3 + $0xe0] sm:$0xff]  ;;  %v5712_v7 = vld [vmem:[%s10897_s3 + $0x3d0] sm:$0xff] }
 0x759   : > { %v3520_v9 = vadd.f32 %v8864_v18, %v3484_v10  ;;  %v3224_v8 = vmul.f32 %v5805_v31, %v2510_v62  ;;  %v2734_v3 = vadd.f32 %v2702_v23, %v2573_v53  ;;  %v3027_v37 = vmul.f32 %v5742_v30, %v2637_v6  ;;  %v5806_v6 = vld [vmem:[%s10897_s3 + $0x6c0] sm:$0xff]  ;;  %v2639_v11 = vld [vmem:[#allocation2 + $0xe8] sm:$0xff] }
 0x75a   : > { %v3421_v27 = vmul.f32 %v5868_v5, %v2766_v39  ;;  %v2960_v29 = vadd.f32 %v2928_v0, %v2861_v26  ;;  %v3126_v51 = vmul.f32 %v5774_v46, %v2766_v39  ;;  %v3323_v2 = vmul.f32 %v5837_v61, %v2638_v24  ;;  %v5650_v28 = vld [vmem:[%s10897_s3 + $0x1e0] sm:$0xff]  ;;  %v5775_v52 = vld [vmem:[%s10897_s3 + $0x5c8] sm:$0xff]  ;;  %v2640_v5 = vld [vmem:[#allocation2 + $0xf0] sm:$0xff] }
 0x75b   : > { %v6153_v47 = vpop.f32.mrb[80].mxu0  ;;  %v3541_v40 = vpack.c.bf16 %v3520_v9, %v3519_v57  ;;  %v3256_v49 = vadd.f32 %v3224_v8, %v3157_v63  ;;  %v2929_v36 = vmul.f32 %v5711_v42, %v2510_v62  ;;  %v2735_v16 = vadd.f32 %v2703_v15, %v2574_v38  ;;  %v5838_v39 = vld [vmem:[%s10897_s3 + $0x7c0] sm:$0xff]  ;;  %v2544_v58 = vld [vmem:[%s10897_s3 + $0xe8] sm:$0xff]  ;;  %v5744_v42 = vld [vmem:[%s10897_s3 + $0x4d0] sm:$0xff] }
 0x75c   : > { %v6154_v22 = vpop.f32.mrb[81].mxu0  ;;  %v3453_v41 = vadd.f32 %v3421_v27, %v3354_v50  ;;  %v3059_v14 = vadd.f32 %v3027_v37, %v2960_v29  ;;  %v2832_v43 = vmul.f32 %v5681_v59, %v2767_v48  ;;  %v3422_v53 = vmul.f32 %v5869_v54, %v2767_v48  ;;  %v5682_v13 = vld [vmem:[%s10897_s3 + $0x2e0] sm:$0xff]  ;;  %v2512_v30 = vld [vmem:[#allocation2 + $0xef] sm:$0xff]  ;;  %v5713_v59 = vld [vmem:[%s10897_s3 + $0x3d8] sm:$0xff] }
 0x75d   : > { %v9805_v56 = vadd.f32 %v6154_v22, %v6153_v47  ;;  %v6156_v26 = vpop.f32.mrb[82].mxu0  ;;  %v3355_v12 = vadd.f32 %v3323_v2, %v3256_v49  ;;  %6381 = vmatprep.mubr.msk.bf16.mxu1 %vm966_vm0, %v3541_v40  ;;  %v3225_v23 = vmul.f32 %v5806_v6, %v2511_v32  ;;  %v2863_v62 = vadd.f32 %v2831_v55, %v2734_v3  ;;  %v5651_v34 = vld [vmem:[%s10897_s3 + $0x1e8] sm:$0xff]  ;;  %v5776_v3 = vld [vmem:[%s10897_s3 + $0x5d0] sm:$0xff] }
 0x75e   : > { %v6157_v60 = vpop.f32.mrb[83].mxu0  ;;  %v3485_v44 = vadd.f32 %v9757_v17, %v3453_v41  ;;  %v3158_v1 = vadd.f32 %v3126_v51, %v3059_v14  ;;  %v3028_v4 = vmul.f32 %v5743_v20, %v2638_v24  ;;  %v2768_v17 = vld [vmem:[#allocation2 + $0xe9] sm:$0xff]  ;;  %v2575_v31 = vmul.f32 %v2543_v25, %v2511_v32  ;;  %v2769_v40 = vld [vmem:[#allocation2 + $0xf1] sm:$0xff] }
 0x75f   : > { %v9824_v19 = vadd.f32 %v6157_v60, %v6156_v26  ;;  %v3454_v0 = vadd.f32 %v3422_v53, %v3355_v12  ;;  %v2704_v33 = vmul.f32 %v5650_v28, %v2639_v11  ;;  %v2961_v24 = vadd.f32 %v2929_v36, %v9773_v21  ;;  %v5807_v15 = vld [vmem:[%s10897_s3 + $0x6c8] sm:$0xff]  ;;  %v5870_v21 = vld [vmem:[%s10897_s3 + $0x8c0] sm:$0xff]  ;;  %v9865_v25 = vld [vmem:[#allocation2 + $0xf7] sm:$0xff] }
 0x760   : > { %v3257_v10 = vadd.f32 %v3225_v23, %v3158_v1  ;;  %v3127_v55 = vmul.f32 %v5775_v52, %v2767_v48  ;;  %v2930_v50 = vmul.f32 %v5712_v7, %v2511_v32  ;;  %v3324_v38 = vmul.f32 %v5838_v39, %v2639_v11  ;;  %v5839_v54 = vld [vmem:[%s10897_s3 + $0x7c8] sm:$0xff]  ;;  %v5714_v28 = vld [vmem:[%s10897_s3 + $0x3e0] sm:$0xff]  ;;  %v5745_v7 = vld [vmem:[%s10897_s3 + $0x4d8] sm:$0xff] }
 0x761   : > { %v3486_v46 = vadd.f32 %v9768_v45, %v3454_v0  ;;  %v3521_v61 = vadd.f32 %v8864_v18, %v3485_v44  ;;  %v2864_v57 = vadd.f32 %v2832_v43, %v2735_v16  ;;  %v2833_v9 = vmul.f32 %v5682_v13, %v2768_v17  ;;  %v5683_v51 = vld [vmem:[%s10897_s3 + $0x2e8] sm:$0xff]  ;;  %v5777_v39 = vld [vmem:[%s10897_s3 + $0x5d8] sm:$0xff] }
 0x762   : > { %v3060_v63 = vadd.f32 %v3028_v4, %v2961_v24  ;;  %v3356_v37 = vadd.f32 %v3324_v38, %v3257_v10  ;;  %v2576_v27 = vmul.f32 %v2544_v58, %v2512_v30  ;;  %v2705_v48 = vmul.f32 %v5651_v34, %v2640_v5  ;;  %v5871_v20 = vld [vmem:[%s10897_s3 + $0x8c8] sm:$0xff]  ;;  %v9883_v13 = vld [vmem:[#allocation2 + $0xf8] sm:$0xff]  ;;  %v5840_v10 = vld [vmem:[%s10897_s3 + $0x7d0] sm:$0xff] }
 0x763   : > { %v6159_v45 = vpop.f32.mrb[84].mxu0  ;;  %v3522_v8 = vadd.f32 %v8864_v18, %v3486_v46  ;;  %v2736_v29 = vadd.f32 %v2704_v33, %v2575_v31  ;;  %v3226_v2 = vmul.f32 %v5807_v15, %v2512_v30  ;;  %v3029_v41 = vmul.f32 %v5744_v42, %v2639_v11  ;;  %v5808_v11 = vld [vmem:[%s10897_s3 + $0x6d0] sm:$0xff]  ;;  %v5746_v24 = vld [vmem:[%s10897_s3 + $0x4e0] sm:$0xff] }
 0x764   : > { %v6160_v47 = vpop.f32.mrb[85].mxu0  ;;  %v3159_v49 = vadd.f32 %v3127_v55, %v3060_v63  ;;  %v3423_v36 = vmul.f32 %v5870_v21, %v2768_v17  ;;  %v2962_v14 = vadd.f32 %v2930_v50, %v2863_v62  ;;  %v3128_v16 = vmul.f32 %v5776_v3, %v2768_v17  ;;  %v9893_v55 = vld [vmem:[#allocation2 + $0xff] sm:$0xff] }
 0x765   : > { %v9860_v22 = vadd.f32 %v6160_v47, %v6159_v45  ;;  %v6162_v32 = vpop.f32.mrb[86].mxu0  ;;  %v3542_v6 = vpack.c.bf16 %v3522_v8, %v3521_v61  ;;  %v2931_v43 = vmul.f32 %v5713_v59, %v2512_v30  ;;  %v3325_v53 = vmul.f32 %v5839_v54, %v2640_v5  ;;  %v9902_v21 = vld [vmem:[#allocation2 + $0xf9] sm:$0xff] }
 0x766   : > { %v6163_v26 = vpop.f32.mrb[87].mxu0  ;;  %v3258_v12 = vadd.f32 %v3226_v2, %v3159_v49  ;;  %v3455_v60 = vadd.f32 %v3423_v36, %v3356_v37  ;;  %v2737_v44 = vadd.f32 %v2705_v48, %v2576_v27  ;;  %v2834_v52 = vmul.f32 %v5683_v51, %v2769_v40  ;;  %v5778_v63 = vld [vmem:[%s10897_s3 + $0x5e0] sm:$0xff]  ;;  %v5841_v54 = vld [vmem:[%s10897_s3 + $0x7d8] sm:$0xff]  ;;  %v5747_v49 = vld [vmem:[%s10897_s3 + $0x4e8] sm:$0xff] }
 0x767   : > { %6382 = vmatmul.mubr.msk.bf16.gmra.mrb[116].mxu1 %vm966_vm0, %v3542_v6  ;;  %v3061_v1 = vadd.f32 %v3029_v41, %v2962_v14  ;;  %v2865_v23 = vadd.f32 %v2833_v9, %v2736_v29  ;;  %v3424_v4 = vmul.f32 %v5871_v20, %v2769_v40  ;;  %v9880_v0 = vadd.f32 %v6163_v26, %v6162_v32  ;;  %v9915_v48 = vld [vmem:[#allocation2 + $0x100] sm:$0xff]  ;;  %v5873_v26 = vld [vmem:[%s10897_s3 + $0x8d8] sm:$0xff] }
 0x768   : > { %v3357_v62 = vadd.f32 %v3325_v53, %v3258_v12  ;;  %v3487_v17 = vadd.f32 %v9805_v56, %v3455_v60  ;;  %v2932_v58 = vmul.f32 %v5714_v28, %v9865_v25  ;;  %v3227_v33 = vmul.f32 %v5808_v11, %v9865_v25  ;;  %v5715_v56 = vld [vmem:[%s10897_s3 + $0x3e8] sm:$0xff]  ;;  %v5810_v41 = vld [vmem:[%s10897_s3 + $0x6e0] sm:$0xff] }
 0x769   : > { %v3160_v31 = vadd.f32 %v3128_v16, %v3061_v1  ;;  %v3030_v30 = vmul.f32 %v5745_v7, %v2640_v5  ;;  %v2963_v46 = vadd.f32 %v2931_v43, %v2864_v57  ;;  %v2866_v38 = vadd.f32 %v2834_v52, %v2737_v44  ;;  %v5809_v5 = vld [vmem:[%s10897_s3 + $0x6d8] sm:$0xff]  ;;  %v5872_v57 = vld [vmem:[%s10897_s3 + $0x8d0] sm:$0xff]  ;;  %v9926_v6 = vld [vmem:[#allocation2 + $0x107] sm:$0xff] }
 0x76a   : > { %v3456_v34 = vadd.f32 %v3424_v4, %v3357_v62  ;;  %v3129_v15 = vmul.f32 %v5777_v39, %v2769_v40  ;;  %v3326_v45 = vmul.f32 %v5840_v10, %v9883_v13  ;;  %v3523_v27 = vadd.f32 %v8864_v18, %v3487_v17  ;;  %v9933_v14 = vld [vmem:[#allocation2 + $0x101] sm:$0xff]  ;;  %v2870_v17 = vld [vmem:[#allocation2 + $0x10f] sm:$0xff] }
 0x76b   : > { %v6165_v50 = vpop.f32.mrb[88].mxu0  ;;  %v3259_v61 = vadd.f32 %v3227_v33, %v3160_v31  ;;  %v3062_v8 = vadd.f32 %v3030_v30, %v2963_v46  ;;  %v2933_v59 = vmul.f32 %v5715_v56, %v9893_v55  ;;  %v2964_v47 = vadd.f32 %v2932_v58, %v2865_v23  ;;  %v5779_v12 = vld [vmem:[%s10897_s3 + $0x5e8] sm:$0xff]  ;;  %v5842_v60 = vld [vmem:[%s10897_s3 + $0x7e0] sm:$0xff] }
 0x76c   : > { %v6166_v9 = vpop.f32.mrb[89].mxu0  ;;  %v3488_v42 = vadd.f32 %v9824_v19, %v3456_v34  ;;  %v3031_v19 = vmul.f32 %v5746_v24, %v9883_v13  ;;  %v3228_v32 = vmul.f32 %v5809_v5, %v9893_v55  ;;  %v3130_v36 = vmul.f32 %v5778_v63, %v9902_v21  ;;  %v9942_v11 = vld [vmem:[#allocation2 + $0x108] sm:$0xff]  ;;  %v5874_v30 = vld [vmem:[%s10897_s3 + $0x8e0] sm:$0xff] }
 0x76d   : > { %v9911_v3 = vadd.f32 %v6166_v9, %v6165_v50  ;;  %v6168_v37 = vpop.f32.mrb[90].mxu0  ;;  %v3358_v51 = vadd.f32 %v3326_v45, %v3259_v61  ;;  %v3161_v2 = vadd.f32 %v3129_v15, %v3062_v8  ;;  %v3425_v20 = vmul.f32 %v5872_v57, %v9902_v21  ;;  %v5811_v58 = vld [vmem:[%s10897_s3 + $0x6e8] sm:$0xff]  ;;  %v2969_v50 = vld [vmem:[#allocation2 + $0x110] sm:$0xff] }
 0x76e   : > { %v6169_v29 = vpop.f32.mrb[91].mxu0  ;;  %v3524_v40 = vadd.f32 %v8864_v18, %v3488_v42  ;;  %v3063_v16 = vadd.f32 %v3031_v19, %v2964_v47  ;;  %v3327_v28 = vmul.f32 %v5841_v54, %v9915_v48  ;;  %v3032_v52 = vmul.f32 %v5747_v49, %v9915_v48  ;;  %v3067_v46 = vld [vmem:[#allocation2 + $0x109] sm:$0xff]  ;;  %v3068_v42 = vld [vmem:[#allocation2 + $0x111] sm:$0xff] }
 0x76f   : > { %v3260_v53 = vadd.f32 %v3228_v32, %v3161_v2  ;;  %v6170_v44 = vadd.f32 %v6169_v29, %v6168_v37  ;;  %v3229_v1 = vmul.f32 %v5810_v41, %v9926_v6  ;;  %v2965_v23 = vadd.f32 %v2933_v59, %v2866_v38  ;;  %v5843_v38 = vld [vmem:[%s10897_s3 + $0x7e8] sm:$0xff]  ;;  %v2545_v2 = vld [vmem:[%s10897_s3 + $0xf0] sm:$0xff]  ;;  %v5653_v41 = vld [vmem:[%s10897_s3 + $0x1f8] sm:$0xff] }
 0x770   : > { %v3543_v43 = vpack.c.bf16 %v3524_v40, %v3523_v27  ;;  %v3162_v7 = vadd.f32 %v3130_v36, %v3063_v16  ;;  %v3457_v39 = vadd.f32 %v3425_v20, %v3358_v51  ;;  %v3426_v4 = vmul.f32 %v5873_v26, %v9933_v14  ;;  %v5875_v63 = vld [vmem:[%s10897_s3 + $0x8e8] sm:$0xff]  ;;  %v5652_v32 = vld [vmem:[%s10897_s3 + $0x1f0] sm:$0xff] }
 0x771   : > { %v3359_v62 = vadd.f32 %v3327_v28, %v3260_v53  ;;  %v3131_v31 = vmul.f32 %v5779_v12, %v9933_v14  ;;  %v3328_v10 = vmul.f32 %v5842_v60, %v9942_v11  ;;  %v3064_v34 = vadd.f32 %v3032_v52, %v2965_v23  ;;  %v5684_v26 = vld [vmem:[%s10897_s3 + $0x2f0] sm:$0xff]  ;;  %v5685_v12 = vld [vmem:[%s10897_s3 + $0x2f8] sm:$0xff] }
 0x772   : > { %6385 = vmatprep.mubr.msk.bf16.mxu1 %vm966_vm0, %v3543_v43  ;;  %v3261_v33 = vadd.f32 %v3229_v1, %v3162_v7  ;;  %v3489_v24 = vadd.f32 %v9860_v22, %v3457_v39  ;;  %v3230_v5 = vmul.f32 %v5811_v58, %v2870_v17  ;;  %v3427_v45 = vmul.f32 %v5874_v30, %v3067_v46  ;;  %v5749_v23 = vld [vmem:[%s10897_s3 + $0x4f8] sm:$0xff] }
 0x773   : > { %v3458_v56 = vadd.f32 %v3426_v4, %v3359_v62  ;;  %v3163_v61 = vadd.f32 %v3131_v31, %v3064_v34  ;;  %v3329_v22 = vmul.f32 %v5843_v38, %v2969_v50  ;;  %v3428_v59 = vmul.f32 %v5875_v63, %v3068_v42  ;;  %v5780_v62 = vld [vmem:[%s10897_s3 + $0x5f0] sm:$0xff]  ;;  %v3167_v30 = vld [vmem:[#allocation2 + $0x11f] sm:$0xff] }
 0x774   : > { %v3360_v15 = vadd.f32 %v3328_v10, %v3261_v33  ;;  %v3525_v8 = vadd.f32 %v8864_v18, %v3489_v24  ;;  %v2577_v36 = vmul.f32 %v2545_v2, %v9865_v25  ;;  %v2706_v20 = vmul.f32 %v5652_v32, %v9883_v13  ;;  %v5716_v25 = vld [vmem:[%s10897_s3 + $0x3f0] sm:$0xff] }
 0x775   : > { %v3490_v9 = vadd.f32 %v9880_v0, %v3458_v56  ;;  %v3262_v57 = vadd.f32 %v3230_v5, %v3163_v61  ;;  %v2707_v43 = vmul.f32 %v5653_v41, %v9915_v48  ;;  %v2835_v28 = vmul.f32 %v5684_v26, %v9902_v21  ;;  %v5748_v21 = vld [vmem:[%s10897_s3 + $0x4f0] sm:$0xff]  ;;  %v3265_v56 = vld [vmem:[#allocation2 + $0x118] sm:$0xff]  ;;  %v3266_v61 = vld [vmem:[#allocation2 + $0x120] sm:$0xff] }
 0x776   : > { %v3459_v27 = vadd.f32 %v3427_v45, %v3360_v15  ;;  %v2738_v53 = vadd.f32 %v2706_v20, %v2577_v36  ;;  %v2836_v60 = vmul.f32 %v5685_v12, %v9933_v14  ;;  %v2934_v48 = vmul.f32 %v5716_v25, %v9926_v6  ;;  %v5812_v31 = vld [vmem:[%s10897_s3 + $0x6f0] sm:$0xff]  ;;  %v5845_v5 = vld [vmem:[%s10897_s3 + $0x7f8] sm:$0xff]  ;;  %v10046_v25 = vld [vmem:[%s10902_s8] sm:$0xff] }
 0x777   : > { %v3526_v37 = vadd.f32 %v8864_v18, %v3490_v9  ;;  %v3361_v19 = vadd.f32 %v3329_v22, %v3262_v57  ;;  %v3033_v14 = vmul.f32 %v5748_v21, %v9942_v11  ;;  %v3034_v4 = vmul.f32 %v5749_v23, %v2969_v50  ;;  %v3166_v10 = vld [vmem:[#allocation2 + $0x117] sm:$0xff] }
 0x778   : > { %v3491_v47 = vadd.f32 %v9911_v3, %v3459_v27  ;;  %v2546_v3 = vld [vmem:[%s10897_s3 + $0xf8] sm:$0xff]  ;;  %v3132_v58 = vmul.f32 %v5780_v62, %v3067_v46  ;;  %v5844_v50 = vld [vmem:[%s10897_s3 + $0x7f0] sm:$0xff]  ;;  %v3231_v38 = vmul.f32 %v5812_v31, %v3166_v10  ;;  %v3331_v22 = vmul.f32 %v5845_v5, %v3266_v61 }
 0x779   : > { %v3544_v54 = vpack.c.bf16 %v3526_v37, %v3525_v8  ;;  %v3460_v29 = vadd.f32 %v3428_v59, %v3361_v19  ;;  %v2578_v16 = vmul.f32 %v2546_v3, %v9893_v55  ;;  %v5717_v55 = vld [vmem:[%s10897_s3 + $0x3f8] sm:$0xff]  ;;  %v3330_v63 = vmul.f32 %v5844_v50, %v3265_v56  ;;  %v3365_v8 = vld [vmem:[#allocation2 + $0x121] sm:$0xff] }
 0x77a   : > { %v3527_v40 = vadd.f32 %v8864_v18, %v3491_v47  ;;  %v2935_v7 = vmul.f32 %v5717_v55, %v2870_v17  ;;  %v5781_v17 = vld [vmem:[%s10897_s3 + $0x5f8] sm:$0xff]  ;;  %v3950_v12 = vsub.s32 5, %v11251_v35 }
 0x77b   : > { %6386 = vmatmul.mubr.msk.bf16.gmra.mrb[120].mxu1 %vm966_vm0, %v3544_v54  ;;  %v3492_v0 = vadd.f32 %v6170_v44, %v3460_v29  ;;  %v2739_v13 = vadd.f32 %v2707_v43, %v2578_v16  ;;  %v2867_v44 = vadd.f32 %v2835_v28, %v2738_v53  ;;  %v5813_v11 = vld [vmem:[%s10897_s3 + $0x6f8] sm:$0xff]  ;;  %v3133_v34 = vmul.f32 %v5781_v17, %v3068_v42  ;;  %v5876_v42 = vld [vmem:[%s10897_s3 + $0x8f0] sm:$0xff] }
 0x77c   : > { %v3232_v15 = vmul.f32 %v5813_v11, %v3167_v30  ;;  %v3364_v45 = vld [vmem:[#allocation2 + $0x119] sm:$0xff] }
 0x77d   : > { %v3528_v51 = vadd.f32 %v8864_v18, %v3492_v0  ;;  %v2868_v52 = vadd.f32 %v2836_v60, %v2739_v13  ;;  %v2966_v1 = vadd.f32 %v2934_v48, %v2867_v44  ;;  %v5877_v37 = vld [vmem:[%s10897_s3 + $0x8f8] sm:$0xff]  ;;  %v3429_v19 = vmul.f32 %v5876_v42, %v3364_v45 }
 0x77e   : > { %v3430_v47 = vmul.f32 %v5877_v37, %v3365_v8  ;;  %v6623_v37 = vld [vmem:[%s10899_s5 + $0x10] sm:$0xff]  }
 0x77f   : > { %v3545_v49 = vpack.c.bf16 %v3528_v51, %v3527_v40  ;;  %v2967_v39 = vadd.f32 %v2935_v7, %v2868_v52  ;;  %v3065_v6 = vadd.f32 %v3033_v14, %v2966_v1 }
 0x781   : > { %6389 = vmatprep.mubr.msk.bf16.mxu1 %vm966_vm0, %v3545_v49  ;;  %v3066_v33 = vadd.f32 %v3034_v4, %v2967_v39  ;;  %v3164_v24 = vadd.f32 %v3132_v58, %v3065_v6 }
 0x783   : > { %v3165_v46 = vadd.f32 %v3133_v34, %v3066_v33  ;;  %v3263_v9 = vadd.f32 %v3231_v38, %v3164_v24  ;;  %v6621_v34 = vld [vmem:[%s10899_s5] sm:$0xff]   ;;  %v6622_v24 = vld [vmem:[%s10899_s5 + $0x8] sm:$0xff]  }
 0x784   : > { %6393 = vmatprep.subr.bf16.mxu0 %v6621_v34 }
 0x785   : > { %v3264_v57 = vadd.f32 %v3232_v15, %v3165_v46  ;;  %v3362_v27 = vadd.f32 %v3330_v63, %v3263_v9  ;;  %6394 = vmatpush3.bf16.msra.mxu0 %v6621_v34 }
 0x786   : > { %6395 = vmatprep.subr.bf16.mxu0 %v6622_v24 }
 0x787   : > { %v3363_v54 = vadd.f32 %v3331_v22, %v3264_v57  ;;  %v3461_v40 = vadd.f32 %v3429_v19, %v3362_v27 }
 0x789   : > { %v3462_v3 = vadd.f32 %v3430_v47, %v3363_v54  ;;  %6396 = vmatpush3.bf16.msra.mxu0 %v6622_v24 }
 0x78a   : > { %6397 = vmatprep.subr.bf16.mxu0 %v6623_v37 }
 0x78d   : > { %6398 = vmatpush3.bf16.msra.mxu0 %v6623_v37 }
 0x7b5   : > { %v6171_v59 = vpop.f32.mrb[92].mxu0 }
 0x7b6   : > { %v6172_v29 = vpop.f32.mrb[93].mxu0 }
 0x7b7   : > { %v6173_v0 = vadd.f32 %v6172_v29, %v6171_v59  ;;  %v6174_v51 = vpop.f32.mrb[94].mxu0  ;;  %v6624_v59 = vld [vmem:[%s10899_s5 + $0x18] sm:$0xff]  }
 0x7b8   : > { %v6175_v49 = vpop.f32.mrb[95].mxu0  ;;  %6399 = vmatprep.subr.bf16.mxu0 %v6624_v59 }
 0x7b9   : > { %v3493_v2 = vadd.f32 %v6173_v0, %v3461_v40  ;;  %v6176_v32 = vadd.f32 %v6175_v49, %v6174_v51  ;;  %v11252_v0 = vld [vmem:[#allocation10_spill] sm:$0xff]  ;;  %v11253_v51 = vld [vmem:[#allocation9_spill] sm:$0xff]  ;;  %6400 = vmatpush3.bf16.msra.mxu0 %v6624_v59 }
 0x7ba   : > { %v11269_v59 = vld [vmem:[#allocation26_spill] sm:$0xff] }
 0x7bb   : > { %v3494_v41 = vadd.f32 %v6176_v32, %v3462_v3  ;;  %v3529_v36 = vadd.f32 %v8864_v18, %v3493_v2  ;;  %v11254_v2 = vld [vmem:[#allocation8_spill] sm:$0xff] }
 0x7bd   : > { %v3530_v20 = vadd.f32 %v8864_v18, %v3494_v41  ;;  %v3951_v18 = vrot.slane %v10046_v25, %v3950_v12 }
 0x7bf   : > { %v3546_v26 = vpack.c.bf16 %v3530_v20, %v3529_v36  ;;  %v11255_v36 = vld [vmem:[#allocation7_spill] sm:$0xff] }
 0x7c1   : > { %6390 = vmatmul.mubr.msk.bf16.gmra.mrb[124].mxu1 %vm966_vm0, %v3546_v26  ;;  %v11256_v26 = vld [vmem:[#allocation12_spill] sm:$0xff] }
 0x7dc   : > { %v6363_v16 = vpop.f32.mrb[96].mxu1 }
 0x7dd   : > { %3824 = vrot.lane.b32.xlu1 %v6363_v16, %s7284_s28  ;;  %v3661_v43 = vpop.f32.mrb[97].mxu1 }
 0x7de   : > { %v6364_v53 = vpop.f32.mrb[98].mxu1 }
 0x7df   : > { %v3664_v28 = vpop.f32.mrb[99].mxu1 }
 0x7e0   : > { %3822 = vrot.lane.b32.xlu0 %v3664_v28, %s7284_s28  ;;  %v11257_v28 = vld [vmem:[#allocation11_spill] sm:$0xff] }
 0x7e1   : > { %3820 = vrot.lane.b32.xlu1 %v3661_v43, %s7284_s28 }
 0x7e4   : > { %3826 = vrot.lane.b32.xlu0 %v6364_v53, %s7284_s28 }
 0x7e5   : > { %3953 = vrot.lane.b32.xlu1 %v3951_v18, %s7284_s28 }
 0x7ef   : > { %v6367_v13 = vpop.f32.mrb[100].mxu1 }
 0x7f0   : > { %v3677_v60 = vpop.f32.mrb[101].mxu1 }
 0x7f1   : > { %3828 = vrot.lane.b32.xlu0 %v3677_v60, %s7284_s28  ;;  %v6368_v55 = vpop.f32.mrb[102].mxu1 }
 0x7f2   : > { %v3680_v44 = vpop.f32.mrb[103].mxu1 }
 0x7f3   : > { %3830 = vrot.lane.b32.xlu1 %v3680_v44, %s7284_s28 }
 0x7f5   : > { %3832 = vrot.lane.b32.xlu0 %v6367_v13, %s7284_s28  ;;  %v11258_v13 = vld [vmem:[#allocation13_spill] sm:$0xff] }
 0x7f7   : > { %3834 = vrot.lane.b32.xlu1 %v6368_v55, %s7284_s28 }
 0x802   : > { %v6371_v48 = vpop.f32.mrb[104].mxu1 }
 0x803   : > { %v3693_v52 = vpop.f32.mrb[105].mxu1 }
 0x804   : > { %3836 = vrot.lane.b32.xlu0 %v3693_v52, %s7284_s28  ;;  %v6372_v7 = vpop.f32.mrb[106].mxu1 }
 0x805   : > { %v3696_v21 = vpop.f32.mrb[107].mxu1 }
 0x806   : > { %3838 = vrot.lane.b32.xlu1 %v3696_v21, %s7284_s28 }
 0x808   : > { %3840 = vrot.lane.b32.xlu0 %v6371_v48, %s7284_s28 }
 0x80a   : > { %3842 = vrot.lane.b32.xlu1 %v6372_v7, %s7284_s28  ;;  %v11259_v7 = vld [vmem:[#allocation14_spill] sm:$0xff] }
 0x812   : > { %v6375_v1 = vpop.f32.mrb[108].mxu1 }
 0x813   : > { %v3709_v23 = vpop.f32.mrb[109].mxu1 }
 0x814   : > { %3844 = vrot.lane.b32.xlu0 %v3709_v23, %s7284_s28  ;;  %v6376_v14 = vpop.f32.mrb[110].mxu1 }
 0x815   : > { %v3712_v39 = vpop.f32.mrb[111].mxu1 }
 0x816   : > { %3846 = vrot.lane.b32.xlu1 %v3712_v39, %s7284_s28  ;;  %v11261_v39 = vld [vmem:[#allocation16_spill] sm:$0xff] }
 0x818   : > { %3848 = vrot.lane.b32.xlu0 %v6375_v1, %s7284_s28  ;;  %v11260_v1 = vld [vmem:[#allocation18_spill] sm:$0xff] }
 0x81a   : > { %3850 = vrot.lane.b32.xlu1 %v6376_v14, %s7284_s28 }
 0x825   : > { %v6379_v62 = vpop.f32.mrb[112].mxu1 }
 0x826   : > { %v3725_v4 = vpop.f32.mrb[113].mxu1 }
 0x827   : > { %3852 = vrot.lane.b32.xlu0 %v3725_v4, %s7284_s28  ;;  %v6380_v6 = vpop.f32.mrb[114].mxu1 }
 0x828   : > { %v3728_v17 = vpop.f32.mrb[115].mxu1 }
 0x829   : > { %3854 = vrot.lane.b32.xlu1 %v3728_v17, %s7284_s28 }
 0x82b   : > { %3856 = vrot.lane.b32.xlu0 %v6379_v62, %s7284_s28 }
 0x82d   : > { %3858 = vrot.lane.b32.xlu1 %v6380_v6, %s7284_s28 }
 0x83a   : > { %v6383_v58 = vpop.f32.mrb[116].mxu1 }
 0x83b   : > { %v3741_v31 = vpop.f32.mrb[117].mxu1 }
 0x83c   : > { %3860 = vrot.lane.b32.xlu0 %v3741_v31, %s7284_s28  ;;  %v6384_v33 = vpop.f32.mrb[118].mxu1 }
 0x83d   : > { %v3744_v10 = vpop.f32.mrb[119].mxu1 }
 0x83e   : > { %3862 = vrot.lane.b32.xlu1 %v3744_v10, %s7284_s28  ;;  %v11263_v10 = vld [vmem:[#allocation15_spill] sm:$0xff] }
 0x840   : > { %3864 = vrot.lane.b32.xlu0 %v6383_v58, %s7284_s28  ;;  %v11262_v58 = vld [vmem:[#allocation17_spill] sm:$0xff] }
 0x842   : > { %3866 = vrot.lane.b32.xlu1 %v6384_v33, %s7284_s28 }
 0x84e   : > { %v6387_v30 = vpop.f32.mrb[120].mxu1 }
 0x84f   : > { %v3757_v11 = vpop.f32.mrb[121].mxu1  ;;  %v3825_v38 = vpop.permute.xlu1 %3824 }
 0x850   : > { %3868 = vrot.lane.b32.xlu0 %v3757_v11, %s7284_s28  ;;  %v6388_v56 = vpop.f32.mrb[122].mxu1  ;;  %v3918_v20 = vadd.f32 %v3825_v38, %v11255_v36 }
 0x851   : > { %v3760_v50 = vpop.f32.mrb[123].mxu1 }
 0x852   : > { %3870 = vrot.lane.b32.xlu1 %v3760_v50, %s7284_s28  ;;  %v3823_v15 = vpop.permute.xlu0 %3822  ;;  %v11264_v50 = vld [vmem:[#allocation21_spill] sm:$0xff] }
 0x853   : > { %v3821_v46 = vpop.permute.xlu1 %3820  ;;  %v3917_v40 = vadd.f32 %v3823_v15, %v11252_v0 }
 0x854   : > { %3872 = vrot.lane.b32.xlu0 %v6387_v30, %s7284_s28  ;;  %v3916_v49 = vadd.f32 %v3821_v46, %v11253_v51 }
 0x856   : > { %3874 = vrot.lane.b32.xlu1 %v6388_v56, %s7284_s28  ;;  %v3827_v5 = vpop.permute.xlu0 %3826 }
 0x857   : > { %v10081_v61 = vpop.permute.xlu1 %3953  ;;  %v3919_v32 = vadd.f32 %v3827_v5, %v11254_v2 }
 0x858   : > { %v10097_v43 = vadd.f32 %v10081_v61, %v3916_v49  ;;  %v10100_v12 = vadd.f32 %v10081_v61, %v3917_v40  ;;  %v10106_v55 = vadd.f32 %v10081_v61, %v3918_v20 }
 0x859   : > { %v10109_v44 = vadd.f32 %v10081_v61, %v3919_v32  ;;  %v11271_v32 = vld [vmem:[#allocation25_spill] sm:$0xff] }
 0x85a   : > { %v3988_v14 = vpack.c.bf16 %v10100_v12, %v10097_v43 }
 0x85b   : > { %v3989_v33 = vpack.c.bf16 %v10109_v44, %v10106_v55 }
 0x863   : > { %v3829_v63 = vpop.permute.xlu0 %3828 }
 0x864   : > { %v3920_v18 = vadd.f32 %v3829_v63, %v11257_v28 }
 0x865   : > { %v3831_v9 = vpop.permute.xlu1 %3830 }
 0x866   : > { %v3921_v16 = vadd.f32 %v3831_v9, %v11256_v26  ;;  %v10121_v6 = vadd.f32 %v10081_v61, %v3920_v18  ;;  %v11265_v9 = vld [vmem:[#allocation22_spill] sm:$0xff] }
 0x867   : > { %v3833_v42 = vpop.permute.xlu0 %3832 }
 0x868   : > { %v10112_v52 = vadd.f32 %v10081_v61, %v3921_v16  ;;  %v3922_v21 = vadd.f32 %v3833_v42, %v11259_v7 }
 0x869   : > { %v3835_v45 = vpop.permute.xlu1 %3834 }
 0x86a   : > { %v3923_v60 = vadd.f32 %v3835_v45, %v11258_v13  ;;  %v3990_v34 = vpack.c.bf16 %v10112_v52, %v10121_v6  ;;  %v10134_v24 = vadd.f32 %v10081_v61, %v3922_v21  ;;  %v11266_v45 = vld [vmem:[#allocation20_spill] sm:$0xff] }
 0x86c   : > { %v10124_v17 = vadd.f32 %v10081_v61, %v3923_v60  ;;  %v11275_v60 = vld [vmem:[#allocation23_spill] sm:$0xff] }
 0x86e   : > { %v3991_v15 = vpack.c.bf16 %v10124_v17, %v10134_v24 }
 0x876   : > { %v3837_v22 = vpop.permute.xlu0 %3836 }
 0x877   : > { %v3924_v31 = vadd.f32 %v3837_v22, %v11262_v58 }
 0x878   : > { %v3839_v57 = vpop.permute.xlu1 %3838 }
 0x879   : > { %v3925_v23 = vadd.f32 %v3839_v57, %v11260_v1  ;;  %v10147_v5 = vadd.f32 %v10081_v61, %v3924_v31 }
 0x87a   : > { %v3841_v27 = vpop.permute.xlu0 %3840 }
 0x87b   : > { %v3926_v30 = vadd.f32 %v3841_v27, %v11263_v10  ;;  %v10137_v56 = vadd.f32 %v10081_v61, %v3925_v23  ;;  %v11268_v27 = vld [vmem:[#allocation19_spill] sm:$0xff] }
 0x87c   : > { %v3843_v8 = vpop.permute.xlu1 %3842 }
 0x87d   : > { %v3927_v62 = vadd.f32 %v3843_v8, %v11261_v39  ;;  %v10153_v57 = vadd.f32 %v10081_v61, %v3926_v30  ;;  %v3992_v8 = vpack.c.bf16 %v10137_v56, %v10147_v5  ;;  %v11279_v30 = vld [vmem:[#allocation29_spill] sm:$0xff] }
 0x87f   : > { %v10142_v46 = vadd.f32 %v10081_v61, %v3927_v62 }
 0x886   : > { %v3845_v47 = vpop.permute.xlu0 %3844 }
 0x887   : > { %v3928_v63 = vadd.f32 %v3845_v47, %v11265_v9  ;;  %v3993_v47 = vpack.c.bf16 %v10142_v46, %v10153_v57 }
 0x888   : > { %v3847_v19 = vpop.permute.xlu1 %3846 }
 0x889   : > { %v3929_v38 = vadd.f32 %v3847_v19, %v11264_v50  ;;  %v10166_v40 = vadd.f32 %v10081_v61, %v3928_v63 }
 0x88a   : > { %v3849_v48 = vpop.permute.xlu0 %3848 }
 0x88b   : > { %v10158_v37 = vadd.f32 %v10081_v61, %v3929_v38  ;;  %v3930_v19 = vadd.f32 %v3849_v48, %v11268_v27  ;;  %v11280_v38 = vld [vmem:[#allocation30_spill] sm:$0xff] }
 0x88c   : > { %v3851_v53 = vpop.permute.xlu1 %3850 }
 0x88d   : > { %v3931_v42 = vadd.f32 %v3851_v53, %v11266_v45  ;;  %11267 = vst [vmem:[#allocation99_spill] sm:$0xff] %v10158_v37  ;;  %v3994_v16 = vpack.c.bf16 %v10158_v37, %v10166_v40  ;;  %v10177_v53 = vadd.f32 %v10081_v61, %v3930_v19 }
 0x88f   : > { %v10169_v49 = vadd.f32 %v10081_v61, %v3931_v42  ;;  %11273 = vst [vmem:[#allocation71_spill] sm:$0xff] %v10177_v53 }
 0x891   : > { %11270 = vst [vmem:[#allocation74_spill] sm:$0xff] %v10169_v49  ;;  %v3995_v21 = vpack.c.bf16 %v10169_v49, %v10177_v53 }
 0x894   : > { %v6391_v54 = vpop.f32.mrb[124].mxu1 }
 0x895   : > { %v3773_v29 = vpop.f32.mrb[125].mxu1 }
 0x896   : > { %3876 = vrot.lane.b32.xlu0 %v3773_v29, %s7284_s28  ;;  %v6392_v3 = vpop.f32.mrb[126].mxu1 }
 0x897   : > { %v3776_v41 = vpop.f32.mrb[127].mxu1 }
 0x898   : > { %3878 = vrot.lane.b32.xlu1 %v3776_v41, %s7284_s28  ;;  %v11272_v41 = vld [vmem:[#allocation24_spill] sm:$0xff] }
 0x899   : > { %v3853_v11 = vpop.permute.xlu0 %3852 }
 0x89a   : > { %3880 = vrot.lane.b32.xlu0 %v6391_v54, %s7284_s28 }
 0x89b   : > { %v3855_v4 = vpop.permute.xlu1 %3854 }
 0x89c   : > { %3882 = vrot.lane.b32.xlu1 %v6392_v3, %s7284_s28  ;;  %v3933_v54 = vadd.f32 %v3855_v4, %v11269_v59  ;;  %v3932_v3 = vadd.f32 %v3853_v11, %v11271_v32 }
 0x89d   : > { %v3857_v29 = vpop.permute.xlu0 %3856 }
 0x89e   : > { %4032 = vrot.lane.b32.xlu0 %v3988_v14, %s7284_s28  ;;  %v10180_v18 = vadd.f32 %v10081_v61, %v3933_v54  ;;  %v3934_v48 = vadd.f32 %v3857_v29, %v11275_v60  ;;  %v10187_v23 = vadd.f32 %v10081_v61, %v3932_v3  ;;  %v11284_v29 = vld [vmem:[#allocation28_spill] sm:$0xff] }
 0x89f   : > { %v3859_v22 = vpop.permute.xlu1 %3858 }
 0x8a0   : > { %4034 = vrot.lane.b32.xlu1 %v3989_v33, %s7284_s28  ;;  %v3935_v20 = vadd.f32 %v3859_v22, %v11272_v41  ;;  %11274 = vst [vmem:[#allocation76_spill] sm:$0xff] %v10180_v18  ;;  %11276 = vst [vmem:[#allocation72_spill] sm:$0xff] %v10187_v23  ;;  %v3996_v62 = vpack.c.bf16 %v10180_v18, %v10187_v23  ;;  %v10196_v4 = vadd.f32 %v10081_v61, %v3934_v48 }
 0x8a2   : > { %4036 = vrot.lane.b32.xlu0 %v3990_v34, %s7284_s28  ;;  %v10190_v14 = vadd.f32 %v10081_v61, %v3935_v20  ;;  %11278 = vst [vmem:[#allocation77_spill] sm:$0xff] %v10196_v4 }
 0x8a4   : > { %4038 = vrot.lane.b32.xlu1 %v3991_v15, %s7284_s28  ;;  %11277 = vst [vmem:[#allocation73_spill] sm:$0xff] %v10190_v14  ;;  %v3997_v31 = vpack.c.bf16 %v10190_v14, %v10196_v4 }
 0x8a6   : > { %4040 = vrot.lane.b32.xlu0 %v3992_v8, %s7284_s28  ;;  %v11283_v8 = vld [vmem:[#allocation27_spill] sm:$0xff] }
 0x8a8   : > { %4042 = vrot.lane.b32.xlu1 %v3993_v47, %s7284_s28 }
 0x8aa   : > { %4044 = vrot.lane.b32.xlu0 %v3994_v16, %s7284_s28 }
 0x8ac   : > { %4046 = vrot.lane.b32.xlu1 %v3995_v21, %s7284_s28 }
 0x8ae   : > { %4048 = vrot.lane.b32.xlu0 %v3996_v62, %s7284_s28  ;;  %v3861_v33 = vpop.permute.xlu0 %3860  ;;  %v11287_v62 = vld [vmem:[#allocation33_spill] sm:$0xff] }
 0x8af   : > { %v3936_v11 = vadd.f32 %v3861_v33, %v11279_v30 }
 0x8b0   : > { %4050 = vrot.lane.b32.xlu1 %v3997_v31, %s7284_s28  ;;  %v3863_v34 = vpop.permute.xlu1 %3862 }
 0x8b1   : > { %v3937_v15 = vadd.f32 %v3863_v34, %v11280_v38  ;;  %v10206_v42 = vadd.f32 %v10081_v61, %v3936_v11  ;;  %v11288_v11 = vld [vmem:[#allocation34_spill] sm:$0xff] }
 0x8b2   : > { %v3865_v63 = vpop.permute.xlu0 %3864 }
 0x8b3   : > { %11281 = vst [vmem:[#allocation79_spill] sm:$0xff] %v10206_v42  ;;  %v10209_v22 = vadd.f32 %v10081_v61, %v3937_v15  ;;  %v3938_v19 = vadd.f32 %v3865_v63, %v11283_v8 }
 0x8b4   : > { %v3867_v54 = vpop.permute.xlu1 %3866 }
 0x8b5   : > { %11282 = vst [vmem:[#allocation75_spill] sm:$0xff] %v10209_v22  ;;  %v3998_v47 = vpack.c.bf16 %v10209_v22, %v10206_v42  ;;  %v3939_v3 = vadd.f32 %v3867_v54, %v11284_v29  ;;  %v10216_v20 = vadd.f32 %v10081_v61, %v3938_v19  ;;  %v11291_v54 = vld [vmem:[#allocation31_spill] sm:$0xff] }
 0x8b7   : > { %11285 = vst [vmem:[#allocation78_spill] sm:$0xff] %v10216_v20  ;;  %v10219_v16 = vadd.f32 %v10081_v61, %v3939_v3  ;;  %4052 = vrot.lane.b32.xlu0 %v3998_v47, %s7284_s28 }
 0x8b9   : > { %11286 = vst [vmem:[#allocation81_spill] sm:$0xff] %v10219_v16  ;;  %v3999_v48 = vpack.c.bf16 %v10219_v16, %v10216_v20 }
 0x8bb   : > { %4054 = vrot.lane.b32.xlu1 %v3999_v48, %s7284_s28  ;;  %v11292_v48 = vld [vmem:[#allocation32_spill] sm:$0xff] }
 0x8c2   : > { %v3869_v21 = vpop.permute.xlu0 %3868 }
 0x8c3   : > { %v3940_v31 = vadd.f32 %v3869_v21, %v11287_v62  ;;  %v11296_v62 = vld [vmem:[#allocation38_spill] sm:$0xff] }
 0x8c4   : > { %v3871_v33 = vpop.permute.xlu1 %3870 }
 0x8c5   : > { %v3941_v34 = vadd.f32 %v3871_v33, %v11288_v11  ;;  %v10228_v63 = vadd.f32 %v10081_v61, %v3940_v31 }
 0x8c6   : > { %v3873_v15 = vpop.permute.xlu0 %3872 }
 0x8c7   : > { %11289 = vst [vmem:[#allocation82_spill] sm:$0xff] %v10228_v63  ;;  %v10231_v19 = vadd.f32 %v10081_v61, %v3941_v34  ;;  %v3942_v47 = vadd.f32 %v3873_v15, %v11291_v54  ;;  %v11295_v15 = vld [vmem:[#allocation37_spill] sm:$0xff] }
 0x8c8   : > { %v3875_v3 = vpop.permute.xlu1 %3874 }
 0x8c9   : > { %11290 = vst [vmem:[#allocation80_spill] sm:$0xff] %v10231_v19  ;;  %v4000_v29 = vpack.c.bf16 %v10231_v19, %v10228_v63  ;;  %v3943_v8 = vadd.f32 %v3875_v3, %v11292_v48  ;;  %v10238_v21 = vadd.f32 %v10081_v61, %v3942_v47  ;;  %v11299_v48 = vld [vmem:[#allocation35_spill] sm:$0xff] }
 0x8cb   : > { %11293 = vst [vmem:[#allocation83_spill] sm:$0xff] %v10238_v21  ;;  %v10241_v33 = vadd.f32 %v10081_v61, %v3943_v8  ;;  %4056 = vrot.lane.b32.xlu0 %v4000_v29, %s7284_s28 }
 0x8cd   : > { %11294 = vst [vmem:[#allocation84_spill] sm:$0xff] %v10241_v33  ;;  %v4001_v31 = vpack.c.bf16 %v10241_v33, %v10238_v21 }
 0x8cf   : > { %4058 = vrot.lane.b32.xlu1 %v4001_v31, %s7284_s28  ;;  %v11300_v31 = vld [vmem:[#allocation36_spill] sm:$0xff] }
 0x908   : > { %v3877_v34 = vpop.permute.xlu0 %3876 }
 0x909   : > { %v3944_v54 = vadd.f32 %v3877_v34, %v11295_v15 }
 0x90a   : > { %v3879_v11 = vpop.permute.xlu1 %3878 }
 0x90b   : > { %v3945_v19 = vadd.f32 %v3879_v11, %v11296_v62  ;;  %v10250_v47 = vadd.f32 %v10081_v61, %v3944_v54 }
 0x90c   : > { %v3881_v3 = vpop.permute.xlu0 %3880 }
 0x90d   : > { %11297 = vst [vmem:[#allocation40_spill] sm:$0xff] %v10250_v47  ;;  %v10253_v8 = vadd.f32 %v10081_v61, %v3945_v19  ;;  %v3946_v29 = vadd.f32 %v3881_v3, %v11299_v48 }
 0x90e   : > { %v3883_v63 = vpop.permute.xlu1 %3882 }
 0x90f   : > { %11298 = vst [vmem:[#allocation42_spill] sm:$0xff] %v10253_v8  ;;  %v4002_v33 = vpack.c.bf16 %v10253_v8, %v10250_v47  ;;  %v3947_v21 = vadd.f32 %v3883_v63, %v11300_v31  ;;  %v10260_v34 = vadd.f32 %v10081_v61, %v3946_v29 }
 0x910   : > { %v4033_v38 = vpop.permute.xlu0 %4032 }
 0x911   : > { %11301 = vst [vmem:[#allocation39_spill] sm:$0xff] %v10260_v34  ;;  %v10263_v11 = vadd.f32 %v10081_v61, %v3947_v21  ;;  %4060 = vrot.lane.b32.xlu0 %v4002_v33, %s7284_s28  ;;  %6401 = vmatprep.mubr.msk.bf16.mxu0 %vm966_vm0, %v4033_v38 }
 0x912   : > { %v4035_v19 = vpop.permute.xlu1 %4034 }
 0x913   : > { %11302 = vst [vmem:[#allocation43_spill] sm:$0xff] %v10263_v11  ;;  %v4003_v54 = vpack.c.bf16 %v10263_v11, %v10260_v34  ;;  %6402 = vmatmul.mubr.msk.bf16.vlgmr.msra.gmra.mrb[96].mxu0 %vm966_vm0, %v4035_v19 }
 0x914   : > { %v4037_v3 = vpop.permute.xlu0 %4036 }
 0x915   : > { %4062 = vrot.lane.b32.xlu1 %v4003_v54, %s7284_s28  ;;  %6405 = vmatprep.mubr.msk.bf16.mxu0 %vm966_vm0, %v4037_v3 }
 0x916   : > { %v4039_v63 = vpop.permute.xlu1 %4038 }
 0x918   : > { %v4041_v29 = vpop.permute.xlu0 %4040 }
 0x91a   : > { %v4043_v61 = vpop.permute.xlu1 %4042 }
 0x91b   : > { %6406 = vmatmul.mubr.msk.bf16.gmra.mrb[100].mxu0 %vm966_vm0, %v4039_v63 }
 0x91c   : > { %6409 = vmatprep.mubr.msk.bf16.mxu0 %vm966_vm0, %v4041_v29  ;;  %v4045_v21 = vpop.permute.xlu0 %4044 }
 0x91e   : > { %v4047_v38 = vpop.permute.xlu1 %4046 }
 0x920   : > { %v4049_v33 = vpop.permute.xlu0 %4048 }
 0x922   : > { %v4051_v19 = vpop.permute.xlu1 %4050 }
 0x923   : > { %6410 = vmatmul.mubr.msk.bf16.gmra.mrb[104].mxu0 %vm966_vm0, %v4043_v61 }
 0x924   : > { %6413 = vmatprep.mubr.msk.bf16.mxu0 %vm966_vm0, %v4045_v21 }
 0x929   : > { %v4053_v54 = vpop.permute.xlu0 %4052 }
 0x92b   : > { %6414 = vmatmul.mubr.msk.bf16.gmra.mrb[108].mxu0 %vm966_vm0, %v4047_v38  ;;  %v6625_v38 = vld [vmem:[%s10900_s6] sm:$0xff]  }
 0x92c   : > { %6417 = vmatprep.mubr.msk.bf16.mxu0 %vm966_vm0, %v4049_v33  ;;  %6433 = vmatprep.subr.bf16.mxu1 %v6625_v38  ;;  %v6626_v33 = vld [vmem:[%s10900_s6 + $0x8] sm:$0xff]  }
 0x92d   : > { %v4055_v3 = vpop.permute.xlu1 %4054  ;;  %6434 = vmatpush3.bf16.msra.mxu1 %v6625_v38 }
 0x92e   : > { %6435 = vmatprep.subr.bf16.mxu1 %v6626_v33 }
 0x931   : > { %6436 = vmatpush3.bf16.msra.mxu1 %v6626_v33 }
 0x933   : > { %6418 = vmatmul.mubr.msk.bf16.gmra.mrb[112].mxu0 %vm966_vm0, %v4051_v19  ;;  %v6627_v19 = vld [vmem:[%s10900_s6 + $0x10] sm:$0xff]  }
 0x934   : > { %6421 = vmatprep.mubr.msk.bf16.mxu0 %vm966_vm0, %v4053_v54  ;;  %6437 = vmatprep.subr.bf16.mxu1 %v6627_v19  ;;  %v6628_v54 = vld [vmem:[%s10900_s6 + $0x18] sm:$0xff]  }
 0x935   : > { %6438 = vmatpush3.bf16.msra.mxu1 %v6627_v19 }
 0x936   : > { %6439 = vmatprep.subr.bf16.mxu1 %v6628_v54 }
 0x939   : > { %6440 = vmatpush3.bf16.msra.mxu1 %v6628_v54 }
 0x93b   : > { %6422 = vmatmul.mubr.msk.bf16.gmra.mrb[116].mxu0 %vm966_vm0, %v4055_v3  ;;  %v6629_v3 = vld [vmem:[%s10900_s6 + $0x20] sm:$0xff]  }
 0x93c   : > { %6441 = vmatprep.subr.bf16.mxu1 %v6629_v3 }
 0x93d   : > { %v4057_v63 = vpop.permute.xlu0 %4056  ;;  %6442 = vmatpush3.bf16.msra.mxu1 %v6629_v3 }
 0x93e   : > { %6425 = vmatprep.mubr.msk.bf16.mxu0 %vm966_vm0, %v4057_v63  ;;  %v6630_v63 = vld [vmem:[%s10900_s6 + $0x28] sm:$0xff]  }
 0x93f   : > { %6443 = vmatprep.subr.bf16.mxu1 %v6630_v63 }
 0x941   : > { %v4059_v29 = vpop.permute.xlu1 %4058  ;;  %6444 = vmatpush3.bf16.msra.mxu1 %v6630_v63 }
 0x943   : > { %6426 = vmatmul.mubr.msk.bf16.gmra.mrb[120].mxu0 %vm966_vm0, %v4059_v29  ;;  %v6631_v29 = vld [vmem:[%s10900_s6 + $0x30] sm:$0xff]  }
 0x944   : > { %6445 = vmatprep.subr.bf16.mxu1 %v6631_v29 }
 0x945   : > { %6446 = vmatpush3.bf16.msra.mxu1 %v6631_v29 }
 0x983   : > { %v4061_v61 = vpop.permute.xlu0 %4060 }
 0x984   : > { %6429 = vmatprep.mubr.msk.bf16.mxu0 %vm966_vm0, %v4061_v61  ;;  %v6632_v61 = vld [vmem:[%s10900_s6 + $0x38] sm:$0xff]  }
 0x985   : > { %6447 = vmatprep.subr.bf16.mxu1 %v6632_v61 }
 0x986   : > { %6448 = vmatpush3.bf16.msra.mxu1 %v6632_v61 }
 0x987   : > { %v4063_v21 = vpop.permute.xlu1 %4062 }
 0x988   : > { %6430 = vmatmul.mubr.msk.bf16.gmra.mrb[124].mxu0 %vm966_vm0, %v4063_v21  ;;  %v4014_v21 = vsub.s32 2, %v11251_v35 }
 0x98a   : > { %v10311_v38 = vrot.slane %v10046_v25, %v4014_v21 }
 0x9e6   : > { %v6403_v33 = vpop.f32.mrb[96].mxu0 }
 0x9e7   : > { %v10314_v19 = vadd.f32 %v6403_v33, %v10311_v38  ;;  %v4170_v54 = vpop.f32.mrb[97].mxu0 }
 0x9e8   : > { %v10317_v3 = vadd.f32 %v4170_v54, %v10311_v38  ;;  %v6404_v63 = vpop.f32.mrb[98].mxu0 }
 0x9e9   : > { %v4299_v29 = vsub.f32 0.0, %v10314_v19  ;;  %v10321_v31 = vadd.f32 %v6404_v63, %v10311_v38  ;;  %v4173_v61 = vpop.f32.mrb[99].mxu0 }
 0x9ea   : > { %v4297_v48 = vsub.f32 0.0, %v10317_v3  ;;  %v10325_v25 = vadd.f32 %v4173_v61, %v10311_v38 }
 0x9eb   : > { %v4333_v21 = vmul.f32 1.442695, %v4299_v29  ;;  %v4300_v33 = vsub.f32 0.0, %v10321_v31 }
 0x9ec   : > { %v4329_v62 = vmul.f32 1.442695, %v4297_v48  ;;  %v4298_v15 = vsub.f32 0.0, %v10325_v25 }
 0x9ed   : > { %6961 = vpow2.f32 %v4333_v21  ;;  %v4335_v54 = vmul.f32 1.442695, %v4300_v33 }
 0x9ee   : > { %6963 = vpow2.f32 %v4329_v62  ;;  %v4331_v11 = vmul.f32 1.442695, %v4298_v15  ;;  %v6407_v34 = vpop.f32.mrb[100].mxu0 }
 0x9ef   : > { %6965 = vpow2.f32 %v4335_v54  ;;  %v10330_v63 = vadd.f32 %v6407_v34, %v10311_v38  ;;  %v4186_v8 = vpop.f32.mrb[101].mxu0 }
 0x9f0   : > { %6967 = vpow2.f32 %v4331_v11  ;;  %v10333_v61 = vadd.f32 %v4186_v8, %v10311_v38  ;;  %v6408_v29 = vpop.f32.mrb[102].mxu0 }
 0x9f1   : > { %v4303_v47 = vsub.f32 0.0, %v10330_v63  ;;  %v10337_v48 = vadd.f32 %v6408_v29, %v10311_v38  ;;  %v4189_v21 = vpop.f32.mrb[103].mxu0 }
 0x9f2   : > { %v4301_v62 = vsub.f32 0.0, %v10333_v61  ;;  %v10341_v15 = vadd.f32 %v4189_v21, %v10311_v38 }
 0x9f3   : > { %v4341_v33 = vmul.f32 1.442695, %v4303_v47  ;;  %v4304_v34 = vsub.f32 0.0, %v10337_v48 }
 0x9f4   : > { %v4337_v54 = vmul.f32 1.442695, %v4301_v62  ;;  %v4302_v11 = vsub.f32 0.0, %v10341_v15 }
 0x9f5   : > { %6969 = vpow2.f32 %v4341_v33  ;;  %v4343_v8 = vmul.f32 1.442695, %v4304_v34 }
 0x9f6   : > { %6971 = vpow2.f32 %v4337_v54  ;;  %v4339_v16 = vmul.f32 1.442695, %v4302_v11  ;;  %v6411_v30 = vpop.f32.mrb[104].mxu0 }
 0x9f7   : > { %v6962_v20 = vpop.eup %6961  ;;  %6973 = vpow2.f32 %v4343_v8  ;;  %v10346_v29 = vadd.f32 %v6411_v30, %v10311_v38  ;;  %v4202_v41 = vpop.f32.mrb[105].mxu0 }
 0x9f8   : > { %v6964_v22 = vpop.eup %6963  ;;  %v4395_v21 = vadd.f32 1.0, %v6962_v20  ;;  %6975 = vpow2.f32 %v4339_v16  ;;  %v10349_v47 = vadd.f32 %v4202_v41, %v10311_v38  ;;  %v6412_v62 = vpop.f32.mrb[106].mxu0 }
 0x9f9   : > { %v6966_v60 = vpop.eup %6965  ;;  %v4393_v42 = vadd.f32 1.0, %v6964_v22  ;;  %v4307_v33 = vsub.f32 0.0, %v10346_v29  ;;  %v10353_v34 = vadd.f32 %v6412_v62, %v10311_v38  ;;  %v4205_v54 = vpop.f32.mrb[107].mxu0 }
 0x9fa   : > { %v6968_v11 = vpop.eup %6967  ;;  %6977 = vrcp.f32 %v4395_v21  ;;  %v4396_v30 = vadd.f32 1.0, %v6966_v60  ;;  %v4305_v8 = vsub.f32 0.0, %v10349_v47  ;;  %v10357_v20 = vadd.f32 %v4205_v54, %v10311_v38 }
 0x9fb   : > { %6979 = vrcp.f32 %v4393_v42  ;;  %v4394_v41 = vadd.f32 1.0, %v6968_v11  ;;  %v4349_v16 = vmul.f32 1.442695, %v4307_v33  ;;  %v4308_v59 = vsub.f32 0.0, %v10353_v34 }
 0x9fc   : > { %6981 = vrcp.f32 %v4396_v30  ;;  %v4345_v22 = vmul.f32 1.442695, %v4305_v8  ;;  %v4306_v14 = vsub.f32 0.0, %v10357_v20 }
 0x9fd   : > { %6983 = vrcp.f32 %v4394_v41  ;;  %v4351_v62 = vmul.f32 1.442695, %v4308_v59 }
 0x9fe   : > { %6985 = vpow2.f32 %v4349_v16  ;;  %v4347_v32 = vmul.f32 1.442695, %v4306_v14  ;;  %v6415_v21 = vpop.f32.mrb[108].mxu0 }
 0x9ff   : > { %v6970_v60 = vpop.eup %6969  ;;  %6987 = vpow2.f32 %v4345_v22  ;;  %v10362_v4 = vadd.f32 %v6415_v21, %v10311_v38  ;;  %v4218_v54 = vpop.f32.mrb[109].mxu0 }
 0xa00   : > { %v6972_v42 = vpop.eup %6971  ;;  %v4399_v11 = vadd.f32 1.0, %v6970_v60  ;;  %6989 = vpow2.f32 %v4351_v62  ;;  %v10365_v33 = vadd.f32 %v4218_v54, %v10311_v38  ;;  %v6416_v30 = vpop.f32.mrb[110].mxu0 }
 0xa01   : > { %v6974_v8 = vpop.eup %6973  ;;  %v4397_v45 = vadd.f32 1.0, %v6972_v42  ;;  %6991 = vpow2.f32 %v4347_v32  ;;  %v4311_v59 = vsub.f32 0.0, %v10362_v4  ;;  %v10369_v14 = vadd.f32 %v6416_v30, %v10311_v38  ;;  %v4221_v41 = vpop.f32.mrb[111].mxu0 }
 0xa02   : > { %v6976_v16 = vpop.eup %6975  ;;  %6993 = vrcp.f32 %v4399_v11  ;;  %v4400_v22 = vadd.f32 1.0, %v6974_v8  ;;  %v4309_v21 = vsub.f32 0.0, %v10365_v33  ;;  %v10373_v62 = vadd.f32 %v4221_v41, %v10311_v38 }
 0xa03   : > { %6995 = vrcp.f32 %v4397_v45  ;;  %v4398_v60 = vadd.f32 1.0, %v6976_v16  ;;  %v4357_v54 = vmul.f32 1.442695, %v4311_v59  ;;  %v4312_v42 = vsub.f32 0.0, %v10369_v14 }
 0xa04   : > { %v6978_v32 = vpop.eup %6977  ;;  %6997 = vrcp.f32 %v4400_v22  ;;  %v4353_v18 = vmul.f32 1.442695, %v4309_v21  ;;  %v4310_v30 = vsub.f32 0.0, %v10373_v62 }
 0xa05   : > { %v6980_v27 = vpop.eup %6979  ;;  %6999 = vrcp.f32 %v4398_v60  ;;  %v4359_v23 = vmul.f32 1.442695, %v4312_v42  ;;  %v4459_v41 = vmul.f32 %v6978_v32, %v10314_v19 }
 0xa06   : > { %v6982_v11 = vpop.eup %6981  ;;  %7001 = vpow2.f32 %v4357_v54  ;;  %v4355_v8 = vmul.f32 1.442695, %v4310_v30  ;;  %v6419_v50 = vpop.f32.mrb[112].mxu0  ;;  %v4457_v21 = vmul.f32 %v6980_v27, %v10317_v3 }
 0xa07   : > { %v6984_v49 = vpop.eup %6983  ;;  %v4460_v45 = vmul.f32 %v6982_v11, %v10321_v31  ;;  %7003 = vpow2.f32 %v4353_v18  ;;  %v10380_v59 = vadd.f32 %v6419_v50, %v10311_v38  ;;  %v4234_v16 = vpop.f32.mrb[113].mxu0 }
 0xa08   : > { %v6986_v22 = vpop.eup %6985  ;;  %v4458_v60 = vmul.f32 %v6984_v49, %v10325_v25  ;;  %7005 = vpow2.f32 %v4359_v23  ;;  %v10385_v54 = vadd.f32 %v4234_v16, %v10311_v38  ;;  %v6420_v42 = vpop.f32.mrb[114].mxu0 }
 0xa09   : > { %v6988_v30 = vpop.eup %6987  ;;  %v4490_v9 = vpack.c.bf16 %v4460_v45, %v4459_v41  ;;  %v4403_v19 = vadd.f32 1.0, %v6986_v22  ;;  %7007 = vpow2.f32 %v4355_v8  ;;  %v4315_v18 = vsub.f32 0.0, %v10380_v59  ;;  %v4237_v31 = vpop.f32.mrb[115].mxu0 }
 0xa0a   : > { %v6990_v50 = vpop.eup %6989  ;;  %v4401_v32 = vadd.f32 1.0, %v6988_v30  ;;  %v4313_v11 = vsub.f32 0.0, %v10385_v54  ;;  %v10390_v27 = vadd.f32 %v6420_v42, %v10311_v38  ;;  %v10393_v49 = vadd.f32 %v4237_v31, %v10311_v38 }
 0xa0b   : > { %v6992_v23 = vpop.eup %6991  ;;  %7009 = vrcp.f32 %v4403_v19  ;;  %v4404_v3 = vadd.f32 1.0, %v6990_v50  ;;  %v4365_v25 = vmul.f32 1.442695, %v4315_v18  ;;  %v4489_v41 = vpack.c.bf16 %v4458_v60, %v4457_v21 }
 0xa0c   : > { %v6994_v45 = vpop.eup %6993  ;;  %7011 = vrcp.f32 %v4401_v32  ;;  %v4402_v8 = vadd.f32 1.0, %v6992_v23  ;;  %v4361_v16 = vmul.f32 1.442695, %v4313_v11  ;;  %v4316_v22 = vsub.f32 0.0, %v10390_v27 }
 0xa0d   : > { %v6996_v30 = vpop.eup %6995  ;;  %7013 = vrcp.f32 %v4404_v3  ;;  %v4314_v53 = vsub.f32 0.0, %v10393_v49  ;;  %6449 = vmatprep.mubr.bf16.mxu1 %v4489_v41  ;;  %v4463_v31 = vmul.f32 %v6994_v45, %v10330_v63 }
 0xa0e   : > { %v6998_v42 = vpop.eup %6997  ;;  %7015 = vrcp.f32 %v4402_v8  ;;  %v4367_v39 = vmul.f32 1.442695, %v4316_v22  ;;  %6450 = vmatmul.mubr.bf16.vlgmr.msra.gmra.mrb[128].mxu1 %v4490_v9  ;;  %v6423_v19 = vpop.f32.mrb[116].mxu0  ;;  %v4461_v21 = vmul.f32 %v6996_v30, %v10333_v61 }
 0xa0f   : > { %v7000_v18 = vpop.eup %6999  ;;  %7017 = vpow2.f32 %v4365_v25  ;;  %v4363_v60 = vmul.f32 1.442695, %v4314_v53  ;;  %v10400_v50 = vadd.f32 %v6423_v19, %v10311_v38  ;;  %v4250_v32 = vpop.f32.mrb[117].mxu0  ;;  %v4464_v23 = vmul.f32 %v6998_v42, %v10337_v48 }
 0xa10   : > { %v7002_v11 = vpop.eup %7001  ;;  %v4462_v3 = vmul.f32 %v7000_v18, %v10341_v15  ;;  %7019 = vpow2.f32 %v4361_v16  ;;  %v10405_v63 = vadd.f32 %v4250_v32, %v10311_v38  ;;  %v6424_v9 = vpop.f32.mrb[118].mxu0 }
 0xa11   : > { %v7004_v41 = vpop.eup %7003  ;;  %v4407_v45 = vadd.f32 1.0, %v7002_v11  ;;  %7021 = vpow2.f32 %v4367_v39  ;;  %v4319_v61 = vsub.f32 0.0, %v10400_v50  ;;  %v10409_v53 = vadd.f32 %v6424_v9, %v10311_v38  ;;  %v4253_v25 = vpop.f32.mrb[119].mxu0 }
 0xa12   : > { %v7006_v8 = vpop.eup %7005  ;;  %v4405_v22 = vadd.f32 1.0, %v7004_v41  ;;  %7023 = vpow2.f32 %v4363_v60  ;;  %v4317_v48 = vsub.f32 0.0, %v10405_v63  ;;  %v10413_v15 = vadd.f32 %v4253_v25, %v10311_v38 }
 0xa13   : > { %v7008_v16 = vpop.eup %7007  ;;  %7025 = vrcp.f32 %v4407_v45  ;;  %v4408_v30 = vadd.f32 1.0, %v7006_v8  ;;  %v4373_v42 = vmul.f32 1.442695, %v4319_v61  ;;  %v4320_v39 = vsub.f32 0.0, %v10409_v53 }
 0xa14   : > { %7027 = vrcp.f32 %v4405_v22  ;;  %v4406_v19 = vadd.f32 1.0, %v7008_v16  ;;  %v4369_v18 = vmul.f32 1.442695, %v4317_v48  ;;  %v4318_v32 = vsub.f32 0.0, %v10413_v15 }
 0xa15   : > { %v7010_v11 = vpop.eup %7009  ;;  %7029 = vrcp.f32 %v4408_v30  ;;  %v4375_v9 = vmul.f32 1.442695, %v4320_v39  ;;  %v4491_v60 = vpack.c.bf16 %v4462_v3, %v4461_v21  ;;  %v4492_v41 = vpack.c.bf16 %v4464_v23, %v4463_v31 }
 0xa16   : > { %v7012_v37 = vpop.eup %7011  ;;  %7031 = vrcp.f32 %v4406_v19  ;;  %v4371_v25 = vmul.f32 1.442695, %v4318_v32  ;;  %v6427_v45 = vpop.f32.mrb[120].mxu0  ;;  %v4467_v8 = vmul.f32 %v7010_v11, %v10346_v29 }
 0xa17   : > { %v7014_v10 = vpop.eup %7013  ;;  %7033 = vpow2.f32 %v4373_v42  ;;  %6453 = vmatprep.mubr.bf16.mxu1 %v4491_v60  ;;  %v4465_v22 = vmul.f32 %v7012_v37, %v10349_v47  ;;  %v10420_v48 = vadd.f32 %v6427_v45, %v10311_v38  ;;  %v4266_v16 = vpop.f32.mrb[121].mxu0 }
 0xa18   : > { %v7016_v61 = vpop.eup %7015  ;;  %7035 = vpow2.f32 %v4369_v18  ;;  %6454 = vmatmul.mubr.bf16.gmra.mrb[132].mxu1 %v4492_v41  ;;  %v4468_v31 = vmul.f32 %v7014_v10, %v10353_v34  ;;  %v10425_v3 = vadd.f32 %v4266_v16, %v10311_v38  ;;  %v6428_v30 = vpop.f32.mrb[122].mxu0 }
 0xa19   : > { %v7018_v21 = vpop.eup %7017  ;;  %v4466_v23 = vmul.f32 %v7016_v61, %v10357_v20  ;;  %7037 = vpow2.f32 %v4375_v9  ;;  %v4323_v37 = vsub.f32 0.0, %v10420_v48  ;;  %v10429_v47 = vadd.f32 %v6428_v30, %v10311_v38  ;;  %v4269_v39 = vpop.f32.mrb[123].mxu0 }
 0xa1a   : > { %v7020_v42 = vpop.eup %7019  ;;  %v4411_v29 = vadd.f32 1.0, %v7018_v21  ;;  %7039 = vpow2.f32 %v4371_v25  ;;  %v4321_v10 = vsub.f32 0.0, %v10425_v3  ;;  %v10433_v34 = vadd.f32 %v4269_v39, %v10311_v38 }
 0xa1b   : > { %v7022_v19 = vpop.eup %7021  ;;  %v4409_v18 = vadd.f32 1.0, %v7020_v42  ;;  %v4493_v20 = vpack.c.bf16 %v4466_v23, %v4465_v22  ;;  %v4381_v9 = vmul.f32 1.442695, %v4323_v37  ;;  %v4324_v60 = vsub.f32 0.0, %v10429_v47 }
 0xa1c   : > { %v7024_v32 = vpop.eup %7023  ;;  %7041 = vrcp.f32 %v4411_v29  ;;  %v4412_v11 = vadd.f32 1.0, %v7022_v19  ;;  %v4377_v45 = vmul.f32 1.442695, %v4321_v10  ;;  %v4322_v61 = vsub.f32 0.0, %v10433_v34 }
 0xa1d   : > { %v7026_v41 = vpop.eup %7025  ;;  %7043 = vrcp.f32 %v4409_v18  ;;  %v4410_v25 = vadd.f32 1.0, %v7024_v32  ;;  %6457 = vmatprep.mubr.bf16.mxu1 %v4493_v20  ;;  %v4383_v21 = vmul.f32 1.442695, %v4324_v60  ;;  %v4494_v30 = vpack.c.bf16 %v4468_v31, %v4467_v8 }
 0xa1e   : > { %v7028_v16 = vpop.eup %7027  ;;  %7045 = vrcp.f32 %v4412_v11  ;;  %v4379_v22 = vmul.f32 1.442695, %v4322_v61  ;;  %v4471_v29 = vmul.f32 %v7026_v41, %v10362_v4 }
 0xa1f   : > { %v7030_v42 = vpop.eup %7029  ;;  %7047 = vrcp.f32 %v4410_v25  ;;  %v4469_v19 = vmul.f32 %v7028_v16, %v10365_v33 }
 0xa20   : > { %v7032_v23 = vpop.eup %7031  ;;  %v4472_v37 = vmul.f32 %v7030_v42, %v10369_v14  ;;  %7049 = vpow2.f32 %v4381_v9  ;;  %6458 = vmatmul.mubr.bf16.gmra.mrb[136].mxu1 %v4494_v30 }
 0xa21   : > { %v7034_v39 = vpop.eup %7033  ;;  %v4470_v18 = vmul.f32 %v7032_v23, %v10373_v62  ;;  %7051 = vpow2.f32 %v4377_v45 }
 0xa22   : > { %v7036_v10 = vpop.eup %7035  ;;  %v4415_v20 = vadd.f32 1.0, %v7034_v39  ;;  %7053 = vpow2.f32 %v4383_v21  ;;  %v4496_v8 = vpack.c.bf16 %v4472_v37, %v4471_v29 }
 0xa23   : > { %v7038_v31 = vpop.eup %7037  ;;  %v4413_v32 = vadd.f32 1.0, %v7036_v10  ;;  %7055 = vpow2.f32 %v4379_v22  ;;  %v4495_v11 = vpack.c.bf16 %v4470_v18, %v4469_v19 }
 0xa24   : > { %v7040_v60 = vpop.eup %7039  ;;  %7057 = vrcp.f32 %v4415_v20  ;;  %v4416_v4 = vadd.f32 1.0, %v7038_v31 }
 0xa25   : > { %7059 = vrcp.f32 %v4413_v32  ;;  %v4414_v14 = vadd.f32 1.0, %v7040_v60  ;;  %6461 = vmatprep.mubr.bf16.mxu1 %v4495_v11 }
 0xa26   : > { %v7042_v9 = vpop.eup %7041  ;;  %7061 = vrcp.f32 %v4416_v4 }
 0xa27   : > { %v7044_v33 = vpop.eup %7043  ;;  %7063 = vrcp.f32 %v4414_v14  ;;  %v4475_v25 = vmul.f32 %v7042_v9, %v10380_v59 }
 0xa28   : > { %v7046_v62 = vpop.eup %7045  ;;  %6462 = vmatmul.mubr.bf16.gmra.mrb[140].mxu1 %v4496_v8  ;;  %v4473_v16 = vmul.f32 %v7044_v33, %v10385_v54 }
 0xa29   : > { %v7048_v41 = vpop.eup %7047  ;;  %v4476_v45 = vmul.f32 %v7046_v62, %v10390_v27 }
 0xa2a   : > { %v7050_v61 = vpop.eup %7049  ;;  %v4474_v21 = vmul.f32 %v7048_v41, %v10393_v49 }
 0xa2b   : > { %v7052_v30 = vpop.eup %7051  ;;  %v4419_v42 = vadd.f32 1.0, %v7050_v61  ;;  %v4498_v22 = vpack.c.bf16 %v4476_v45, %v4475_v25 }
 0xa2c   : > { %v7054_v23 = vpop.eup %7053  ;;  %v4417_v29 = vadd.f32 1.0, %v7052_v30  ;;  %v4497_v37 = vpack.c.bf16 %v4474_v21, %v4473_v16 }
 0xa2d   : > { %v7056_v39 = vpop.eup %7055  ;;  %7065 = vrcp.f32 %v4419_v42  ;;  %v4420_v19 = vadd.f32 1.0, %v7054_v23 }
 0xa2e   : > { %v7058_v18 = vpop.eup %7057  ;;  %7067 = vrcp.f32 %v4417_v29  ;;  %v4418_v10 = vadd.f32 1.0, %v7056_v39  ;;  %6465 = vmatprep.mubr.bf16.mxu1 %v4497_v37 }
 0xa2f   : > { %v7060_v59 = vpop.eup %7059  ;;  %7069 = vrcp.f32 %v4420_v19  ;;  %v4479_v49 = vmul.f32 %v7058_v18, %v10400_v50 }
 0xa30   : > { %v7062_v27 = vpop.eup %7061  ;;  %7071 = vrcp.f32 %v4418_v10  ;;  %6466 = vmatmul.mubr.bf16.gmra.mrb[144].mxu1 %v4498_v22  ;;  %v4477_v8 = vmul.f32 %v7060_v59, %v10405_v63 }
 0xa31   : > { %v7064_v54 = vpop.eup %7063  ;;  %v4480_v20 = vmul.f32 %v7062_v27, %v10409_v53 }
 0xa32   : > { %v4478_v31 = vmul.f32 %v7064_v54, %v10413_v15 }
 0xa33   : > { %v4500_v32 = vpack.c.bf16 %v4480_v20, %v4479_v49 }
 0xa34   : > { %v4499_v11 = vpack.c.bf16 %v4478_v31, %v4477_v8 }
 0xa36   : > { %6469 = vmatprep.mubr.bf16.mxu1 %v4499_v11 }
 0xa37   : > { %v7066_v60 = vpop.eup %7065 }
 0xa38   : > { %v7068_v4 = vpop.eup %7067  ;;  %6470 = vmatmul.mubr.bf16.gmra.mrb[148].mxu1 %v4500_v32  ;;  %v4483_v33 = vmul.f32 %v7066_v60, %v10420_v48 }
 0xa39   : > { %v7070_v14 = vpop.eup %7069  ;;  %v4481_v50 = vmul.f32 %v7068_v4, %v10425_v3 }
 0xa3a   : > { %v7072_v9 = vpop.eup %7071  ;;  %v4484_v62 = vmul.f32 %v7070_v14, %v10429_v47 }
 0xa3b   : > { %v4482_v53 = vmul.f32 %v7072_v9, %v10433_v34 }
 0xa3c   : > { %v4502_v41 = vpack.c.bf16 %v4484_v62, %v4483_v33  ;;  %v6633_v33 = vld [vmem:[%s10901_s7] sm:$0xff]   ;;  %v6634_v62 = vld [vmem:[%s10901_s7 + $0x8] sm:$0xff]  }
 0xa3d   : > { %v4501_v63 = vpack.c.bf16 %v4482_v53, %v4481_v50  ;;  %6481 = vmatprep.subr.bf16.mxu0 %v6633_v33  ;;  %6529 = vmatprep.subr.bf16.mxu1 %v6633_v33  ;;  %v6635_v50 = vld [vmem:[%s10901_s7 + $0x10] sm:$0xff]   ;;  %v6636_v53 = vld [vmem:[%s10901_s7 + $0x18] sm:$0xff]  }
 0xa3e   : > { %6482 = vmatpush3.bf16.msra.mxu0 %v6633_v33  ;;  %6537 = vmatpush3.bf16.msra.mxu1 %v6633_v33 }
 0xa3f   : > { %6473 = vmatprep.mubr.bf16.mxu1 %v4501_v63  ;;  %6483 = vmatprep.subr.bf16.mxu0 %v6634_v62  ;;  %v6638_v63 = vld [vmem:[%s10901_s7 + $0x28] sm:$0xff]  }
 0xa40   : > { %6474 = vmatmul.mubr.bf16.gmra.mrb[152].mxu1 %v4502_v41  ;;  %6530 = vmatprep.subr.bf16.mxu1 %v6634_v62  ;;  %v6637_v41 = vld [vmem:[%s10901_s7 + $0x20] sm:$0xff]  }
 0xa42   : > { %6484 = vmatpush3.bf16.msra.mxu0 %v6634_v62  ;;  %6538 = vmatpush3.bf16.msra.mxu1 %v6634_v62 }
 0xa43   : > { %6485 = vmatprep.subr.bf16.mxu0 %v6635_v50  ;;  %6531 = vmatprep.subr.bf16.mxu1 %v6635_v50 }
 0xa46   : > { %6486 = vmatpush3.bf16.msra.mxu0 %v6635_v50  ;;  %6539 = vmatpush3.bf16.msra.mxu1 %v6635_v50 }
 0xa47   : > { %6487 = vmatprep.subr.bf16.mxu0 %v6636_v53  ;;  %6532 = vmatprep.subr.bf16.mxu1 %v6636_v53 }
 0xa4a   : > { %6488 = vmatpush3.bf16.msra.mxu0 %v6636_v53  ;;  %6540 = vmatpush3.bf16.msra.mxu1 %v6636_v53 }
 0xa4b   : > { %6489 = vmatprep.subr.bf16.mxu0 %v6637_v41  ;;  %6533 = vmatprep.subr.bf16.mxu1 %v6637_v41 }
 0xa4e   : > { %6490 = vmatpush3.bf16.msra.mxu0 %v6637_v41  ;;  %6541 = vmatpush3.bf16.msra.mxu1 %v6637_v41 }
 0xa4f   : > { %6491 = vmatprep.subr.bf16.mxu0 %v6638_v63  ;;  %6534 = vmatprep.subr.bf16.mxu1 %v6638_v63 }
 0xa52   : > { %6492 = vmatpush3.bf16.msra.mxu0 %v6638_v63  ;;  %6542 = vmatpush3.bf16.msra.mxu1 %v6638_v63 }
 0xa5b   : > { %v6431_v15 = vpop.f32.mrb[124].mxu0 }
 0xa5c   : > { %v4291_v25 = vadd.f32 %v6431_v15, %v10311_v38  ;;  %v4282_v45 = vpop.f32.mrb[125].mxu0  ;;  %v6639_v15 = vld [vmem:[%s10901_s7 + $0x30] sm:$0xff]  }
 0xa5d   : > { %v4283_v61 = vadd.f32 %v4282_v45, %v10311_v38  ;;  %v6432_v16 = vpop.f32.mrb[126].mxu0  ;;  %6493 = vmatprep.subr.bf16.mxu0 %v6639_v15  ;;  %6535 = vmatprep.subr.bf16.mxu1 %v6639_v15 }
 0xa5e   : > { %v4327_v21 = vsub.f32 0.0, %v4291_v25  ;;  %v4294_v48 = vadd.f32 %v6432_v16, %v10311_v38  ;;  %v4285_v30 = vpop.f32.mrb[127].mxu0  ;;  %6494 = vmatpush3.bf16.msra.mxu0 %v6639_v15  ;;  %6543 = vmatpush3.bf16.msra.mxu1 %v6639_v15  ;;  %v4892_v16 = vsub.s32 6, %v11251_v35 }
 0xa5f   : > { %v4325_v47 = vsub.f32 0.0, %v4283_v61  ;;  %v4286_v3 = vadd.f32 %v4285_v30, %v10311_v38  ;;  %v10488_v30 = vld [vmem:[%s10902_s8] sm:$0xff] }
 0xa60   : > { %v4389_v42 = vmul.f32 1.442695, %v4327_v21  ;;  %v4328_v34 = vsub.f32 0.0, %v4294_v48 }
 0xa61   : > { %v4385_v22 = vmul.f32 1.442695, %v4325_v47  ;;  %v4326_v23 = vsub.f32 0.0, %v4286_v3  ;;  %v4893_v47 = vrot.slane %v10488_v30, %v4892_v16 }
 0xa62   : > { %7073 = vpow2.f32 %v4389_v42  ;;  %v4391_v29 = vmul.f32 1.442695, %v4328_v34 }
 0xa63   : > { %7075 = vpow2.f32 %v4385_v22  ;;  %v4387_v37 = vmul.f32 1.442695, %v4326_v23 }
 0xa64   : > { %7077 = vpow2.f32 %v4391_v29 }
 0xa65   : > { %7079 = vpow2.f32 %v4387_v37 }
 0xa6c   : > { %v7074_v39 = vpop.eup %7073 }
 0xa6d   : > { %v7076_v19 = vpop.eup %7075  ;;  %v4423_v18 = vadd.f32 1.0, %v7074_v39 }
 0xa6e   : > { %v7078_v10 = vpop.eup %7077  ;;  %v4421_v59 = vadd.f32 1.0, %v7076_v19 }
 0xa6f   : > { %v7080_v27 = vpop.eup %7079  ;;  %7081 = vrcp.f32 %v4423_v18  ;;  %v4424_v54 = vadd.f32 1.0, %v7078_v10 }
 0xa70   : > { %7083 = vrcp.f32 %v4421_v59  ;;  %v4422_v38 = vadd.f32 1.0, %v7080_v27 }
 0xa71   : > { %7085 = vrcp.f32 %v4424_v54 }
 0xa72   : > { %7087 = vrcp.f32 %v4422_v38 }
 0xa79   : > { %v7082_v49 = vpop.eup %7081 }
 0xa7a   : > { %v7084_v20 = vpop.eup %7083  ;;  %v4487_v32 = vmul.f32 %v7082_v49, %v4291_v25  ;;  %v6640_v25 = vld [vmem:[%s10901_s7 + $0x38] sm:$0xff]  }
 0xa7b   : > { %v7086_v8 = vpop.eup %7085  ;;  %v4485_v60 = vmul.f32 %v7084_v20, %v4283_v61  ;;  %6495 = vmatprep.subr.bf16.mxu0 %v6640_v25  ;;  %6536 = vmatprep.subr.bf16.mxu1 %v6640_v25 }
 0xa7c   : > { %v7088_v31 = vpop.eup %7087  ;;  %v4488_v11 = vmul.f32 %v7086_v8, %v4294_v48  ;;  %6496 = vmatpush3.bf16.msra.mxu0 %v6640_v25  ;;  %6544 = vmatpush3.bf16.msra.mxu1 %v6640_v25 }
 0xa7d   : > { %v4486_v4 = vmul.f32 %v7088_v31, %v4286_v3 }
 0xa7e   : > { %v4504_v14 = vpack.c.bf16 %v4488_v11, %v4487_v32 }
 0xa7f   : > { %v4503_v9 = vpack.c.bf16 %v4486_v4, %v4485_v60 }
 0xa81   : > { %6477 = vmatprep.mubr.bf16.mxu1 %v4503_v9 }
 0xa82   : > { %6478 = vmatmul.mubr.bf16.gmra.mrb[156].mxu1 %v4504_v14 }
 0xae1   : > { %v6451_v45 = vpop.f32.mrb[128].mxu1 }
 0xae2   : > { %4766 = vrot.lane.b32.xlu0 %v6451_v45, %s7284_s28  ;;  %v4603_v61 = vpop.f32.mrb[129].mxu1 }
 0xae3   : > { %v6452_v21 = vpop.f32.mrb[130].mxu1 }
 0xae4   : > { %v4606_v48 = vpop.f32.mrb[131].mxu1 }
 0xae5   : > { %4764 = vrot.lane.b32.xlu1 %v4606_v48, %s7284_s28 }
 0xae6   : > { %4762 = vrot.lane.b32.xlu0 %v4603_v61, %s7284_s28 }
 0xae9   : > { %4768 = vrot.lane.b32.xlu1 %v6452_v21, %s7284_s28 }
 0xaea   : > { %4895 = vrot.lane.b32.xlu0 %v4893_v47, %s7284_s28 }
 0xaeb   : > { %v6455_v3 = vpop.f32.mrb[132].mxu1 }
 0xaec   : > { %v4619_v42 = vpop.f32.mrb[133].mxu1 }
 0xaed   : > { %v6456_v34 = vpop.f32.mrb[134].mxu1  ;;  %4770 = vrot.lane.b32.xlu1 %v4619_v42, %s7284_s28 }
 0xaee   : > { %v4622_v22 = vpop.f32.mrb[135].mxu1 }
 0xaef   : > { %4772 = vrot.lane.b32.xlu0 %v4622_v22, %s7284_s28 }
 0xaf1   : > { %4774 = vrot.lane.b32.xlu1 %v6455_v3, %s7284_s28 }
 0xaf3   : > { %v6459_v23 = vpop.f32.mrb[136].mxu1  ;;  %4776 = vrot.lane.b32.xlu0 %v6456_v34, %s7284_s28 }
 0xaf4   : > { %v4635_v29 = vpop.f32.mrb[137].mxu1 }
 0xaf5   : > { %v6460_v37 = vpop.f32.mrb[138].mxu1  ;;  %4778 = vrot.lane.b32.xlu1 %v4635_v29, %s7284_s28 }
 0xaf6   : > { %v4638_v39 = vpop.f32.mrb[139].mxu1 }
 0xaf7   : > { %4780 = vrot.lane.b32.xlu0 %v4638_v39, %s7284_s28 }
 0xaf9   : > { %4782 = vrot.lane.b32.xlu1 %v6459_v23, %s7284_s28 }
 0xafb   : > { %v6463_v19 = vpop.f32.mrb[140].mxu1  ;;  %4784 = vrot.lane.b32.xlu0 %v6460_v37, %s7284_s28 }
 0xafc   : > { %v4651_v18 = vpop.f32.mrb[141].mxu1 }
 0xafd   : > { %v6464_v10 = vpop.f32.mrb[142].mxu1  ;;  %4786 = vrot.lane.b32.xlu1 %v4651_v18, %s7284_s28 }
 0xafe   : > { %v4654_v59 = vpop.f32.mrb[143].mxu1 }
 0xaff   : > { %4788 = vrot.lane.b32.xlu0 %v4654_v59, %s7284_s28 }
 0xb01   : > { %4790 = vrot.lane.b32.xlu1 %v6463_v19, %s7284_s28 }
 0xb03   : > { %v6467_v27 = vpop.f32.mrb[144].mxu1  ;;  %4792 = vrot.lane.b32.xlu0 %v6464_v10, %s7284_s28 }
 0xb04   : > { %v4667_v54 = vpop.f32.mrb[145].mxu1 }
 0xb05   : > { %v6468_v38 = vpop.f32.mrb[146].mxu1  ;;  %4794 = vrot.lane.b32.xlu1 %v4667_v54, %s7284_s28 }
 0xb06   : > { %v4670_v49 = vpop.f32.mrb[147].mxu1 }
 0xb07   : > { %4796 = vrot.lane.b32.xlu0 %v4670_v49, %s7284_s28 }
 0xb09   : > { %4798 = vrot.lane.b32.xlu1 %v6467_v27, %s7284_s28 }
 0xb0b   : > { %v6471_v20 = vpop.f32.mrb[148].mxu1  ;;  %4800 = vrot.lane.b32.xlu0 %v6468_v38, %s7284_s28 }
 0xb0c   : > { %v4683_v8 = vpop.f32.mrb[149].mxu1 }
 0xb0d   : > { %v6472_v31 = vpop.f32.mrb[150].mxu1  ;;  %4802 = vrot.lane.b32.xlu1 %v4683_v8, %s7284_s28 }
 0xb0e   : > { %v4686_v32 = vpop.f32.mrb[151].mxu1 }
 0xb0f   : > { %4804 = vrot.lane.b32.xlu0 %v4686_v32, %s7284_s28 }
 0xb11   : > { %4806 = vrot.lane.b32.xlu1 %v6471_v20, %s7284_s28 }
 0xb13   : > { %v6475_v11 = vpop.f32.mrb[152].mxu1  ;;  %4808 = vrot.lane.b32.xlu0 %v6472_v31, %s7284_s28 }
 0xb14   : > { %v4699_v60 = vpop.f32.mrb[153].mxu1 }
 0xb15   : > { %v6476_v4 = vpop.f32.mrb[154].mxu1  ;;  %4810 = vrot.lane.b32.xlu1 %v4699_v60, %s7284_s28 }
 0xb16   : > { %v4702_v14 = vpop.f32.mrb[155].mxu1 }
 0xb17   : > { %4812 = vrot.lane.b32.xlu0 %v4702_v14, %s7284_s28 }
 0xb19   : > { %4814 = vrot.lane.b32.xlu1 %v6475_v11, %s7284_s28 }
 0xb1b   : > { %4816 = vrot.lane.b32.xlu0 %v6476_v4, %s7284_s28 }
 0xb54   : > { %v4767_v9 = vpop.permute.xlu0 %4766 }
 0xb55   : > { %v6479_v33 = vpop.f32.mrb[156].mxu1  ;;  %v4860_v15 = vadd.f32 %v4767_v9, %v10106_v55 }
 0xb56   : > { %v4715_v62 = vpop.f32.mrb[157].mxu1 }
 0xb57   : > { %v4765_v50 = vpop.permute.xlu1 %4764  ;;  %4818 = vrot.lane.b32.xlu1 %v4715_v62, %s7284_s28  ;;  %v6480_v53 = vpop.f32.mrb[158].mxu1 }
 0xb58   : > { %v4763_v41 = vpop.permute.xlu0 %4762  ;;  %v4718_v63 = vpop.f32.mrb[159].mxu1  ;;  %v4859_v25 = vadd.f32 %v4765_v50, %v10100_v12  ;;  %v11304_v50 = vld [vmem:[#allocation99_spill] sm:$0xff] }
 0xb59   : > { %4820 = vrot.lane.b32.xlu0 %v4718_v63, %s7284_s28  ;;  %v4858_v45 = vadd.f32 %v4763_v41, %v10097_v43  ;;  %v11305_v41 = vld [vmem:[#allocation16_spill] sm:$0xff] }
 0xb5b   : > { %v4769_v61 = vpop.permute.xlu1 %4768  ;;  %4822 = vrot.lane.b32.xlu1 %v6479_v33, %s7284_s28  ;;  %v11303_v33 = vld [vmem:[#allocation15_spill] sm:$0xff] }
 0xb5c   : > { %v4861_v16 = vadd.f32 %v4769_v61, %v10109_v44  ;;  %v10524_v21 = vpop.permute.xlu0 %4895  ;;  %v11307_v61 = vld [vmem:[#allocation22_spill] sm:$0xff] }
 0xb5d   : > { %4824 = vrot.lane.b32.xlu0 %v6480_v53, %s7284_s28  ;;  %v4898_v48 = vadd.f32 %v10524_v21, %v4858_v45  ;;  %v4899_v47 = vadd.f32 %v10524_v21, %v4859_v25  ;;  %v4900_v3 = vadd.f32 %v10524_v21, %v4860_v15  ;;  %v11306_v25 = vld [vmem:[#allocation71_spill] sm:$0xff]  ;;  %s323_s28 = sand.u32 1, %s7274_s10  }
 0xb5e   : > { %v4901_v55 = vadd.f32 %v10524_v21, %v4861_v16  ;;  %s5575_s21 = sshll.u32 %s323_s28, 8  ;;  %s10853_s29 = scalar_lea.sflag [#allocation4], %s323_s28 }
 0xb5f   : > { %v4771_v12 = vpop.permute.xlu1 %4770  ;;  %v4930_v43 = vsel %vm966_vm0, %v11253_v51, %v4898_v48  ;;  %v4931_v42 = vsel %vm966_vm0, %v11252_v0, %v4899_v47  ;;  %v4932_v44 = vsel %vm966_vm0, %v11255_v36, %v4900_v3  ;;  %v11308_v47 = vld [vmem:[#allocation74_spill] sm:$0xff]  ;;  %s10808_s22 = scalar_lea.vmem [#allocation3], %s5575_s21 }
 0xb60   : > { %v4862_v34 = vadd.f32 %v4771_v12, %v10121_v6  ;;  %v4962_v22 = vpack.c.bf16 %v4931_v42, %v4930_v43  ;;  %v4933_v23 = vsel %vm966_vm0, %v11254_v2, %v4901_v55  ;;  %v11309_v55 = vld [vmem:[#allocation21_spill] sm:$0xff]  ;;  %s5509_s24 = sshll.u32 %s10808_s22, 4  ;;  %s10848_s24 = int_to_ptr.vmem [resolvable:$true] %s5509_s24 }
 0xb61   : > { %v4773_v29 = vpop.permute.xlu0 %4772  ;;  %v4963_v37 = vpack.c.bf16 %v4933_v23, %v4932_v44  ;;  %v11311_v23 = vld [vmem:[#allocation19_spill] sm:$0xff]  ;;  %s7220_s14 = scalar_lea.vmem %s10848_s24, 4096  ;;  %p7227_p0 = scmp.lt.s32.totalorder %s10848_s24, %s7225_s16 }
 0xb62   : > { %v4902_v39 = vadd.f32 %v10524_v21, %v4862_v34  ;;  %v4863_v19 = vadd.f32 %v4773_v29, %v10112_v52  ;;  %6497 = vmatprep.mubr.bf16.mxu0 %v4962_v22  ;;  %v11310_v34 = vld [vmem:[#allocation72_spill] sm:$0xff]  ;;  %p7221_p11 = scmp.ne.s32.totalorder %s10848_s24, %s7220_s14  ;;  %p7228_p1 = scmp.lt.s32.totalorder %s7226_s17, %s7220_s14 }
 0xb63   : > { %v4775_v51 = vpop.permute.xlu1 %4774  ;;  %6498 = vmatmul.mubr.bf16.vlgmr.msra.gmra.mrb[128].mxu0 %v4963_v37 }
 0xb64   : > { %v4903_v0 = vadd.f32 %v10524_v21, %v4863_v19  ;;  %v4864_v18 = vadd.f32 %v4775_v51, %v10134_v24  ;;  %v4934_v36 = vsel %vm966_vm0, %v11257_v28, %v4902_v39  ;;  %v11312_v19 = vld [vmem:[#allocation76_spill] sm:$0xff]  ;;  %p7222_p12 = pnand %p7221_p11, %p7378_p5  ;;  %p7229_p2 = por %p7228_p1, %p7227_p0 }
 0xb65   : > { %v4777_v6 = vpop.permute.xlu0 %4776 }
 0xb66   : > { %v4904_v10 = vadd.f32 %v10524_v21, %v4864_v18  ;;  %v4865_v2 = vadd.f32 %v4777_v6, %v10124_v17  ;;  %v4935_v59 = vsel %vm966_vm0, %v11256_v26, %v4903_v0  ;;  %v11313_v0 = vld [vmem:[#allocation20_spill] sm:$0xff]  ;;  %p7223_p13 = pneg %p7222_p12 }
 0xb67   : > { %v4779_v27 = vpop.permute.xlu1 %4778  ;;  %v4964_v52 = vpack.c.bf16 %v4935_v59, %v4934_v36 }
 0xb68   : > { %v4905_v54 = vadd.f32 %v10524_v21, %v4865_v2  ;;  %v4866_v38 = vadd.f32 %v4779_v27, %v10147_v5  ;;  %v4936_v24 = vsel %vm966_vm0, %v11259_v7, %v4904_v10  ;;  %v11314_v2 = vld [vmem:[#allocation77_spill] sm:$0xff]  ;;  %p7230_p3 = pnand %p7229_p2, %p7223_p13 }
 0xb69   : > { %6501 = vmatprep.mubr.bf16.mxu0 %v4964_v52  ;;  %v4781_v49 = vpop.permute.xlu0 %4780  ;;  %v11315_v27 = vld [vmem:[#allocation25_spill] sm:$0xff] }
 0xb6a   : > { %v4906_v28 = vadd.f32 %v10524_v21, %v4866_v38  ;;  %v4867_v20 = vadd.f32 %v4781_v49, %v10137_v56  ;;  %v4937_v17 = vsel %vm966_vm0, %v11258_v13, %v4905_v54 }
 0xb6b   : > { %v4783_v8 = vpop.permute.xlu1 %4782  ;;  %v4965_v26 = vpack.c.bf16 %v4937_v17, %v4936_v24  ;;  %v11316_v24 = vld [vmem:[#allocation73_spill] sm:$0xff] }
 0xb6c   : > { %v4907_v31 = vadd.f32 %v10524_v21, %v4867_v20  ;;  %v4868_v32 = vadd.f32 %v4783_v8, %v10153_v57  ;;  %v4938_v5 = vsel %vm966_vm0, %v11262_v58, %v4906_v28  ;;  %v11317_v28 = vld [vmem:[#allocation26_spill] sm:$0xff] }
 0xb6d   : > { %6502 = vmatmul.mubr.bf16.gmra.mrb[132].mxu0 %v4965_v26  ;;  %v4785_v7 = vpop.permute.xlu0 %4784 }
 0xb6e   : > { %v4908_v11 = vadd.f32 %v10524_v21, %v4868_v32  ;;  %v4869_v60 = vadd.f32 %v4785_v7, %v10142_v46  ;;  %v4939_v56 = vsel %vm966_vm0, %v11260_v1, %v4907_v31  ;;  %v11318_v31 = vld [vmem:[#allocation79_spill] sm:$0xff] }
 0xb6f   : > { %v4787_v4 = vpop.permute.xlu1 %4786  ;;  %v4966_v13 = vpack.c.bf16 %v4939_v56, %v4938_v5  ;;  %v11319_v5 = vld [vmem:[#allocation23_spill] sm:$0xff] }
 0xb70   : > { %v4909_v14 = vadd.f32 %v10524_v21, %v4869_v60  ;;  %v4870_v9 = vadd.f32 %v4787_v4, %v10166_v40  ;;  %v4940_v57 = vsel %vm966_vm0, %v11303_v33, %v4908_v11  ;;  %v11320_v56 = vld [vmem:[#allocation75_spill] sm:$0xff] }
 0xb71   : > { %6505 = vmatprep.mubr.bf16.mxu0 %v4966_v13  ;;  %v4789_v58 = vpop.permute.xlu0 %4788  ;;  %v11321_v13 = vld [vmem:[#allocation24_spill] sm:$0xff] }
 0xb72   : > { %v4910_v62 = vadd.f32 %v10524_v21, %v4870_v9  ;;  %v4871_v53 = vadd.f32 %v4789_v58, %v11304_v50  ;;  %v4941_v46 = vsel %vm966_vm0, %v11305_v41, %v4909_v14  ;;  %v11322_v58 = vld [vmem:[#allocation78_spill] sm:$0xff]  ;;  %v11323_v50 = vld [vmem:[#allocation29_spill] sm:$0xff] }
 0xb73   : > { %v4791_v63 = vpop.permute.xlu1 %4790  ;;  %v4967_v1 = vpack.c.bf16 %v4941_v46, %v4940_v57 }
 0xb74   : > { %v4911_v15 = vadd.f32 %v10524_v21, %v4871_v53  ;;  %v4872_v45 = vadd.f32 %v4791_v63, %v11306_v25  ;;  %v4942_v40 = vsel %vm966_vm0, %v11307_v61, %v4910_v62  ;;  %v11324_v63 = vld [vmem:[#allocation81_spill] sm:$0xff] }
 0xb75   : > { %6506 = vmatmul.mubr.bf16.gmra.mrb[136].mxu0 %v4967_v1  ;;  %v4793_v16 = vpop.permute.xlu0 %4792 }
 0xb76   : > { %v4912_v48 = vadd.f32 %v10524_v21, %v4872_v45  ;;  %v4873_v3 = vadd.f32 %v4793_v16, %v11308_v47  ;;  %v4943_v12 = vsel %vm966_vm0, %v11309_v55, %v4911_v15  ;;  %v11325_v15 = vld [vmem:[#allocation30_spill] sm:$0xff]  ;;  %v11327_v47 = vld [vmem:[#allocation27_spill] sm:$0xff] }
 0xb77   : > { %v4795_v43 = vpop.permute.xlu1 %4794  ;;  %v4968_v42 = vpack.c.bf16 %v4943_v12, %v4942_v40  ;;  %v11326_v16 = vld [vmem:[#allocation82_spill] sm:$0xff] }
 0xb78   : > { %v4913_v44 = vadd.f32 %v10524_v21, %v4873_v3  ;;  %v4874_v22 = vadd.f32 %v4795_v43, %v11310_v34  ;;  %v4944_v29 = vsel %vm966_vm0, %v11311_v23, %v4912_v48  ;;  %v11328_v43 = vld [vmem:[#allocation80_spill] sm:$0xff] }
 0xb79   : > { %6509 = vmatprep.mubr.bf16.mxu0 %v4968_v42  ;;  %v4797_v37 = vpop.permute.xlu0 %4796 }
 0xb7a   : > { %v4914_v39 = vadd.f32 %v10524_v21, %v4874_v22  ;;  %v4875_v51 = vadd.f32 %v4797_v37, %v11312_v19  ;;  %v4945_v18 = vsel %vm966_vm0, %v11313_v0, %v4913_v44  ;;  %v11329_v44 = vld [vmem:[#allocation28_spill] sm:$0xff]  ;;  %v11330_v37 = vld [vmem:[#allocation83_spill] sm:$0xff]  ;;  %v11331_v19 = vld [vmem:[#allocation33_spill] sm:$0xff] }
 0xb7b   : > { %v4799_v36 = vpop.permute.xlu1 %4798  ;;  %v4969_v6 = vpack.c.bf16 %v4945_v18, %v4944_v29 }
 0xb7c   : > { %v4915_v10 = vadd.f32 %v10524_v21, %v4875_v51  ;;  %v4876_v59 = vadd.f32 %v4799_v36, %v11314_v2  ;;  %v4946_v52 = vsel %vm966_vm0, %v11315_v27, %v4914_v39  ;;  %v11332_v36 = vld [vmem:[#allocation84_spill] sm:$0xff] }
 0xb7d   : > { %6510 = vmatmul.mubr.bf16.gmra.mrb[140].mxu0 %v4969_v6  ;;  %v4801_v54 = vpop.permute.xlu0 %4800 }
 0xb7e   : > { %v4916_v38 = vadd.f32 %v10524_v21, %v4876_v59  ;;  %v4877_v49 = vadd.f32 %v4801_v54, %v11316_v24  ;;  %v4947_v20 = vsel %vm966_vm0, %v11317_v28, %v4915_v10  ;;  %v11333_v10 = vld [vmem:[#allocation34_spill] sm:$0xff] }
 0xb7f   : > { %v4803_v17 = vpop.permute.xlu1 %4802  ;;  %v4970_v8 = vpack.c.bf16 %v4947_v20, %v4946_v52  ;;  %v11334_v52 = vld [vmem:[#allocation31_spill] sm:$0xff]  ;;  %v11336_v20 = vld [vmem:[#allocation40_spill] sm:$0xff] }
 0xb80   : > { %v4917_v26 = vadd.f32 %v10524_v21, %v4877_v49  ;;  %v4878_v32 = vadd.f32 %v4803_v17, %v11318_v31  ;;  %v4948_v7 = vsel %vm966_vm0, %v11319_v5, %v4916_v38  ;;  %v11335_v38 = vld [vmem:[#allocation32_spill] sm:$0xff]  ;;  %v11337_v31 = vld [vmem:[#allocation42_spill] sm:$0xff] }
 0xb81   : > { %6513 = vmatprep.mubr.bf16.mxu0 %v4970_v8  ;;  %v4805_v11 = vpop.permute.xlu0 %4804 }
 0xb82   : > { %v4918_v60 = vadd.f32 %v10524_v21, %v4878_v32  ;;  %v4879_v4 = vadd.f32 %v4805_v11, %v11320_v56  ;;  %v4949_v14 = vsel %vm966_vm0, %v11321_v13, %v4917_v26  ;;  %v11338_v11 = vld [vmem:[#allocation39_spill] sm:$0xff] }
 0xb83   : > { %v4807_v9 = vpop.permute.xlu1 %4806  ;;  %v4971_v33 = vpack.c.bf16 %v4949_v14, %v4948_v7  ;;  %v11339_v13 = vld [vmem:[#allocation43_spill] sm:$0xff] }
 0xb84   : > { %v4919_v57 = vadd.f32 %v10524_v21, %v4879_v4  ;;  %v4880_v62 = vadd.f32 %v4807_v9, %v11322_v58  ;;  %v4950_v53 = vsel %vm966_vm0, %v11323_v50, %v4918_v60  ;;  %v11340_v9 = vld [vmem:[#allocation37_spill] sm:$0xff] }
 0xb85   : > { %6514 = vmatmul.mubr.bf16.gmra.mrb[144].mxu0 %v4971_v33  ;;  %v4809_v41 = vpop.permute.xlu0 %4808 }
 0xb86   : > { %v4920_v46 = vadd.f32 %v10524_v21, %v4880_v62  ;;  %v4881_v1 = vadd.f32 %v4809_v41, %v11324_v63  ;;  %v4951_v25 = vsel %vm966_vm0, %v11325_v15, %v4919_v57  ;;  %v11341_v57 = vld [vmem:[#allocation38_spill] sm:$0xff]  ;;  %v4996_v15 = vsub.s32 3, %v11251_v35 }
 0xb87   : > { %v4811_v45 = vpop.permute.xlu1 %4810  ;;  %v4972_v61 = vpack.c.bf16 %v4951_v25, %v4950_v53  ;;  %v11342_v53 = vld [vmem:[#allocation35_spill] sm:$0xff] }
 0xb88   : > { %v4921_v40 = vadd.f32 %v10524_v21, %v4881_v1  ;;  %v4882_v48 = vadd.f32 %v4811_v45, %v11326_v16  ;;  %v4952_v3 = vsel %vm966_vm0, %v11327_v47, %v4920_v46  ;;  %v11343_v46 = vld [vmem:[#allocation36_spill] sm:$0xff]  ;;  %v10653_v25 = vrot.slane %v10488_v30, %v4996_v15 }
 0xb89   : > { %6517 = vmatprep.mubr.bf16.mxu0 %v4972_v61  ;;  %v4813_v55 = vpop.permute.xlu0 %4812 }
 0xb8a   : > { %v4922_v12 = vadd.f32 %v10524_v21, %v4882_v48  ;;  %v4883_v42 = vadd.f32 %v4813_v55, %v11328_v43  ;;  %v4953_v34 = vsel %vm966_vm0, %v11329_v44, %v4921_v40 }
 0xb8b   : > { %v4815_v22 = vpop.permute.xlu1 %4814  ;;  %v4973_v23 = vpack.c.bf16 %v4953_v34, %v4952_v3 }
 0xb8c   : > { %v4923_v29 = vadd.f32 %v10524_v21, %v4883_v42  ;;  %v4884_v39 = vadd.f32 %v4815_v22, %v11330_v37  ;;  %v4954_v51 = vsel %vm966_vm0, %v11331_v19, %v4922_v12 }
 0xb8d   : > { %6518 = vmatmul.mubr.bf16.gmra.mrb[148].mxu0 %v4973_v23  ;;  %v4817_v0 = vpop.permute.xlu0 %4816 }
 0xb8e   : > { %v4924_v18 = vadd.f32 %v10524_v21, %v4884_v39  ;;  %v4885_v6 = vadd.f32 %v4817_v0, %v11332_v36  ;;  %v4955_v2 = vsel %vm966_vm0, %v11333_v10, %v4923_v29 }
 0xb8f   : > { %v4974_v59 = vpack.c.bf16 %v4955_v2, %v4954_v51 }
 0xb90   : > { %v4925_v27 = vadd.f32 %v10524_v21, %v4885_v6  ;;  %v4956_v54 = vsel %vm966_vm0, %v11334_v52, %v4924_v18 }
 0xb91   : > { %6521 = vmatprep.mubr.bf16.mxu0 %v4974_v59 }
 0xb92   : > { %v4957_v24 = vsel %vm966_vm0, %v11335_v38, %v4925_v27 }
 0xb93   : > { %v4975_v49 = vpack.c.bf16 %v4957_v24, %v4956_v54 }
 0xb95   : > { %6522 = vmatmul.mubr.bf16.gmra.mrb[152].mxu0 %v4975_v49 }
 0xbc9   : > { %v4819_v28 = vpop.permute.xlu1 %4818 }
 0xbca   : > { %v4886_v17 = vadd.f32 %v4819_v28, %v11336_v20 }
 0xbcb   : > { %v4821_v8 = vpop.permute.xlu0 %4820 }
 0xbcc   : > { %v4926_v26 = vadd.f32 %v10524_v21, %v4886_v17  ;;  %v4887_v32 = vadd.f32 %v4821_v8, %v11337_v31 }
 0xbcd   : > { %v4823_v5 = vpop.permute.xlu1 %4822 }
 0xbce   : > { %v4927_v7 = vadd.f32 %v10524_v21, %v4887_v32  ;;  %v4888_v60 = vadd.f32 %v4823_v5, %v11338_v11  ;;  %v4958_v33 = vsel %vm966_vm0, %v11340_v9, %v4926_v26 }
 0xbcf   : > { %v4825_v56 = vpop.permute.xlu0 %4824 }
 0xbd0   : > { %v4928_v4 = vadd.f32 %v10524_v21, %v4888_v60  ;;  %v4889_v14 = vadd.f32 %v4825_v56, %v11339_v13  ;;  %v4959_v58 = vsel %vm966_vm0, %v11341_v57, %v4927_v7 }
 0xbd1   : > { %v4976_v62 = vpack.c.bf16 %v4959_v58, %v4958_v33 }
 0xbd2   : > { %v4929_v50 = vadd.f32 %v10524_v21, %v4889_v14  ;;  %v4960_v41 = vsel %vm966_vm0, %v11342_v53, %v4928_v4 }
 0xbd3   : > { %6525 = vmatprep.mubr.bf16.mxu1 %v4976_v62 }
 0xbd4   : > { %v4961_v63 = vsel %vm966_vm0, %v11343_v46, %v4929_v50 }
 0xbd5   : > { %v4977_v1 = vpack.c.bf16 %v4961_v63, %v4960_v41 }
 0xbd7   : > { %6526 = vmatmul.mubr.bf16.vlgmr.msra.gmra.mrb[160].mxu1 %v4977_v1 }
 0xc36   : > { %v6499_v45 = vpop.f32.mrb[128].mxu0 }
 0xc37   : > { %v10656_v61 = vadd.f32 %v6499_v45, %v10653_v25  ;;  %v5080_v40 = vpop.f32.mrb[129].mxu0 }
 0xc38   : > { %v10659_v21 = vadd.f32 %v5080_v40, %v10653_v25  ;;  %v6500_v16 = vpop.f32.mrb[130].mxu0 }
 0xc39   : > { %v5209_v48 = vsub.f32 0.0, %v10656_v61  ;;  %v10663_v47 = vadd.f32 %v6500_v16, %v10653_v25  ;;  %v5083_v3 = vpop.f32.mrb[131].mxu0 }
 0xc3a   : > { %v5207_v35 = vsub.f32 0.0, %v10659_v21  ;;  %v10667_v30 = vadd.f32 %v5083_v3, %v10653_v25 }
 0xc3b   : > { %v5243_v55 = vmul.f32 1.442695, %v5209_v48  ;;  %v5210_v43 = vsub.f32 0.0, %v10663_v47 }
 0xc3c   : > { %v5239_v12 = vmul.f32 1.442695, %v5207_v35  ;;  %v5208_v42 = vsub.f32 0.0, %v10667_v30 }
 0xc3d   : > { %v5245_v34 = vmul.f32 1.442695, %v5210_v43 }
 0xc3e   : > { %7089 = vpow2.f32 %v5239_v12  ;;  %v5241_v44 = vmul.f32 1.442695, %v5208_v42 }
 0xc3f   : > { %7091 = vpow2.f32 %v5243_v55 }
 0xc40   : > { %7093 = vpow2.f32 %v5241_v44  ;;  %v6503_v22 = vpop.f32.mrb[132].mxu0 }
 0xc41   : > { %v10672_v23 = vadd.f32 %v6503_v22, %v10653_v25  ;;  %v5096_v29 = vpop.f32.mrb[133].mxu0  ;;  %7095 = vpow2.f32 %v5245_v34 }
 0xc42   : > { %v10675_v37 = vadd.f32 %v5096_v29, %v10653_v25  ;;  %v6504_v39 = vpop.f32.mrb[134].mxu0 }
 0xc43   : > { %v5099_v19 = vpop.f32.mrb[135].mxu0  ;;  %v5213_v51 = vsub.f32 0.0, %v10672_v23  ;;  %v10684_v59 = vadd.f32 %v6504_v39, %v10653_v25 }
 0xc44   : > { %v5211_v0 = vsub.f32 0.0, %v10675_v37  ;;  %v10680_v18 = vadd.f32 %v5099_v19, %v10653_v25 }
 0xc45   : > { %v5251_v2 = vmul.f32 1.442695, %v5213_v51  ;;  %v5214_v8 = vsub.f32 0.0, %v10684_v59 }
 0xc46   : > { %v5247_v36 = vmul.f32 1.442695, %v5211_v0  ;;  %v5212_v6 = vsub.f32 0.0, %v10680_v18 }
 0xc47   : > { %v5253_v7 = vmul.f32 1.442695, %v5214_v8 }
 0xc48   : > { %v7090_v10 = vpop.eup %7089  ;;  %7097 = vpow2.f32 %v5247_v36  ;;  %v6507_v27 = vpop.f32.mrb[136].mxu0  ;;  %v5249_v49 = vmul.f32 1.442695, %v5212_v6 }
 0xc49   : > { %v7092_v52 = vpop.eup %7091  ;;  %v5303_v54 = vadd.f32 1.0, %v7090_v10  ;;  %v5112_v38 = vpop.f32.mrb[137].mxu0  ;;  %v10691_v5 = vadd.f32 %v6507_v27, %v10653_v25 }
 0xc4a   : > { %v7094_v24 = vpop.eup %7093  ;;  %v6508_v28 = vpop.f32.mrb[138].mxu0  ;;  %v10688_v26 = vadd.f32 %v5112_v38, %v10653_v25  ;;  %v5305_v31 = vadd.f32 1.0, %v7092_v52 }
 0xc4b   : > { %7099 = vrcp.f32 %v5303_v54  ;;  %v5304_v20 = vadd.f32 1.0, %v7094_v24  ;;  %v5115_v17 = vpop.f32.mrb[139].mxu0  ;;  %v7096_v32 = vpop.eup %7095  ;;  %v5217_v9 = vsub.f32 0.0, %v10691_v5  ;;  %v10701_v57 = vadd.f32 %v6508_v28, %v10653_v25 }
 0xc4c   : > { %7101 = vpow2.f32 %v5251_v2  ;;  %v5215_v11 = vsub.f32 0.0, %v10688_v26  ;;  %v10695_v60 = vadd.f32 %v5115_v17, %v10653_v25  ;;  %v5306_v4 = vadd.f32 1.0, %v7096_v32 }
 0xc4d   : > { %7103 = vrcp.f32 %v5304_v20  ;;  %v5259_v1 = vmul.f32 1.442695, %v5217_v9  ;;  %v5218_v45 = vsub.f32 0.0, %v10701_v57 }
 0xc4e   : > { %7105 = vpow2.f32 %v5249_v49  ;;  %v5255_v62 = vmul.f32 1.442695, %v5215_v11  ;;  %v5216_v50 = vsub.f32 0.0, %v10695_v60 }
 0xc4f   : > { %7107 = vrcp.f32 %v5305_v31  ;;  %v5261_v34 = vmul.f32 1.442695, %v5218_v45 }
 0xc50   : > { %v6511_v56 = vpop.f32.mrb[140].mxu0  ;;  %7109 = vpow2.f32 %v5253_v7  ;;  %v5257_v16 = vmul.f32 1.442695, %v5216_v50 }
 0xc51   : > { %v5128_v13 = vpop.f32.mrb[141].mxu0  ;;  %7111 = vrcp.f32 %v5306_v4  ;;  %v10725_v0 = vadd.f32 %v6511_v56, %v10653_v25 }
 0xc52   : > { %v7098_v14 = vpop.eup %7097  ;;  %v10698_v33 = vpop.f32.mrb[142].mxu0  ;;  %7113 = vpow2.f32 %v5255_v62  ;;  %v10718_v19 = vadd.f32 %v5128_v13, %v10653_v25 }
 0xc53   : > { %v5131_v58 = vpop.f32.mrb[143].mxu0  ;;  %v5307_v41 = vadd.f32 1.0, %v7098_v14  ;;  %v5221_v31 = vsub.f32 0.0, %v10725_v0 }
 0xc54   : > { %v5219_v38 = vsub.f32 0.0, %v10718_v19  ;;  %v10732_v24 = vadd.f32 %v5131_v58, %v10653_v25 }
 0xc55   : > { %v7100_v53 = vpop.eup %7099  ;;  %7115 = vrcp.f32 %v5307_v41  ;;  %v5267_v41 = vmul.f32 1.442695, %v5221_v31 }
 0xc56   : > { %v7102_v46 = vpop.eup %7101  ;;  %v5367_v63 = vmul.f32 %v7100_v53, %v10659_v21  ;;  %7117 = vpow2.f32 %v5259_v1  ;;  %v5263_v14 = vmul.f32 1.442695, %v5219_v38  ;;  %v5220_v9 = vsub.f32 0.0, %v10732_v24 }
 0xc57   : > { %v7104_v15 = vpop.eup %7103  ;;  %v5309_v44 = vadd.f32 1.0, %v7102_v46  ;;  %7119 = vpow2.f32 %v5257_v16  ;;  %v10747_v46 = vadd.f32 %v10698_v33, %v10653_v25 }
 0xc58   : > { %v7106_v40 = vpop.eup %7105  ;;  %v6515_v48 = vpop.f32.mrb[144].mxu0  ;;  %5399 = vxpose.xlu1.b32.start [1/16] %v5367_v63, 128  ;;  %v5368_v12 = vmul.f32 %v7104_v15, %v10667_v30 }
 0xc59   : > { %v5308_v3 = vadd.f32 1.0, %v7106_v40  ;;  %v10707_v35 = vadd.f32 %v6515_v48, %v10653_v25  ;;  %v5144_v55 = vpop.f32.mrb[145].mxu0  ;;  %v7108_v42 = vpop.eup %7107  ;;  %v5265_v40 = vmul.f32 1.442695, %v5220_v9 }
 0xc5a   : > { %v10711_v21 = vadd.f32 %v5144_v55, %v10653_v25  ;;  %v6516_v43 = vpop.f32.mrb[146].mxu0  ;;  %v7110_v36 = vpop.eup %7109  ;;  %v5369_v6 = vmul.f32 %v7108_v42, %v10656_v61 }
 0xc5b   : > { %v5225_v22 = vsub.f32 0.0, %v10707_v35  ;;  %v10715_v29 = vadd.f32 %v6516_v43, %v10653_v25  ;;  %v5147_v39 = vpop.f32.mrb[147].mxu0  ;;  %7121 = vrcp.f32 %v5308_v3  ;;  %v7112_v52 = vpop.eup %7111  ;;  %v5310_v20 = vadd.f32 1.0, %v7110_v36 }
 0xc5c   : > { %v5223_v30 = vsub.f32 0.0, %v10711_v21  ;;  %v10722_v51 = vadd.f32 %v5147_v39, %v10653_v25  ;;  %5400 = vxpose.xlu1.b32.cont [2/16] %v5368_v12, 128  ;;  %7123 = vpow2.f32 %v5261_v34  ;;  %v7114_v17 = vpop.eup %7113  ;;  %v5370_v8 = vmul.f32 %v7112_v52, %v10663_v47 }
 0xc5d   : > { %v5275_v10 = vmul.f32 1.442695, %v5225_v22  ;;  %v5226_v54 = vsub.f32 0.0, %v10715_v29  ;;  %7125 = vrcp.f32 %v5309_v44  ;;  %v5311_v47 = vadd.f32 1.0, %v7114_v17 }
 0xc5e   : > { %v5271_v2 = vmul.f32 1.442695, %v5223_v30  ;;  %v5224_v27 = vsub.f32 0.0, %v10722_v51  ;;  %v5222_v12 = vsub.f32 0.0, %v10747_v46 }
 0xc5f   : > { %v7116_v11 = vpop.eup %7115  ;;  %v5277_v56 = vmul.f32 1.442695, %v5226_v54 }
 0xc60   : > { %v5273_v49 = vmul.f32 1.442695, %v5224_v27  ;;  %v6519_v28 = vpop.f32.mrb[148].mxu0  ;;  %5401 = vxpose.xlu1.b32.cont [3/16] %v5369_v6, 128  ;;  %7127 = vpow2.f32 %v5271_v2  ;;  %v7118_v13 = vpop.eup %7117  ;;  %v5371_v53 = vmul.f32 %v7116_v11, %v10675_v37  ;;  %v5269_v2 = vmul.f32 1.442695, %v5222_v12 }
 0xc61   : > { %v5160_v61 = vpop.f32.mrb[149].mxu0  ;;  %7129 = vpow2.f32 %v5275_v10  ;;  %v7120_v50 = vpop.eup %7119  ;;  %v10750_v1 = vadd.f32 %v6519_v28, %v10653_v25 }
 0xc62   : > { %v10737_v32 = vadd.f32 %v5160_v61, %v10653_v25  ;;  %v6520_v7 = vpop.f32.mrb[150].mxu0  ;;  %7131 = vpow2.f32 %v5273_v49  ;;  %v5312_v37 = vadd.f32 1.0, %v7120_v50 }
 0xc63   : > { %v5163_v4 = vpop.f32.mrb[151].mxu0  ;;  %7133 = vrcp.f32 %v5310_v20  ;;  %v5229_v44 = vsub.f32 0.0, %v10750_v1  ;;  %v10759_v34 = vadd.f32 %v6520_v7, %v10653_v25 }
 0xc64   : > { %v5227_v58 = vsub.f32 0.0, %v10737_v32  ;;  %v10742_v62 = vadd.f32 %v5163_v4, %v10653_v25  ;;  %5402 = vxpose.xlu1.b32.cont [4/16] %v5370_v8, 128  ;;  %7135 = vpow2.f32 %v5277_v56 }
 0xc65   : > { %v7122_v63 = vpop.eup %7121  ;;  %7137 = vpow2.f32 %v5263_v14  ;;  %v5283_v54 = vmul.f32 1.442695, %v5229_v44  ;;  %v5230_v38 = vsub.f32 0.0, %v10759_v34 }
 0xc66   : > { %v5279_v15 = vmul.f32 1.442695, %v5227_v58  ;;  %v5228_v45 = vsub.f32 0.0, %v10742_v62  ;;  %v7124_v48 = vpop.eup %7123  ;;  %7139 = vrcp.f32 %v5311_v47  ;;  %v5372_v33 = vmul.f32 %v7122_v63, %v10680_v18 }
 0xc67   : > { %v7126_v55 = vpop.eup %7125  ;;  %7141 = vpow2.f32 %v5267_v41  ;;  %v5313_v18 = vadd.f32 1.0, %v7118_v13  ;;  %v5314_v61 = vadd.f32 1.0, %v7124_v48  ;;  %v5285_v31 = vmul.f32 1.442695, %v5230_v38 }
 0xc68   : > { %v6523_v16 = vpop.f32.mrb[152].mxu0  ;;  %5403 = vxpose.xlu1.b32.cont [5/16] %v5371_v53, 128  ;;  %7143 = vpow2.f32 %v5279_v15  ;;  %v5281_v22 = vmul.f32 1.442695, %v5228_v45  ;;  %v5373_v10 = vmul.f32 %v7126_v55, %v10672_v23 }
 0xc69   : > { %v5176_v3 = vpop.f32.mrb[153].mxu0  ;;  %7145 = vpow2.f32 %v5265_v40  ;;  %v10773_v47 = vadd.f32 %v6523_v16, %v10653_v25 }
 0xc6a   : > { %v10755_v43 = vpop.f32.mrb[154].mxu0  ;;  %v7128_v42 = vpop.eup %7127  ;;  %7147 = vrcp.f32 %v5312_v37  ;;  %v10764_v49 = vadd.f32 %v5176_v3, %v10653_v25 }
 0xc6b   : > { %v5179_v39 = vpop.f32.mrb[155].mxu0  ;;  %v7130_v30 = vpop.eup %7129  ;;  %v5319_v36 = vadd.f32 1.0, %v7128_v42  ;;  %v5233_v3 = vsub.f32 0.0, %v10773_v47  ;;  %v10781_v16 = vadd.f32 %v10755_v43, %v10653_v25 }
 0xc6c   : > { %5404 = vxpose.xlu1.b32.cont [6/16] %v5372_v33, 128  ;;  %v7132_v6 = vpop.eup %7131  ;;  %v5321_v28 = vadd.f32 1.0, %v7130_v30  ;;  %v5231_v7 = vsub.f32 0.0, %v10764_v49  ;;  %v10769_v11 = vadd.f32 %v5179_v39, %v10653_v25 }
 0xc6d   : > { %7149 = vrcp.f32 %v5319_v36  ;;  %v5320_v27 = vadd.f32 1.0, %v7132_v6  ;;  %v7134_v52 = vpop.eup %7133  ;;  %v5291_v30 = vmul.f32 1.442695, %v5233_v3  ;;  %v5234_v36 = vsub.f32 0.0, %v10781_v16 }
 0xc6e   : > { %7151 = vpow2.f32 %v5281_v22  ;;  %v7136_v20 = vpop.eup %7135  ;;  %v5374_v23 = vmul.f32 %v7134_v52, %v10684_v59  ;;  %v5287_v50 = vmul.f32 1.442695, %v5231_v7  ;;  %v5232_v53 = vsub.f32 0.0, %v10769_v11 }
 0xc6f   : > { %7153 = vrcp.f32 %v5320_v27  ;;  %v7138_v17 = vpop.eup %7137  ;;  %v5322_v4 = vadd.f32 1.0, %v7136_v20 }
 0xc70   : > { %5405 = vxpose.xlu1.b32.cont [7/16] %v5373_v10, 128  ;;  %7155 = vrcp.f32 %v5313_v18  ;;  %v7140_v8 = vpop.eup %7139  ;;  %v5315_v14 = vadd.f32 1.0, %v7138_v17  ;;  %v5289_v55 = vmul.f32 1.442695, %v5232_v53 }
 0xc71   : > { %7157 = vpow2.f32 %v5269_v2  ;;  %v7142_v56 = vpop.eup %7141  ;;  %v5375_v58 = vmul.f32 %v7140_v8, %v10688_v26 }
 0xc72   : > { %7159 = vpow2.f32 %v5283_v54  ;;  %v7144_v13 = vpop.eup %7143  ;;  %v5317_v44 = vadd.f32 1.0, %v7142_v56 }
 0xc73   : > { %7161 = vrcp.f32 %v5321_v28  ;;  %v7146_v9 = vpop.eup %7145  ;;  %v5323_v63 = vadd.f32 1.0, %v7144_v13 }
 0xc74   : > { %5406 = vxpose.xlu1.b32.cont [8/16] %v5374_v23, 128  ;;  %7163 = vrcp.f32 %v5314_v61  ;;  %v7148_v59 = vpop.eup %7147  ;;  %v5316_v45 = vadd.f32 1.0, %v7146_v9 }
 0xc75   : > { %7165 = vpow2.f32 %v5285_v31  ;;  %v5376_v26 = vmul.f32 %v7148_v59, %v10695_v60 }
 0xc76   : > { %7167 = vrcp.f32 %v5322_v4 }
 0xc77   : > { %v7150_v41 = vpop.eup %7149  ;;  %7169 = vrcp.f32 %v5315_v14 }
 0xc78   : > { %5407 = vxpose.xlu1.b32.cont [9/16] %v5375_v58, 128  ;;  %v7152_v15 = vpop.eup %7151  ;;  %v5383_v40 = vmul.f32 %v7150_v41, %v10711_v21  ;;  %7171 = vpow2.f32 %v5287_v50 }
 0xc79   : > { %v7154_v48 = vpop.eup %7153  ;;  %7173 = vrcp.f32 %v5323_v63  ;;  %v5324_v12 = vadd.f32 1.0, %v7152_v15 }
 0xc7a   : > { %v7156_v37 = vpop.eup %7155  ;;  %5431 = vxpose.xlu0.b32.start [1/16] %v5383_v40, 128  ;;  %7175 = vrcp.f32 %v5316_v45  ;;  %v5384_v21 = vmul.f32 %v7154_v48, %v10722_v51 }
 0xc7b   : > { %v7158_v33 = vpop.eup %7157  ;;  %v5377_v22 = vmul.f32 %v7156_v37, %v10691_v5  ;;  %7177 = vpow2.f32 %v5289_v55  ;;  %v5293_v5 = vmul.f32 1.442695, %v5234_v36 }
 0xc7c   : > { %5408 = vxpose.xlu1.b32.cont [10/16] %v5376_v26, 128  ;;  %v7160_v42 = vpop.eup %7159  ;;  %7179 = vrcp.f32 %v5324_v12  ;;  %v5318_v18 = vadd.f32 1.0, %v7158_v33 }
 0xc7d   : > { %v7162_v60 = vpop.eup %7161  ;;  %v5325_v43 = vadd.f32 1.0, %v7160_v42  ;;  %7181 = vrcp.f32 %v5317_v44 }
 0xc7e   : > { %v7164_v39 = vpop.eup %7163  ;;  %5432 = vxpose.xlu0.b32.cont [2/16] %v5384_v21, 128  ;;  %v5385_v10 = vmul.f32 %v7162_v60, %v10707_v35  ;;  %7183 = vpow2.f32 %v5291_v30 }
 0xc7f   : > { %v7166_v6 = vpop.eup %7165  ;;  %v5378_v51 = vmul.f32 %v7164_v39, %v10701_v57  ;;  %7185 = vrcp.f32 %v5325_v43 }
 0xc80   : > { %5409 = vxpose.xlu1.b32.cont [11/16] %v5377_v22, 128  ;;  %v7168_v2 = vpop.eup %7167  ;;  %v5326_v52 = vadd.f32 1.0, %v7166_v6  ;;  %7187 = vrcp.f32 %v5318_v18 }
 0xc81   : > { %v7170_v27 = vpop.eup %7169  ;;  %v5386_v38 = vmul.f32 %v7168_v2, %v10715_v29  ;;  %7189 = vpow2.f32 %v5293_v5 }
 0xc82   : > { %5433 = vxpose.xlu0.b32.cont [3/16] %v5385_v10, 128  ;;  %v7172_v54 = vpop.eup %7171  ;;  %v5379_v20 = vmul.f32 %v7170_v27, %v10718_v19  ;;  %7191 = vrcp.f32 %v5326_v52 }
 0xc83   : > { %v7174_v28 = vpop.eup %7173  ;;  %v5327_v35 = vadd.f32 1.0, %v7172_v54 }
 0xc84   : > { %5410 = vxpose.xlu1.b32.cont [12/16] %v5378_v51, 128  ;;  %v7176_v61 = vpop.eup %7175  ;;  %v5387_v17 = vmul.f32 %v7174_v28, %v10737_v32 }
 0xc85   : > { %v7178_v57 = vpop.eup %7177  ;;  %v5380_v8 = vmul.f32 %v7176_v61, %v10732_v24  ;;  %7193 = vrcp.f32 %v5327_v35 }
 0xc86   : > { %5434 = vxpose.xlu0.b32.cont [4/16] %v5386_v38, 128  ;;  %v7180_v23 = vpop.eup %7179  ;;  %v5328_v7 = vadd.f32 1.0, %v7178_v57 }
 0xc87   : > { %v7182_v31 = vpop.eup %7181  ;;  %v5388_v19 = vmul.f32 %v7180_v23, %v10742_v62 }
 0xc88   : > { %5411 = vxpose.xlu1.b32.cont [13/16] %v5379_v20, 128  ;;  %v7184_v29 = vpop.eup %7183  ;;  %v5381_v4 = vmul.f32 %v7182_v31, %v10725_v0  ;;  %7195 = vrcp.f32 %v5328_v7 }
 0xc89   : > { %v7186_v56 = vpop.eup %7185  ;;  %v5329_v14 = vadd.f32 1.0, %v7184_v29 }
 0xc8a   : > { %5435 = vxpose.xlu0.b32.cont [5/16] %v5387_v17, 128  ;;  %v7188_v13 = vpop.eup %7187  ;;  %v5389_v9 = vmul.f32 %v7186_v56, %v10750_v1 }
 0xc8b   : > { %v7190_v32 = vpop.eup %7189  ;;  %v5382_v58 = vmul.f32 %v7188_v13, %v10747_v46  ;;  %7197 = vrcp.f32 %v5329_v14 }
 0xc8c   : > { %5412 = vxpose.xlu1.b32.cont [14/16] %v5380_v8, 128  ;;  %v7192_v24 = vpop.eup %7191  ;;  %v5330_v59 = vadd.f32 1.0, %v7190_v32 }
 0xc8d   : > { %v5390_v62 = vmul.f32 %v7192_v24, %v10759_v34 }
 0xc8e   : > { %5436 = vxpose.xlu0.b32.cont [6/16] %v5388_v19, 128  ;;  %7199 = vrcp.f32 %v5330_v59 }
 0xc8f   : > { %v7194_v50 = vpop.eup %7193 }
 0xc90   : > { %5413 = vxpose.xlu1.b32.cont [15/16] %v5381_v4, 128  ;;  %v5391_v0 = vmul.f32 %v7194_v50, %v10764_v49 }
 0xc92   : > { %5437 = vxpose.xlu0.b32.cont [7/16] %v5389_v9, 128  ;;  %v7196_v53 = vpop.eup %7195 }
 0xc93   : > { %v5392_v41 = vmul.f32 %v7196_v53, %v10769_v11 }
 0xc94   : > { %5414 = vxpose.xlu1.b32.end [16/16] %v5382_v58, 128 }
 0xc95   : > { %v7198_v63 = vpop.eup %7197 }
 0xc96   : > { %5438 = vxpose.xlu0.b32.cont [8/16] %v5390_v62, 128  ;;  %v5393_v1 = vmul.f32 %v7198_v63, %v10773_v47 }
 0xc98   : > { %v7200_v46 = vpop.eup %7199 }
 0xc99   : > { %v5394_v15 = vmul.f32 %v7200_v46, %v10781_v16 }
 0xc9a   : > { %5439 = vxpose.xlu0.b32.cont [9/16] %v5391_v0, 128 }
 0xc9e   : > { %5440 = vxpose.xlu0.b32.cont [10/16] %v5392_v41, 128 }
 0xca2   : > { %5441 = vxpose.xlu0.b32.cont [11/16] %v5393_v1, 128 }
 0xca6   : > { %5442 = vxpose.xlu0.b32.cont [12/16] %v5394_v15, 128 }
 0xcaa   : > { %v6527_v45 = vpop.f32.mrb[160].mxu1 }
 0xcab   : > { %v5201_v34 = vadd.f32 %v6527_v45, %v10653_v25  ;;  %v5192_v40 = vpop.f32.mrb[161].mxu1 }
 0xcac   : > { %v5193_v48 = vadd.f32 %v5192_v40, %v10653_v25  ;;  %v6528_v49 = vpop.f32.mrb[162].mxu1 }
 0xcad   : > { %v5237_v26 = vsub.f32 0.0, %v5201_v34  ;;  %v5204_v37 = vadd.f32 %v6528_v49, %v10653_v25  ;;  %v5195_v11 = vpop.f32.mrb[163].mxu1 }
 0xcae   : > { %v5235_v3 = vsub.f32 0.0, %v5193_v48  ;;  %v5196_v55 = vadd.f32 %v5195_v11, %v10653_v25 }
 0xcaf   : > { %v5299_v47 = vmul.f32 1.442695, %v5237_v26  ;;  %v5238_v12 = vsub.f32 0.0, %v5204_v37 }
 0xcb0   : > { %v5295_v33 = vmul.f32 1.442695, %v5235_v3  ;;  %v5236_v42 = vsub.f32 0.0, %v5196_v55 }
 0xcb1   : > { %v5301_v44 = vmul.f32 1.442695, %v5238_v12 }
 0xcb2   : > { %7201 = vpow2.f32 %v5295_v33  ;;  %v5297_v16 = vmul.f32 1.442695, %v5236_v42 }
 0xcb3   : > { %7203 = vpow2.f32 %v5299_v47 }
 0xcb4   : > { %7205 = vpow2.f32 %v5297_v16 }
 0xcb5   : > { %7207 = vpow2.f32 %v5301_v44 }
 0xcbc   : > { %v7202_v21 = vpop.eup %7201 }
 0xcbd   : > { %v7204_v60 = vpop.eup %7203  ;;  %v5331_v22 = vadd.f32 1.0, %v7202_v21 }
 0xcbe   : > { %v7206_v39 = vpop.eup %7205  ;;  %v5333_v36 = vadd.f32 1.0, %v7204_v60 }
 0xcbf   : > { %7209 = vrcp.f32 %v5331_v22  ;;  %v5332_v30 = vadd.f32 1.0, %v7206_v39  ;;  %v7208_v25 = vpop.eup %7207 }
 0xcc0   : > { %v5334_v43 = vadd.f32 1.0, %v7208_v25 }
 0xcc1   : > { %7211 = vrcp.f32 %v5332_v30 }
 0xcc2   : > { %7213 = vrcp.f32 %v5333_v36 }
 0xcc3   : > { %7215 = vrcp.f32 %v5334_v43 }
 0xcc9   : > { %v7210_v6 = vpop.eup %7209 }
 0xcca   : > { %v5395_v18 = vmul.f32 %v7210_v6, %v5193_v48 }
 0xccb   : > { %v7212_v10 = vpop.eup %7211 }
 0xccc   : > { %5443 = vxpose.xlu0.b32.cont [13/16] %v5395_v18, 128  ;;  %v5396_v2 = vmul.f32 %v7212_v10, %v5196_v55  ;;  %v7214_v51 = vpop.eup %7213 }
 0xccd   : > { %v5397_v27 = vmul.f32 %v7214_v51, %v5201_v34  ;;  %v7216_v5 = vpop.eup %7215 }
 0xcce   : > { %v5398_v52 = vmul.f32 %v7216_v5, %v5204_v37 }
 0xcd0   : > { %5444 = vxpose.xlu0.b32.cont [14/16] %v5396_v2, 128 }
 0xcd4   : > { %5445 = vxpose.xlu0.b32.cont [15/16] %v5397_v27, 128 }
 0xcd8   : > { %5446 = vxpose.xlu0.b32.end [16/16] %v5398_v52, 128  ;;  %v5415_v54 = vpop.trf.xlu1 }
 0xcd9   : > { %5463 = vst [vmem:[%s10808_s22] sm:$0xff] %v5415_v54 }
 0xcdc   : > { %v5416_v38 = vpop.trf.xlu1 }
 0xcdd   : > { %5465 = vst [vmem:[%s10808_s22 + $0x10] sm:$0xff] %v5416_v38 }
 0xce0   : > { %v5417_v28 = vpop.trf.xlu1 }
 0xce1   : > { %5467 = vst [vmem:[%s10808_s22 + $0x20] sm:$0xff] %v5417_v28 }
 0xce4   : > { %v5418_v20 = vpop.trf.xlu1 }
 0xce5   : > { %5469 = vst [vmem:[%s10808_s22 + $0x30] sm:$0xff] %v5418_v20 }
 0xce8   : > { %v5419_v61 = vpop.trf.xlu1 }
 0xce9   : > { %5471 = vst [vmem:[%s10808_s22 + $0x40] sm:$0xff] %v5419_v61 }
 0xcec   : > { %v5420_v35 = vpop.trf.xlu1 }
 0xced   : > { %5473 = vst [vmem:[%s10808_s22 + $0x50] sm:$0xff] %v5420_v35 }
 0xcf0   : > { %v5421_v57 = vpop.trf.xlu1 }
 0xcf1   : > { %5475 = vst [vmem:[%s10808_s22 + $0x60] sm:$0xff] %v5421_v57 }
 0xcf4   : > { %v5422_v17 = vpop.trf.xlu1 }
 0xcf5   : > { %5477 = vst [vmem:[%s10808_s22 + $0x70] sm:$0xff] %v5422_v17 }
 0xcf8   : > { %v5423_v23 = vpop.trf.xlu1 }
 0xcf9   : > { %5479 = vst [vmem:[%s10808_s22 + $0x80] sm:$0xff] %v5423_v23 }
 0xcfc   : > { %v5424_v8 = vpop.trf.xlu1 }
 0xcfd   : > { %5481 = vst [vmem:[%s10808_s22 + $0x90] sm:$0xff] %v5424_v8 }
 0xd00   : > { %v5425_v31 = vpop.trf.xlu1 }
 0xd01   : > { %5483 = vst [vmem:[%s10808_s22 + $0xa0] sm:$0xff] %v5425_v31 }
 0xd04   : > { %v5426_v7 = vpop.trf.xlu1 }
 0xd05   : > { %5485 = vst [vmem:[%s10808_s22 + $0xb0] sm:$0xff] %v5426_v7 }
 0xd08   : > { %v5427_v29 = vpop.trf.xlu1 }
 0xd09   : > { %5487 = vst [vmem:[%s10808_s22 + $0xc0] sm:$0xff] %v5427_v29 }
 0xd0c   : > { %v5428_v19 = vpop.trf.xlu1 }
 0xd0d   : > { %5489 = vst [vmem:[%s10808_s22 + $0xd0] sm:$0xff] %v5428_v19 }
 0xd10   : > { %v5429_v56 = vpop.trf.xlu1 }
 0xd11   : > { %5491 = vst [vmem:[%s10808_s22 + $0xe0] sm:$0xff] %v5429_v56 }
 0xd14   : > { %v5430_v4 = vpop.trf.xlu1 }
 0xd15   : > { %5493 = vst [vmem:[%s10808_s22 + $0xf0] sm:$0xff] %v5430_v4 }
 0xd1c   : > { %v5447_v13 = vpop.trf.xlu0 }
 0xd1d   : > { %5464 = vst [vmem:[%s10808_s22 + $0x8] sm:$0xff] %v5447_v13 }
 0xd20   : > { %v5448_v14 = vpop.trf.xlu0 }
 0xd21   : > { %5466 = vst [vmem:[%s10808_s22 + $0x18] sm:$0xff] %v5448_v14 }
 0xd24   : > { %v5449_v32 = vpop.trf.xlu0 }
 0xd25   : > { %5468 = vst [vmem:[%s10808_s22 + $0x28] sm:$0xff] %v5449_v32 }
 0xd28   : > { %v5450_v9 = vpop.trf.xlu0 }
 0xd29   : > { %5470 = vst [vmem:[%s10808_s22 + $0x38] sm:$0xff] %v5450_v9 }
 0xd2c   : > { %v5451_v24 = vpop.trf.xlu0 }
 0xd2d   : > { %5472 = vst [vmem:[%s10808_s22 + $0x48] sm:$0xff] %v5451_v24 }
 0xd30   : > { %v5452_v58 = vpop.trf.xlu0 }
 0xd31   : > { %5474 = vst [vmem:[%s10808_s22 + $0x58] sm:$0xff] %v5452_v58 }
 0xd34   : > { %v5453_v59 = vpop.trf.xlu0 }
 0xd35   : > { %5476 = vst [vmem:[%s10808_s22 + $0x68] sm:$0xff] %v5453_v59 }
 0xd38   : > { %v5454_v62 = vpop.trf.xlu0 }
 0xd39   : > { %5478 = vst [vmem:[%s10808_s22 + $0x78] sm:$0xff] %v5454_v62 }
 0xd3c   : > { %v5455_v50 = vpop.trf.xlu0 }
 0xd3d   : > { %5480 = vst [vmem:[%s10808_s22 + $0x88] sm:$0xff] %v5455_v50 }
 0xd40   : > { %v5456_v0 = vpop.trf.xlu0 }
 0xd41   : > { %5482 = vst [vmem:[%s10808_s22 + $0x98] sm:$0xff] %v5456_v0 }
 0xd44   : > { %v5457_v53 = vpop.trf.xlu0 }
 0xd45   : > { %5484 = vst [vmem:[%s10808_s22 + $0xa8] sm:$0xff] %v5457_v53 }
 0xd48   : > { %v5458_v41 = vpop.trf.xlu0 }
 0xd49   : > { %5486 = vst [vmem:[%s10808_s22 + $0xb8] sm:$0xff] %v5458_v41 }
 0xd4c   : > { %v5459_v63 = vpop.trf.xlu0 }
 0xd4d   : > { %5488 = vst [vmem:[%s10808_s22 + $0xc8] sm:$0xff] %v5459_v63 }
 0xd50   : > { %v5460_v1 = vpop.trf.xlu0 }
 0xd51   : > { %5490 = vst [vmem:[%s10808_s22 + $0xd8] sm:$0xff] %v5460_v1 }
 0xd54   : > { %v5461_v46 = vpop.trf.xlu0 }
 0xd55   : > { %5492 = vst [vmem:[%s10808_s22 + $0xe8] sm:$0xff] %v5461_v46 }
 0xd58   : > { %v5462_v15 = vpop.trf.xlu0 }
 0xd59   : > { %5494 = vst [vmem:[%s10808_s22 + $0xf8] sm:$0xff] %v5462_v15 }
 0xd5a   : > { %7233 = shalt.err (!%p7230_p3)
}
 0xd5b   : > { %s7234_s28 = scalar_lea.hbm %s10846_s27, 4096  ;;  %s7238_s23 = scalar_lea.hbm %s10903_s9, 8192 }
 0xd5c   : > { %p7235_p4 = scmp.ne.s32.totalorder %s10846_s27, %s7234_s28  ;;  %p7239_p9 = scmp.lt.u32.totalorder %s10846_s27, %s10903_s9 }
 0xd5d   : > { %p7240_p10 = scmp.lt.u32.totalorder %s7238_s23, %s7234_s28  ;;  %p7242_p12 = scmp.lt.u32.totalorder %s7234_s28, %s10846_s27 }
 0xd5e   : > { %p7236_p7 = pnand %p7235_p4, %p7378_p5 }
 0xd5f   : > { %p7241_p11 = por %p7240_p10, %p7239_p9 }
 0xd60   : > { %p7237_p8 = pneg %p7236_p7 }
 0xd61   : > { %p7243_p13 = por %p7242_p12, %p7241_p11 }
 0xd63   : > { %p7244_p0 = pnand %p7243_p13, %p7237_p8 }
 0xd65   : > { %7247 = shalt.err (!%p7244_p0)
}
 0xd66   : > { %s7288_s14 = smov 256   ;;  %s7289_s13 = smov 16  }
 0xd67   : > { %6561 = dma.vmem_to_hbm [thread:$0]  (%p7378_p5), %s10848_s24, 4096, %s10846_s27, %s10853_s29, %s7288_s14, %s7288_s14, %s7289_s13  }
 0xd68 PF: > { %p6567_p1 = scmp.ge.s32.totalorder %s7282_s12, 2  ;;  %s5524_s16 = sand.u32 1, %s7270_s30  }
 0xd69   : > { %s5525_s17 = scalar_lea.sflag [#allocation4], %s5524_s16 }
 0xd6a   : > { %p6564_p2 = pnand %p6567_p1, %p7382_p6 }
 0xd6c   : > { %7265 = dma.done.wait (!%p6564_p2), %s5525_s17, 4096  }
 0xd6d   : > { %7267 = vsyncadd (!%p6564_p2), %s5525_s17, 4294963200  ;;  %p19_p3 = scmp.ge.s32.totalorder %s7365_s15, 4   ;;  %s11344_s30 = smov %s7274_s10 }
 0xd6e   : > { %s11345_s10 = smov %s7278_s11  ;;  %s11346_s11 = smov %s7376_s18 }
 0xd6f   : > { %s11347_s12 = smov %s7365_s15  ;;  %21 = sbr.rel (!%p19_p3) target bundleno = 3 (0x3), region = 99 }
 0xd76   :  { %5530 = vsyncpa [#allocation4], 1 }
 0xd77   :  { %5532 = vsyncpa [#allocation4 + $0x1], 1 }

</bundles_post_ra>
